<compile_context>
chip_gen: v7x
topology: tpu7x:2x2x1
jax: 0.10.0
libtpu: 0.0.40
codegen_flags: <defaults>
</compile_context>

<pallas_src>
import jax
import jax.numpy as jnp
import numpy as np
from jax.experimental import pallas as pl
from jax.experimental.pallas import tpu as pltpu


# ---------------- Kernel 1: fused ConvRelu + ConvTranspose2d (+ BN partial stats) ----------------
def fused_conv_deconv_kernel(x_ref, w1_ref, b1_ref, wd0_ref, wd1_ref, bd_ref,
                             y_ref, stats_ref, xs_ref, hs_ref):
    # x_ref    : (1, H, W, Cin)         bf16 NHWC input (one image)
    # w1_ref   : (9*Cin, Cmid)          bf16 im2col-packed 3x3 conv weight; K order (kh, kw, ci)
    # b1_ref   : (1, Cmid)              f32
    # wd0_ref  : (6*Cmid, N2)           bf16 deconv weight for EVEN output rows; K order (di, dj, cm), di in {0,1}
    # wd1_ref  : (6*Cmid, N2)           bf16 deconv weight for ODD  output rows; di in {1,2}
    # bd_ref   : (1, N2)                f32 deconv bias tiled over the output-column parity
    # y_ref    : (1, H, 2, W, N2)       f32 pre-BN output; axis 2 = output-row parity a,
    #                                   last axis packs (output-col parity b, padded channel)
    # stats_ref: (1, 2, N2)             f32 per-image BN sums (row 0) / sums of squares (row 1)
    # xs_ref   : VMEM (H+2, W+2, Cin)   bf16 zero-bordered copy of x            (scratch)
    # hs_ref   : VMEM (H+2, W+2, Cmid)  bf16 zero-bordered ConvRelu output      (scratch)
    _, H, W, Cin = x_ref.shape
    Cmid = hs_ref.shape[2]
    N2 = y_ref.shape[4]

    # ---- stage 1: 3x3 conv (pad=1) + bias + ReLU, entirely in VMEM ----
    # Zero only the 1-pixel border strips (every step — a program_id==0 gate would break
    # under megacore sharding); interior is fully overwritten below.
    xdt = xs_ref.dtype
    xs_ref[0:1, :, :] = jnp.zeros((1, W + 2, Cin), xdt)
    xs_ref[H + 1:H + 2, :, :] = jnp.zeros((1, W + 2, Cin), xdt)
    xs_ref[:, 0:1, :] = jnp.zeros((H + 2, 1, Cin), xdt)
    xs_ref[:, W + 1:W + 2, :] = jnp.zeros((H + 2, 1, Cin), xdt)
    xs_ref[1:H + 1, 1:W + 1, :] = x_ref[0]

    # im2col: ONE (H*W, 9*Cin) x (9*Cin, Cmid) matmul instead of 9 shallow per-tap dots.
    xcol = jnp.concatenate(
        [xs_ref[kh:kh + H, kw:kw + W, :].reshape(H * W, Cin)
         for kh in range(3) for kw in range(3)], axis=1)
    h = jnp.maximum(
        jnp.dot(xcol, w1_ref[...], preferred_element_type=jnp.float32) + b1_ref[...],
        0.0)

    hdt = hs_ref.dtype
    hs_ref[0:1, :, :] = jnp.zeros((1, W + 2, Cmid), hdt)
    hs_ref[H + 1:H + 2, :, :] = jnp.zeros((1, W + 2, Cmid), hdt)
    hs_ref[:, 0:1, :] = jnp.zeros((H + 2, 1, Cmid), hdt)
    hs_ref[:, W + 1:W + 2, :] = jnp.zeros((H + 2, 1, Cmid), hdt)
    hs_ref[1:H + 1, 1:W + 1, :] = h.reshape(H, W, Cmid).astype(hdt)

    # ---- stage 2: ConvTranspose2d(k=4, s=2, p=1) + bias ----
    # Output pixel (2i+a, 2j+b): row parity a=0 uses input-row shifts di in {0,1},
    # a=1 uses di in {1,2}; column parity b is packed into the matmul N dimension.
    # The 9 window patches are materialized once; each parity is a single
    # (H*W, 6*Cmid) x (6*Cmid, N2) matmul, written straight to y_ref.
    patches = [[hs_ref[di:di + H, dj:dj + W, :].reshape(H * W, Cmid) for dj in range(3)]
               for di in range(3)]

    y0 = jnp.dot(jnp.concatenate(patches[0] + patches[1], axis=1), wd0_ref[...],
                 preferred_element_type=jnp.float32) + bd_ref[...]
    y_ref[0, :, 0, :, :] = y0.reshape(H, W, N2)
    s_sum = jnp.sum(y0, axis=0, keepdims=True)          # BN stats stay f32 (bf16 only feeds the MXU)
    s_sq = jnp.sum(y0 * y0, axis=0, keepdims=True)

    y1 = jnp.dot(jnp.concatenate(patches[1] + patches[2], axis=1), wd1_ref[...],
                 preferred_element_type=jnp.float32) + bd_ref[...]
    y_ref[0, :, 1, :, :] = y1.reshape(H, W, N2)
    s_sum = s_sum + jnp.sum(y1, axis=0, keepdims=True)
    s_sq = s_sq + jnp.sum(y1 * y1, axis=0, keepdims=True)

    stats_ref[:, 0:1, :] = s_sum.reshape(1, 1, N2)
    stats_ref[:, 1:2, :] = s_sq.reshape(1, 1, N2)


# ---------------- Kernel 2: fused BatchNorm affine + ReLU (elementwise, in place) ----------------
def bn_relu_kernel(y_ref, scale_ref, shift_ref, o_ref):
    # y_ref/o_ref: (1, tH, 2, W, N2); scale/shift: (1, N2)
    o_ref[...] = jnp.maximum(y_ref[...] * scale_ref[...] + shift_ref[...], 0.0)


# ----------------------------- weight packing (wrapper-side glue) -----------------------------
def _pack_conv_weights(w1, dtype):
    # PyTorch OIHW (Cmid, Cin, 3, 3) -> (9*Cin, Cmid); K order (kh, kw, ci) matches the
    # in-kernel im2col concatenation order.
    Cmid, Cin = w1.shape[0], w1.shape[1]
    return jnp.transpose(w1, (2, 3, 1, 0)).reshape(9 * Cin, Cmid).astype(dtype)


def _pack_deconv_weights(wt, cout_pad, dtype):
    # PyTorch ConvTranspose2d weight (Cmid, Cout, 4, 4) = (in, out, kh, kw) -> two
    # (6*Cmid, 2*cout_pad) matrices (even / odd output rows).
    # K order (di, dj, cm); N order (column parity b, padded channel co).
    # Output pixel (2i+a, 2j+b):
    #   rows:    a=0: di=0 -> kh=3, di=1 -> kh=1 ;  a=1: di=1 -> kh=2, di=2 -> kh=0
    #   columns: b=0: dj=0 -> kw=3, dj=1 -> kw=1 ;  b=1: dj=1 -> kw=2, dj=2 -> kw=0
    Cmid, Cout = wt.shape[0], wt.shape[1]
    wt_t = jnp.transpose(wt, (2, 3, 0, 1))                  # (kh, kw, Cmid, Cout)
    zero = jnp.zeros((Cmid, cout_pad), wt.dtype)
    k_of = ({0: 3, 1: 1}, {1: 2, 2: 0})                     # same map for rows and columns

    def tap(a, di, dj):
        kh = k_of[a][di]
        cols = []
        for b in range(2):
            kw = k_of[b].get(dj)
            blk = zero if kw is None else jnp.pad(wt_t[kh, kw],
                                                  ((0, 0), (0, cout_pad - Cout)))
            cols.append(blk)
        return jnp.concatenate(cols, axis=1)                 # (Cmid, 2*cout_pad)

    def parity(a, dis):
        return jnp.concatenate([tap(a, di, dj) for di in dis for dj in range(3)], axis=0)

    return parity(0, (0, 1)).astype(dtype), parity(1, (1, 2)).astype(dtype)


# ----------------------------- VMEM budgeting helpers -----------------------------
def _vmem_limit_bytes(need_bytes):
    # Explicit scoped-VMEM budget (default is only 16/32 MiB) with headroom, capped below
    # physical capacity (128 MiB on v5e/v6e, 64 MiB on v7x).
    try:
        cap = int(pltpu.get_tpu_info().vmem_capacity_bytes) * 3 // 4
    except Exception:
        cap = 48 << 20
    return int(min(cap, max(16 << 20, int(need_bytes * 1.5))))


def _largest_divisor_leq(n, limit):
    limit = max(1, min(n, limit))
    for d in range(limit, 0, -1):
        if n % d == 0:
            return d
    return 1


# ----------------------------- Pallas wrappers -----------------------------
def fused_conv_deconv(x_nhwc, w1_k, b1_k, wd0_k, wd1_k, bd_k):
    B, H, W, Cin = x_nhwc.shape
    Cmid = w1_k.shape[1]
    N2 = wd0_k.shape[1]

    w_bytes = (9 * Cin * Cmid + 2 * 6 * Cmid * N2) * 2 + (Cmid + N2) * 4
    io_bytes = (2 * H * W * Cin * 2                       # x (double buffered, bf16)
                + 2 * (H * 2 * W * N2 * 4 + 2 * N2 * 4)   # y + stats (double buffered, f32)
                + 2 * w_bytes)
    scratch_bytes = (H + 2) * (W + 2) * (Cin + Cmid) * 2
    temp_bytes = H * W * (9 * Cin * 2 + 12 * Cmid * 2 + Cmid * 4 + 2 * N2 * 4)
    vmem = _vmem_limit_bytes(io_bytes + scratch_bytes + temp_bytes)

    return pl.pallas_call(
        fused_conv_deconv_kernel,
        out_shape=(jax.ShapeDtypeStruct((B, H, 2, W, N2), jnp.float32),
                   jax.ShapeDtypeStruct((B, 2, N2), jnp.float32)),
        grid=(B,),
        in_specs=[
            pl.BlockSpec((1, H, W, Cin), lambda i: (i, 0, 0, 0)),
            pl.BlockSpec((9 * Cin, Cmid), lambda i: (0, 0)),
            pl.BlockSpec((1, Cmid), lambda i: (0, 0)),
            pl.BlockSpec((6 * Cmid, N2), lambda i: (0, 0)),
            pl.BlockSpec((6 * Cmid, N2), lambda i: (0, 0)),
            pl.BlockSpec((1, N2), lambda i: (0, 0)),
        ],
        out_specs=(pl.BlockSpec((1, H, 2, W, N2), lambda i: (i, 0, 0, 0, 0)),
                   pl.BlockSpec((1, 2, N2), lambda i: (i, 0, 0))),
        scratch_shapes=[pltpu.VMEM((H + 2, W + 2, Cin), jnp.bfloat16),
                        pltpu.VMEM((H + 2, W + 2, Cmid), jnp.bfloat16)],
        # per-image outputs (incl. stats) -> batch axis is truly parallel (megacore-friendly)
        compiler_params=pltpu.CompilerParams(dimension_semantics=("parallel",),
                                             vmem_limit_bytes=vmem),
    )(x_nhwc, w1_k, b1_k, wd0_k, wd1_k, bd_k)


def bn_relu(y_packed, scale2, shift2):
    B, H, P, W, N2 = y_packed.shape
    # Pure HBM-bandwidth kernel: strip-tile over H (~4 MiB f32 blocks) so the pipeline gets
    # many steps and the block fits v7x's scoped VMEM; apply BN+ReLU in place via aliasing.
    row_bytes = P * W * N2 * 4
    tH = _largest_divisor_leq(H, max(1, (4 << 20) // row_bytes))
    need = 4 * tH * row_bytes + 8 * N2 * 4
    return pl.pallas_call(
        bn_relu_kernel,
        out_shape=jax.ShapeDtypeStruct(y_packed.shape, jnp.float32),
        grid=(B, H // tH),
        in_specs=[
            pl.BlockSpec((1, tH, P, W, N2), lambda b, h: (b, h, 0, 0, 0)),
            pl.BlockSpec((1, N2), lambda b, h: (0, 0)),
            pl.BlockSpec((1, N2), lambda b, h: (0, 0)),
        ],
        out_specs=pl.BlockSpec((1, tH, P, W, N2), lambda b, h: (b, h, 0, 0, 0)),
        input_output_aliases={0: 0},    # in place: no second full-size HBM buffer
        compiler_params=pltpu.CompilerParams(dimension_semantics=("parallel", "parallel"),
                                             vmem_limit_bytes=_vmem_limit_bytes(need)),
    )(y_packed, scale2, shift2)


@jax.jit
def decoder_center_forward(x_nchw, params):
    w1, b1 = params["w1"], params["b1"]          # (Cmid, Cin, 3, 3), (Cmid,)   PyTorch layout
    wt, bt = params["wt"], params["bt"]          # (Cmid, Cout, 4, 4), (Cout,)  PyTorch layout
    gamma, beta = params["gamma"], params["beta"]
    eps = 1e-5

    x = jnp.transpose(x_nchw, (0, 2, 3, 1)).astype(jnp.float32)   # NHWC
    B, H, W, Cin = x.shape
    Cmid = w1.shape[0]
    Cout = wt.shape[1]
    cout_pad = ((Cout + 63) // 64) * 64        # N2 = 2*cout_pad is a multiple of 128 (lane-dense stores)
    N2 = 2 * cout_pad

    # bf16 matmul operands (f32 accumulation in-kernel); biases / BN math stay f32.
    x_bf = x.astype(jnp.bfloat16)
    w1_k = _pack_conv_weights(w1.astype(jnp.float32), jnp.bfloat16)
    wd0_k, wd1_k = _pack_deconv_weights(wt.astype(jnp.float32), cout_pad, jnp.bfloat16)
    b1_k = b1.astype(jnp.float32).reshape(1, Cmid)
    bt_pad = jnp.pad(bt.astype(jnp.float32), (0, cout_pad - Cout))
    bd_k = jnp.tile(bt_pad.reshape(1, cout_pad), (1, 2))           # (1, N2)

    # fused ConvRelu + ConvTranspose2d; `h` never touches HBM
    y, stats = fused_conv_deconv(x_bf, w1_k, b1_k, wd0_k, wd1_k, bd_k)

    # BatchNorm batch statistics (training mode, biased variance) — tiny f32 wrapper reduction.
    s = stats.reshape(B, 2, 2, cout_pad).sum(axis=(0, 2))          # (2, cout_pad): sum, sum-of-squares
    count = jnp.float32(B * (2 * H) * (2 * W))
    mean = s[0] / count
    var = s[1] / count - mean * mean
    gamma_pad = jnp.pad(gamma.astype(jnp.float32), (0, cout_pad - Cout))
    beta_pad = jnp.pad(beta.astype(jnp.float32), (0, cout_pad - Cout))
    scale = gamma_pad / jnp.sqrt(var + eps)
    shift = beta_pad - mean * scale
    scale2 = jnp.tile(scale.reshape(1, cout_pad), (1, 2))          # match (b, co) packing
    shift2 = jnp.tile(shift.reshape(1, cout_pad), (1, 2))

    t = bn_relu(y, scale2, shift2)                                 # BN affine + ReLU, in place

    # Packed (B, H, 2, W, 2*cout_pad) is laid out exactly as NHWC (B, 2H, 2W, cout_pad):
    # the reshape is free; slice off the channel padding.
    out_nhwc = t.reshape(B, 2 * H, 2 * W, cout_pad)[..., :Cout]
    return jnp.transpose(out_nhwc, (0, 3, 1, 2))


# -------------------------- pure-JAX references (for verification) --------------------------
def reference_forward(x, w1, b1, wt, bt, gamma, beta, eps=1e-5, matmul_dtype=jnp.float32):
    # matmul_dtype=bf16 reproduces the kernel's numerics class (bf16 operands, f32 accumulation)
    # for a deliberate tight-tolerance re-baseline; f32 gives the exact PyTorch math.
    md = matmul_dtype
    h = jax.lax.conv_general_dilated(
        x.astype(md), w1.astype(md), (1, 1), ((1, 1), (1, 1)),
        dimension_numbers=("NCHW", "OIHW", "NCHW"),
        preferred_element_type=jnp.float32)
    h = jax.nn.relu(h + b1[None, :, None, None])
    wt_conv = jnp.transpose(wt, (1, 0, 2, 3))[:, :, ::-1, ::-1]
    y = jax.lax.conv_general_dilated(
        h.astype(md), wt_conv.astype(md), (1, 1), ((2, 2), (2, 2)),
        lhs_dilation=(2, 2), dimension_numbers=("NCHW", "OIHW", "NCHW"),
        preferred_element_type=jnp.float32)
    y = y + bt[None, :, None, None]
    mean = jnp.mean(y, axis=(0, 2, 3), keepdims=True)
    var = jnp.mean((y - mean) ** 2, axis=(0, 2, 3), keepdims=True)
    yn = (y - mean) / jnp.sqrt(var + eps)
    return jax.nn.relu(gamma[None, :, None, None] * yn + beta[None, :, None, None])


if __name__ == "__main__":
    B, Cin, Cmid, Cout, H, W = 2, 4, 8, 4, 16, 16

    key = jax.random.PRNGKey(0)
    kx, k1, k2, k3, k4, k5, k6 = jax.random.split(key, 7)

    x = jax.random.normal(kx, (B, Cin, H, W), dtype=jnp.float32)  # NCHW, like PyTorch

    b_conv = 1.0 / np.sqrt(Cin * 9)
    b_deconv = 1.0 / np.sqrt(Cmid * 16)
    params = {
        "w1": jax.random.uniform(k1, (Cmid, Cin, 3, 3), jnp.float32, -b_conv, b_conv),
        "b1": jax.random.uniform(k2, (Cmid,), jnp.float32, -b_conv, b_conv),
        "wt": jax.random.uniform(k3, (Cmid, Cout, 4, 4), jnp.float32, -b_deconv, b_deconv),
        "bt": jax.random.uniform(k4, (Cout,), jnp.float32, -b_deconv, b_deconv),
        "gamma": jax.random.uniform(k5, (Cout,), jnp.float32, 0.5, 1.5),
        "beta": jax.random.uniform(k6, (Cout,), jnp.float32, -0.5, 0.5),
    }

    out = decoder_center_forward(x, params)
    out = jax.block_until_ready(out)
    assert out.shape == (B, Cout, 2 * H, 2 * W), out.shape

    # Deliberate re-baseline: the kernel's matmuls use bf16 operands with f32 accumulation,
    # so the primary check is a reference with the same numerics class (tight tolerance).
    ref_bf16 = reference_forward(x, params["w1"], params["b1"], params["wt"], params["bt"],
                                 params["gamma"], params["beta"],
                                 matmul_dtype=jnp.bfloat16)
    np.testing.assert_allclose(np.asarray(out), np.asarray(ref_bf16), atol=1e-2, rtol=1e-2)

    # Sanity check against the exact f32 math (allows only bf16 quantization noise).
    ref_f32 = reference_forward(x, params["w1"], params["b1"], params["wt"], params["bt"],
                                params["gamma"], params["beta"],
                                matmul_dtype=jnp.float32)
    np.testing.assert_allclose(np.asarray(out), np.asarray(ref_f32), atol=1e-1, rtol=1e-1)

    print("KERNEL_OK")
</pallas_src>

<mosaic_0001>
module attributes {stable_mosaic.version = 11 : i64} {
  func.func @fused_conv_deconv_kernel(%arg0: i32, %arg1: memref<1x16x16x4xbf16, #tpu.memory_space<vmem>>, %arg2: memref<36x8xbf16, #tpu.memory_space<vmem>>, %arg3: memref<1x8xf32, #tpu.memory_space<vmem>>, %arg4: memref<48x128xbf16, #tpu.memory_space<vmem>>, %arg5: memref<48x128xbf16, #tpu.memory_space<vmem>>, %arg6: memref<1x128xf32, #tpu.memory_space<vmem>>, %arg7: memref<1x16x2x16x128xf32, #tpu.memory_space<vmem>>, %arg8: memref<1x2x128xf32, #tpu.memory_space<vmem>>, %arg9: memref<18x18x4xbf16, #tpu.memory_space<vmem>>, %arg10: memref<18x18x8xbf16, #tpu.memory_space<vmem>>) attributes {dimension_semantics = [#tpu.dimension_semantics<parallel>], iteration_bounds = array<i64: 2>, scalar_prefetch = 0 : i64, scratch_operands = 2 : i64, tpu.core_type = #tpu.core_type<tc>, window_params = [{transform_indices = @transform_0, window_bounds = array<i64: 1, 16, 16, 4>}, {pipeline_mode = #tpu.pipeline_mode<synchronous>, transform_indices = @transform_1, window_bounds = array<i64: 36, 8>}, {pipeline_mode = #tpu.pipeline_mode<synchronous>, transform_indices = @transform_2, window_bounds = array<i64: 1, 8>}, {pipeline_mode = #tpu.pipeline_mode<synchronous>, transform_indices = @transform_3, window_bounds = array<i64: 48, 128>}, {pipeline_mode = #tpu.pipeline_mode<synchronous>, transform_indices = @transform_4, window_bounds = array<i64: 48, 128>}, {pipeline_mode = #tpu.pipeline_mode<synchronous>, transform_indices = @transform_5, window_bounds = array<i64: 1, 128>}, {transform_indices = @transform_6, window_bounds = array<i64: 1, 16, 2, 16, 128>}, {transform_indices = @transform_7, window_bounds = array<i64: 1, 2, 128>}]} {
    %cst = arith.constant 0.000000e+00 : bf16
    %0 = vector.broadcast %cst : bf16 to vector<1x18x4xbf16>
    %c0 = arith.constant 0 : index
    %c0_0 = arith.constant 0 : index
    %c0_1 = arith.constant 0 : index
    %1 = vector.load %arg9[%c0, %c0_0, %c0_1] : memref<18x18x4xbf16, #tpu.memory_space<vmem>>, vector<1x18x4xbf16>
    tpu.vector_store %arg9[%c0, %c0_0, %c0_1], %0 {strides = array<i32>} : memref<18x18x4xbf16, #tpu.memory_space<vmem>>, vector<1x18x4xbf16>,
    %cst_2 = arith.constant 0.000000e+00 : bf16
    %2 = vector.broadcast %cst_2 : bf16 to vector<1x18x4xbf16>
    %c17 = arith.constant 17 : index
    %c0_3 = arith.constant 0 : index
    %c0_4 = arith.constant 0 : index
    %3 = vector.load %arg9[%c17, %c0_3, %c0_4] : memref<18x18x4xbf16, #tpu.memory_space<vmem>>, vector<1x18x4xbf16>
    tpu.vector_store %arg9[%c17, %c0_3, %c0_4], %2 {strides = array<i32>} : memref<18x18x4xbf16, #tpu.memory_space<vmem>>, vector<1x18x4xbf16>,
    %cst_5 = arith.constant 0.000000e+00 : bf16
    %4 = vector.broadcast %cst_5 : bf16 to vector<18x1x4xbf16>
    %c0_6 = arith.constant 0 : index
    %c0_7 = arith.constant 0 : index
    %c0_8 = arith.constant 0 : index
    %5 = vector.load %arg9[%c0_6, %c0_7, %c0_8] : memref<18x18x4xbf16, #tpu.memory_space<vmem>>, vector<18x1x4xbf16>
    tpu.vector_store %arg9[%c0_6, %c0_7, %c0_8], %4 {strides = array<i32>} : memref<18x18x4xbf16, #tpu.memory_space<vmem>>, vector<18x1x4xbf16>,
    %cst_9 = arith.constant 0.000000e+00 : bf16
    %6 = vector.broadcast %cst_9 : bf16 to vector<18x1x4xbf16>
    %c0_10 = arith.constant 0 : index
    %c17_11 = arith.constant 17 : index
    %c0_12 = arith.constant 0 : index
    %7 = vector.load %arg9[%c0_10, %c17_11, %c0_12] : memref<18x18x4xbf16, #tpu.memory_space<vmem>>, vector<18x1x4xbf16>
    tpu.vector_store %arg9[%c0_10, %c17_11, %c0_12], %6 {strides = array<i32>} : memref<18x18x4xbf16, #tpu.memory_space<vmem>>, vector<18x1x4xbf16>,
    %c0_13 = arith.constant 0 : index
    %c0_14 = arith.constant 0 : index
    %c0_15 = arith.constant 0 : index
    %c0_16 = arith.constant 0 : index
    %8 = vector.load %arg1[%c0_13, %c0_14, %c0_15, %c0_16] : memref<1x16x16x4xbf16, #tpu.memory_space<vmem>>, vector<1x16x16x4xbf16>
    %9 = vector.shape_cast %8 : vector<1x16x16x4xbf16> to vector<16x16x4xbf16>
    %c1 = arith.constant 1 : index
    %c1_17 = arith.constant 1 : index
    %c0_18 = arith.constant 0 : index
    %10 = vector.load %arg9[%c1, %c1_17, %c0_18] : memref<18x18x4xbf16, #tpu.memory_space<vmem>>, vector<16x16x4xbf16>
    tpu.vector_store %arg9[%c1, %c1_17, %c0_18], %9 {strides = array<i32>} : memref<18x18x4xbf16, #tpu.memory_space<vmem>>, vector<16x16x4xbf16>,
    %c0_19 = arith.constant 0 : index
    %c0_20 = arith.constant 0 : index
    %c0_21 = arith.constant 0 : index
    %11 = vector.load %arg9[%c0_19, %c0_20, %c0_21] : memref<18x18x4xbf16, #tpu.memory_space<vmem>>, vector<16x16x4xbf16>
    %12 = vector.shape_cast %11 : vector<16x16x4xbf16> to vector<256x4xbf16>
    %c0_22 = arith.constant 0 : index
    %c1_23 = arith.constant 1 : index
    %c0_24 = arith.constant 0 : index
    %13 = vector.load %arg9[%c0_22, %c1_23, %c0_24] : memref<18x18x4xbf16, #tpu.memory_space<vmem>>, vector<16x16x4xbf16>
    %14 = vector.shape_cast %13 : vector<16x16x4xbf16> to vector<256x4xbf16>
    %c0_25 = arith.constant 0 : index
    %c2 = arith.constant 2 : index
    %c0_26 = arith.constant 0 : index
    %15 = vector.load %arg9[%c0_25, %c2, %c0_26] : memref<18x18x4xbf16, #tpu.memory_space<vmem>>, vector<16x16x4xbf16>
    %16 = vector.shape_cast %15 : vector<16x16x4xbf16> to vector<256x4xbf16>
    %c1_27 = arith.constant 1 : index
    %c0_28 = arith.constant 0 : index
    %c0_29 = arith.constant 0 : index
    %17 = vector.load %arg9[%c1_27, %c0_28, %c0_29] : memref<18x18x4xbf16, #tpu.memory_space<vmem>>, vector<16x16x4xbf16>
    %18 = vector.shape_cast %17 : vector<16x16x4xbf16> to vector<256x4xbf16>
    %c1_30 = arith.constant 1 : index
    %c1_31 = arith.constant 1 : index
    %c0_32 = arith.constant 0 : index
    %19 = vector.load %arg9[%c1_30, %c1_31, %c0_32] : memref<18x18x4xbf16, #tpu.memory_space<vmem>>, vector<16x16x4xbf16>
    %20 = vector.shape_cast %19 : vector<16x16x4xbf16> to vector<256x4xbf16>
    %c1_33 = arith.constant 1 : index
    %c2_34 = arith.constant 2 : index
    %c0_35 = arith.constant 0 : index
    %21 = vector.load %arg9[%c1_33, %c2_34, %c0_35] : memref<18x18x4xbf16, #tpu.memory_space<vmem>>, vector<16x16x4xbf16>
    %22 = vector.shape_cast %21 : vector<16x16x4xbf16> to vector<256x4xbf16>
    %c2_36 = arith.constant 2 : index
    %c0_37 = arith.constant 0 : index
    %c0_38 = arith.constant 0 : index
    %23 = vector.load %arg9[%c2_36, %c0_37, %c0_38] : memref<18x18x4xbf16, #tpu.memory_space<vmem>>, vector<16x16x4xbf16>
    %24 = vector.shape_cast %23 : vector<16x16x4xbf16> to vector<256x4xbf16>
    %c2_39 = arith.constant 2 : index
    %c1_40 = arith.constant 1 : index
    %c0_41 = arith.constant 0 : index
    %25 = vector.load %arg9[%c2_39, %c1_40, %c0_41] : memref<18x18x4xbf16, #tpu.memory_space<vmem>>, vector<16x16x4xbf16>
    %26 = vector.shape_cast %25 : vector<16x16x4xbf16> to vector<256x4xbf16>
    %c2_42 = arith.constant 2 : index
    %c2_43 = arith.constant 2 : index
    %c0_44 = arith.constant 0 : index
    %27 = vector.load %arg9[%c2_42, %c2_43, %c0_44] : memref<18x18x4xbf16, #tpu.memory_space<vmem>>, vector<16x16x4xbf16>
    %28 = vector.shape_cast %27 : vector<16x16x4xbf16> to vector<256x4xbf16>
    %29 = tpu.concatenate %12, %14, %16, %18, %20, %22, %24, %26, %28 in 1 : vector<256x4xbf16>, vector<256x4xbf16>, vector<256x4xbf16>, vector<256x4xbf16>, vector<256x4xbf16>, vector<256x4xbf16>, vector<256x4xbf16>, vector<256x4xbf16>, vector<256x4xbf16> -> vector<256x36xbf16>
    %c0_45 = arith.constant 0 : index
    %c0_46 = arith.constant 0 : index
    %30 = vector.load %arg2[%c0_45, %c0_46] : memref<36x8xbf16, #tpu.memory_space<vmem>>, vector<36x8xbf16>
    %cst_47 = arith.constant dense<0.000000e+00> : vector<256x8xf32>
    %31 = tpu.matmul %29, %30, %cst_47 {dimension_numbers = #tpu.dot_dimension_numbers<[1], [0], [0], [1], [0, 0, 1, 1], [], []>} : vector<256x36xbf16>, vector<36x8xbf16>, vector<256x8xf32> -> vector<256x8xf32>
    %c0_48 = arith.constant 0 : index
    %c0_49 = arith.constant 0 : index
    %32 = vector.load %arg3[%c0_48, %c0_49] : memref<1x8xf32, #tpu.memory_space<vmem>>, vector<1x8xf32>
    %33 = vector.broadcast %32 : vector<1x8xf32> to vector<256x8xf32>
    %34 = arith.addf %31, %33 : vector<256x8xf32>
    %cst_50 = arith.constant 0.000000e+00 : f32
    %35 = vector.broadcast %cst_50 : f32 to vector<256x8xf32>
    %36 = arith.maximumf %34, %35 : vector<256x8xf32>
    %cst_51 = arith.constant 0.000000e+00 : bf16
    %37 = vector.broadcast %cst_51 : bf16 to vector<1x18x8xbf16>
    %c0_52 = arith.constant 0 : index
    %c0_53 = arith.constant 0 : index
    %c0_54 = arith.constant 0 : index
    %38 = vector.load %arg10[%c0_52, %c0_53, %c0_54] : memref<18x18x8xbf16, #tpu.memory_space<vmem>>, vector<1x18x8xbf16>
    tpu.vector_store %arg10[%c0_52, %c0_53, %c0_54], %37 {strides = array<i32>} : memref<18x18x8xbf16, #tpu.memory_space<vmem>>, vector<1x18x8xbf16>,
    %cst_55 = arith.constant 0.000000e+00 : bf16
    %39 = vector.broadcast %cst_55 : bf16 to vector<1x18x8xbf16>
    %c17_56 = arith.constant 17 : index
    %c0_57 = arith.constant 0 : index
    %c0_58 = arith.constant 0 : index
    %40 = vector.load %arg10[%c17_56, %c0_57, %c0_58] : memref<18x18x8xbf16, #tpu.memory_space<vmem>>, vector<1x18x8xbf16>
    tpu.vector_store %arg10[%c17_56, %c0_57, %c0_58], %39 {strides = array<i32>} : memref<18x18x8xbf16, #tpu.memory_space<vmem>>, vector<1x18x8xbf16>,
    %cst_59 = arith.constant 0.000000e+00 : bf16
    %41 = vector.broadcast %cst_59 : bf16 to vector<18x1x8xbf16>
    %c0_60 = arith.constant 0 : index
    %c0_61 = arith.constant 0 : index
    %c0_62 = arith.constant 0 : index
    %42 = vector.load %arg10[%c0_60, %c0_61, %c0_62] : memref<18x18x8xbf16, #tpu.memory_space<vmem>>, vector<18x1x8xbf16>
    tpu.vector_store %arg10[%c0_60, %c0_61, %c0_62], %41 {strides = array<i32>} : memref<18x18x8xbf16, #tpu.memory_space<vmem>>, vector<18x1x8xbf16>,
    %cst_63 = arith.constant 0.000000e+00 : bf16
    %43 = vector.broadcast %cst_63 : bf16 to vector<18x1x8xbf16>
    %c0_64 = arith.constant 0 : index
    %c17_65 = arith.constant 17 : index
    %c0_66 = arith.constant 0 : index
    %44 = vector.load %arg10[%c0_64, %c17_65, %c0_66] : memref<18x18x8xbf16, #tpu.memory_space<vmem>>, vector<18x1x8xbf16>
    tpu.vector_store %arg10[%c0_64, %c17_65, %c0_66], %43 {strides = array<i32>} : memref<18x18x8xbf16, #tpu.memory_space<vmem>>, vector<18x1x8xbf16>,
    %45 = vector.shape_cast %36 : vector<256x8xf32> to vector<16x16x8xf32>
    %46 = arith.truncf %45 : vector<16x16x8xf32> to vector<16x16x8xbf16>
    %c1_67 = arith.constant 1 : index
    %c1_68 = arith.constant 1 : index
    %c0_69 = arith.constant 0 : index
    %47 = vector.load %arg10[%c1_67, %c1_68, %c0_69] : memref<18x18x8xbf16, #tpu.memory_space<vmem>>, vector<16x16x8xbf16>
    tpu.vector_store %arg10[%c1_67, %c1_68, %c0_69], %46 {strides = array<i32>} : memref<18x18x8xbf16, #tpu.memory_space<vmem>>, vector<16x16x8xbf16>,
    %c0_70 = arith.constant 0 : index
    %c0_71 = arith.constant 0 : index
    %c0_72 = arith.constant 0 : index
    %48 = vector.load %arg10[%c0_70, %c0_71, %c0_72] : memref<18x18x8xbf16, #tpu.memory_space<vmem>>, vector<16x16x8xbf16>
    %49 = vector.shape_cast %48 : vector<16x16x8xbf16> to vector<256x8xbf16>
    %c0_73 = arith.constant 0 : index
    %c1_74 = arith.constant 1 : index
    %c0_75 = arith.constant 0 : index
    %50 = vector.load %arg10[%c0_73, %c1_74, %c0_75] : memref<18x18x8xbf16, #tpu.memory_space<vmem>>, vector<16x16x8xbf16>
    %51 = vector.shape_cast %50 : vector<16x16x8xbf16> to vector<256x8xbf16>
    %c0_76 = arith.constant 0 : index
    %c2_77 = arith.constant 2 : index
    %c0_78 = arith.constant 0 : index
    %52 = vector.load %arg10[%c0_76, %c2_77, %c0_78] : memref<18x18x8xbf16, #tpu.memory_space<vmem>>, vector<16x16x8xbf16>
    %53 = vector.shape_cast %52 : vector<16x16x8xbf16> to vector<256x8xbf16>
    %c1_79 = arith.constant 1 : index
    %c0_80 = arith.constant 0 : index
    %c0_81 = arith.constant 0 : index
    %54 = vector.load %arg10[%c1_79, %c0_80, %c0_81] : memref<18x18x8xbf16, #tpu.memory_space<vmem>>, vector<16x16x8xbf16>
    %55 = vector.shape_cast %54 : vector<16x16x8xbf16> to vector<256x8xbf16>
    %c1_82 = arith.constant 1 : index
    %c1_83 = arith.constant 1 : index
    %c0_84 = arith.constant 0 : index
    %56 = vector.load %arg10[%c1_82, %c1_83, %c0_84] : memref<18x18x8xbf16, #tpu.memory_space<vmem>>, vector<16x16x8xbf16>
    %57 = vector.shape_cast %56 : vector<16x16x8xbf16> to vector<256x8xbf16>
    %c1_85 = arith.constant 1 : index
    %c2_86 = arith.constant 2 : index
    %c0_87 = arith.constant 0 : index
    %58 = vector.load %arg10[%c1_85, %c2_86, %c0_87] : memref<18x18x8xbf16, #tpu.memory_space<vmem>>, vector<16x16x8xbf16>
    %59 = vector.shape_cast %58 : vector<16x16x8xbf16> to vector<256x8xbf16>
    %c2_88 = arith.constant 2 : index
    %c0_89 = arith.constant 0 : index
    %c0_90 = arith.constant 0 : index
    %60 = vector.load %arg10[%c2_88, %c0_89, %c0_90] : memref<18x18x8xbf16, #tpu.memory_space<vmem>>, vector<16x16x8xbf16>
    %61 = vector.shape_cast %60 : vector<16x16x8xbf16> to vector<256x8xbf16>
    %c2_91 = arith.constant 2 : index
    %c1_92 = arith.constant 1 : index
    %c0_93 = arith.constant 0 : index
    %62 = vector.load %arg10[%c2_91, %c1_92, %c0_93] : memref<18x18x8xbf16, #tpu.memory_space<vmem>>, vector<16x16x8xbf16>
    %63 = vector.shape_cast %62 : vector<16x16x8xbf16> to vector<256x8xbf16>
    %c2_94 = arith.constant 2 : index
    %c2_95 = arith.constant 2 : index
    %c0_96 = arith.constant 0 : index
    %64 = vector.load %arg10[%c2_94, %c2_95, %c0_96] : memref<18x18x8xbf16, #tpu.memory_space<vmem>>, vector<16x16x8xbf16>
    %65 = vector.shape_cast %64 : vector<16x16x8xbf16> to vector<256x8xbf16>
    %66 = tpu.concatenate %49, %51, %53, %55, %57, %59 in 1 : vector<256x8xbf16>, vector<256x8xbf16>, vector<256x8xbf16>, vector<256x8xbf16>, vector<256x8xbf16>, vector<256x8xbf16> -> vector<256x48xbf16>
    %c0_97 = arith.constant 0 : index
    %c0_98 = arith.constant 0 : index
    %67 = vector.load %arg4[%c0_97, %c0_98] : memref<48x128xbf16, #tpu.memory_space<vmem>>, vector<48x128xbf16>
    %cst_99 = arith.constant dense<0.000000e+00> : vector<256x128xf32>
    %68 = tpu.matmul %66, %67, %cst_99 {dimension_numbers = #tpu.dot_dimension_numbers<[1], [0], [0], [1], [0, 0, 1, 1], [], []>} : vector<256x48xbf16>, vector<48x128xbf16>, vector<256x128xf32> -> vector<256x128xf32>
    %c0_100 = arith.constant 0 : index
    %c0_101 = arith.constant 0 : index
    %69 = vector.load %arg6[%c0_100, %c0_101] : memref<1x128xf32, #tpu.memory_space<vmem>>, vector<1x128xf32>
    %70 = vector.broadcast %69 : vector<1x128xf32> to vector<256x128xf32>
    %71 = arith.addf %68, %70 : vector<256x128xf32>
    %72 = vector.shape_cast %71 : vector<256x128xf32> to vector<16x16x128xf32>
    %c0_102 = arith.constant 0 : index
    %c0_103 = arith.constant 0 : index
    %c0_104 = arith.constant 0 : index
    %c0_105 = arith.constant 0 : index
    %c0_106 = arith.constant 0 : index
    %73 = vector.load %arg7[%c0_102, %c0_103, %c0_104, %c0_105, %c0_106] : memref<1x16x2x16x128xf32, #tpu.memory_space<vmem>>, vector<1x16x1x16x128xf32>
    %74 = vector.shape_cast %73 : vector<1x16x1x16x128xf32> to vector<16x16x128xf32>
    %75 = vector.shape_cast %72 : vector<16x16x128xf32> to vector<1x16x1x16x128xf32>
    tpu.vector_store %arg7[%c0_102, %c0_103, %c0_104, %c0_105, %c0_106], %75 {strides = array<i32>} : memref<1x16x2x16x128xf32, #tpu.memory_space<vmem>>, vector<1x16x1x16x128xf32>,
    %cst_107 = arith.constant dense<0.000000e+00> : vector<128xf32>
    %76 = vector.multi_reduction <add>, %71, %cst_107 [0] : vector<256x128xf32> to vector<128xf32>
    %77 = vector.shape_cast %76 : vector<128xf32> to vector<1x128xf32>
    %78 = arith.mulf %71, %71 : vector<256x128xf32>
    %cst_108 = arith.constant dense<0.000000e+00> : vector<128xf32>
    %79 = vector.multi_reduction <add>, %78, %cst_108 [0] : vector<256x128xf32> to vector<128xf32>
    %80 = vector.shape_cast %79 : vector<128xf32> to vector<1x128xf32>
    %81 = tpu.concatenate %55, %57, %59, %61, %63, %65 in 1 : vector<256x8xbf16>, vector<256x8xbf16>, vector<256x8xbf16>, vector<256x8xbf16>, vector<256x8xbf16>, vector<256x8xbf16> -> vector<256x48xbf16>
    %c0_109 = arith.constant 0 : index
    %c0_110 = arith.constant 0 : index
    %82 = vector.load %arg5[%c0_109, %c0_110] : memref<48x128xbf16, #tpu.memory_space<vmem>>, vector<48x128xbf16>
    %cst_111 = arith.constant dense<0.000000e+00> : vector<256x128xf32>
    %83 = tpu.matmul %81, %82, %cst_111 {dimension_numbers = #tpu.dot_dimension_numbers<[1], [0], [0], [1], [0, 0, 1, 1], [], []>} : vector<256x48xbf16>, vector<48x128xbf16>, vector<256x128xf32> -> vector<256x128xf32>
    %c0_112 = arith.constant 0 : index
    %c0_113 = arith.constant 0 : index
    %84 = vector.load %arg6[%c0_112, %c0_113] : memref<1x128xf32, #tpu.memory_space<vmem>>, vector<1x128xf32>
    %85 = vector.broadcast %84 : vector<1x128xf32> to vector<256x128xf32>
    %86 = arith.addf %83, %85 : vector<256x128xf32>
    %87 = vector.shape_cast %86 : vector<256x128xf32> to vector<16x16x128xf32>
    %c0_114 = arith.constant 0 : index
    %c0_115 = arith.constant 0 : index
    %c1_116 = arith.constant 1 : index
    %c0_117 = arith.constant 0 : index
    %c0_118 = arith.constant 0 : index
    %88 = vector.load %arg7[%c0_114, %c0_115, %c1_116, %c0_117, %c0_118] : memref<1x16x2x16x128xf32, #tpu.memory_space<vmem>>, vector<1x16x1x16x128xf32>
    %89 = vector.shape_cast %88 : vector<1x16x1x16x128xf32> to vector<16x16x128xf32>
    %90 = vector.shape_cast %87 : vector<16x16x128xf32> to vector<1x16x1x16x128xf32>
    tpu.vector_store %arg7[%c0_114, %c0_115, %c1_116, %c0_117, %c0_118], %90 {strides = array<i32>} : memref<1x16x2x16x128xf32, #tpu.memory_space<vmem>>, vector<1x16x1x16x128xf32>,
    %cst_119 = arith.constant dense<0.000000e+00> : vector<128xf32>
    %91 = vector.multi_reduction <add>, %86, %cst_119 [0] : vector<256x128xf32> to vector<128xf32>
    %92 = vector.shape_cast %91 : vector<128xf32> to vector<1x128xf32>
    %93 = arith.addf %77, %92 : vector<1x128xf32>
    %94 = arith.mulf %86, %86 : vector<256x128xf32>
    %cst_120 = arith.constant dense<0.000000e+00> : vector<128xf32>
    %95 = vector.multi_reduction <add>, %94, %cst_120 [0] : vector<256x128xf32> to vector<128xf32>
    %96 = vector.shape_cast %95 : vector<128xf32> to vector<1x128xf32>
    %97 = arith.addf %80, %96 : vector<1x128xf32>
    %98 = vector.shape_cast %93 : vector<1x128xf32> to vector<1x1x128xf32>
    %c0_121 = arith.constant 0 : index
    %c0_122 = arith.constant 0 : index
    %c0_123 = arith.constant 0 : index
    %99 = vector.load %arg8[%c0_121, %c0_122, %c0_123] : memref<1x2x128xf32, #tpu.memory_space<vmem>>, vector<1x1x128xf32>
    tpu.vector_store %arg8[%c0_121, %c0_122, %c0_123], %98 {strides = array<i32>} : memref<1x2x128xf32, #tpu.memory_space<vmem>>, vector<1x1x128xf32>,
    %100 = vector.shape_cast %97 : vector<1x128xf32> to vector<1x1x128xf32>
    %c0_124 = arith.constant 0 : index
    %c1_125 = arith.constant 1 : index
    %c0_126 = arith.constant 0 : index
    %101 = vector.load %arg8[%c0_124, %c1_125, %c0_126] : memref<1x2x128xf32, #tpu.memory_space<vmem>>, vector<1x1x128xf32>
    tpu.vector_store %arg8[%c0_124, %c1_125, %c0_126], %100 {strides = array<i32>} : memref<1x2x128xf32, #tpu.memory_space<vmem>>, vector<1x1x128xf32>,
    return
  }
  func.func @transform_0(%arg0: i32) -> (i32, i32, i32, i32) {
    %c0_i32 = arith.constant 0 : i32
    %c0_i32_0 = arith.constant 0 : i32
    %c0_i32_1 = arith.constant 0 : i32
    %c0_i32_2 = arith.constant 0 : i32
    return %arg0, %c0_i32, %c0_i32_0, %c0_i32_1 : i32, i32, i32, i32
  }
  func.func @transform_1(%arg0: i32) -> (i32, i32) {
    %c0_i32 = arith.constant 0 : i32
    %c0_i32_0 = arith.constant 0 : i32
    %c0_i32_1 = arith.constant 0 : i32
    return %c0_i32, %c0_i32_0 : i32, i32
  }
  func.func @transform_2(%arg0: i32) -> (i32, i32) {
    %c0_i32 = arith.constant 0 : i32
    %c0_i32_0 = arith.constant 0 : i32
    %c0_i32_1 = arith.constant 0 : i32
    return %c0_i32, %c0_i32_0 : i32, i32
  }
  func.func @transform_3(%arg0: i32) -> (i32, i32) {
    %c0_i32 = arith.constant 0 : i32
    %c0_i32_0 = arith.constant 0 : i32
    %c0_i32_1 = arith.constant 0 : i32
    return %c0_i32, %c0_i32_0 : i32, i32
  }
  func.func @transform_4(%arg0: i32) -> (i32, i32) {
    %c0_i32 = arith.constant 0 : i32
    %c0_i32_0 = arith.constant 0 : i32
    %c0_i32_1 = arith.constant 0 : i32
    return %c0_i32, %c0_i32_0 : i32, i32
  }
  func.func @transform_5(%arg0: i32) -> (i32, i32) {
    %c0_i32 = arith.constant 0 : i32
    %c0_i32_0 = arith.constant 0 : i32
    %c0_i32_1 = arith.constant 0 : i32
    return %c0_i32, %c0_i32_0 : i32, i32
  }
  func.func @transform_6(%arg0: i32) -> (i32, i32, i32, i32, i32) {
    %c0_i32 = arith.constant 0 : i32
    %c0_i32_0 = arith.constant 0 : i32
    %c0_i32_1 = arith.constant 0 : i32
    %c0_i32_2 = arith.constant 0 : i32
    %c0_i32_3 = arith.constant 0 : i32
    return %arg0, %c0_i32, %c0_i32_0, %c0_i32_1, %c0_i32_2 : i32, i32, i32, i32, i32
  }
  func.func @transform_7(%arg0: i32) -> (i32, i32, i32) {
    %c0_i32 = arith.constant 0 : i32
    %c0_i32_0 = arith.constant 0 : i32
    %c0_i32_1 = arith.constant 0 : i32
    return %arg0, %c0_i32, %c0_i32_0 : i32, i32, i32
  }
}

module attributes {stable_mosaic.version = 11 : i64} {
  func.func @bn_relu_kernel(%arg0: i32, %arg1: i32, %arg2: memref<1x16x2x16x128xf32, #tpu.memory_space<vmem>>, %arg3: memref<1x128xf32, #tpu.memory_space<vmem>>, %arg4: memref<1x128xf32, #tpu.memory_space<vmem>>, %arg5: memref<1x16x2x16x128xf32, #tpu.memory_space<vmem>>) attributes {dimension_semantics = [#tpu.dimension_semantics<parallel>, #tpu.dimension_semantics<parallel>], iteration_bounds = array<i64: 2, 1>, scalar_prefetch = 0 : i64, scratch_operands = 0 : i64, tpu.core_type = #tpu.core_type<tc>, window_params = [{transform_indices = @transform_0, window_bounds = array<i64: 1, 16, 2, 16, 128>}, {pipeline_mode = #tpu.pipeline_mode<synchronous>, transform_indices = @transform_1, window_bounds = array<i64: 1, 128>}, {pipeline_mode = #tpu.pipeline_mode<synchronous>, transform_indices = @transform_2, window_bounds = array<i64: 1, 128>}, {transform_indices = @transform_3, window_bounds = array<i64: 1, 16, 2, 16, 128>}]} {
    %c0 = arith.constant 0 : index
    %c0_0 = arith.constant 0 : index
    %c0_1 = arith.constant 0 : index
    %c0_2 = arith.constant 0 : index
    %c0_3 = arith.constant 0 : index
    %0 = vector.load %arg2[%c0, %c0_0, %c0_1, %c0_2, %c0_3] : memref<1x16x2x16x128xf32, #tpu.memory_space<vmem>>, vector<1x16x2x16x128xf32>
    %c0_4 = arith.constant 0 : index
    %c0_5 = arith.constant 0 : index
    %1 = vector.load %arg3[%c0_4, %c0_5] : memref<1x128xf32, #tpu.memory_space<vmem>>, vector<1x128xf32>
    %2 = vector.shape_cast %1 : vector<1x128xf32> to vector<1x1x1x1x128xf32>
    %3 = vector.broadcast %2 : vector<1x1x1x1x128xf32> to vector<1x16x2x16x128xf32>
    %4 = arith.mulf %0, %3 : vector<1x16x2x16x128xf32>
    %c0_6 = arith.constant 0 : index
    %c0_7 = arith.constant 0 : index
    %5 = vector.load %arg4[%c0_6, %c0_7] : memref<1x128xf32, #tpu.memory_space<vmem>>, vector<1x128xf32>
    %6 = vector.shape_cast %5 : vector<1x128xf32> to vector<1x1x1x1x128xf32>
    %7 = vector.broadcast %6 : vector<1x1x1x1x128xf32> to vector<1x16x2x16x128xf32>
    %8 = arith.addf %4, %7 : vector<1x16x2x16x128xf32>
    %cst = arith.constant 0.000000e+00 : f32
    %9 = vector.broadcast %cst : f32 to vector<1x16x2x16x128xf32>
    %10 = arith.maximumf %8, %9 : vector<1x16x2x16x128xf32>
    %c0_8 = arith.constant 0 : index
    %c0_9 = arith.constant 0 : index
    %c0_10 = arith.constant 0 : index
    %c0_11 = arith.constant 0 : index
    %c0_12 = arith.constant 0 : index
    %11 = vector.load %arg5[%c0_8, %c0_9, %c0_10, %c0_11, %c0_12] : memref<1x16x2x16x128xf32, #tpu.memory_space<vmem>>, vector<1x16x2x16x128xf32>
    tpu.vector_store %arg5[%c0_8, %c0_9, %c0_10, %c0_11, %c0_12], %10 {strides = array<i32>} : memref<1x16x2x16x128xf32, #tpu.memory_space<vmem>>, vector<1x16x2x16x128xf32>,
    return
  }
  func.func @transform_0(%arg0: i32, %arg1: i32) -> (i32, i32, i32, i32, i32) {
    %c0_i32 = arith.constant 0 : i32
    %c0_i32_0 = arith.constant 0 : i32
    %c0_i32_1 = arith.constant 0 : i32
    %c0_i32_2 = arith.constant 0 : i32
    return %arg0, %arg1, %c0_i32, %c0_i32_0, %c0_i32_1 : i32, i32, i32, i32, i32
  }
  func.func @transform_1(%arg0: i32, %arg1: i32) -> (i32, i32) {
    %c0_i32 = arith.constant 0 : i32
    %c0_i32_0 = arith.constant 0 : i32
    %c0_i32_1 = arith.constant 0 : i32
    return %c0_i32, %c0_i32_0 : i32, i32
  }
  func.func @transform_2(%arg0: i32, %arg1: i32) -> (i32, i32) {
    %c0_i32 = arith.constant 0 : i32
    %c0_i32_0 = arith.constant 0 : i32
    %c0_i32_1 = arith.constant 0 : i32
    return %c0_i32, %c0_i32_0 : i32, i32
  }
  func.func @transform_3(%arg0: i32, %arg1: i32) -> (i32, i32, i32, i32, i32) {
    %c0_i32 = arith.constant 0 : i32
    %c0_i32_0 = arith.constant 0 : i32
    %c0_i32_1 = arith.constant 0 : i32
    %c0_i32_2 = arith.constant 0 : i32
    return %arg0, %arg1, %c0_i32, %c0_i32_0, %c0_i32_1 : i32, i32, i32, i32, i32
  }
}

</mosaic_0001>

<bundles_post_ra>
// kernel: decoder_center_forward.3
= control target key start
LH: loop header
LB: loop body
LE: loop exit
PB: predicated region body
PF: predicated region fallthrough
CT: control target
= control target key end

     0   :  { %s728_s12 = smov 0   ;;  %s730_s13 = smov 0   ;;  %s1253_s0 = inlined_call_operand.vmem [shape: f32[2,16,2,16,128], index: 0, kind: input, shape index: {}, may-alias: {0,3}]   ;;  %s1254_s1 = inlined_call_operand.vmem [shape: f32[1,128], index: 1, kind: input, shape index: {}]   ;;  %s1255_s2 = inlined_call_operand.vmem [shape: f32[1,128], index: 2, kind: input, shape index: {}]   ;;  %s1256_s3 = inlined_call_operand.vmem [shape: f32[2,16,2,16,128], index: 3, kind: output, shape index: {}, may-alias: {0,3}]  }
   0x1   :  { %s732_s14 = smov 0  }
   0x2 LB: > { %s25_s15 = sadd.s32 1, %s702_s13  ;;  %p649_p0 = scmp.ge.s32.totalorder %s706_s14, 1  ;;  %s706_s14 = sphi %s732_s14, %s13_s14   ;;  %s702_s13 = sphi %s730_s13, %s1298_s13   ;;  %s698_s12 = sphi %s728_s12, %s1297_s12  }
   0x3   : > { %p27_p1 = scmp.ge.s32.totalorder %s25_s15, 2  ;;  %p159_p2 = scmp.lt.s32.totalorder %s706_s14, 3 }
   0x5   : > { %s1300_s15 = smov (%p27_p1, %s25_s15), 0  ;;  %p160_p3 = pnand %p649_p0, %p159_p2 }
   0x7   : > { %163 = sbr.rel (%p160_p3) target bundleno = 75 (0x4b), region = 32 }
   0xe   : > { %p194_p4 = scmp.lt.s32.totalorder %s698_s12, 1  ;;  %v752_v0 = vld [vmem:[%s1254_s1] ss:$0 sm:$0xff] }
   0xf   : > { %v764_v1 = vld [vmem:[%s1255_s2] ss:$0 sm:$0xff] }
  0x10   : > { %s1302_s12 = smov (!%p194_p4, %s698_s12), 1 }
  0x11   : > { %s658_s16 = sshll.u32 %s1302_s12, 9 }
  0x12   : > { %s759_s21 = scalar_lea.vmem %s1253_s0, %s658_s16  ;;  %s923_s26 = scalar_lea.vmem %s1256_s3, %s658_s16 }
  0x13   : > { %v215_v2 = vld [vmem:[%s759_s21] sm:$0xff]  ;;  %v216_v3 = vld [vmem:[%s759_s21 + $0x8] sm:$0xff]  ;;  %v217_v4 = vld [vmem:[%s759_s21 + $0x10] sm:$0xff] }
  0x14   : > { %v218_v5 = vld [vmem:[%s759_s21 + $0x18] sm:$0xff]  ;;  %v219_v6 = vld [vmem:[%s759_s21 + $0x20] sm:$0xff]  ;;  %v220_v7 = vld [vmem:[%s759_s21 + $0x28] sm:$0xff]  ;;  %v286_v8 = vmul.f32 %v752_v0, %v215_v2  ;;  %v287_v9 = vmul.f32 %v752_v0, %v216_v3  ;;  %v288_v10 = vmul.f32 %v752_v0, %v217_v4 }
  0x15   : > { %v221_v11 = vld [vmem:[%s759_s21 + $0x30] sm:$0xff]  ;;  %v222_v12 = vld [vmem:[%s759_s21 + $0x38] sm:$0xff]  ;;  %v289_v13 = vmul.f32 %v752_v0, %v218_v5  ;;  %v290_v14 = vmul.f32 %v752_v0, %v219_v6  ;;  %v291_v15 = vmul.f32 %v752_v0, %v220_v7  ;;  %v223_v20 = vld [vmem:[%s759_s21 + $0x40] sm:$0xff] }
  0x16   : > { %v781_v16 = vadd.f32 %v764_v1, %v286_v8  ;;  %v784_v17 = vadd.f32 %v764_v1, %v287_v9  ;;  %v787_v18 = vadd.f32 %v764_v1, %v288_v10  ;;  %v292_v19 = vmul.f32 %v752_v0, %v221_v11  ;;  %v224_v21 = vld [vmem:[%s759_s21 + $0x48] sm:$0xff]  ;;  %v225_v22 = vld [vmem:[%s759_s21 + $0x50] sm:$0xff]  ;;  %v226_v27 = vld [vmem:[%s759_s21 + $0x58] sm:$0xff] }
  0x17   : > { %v794_v23 = vadd.f32 %v764_v1, %v289_v13  ;;  %v797_v24 = vadd.f32 %v764_v1, %v290_v14  ;;  %v800_v25 = vadd.f32 %v764_v1, %v291_v15  ;;  %v293_v26 = vmul.f32 %v752_v0, %v222_v12  ;;  %v227_v28 = vld [vmem:[%s759_s21 + $0x60] sm:$0xff]  ;;  %v228_v29 = vld [vmem:[%s759_s21 + $0x68] sm:$0xff]  ;;  %v229_v34 = vld [vmem:[%s759_s21 + $0x70] sm:$0xff] }
  0x18   : > { %v810_v33 = vadd.f32 %v764_v1, %v292_v19  ;;  %v230_v39 = vld [vmem:[%s759_s21 + $0x78] sm:$0xff]  ;;  %v294_v41 = vmul.f32 %v752_v0, %v223_v20  ;;  %v295_v42 = vmul.f32 %v752_v0, %v224_v21  ;;  %v296_v43 = vmul.f32 %v752_v0, %v225_v22  ;;  %v231_v52 = vld [vmem:[%s759_s21 + $0x80] sm:$0xff]  ;;  %v232_v53 = vld [vmem:[%s759_s21 + $0x88] sm:$0xff] }
  0x19   : > { %v817_v38 = vadd.f32 %v764_v1, %v293_v26  ;;  %v297_v45 = vmul.f32 %v752_v0, %v226_v27  ;;  %v298_v46 = vmul.f32 %v752_v0, %v227_v28  ;;  %v299_v47 = vmul.f32 %v752_v0, %v228_v29  ;;  %v233_v54 = vld [vmem:[%s759_s21 + $0x90] sm:$0xff]  ;;  %v234_v59 = vld [vmem:[%s759_s21 + $0x98] sm:$0xff]  ;;  %v235_v60 = vld [vmem:[%s759_s21 + $0xa0] sm:$0xff] }
  0x1a   : > { %v829_v48 = vadd.f32 %v764_v1, %v294_v41  ;;  %v832_v49 = vadd.f32 %v764_v1, %v295_v42  ;;  %v835_v50 = vadd.f32 %v764_v1, %v296_v43  ;;  %v300_v51 = vmul.f32 %v752_v0, %v229_v34  ;;  %v236_v61 = vld [vmem:[%s759_s21 + $0xa8] sm:$0xff]  ;;  %v237_v4 = vld [vmem:[%s759_s21 + $0xb0] sm:$0xff]  ;;  %v238_v9 = vld [vmem:[%s759_s21 + $0xb8] sm:$0xff] }
  0x1b   : > { %v842_v55 = vadd.f32 %v764_v1, %v297_v45  ;;  %v845_v56 = vadd.f32 %v764_v1, %v298_v46  ;;  %v848_v57 = vadd.f32 %v764_v1, %v299_v47  ;;  %v301_v58 = vmul.f32 %v752_v0, %v230_v39  ;;  %v239_v28 = vld [vmem:[%s759_s21 + $0xc0] sm:$0xff]  ;;  %v240_v29 = vld [vmem:[%s759_s21 + $0xc8] sm:$0xff]  ;;  %v241_v34 = vld [vmem:[%s759_s21 + $0xd0] sm:$0xff] }
  0x1c   : > { %v858_v3 = vadd.f32 %v764_v1, %v300_v51  ;;  %v302_v11 = vmul.f32 %v752_v0, %v231_v52  ;;  %v303_v12 = vmul.f32 %v752_v0, %v232_v53  ;;  %v304_v13 = vmul.f32 %v752_v0, %v233_v54  ;;  %v242_v45 = vld [vmem:[%s759_s21 + $0xd8] sm:$0xff]  ;;  %v243_v46 = vld [vmem:[%s759_s21 + $0xe0] sm:$0xff]  ;;  %v244_v47 = vld [vmem:[%s759_s21 + $0xe8] sm:$0xff] }
  0x1d   : > { %v865_v8 = vadd.f32 %v764_v1, %v301_v58  ;;  %v305_v15 = vmul.f32 %v752_v0, %v234_v59  ;;  %v306_v19 = vmul.f32 %v752_v0, %v235_v60  ;;  %v307_v20 = vmul.f32 %v752_v0, %v236_v61  ;;  %v245_v58 = vld [vmem:[%s759_s21 + $0xf0] sm:$0xff]  ;;  %v910_v59 = vld [vmem:[%s759_s21 + $0xf8] sm:$0xff]  ;;  %v953_v61 = vld [vmem:[%s759_s21 + $0x148] sm:$0xff] }
  0x1e   : > { %v877_v21 = vadd.f32 %v764_v1, %v302_v11  ;;  %v880_v22 = vadd.f32 %v764_v1, %v303_v12  ;;  %v883_v26 = vadd.f32 %v764_v1, %v304_v13  ;;  %v308_v27 = vmul.f32 %v752_v0, %v237_v4  ;;  %v926_v11 = vld [vmem:[%s759_s21 + $0x100] sm:$0xff]  ;;  %v929_v12 = vld [vmem:[%s759_s21 + $0x108] sm:$0xff]  ;;  %v932_v13 = vld [vmem:[%s759_s21 + $0x110] sm:$0xff] }
  0x1f   : > { %v890_v39 = vadd.f32 %v764_v1, %v305_v15  ;;  %v893_v41 = vadd.f32 %v764_v1, %v306_v19  ;;  %v896_v42 = vadd.f32 %v764_v1, %v307_v20  ;;  %v309_v43 = vmul.f32 %v752_v0, %v238_v9  ;;  %v935_v15 = vld [vmem:[%s759_s21 + $0x118] sm:$0xff]  ;;  %v938_v19 = vld [vmem:[%s759_s21 + $0x120] sm:$0xff]  ;;  %v941_v20 = vld [vmem:[%s759_s21 + $0x128] sm:$0xff] }
  0x20   : > { %v906_v54 = vadd.f32 %v764_v1, %v308_v27  ;;  %v944_v27 = vld [vmem:[%s759_s21 + $0x130] sm:$0xff]  ;;  %v950_v4 = vld [vmem:[%s759_s21 + $0x140] sm:$0xff]  ;;  %v959_v53 = vld [vmem:[%s759_s21 + $0x158] sm:$0xff]  ;;  %v310_v32 = vmul.f32 %v752_v0, %v239_v28  ;;  %v311_v31 = vmul.f32 %v752_v0, %v240_v29  ;;  %v312_v30 = vmul.f32 %v752_v0, %v241_v34 }
  0x21   : > { %v916_v9 = vadd.f32 %v764_v1, %v309_v43  ;;  %v947_v43 = vld [vmem:[%s759_s21 + $0x138] sm:$0xff]  ;;  %v956_v60 = vld [vmem:[%s759_s21 + $0x150] sm:$0xff]  ;;  %v962_v52 = vld [vmem:[%s759_s21 + $0x160] sm:$0xff]  ;;  %v313_v28 = vmul.f32 %v752_v0, %v242_v45  ;;  %v314_v29 = vmul.f32 %v752_v0, %v243_v46  ;;  %v315_v34 = vmul.f32 %v752_v0, %v244_v47 }
  0x22   : > { %v965_v51 = vld [vmem:[%s759_s21 + $0x168] sm:$0xff]  ;;  %v968_v14 = vld [vmem:[%s759_s21 + $0x170] sm:$0xff]  ;;  %v971_v10 = vld [vmem:[%s759_s21 + $0x178] sm:$0xff]  ;;  %v443_v35 = vmax.f32 %v906_v54, 0.0  ;;  %v382_v45 = vadd.f32 %v764_v1, %v311_v31  ;;  %v383_v46 = vadd.f32 %v764_v1, %v312_v30  ;;  %v316_v47 = vmul.f32 %v752_v0, %v245_v58 }
  0x23   : > { %v974_v7 = vld [vmem:[%s759_s21 + $0x180] sm:$0xff]  ;;  %v977_v6 = vld [vmem:[%s759_s21 + $0x188] sm:$0xff]  ;;  %v980_v5 = vld [vmem:[%s759_s21 + $0x190] sm:$0xff]  ;;  %v1269_v31 = vmax.f32 %v794_v23, 0.0  ;;  %v1270_v30 = vmax.f32 %v797_v24, 0.0  ;;  %v1274_v23 = vmax.f32 %v829_v48, 0.0 }
  0x24   : > { %v983_v2 = vld [vmem:[%s759_s21 + $0x198] sm:$0xff]  ;;  %v986_v63 = vld [vmem:[%s759_s21 + $0x1a0] sm:$0xff]  ;;  %v989_v62 = vld [vmem:[%s759_s21 + $0x1a8] sm:$0xff]  ;;  %v1275_v24 = vmax.f32 %v832_v49, 0.0  ;;  %v1282_v48 = vmax.f32 %v877_v21, 0.0  ;;  %v1283_v49 = vmax.f32 %v880_v22, 0.0  ;;  %v386_v21 = vadd.f32 %v764_v1, %v315_v34 }
  0x25   : > { %1257 = vst [vmem:[#allocation2_spill] sm:$0xff] %v989_v62  ;;  %v992_v44 = vld [vmem:[%s759_s21 + $0x1b0] sm:$0xff]  ;;  %v995_v40 = vld [vmem:[%s759_s21 + $0x1b8] sm:$0xff]  ;;  %v998_v37 = vld [vmem:[%s759_s21 + $0x1c0] sm:$0xff]  ;;  %v317_v22 = vmul.f32 %v752_v0, %v910_v59  ;;  %v318_v59 = vmul.f32 %v752_v0, %v926_v11  ;;  %v319_v34 = vmul.f32 %v752_v0, %v929_v12 }
  0x26   : > { %1258 = vst [vmem:[#allocation3_spill] sm:$0xff] %v992_v44  ;;  %1259 = vst [vmem:[#allocation4_spill] sm:$0xff] %v995_v40  ;;  %v1001_v36 = vld [vmem:[%s759_s21 + $0x1c8] sm:$0xff]  ;;  %v1008_v62 = vld [vmem:[%s759_s21 + $0x1d0] sm:$0xff] }
  0x27   : > { %1260 = vst [vmem:[#allocation5_spill] sm:$0xff] %v1001_v36  ;;  %v1011_v44 = vld [vmem:[%s759_s21 + $0x1d8] sm:$0xff]  ;;  %v1014_v40 = vld [vmem:[%s759_s21 + $0x1e0] sm:$0xff]  ;;  %v444_v36 = vmax.f32 %v916_v9, 0.0  ;;  %v1021_v54 = vld [vmem:[%s759_s21 + $0x1e8] sm:$0xff]  ;;  %v381_v9 = vadd.f32 %v764_v1, %v310_v32  ;;  %v1276_v32 = vmax.f32 %v835_v50, 0.0  ;;  %v389_v11 = vadd.f32 %v764_v1, %v318_v59 }
  0x28   : > { %1261 = vst [vmem:[#allocation6_spill] sm:$0xff] %v1011_v44  ;;  %1262 = vst [vmem:[#allocation7_spill] sm:$0xff] %v1014_v40  ;;  %v1024_v44 = vld [vmem:[%s759_s21 + $0x1f0] sm:$0xff]  ;;  %v1027_v40 = vld [vmem:[%s759_s21 + $0x1f8] sm:$0xff]  ;;  %v1284_v50 = vmax.f32 %v883_v26, 0.0  ;;  %v390_v12 = vadd.f32 %v764_v1, %v319_v34 }
  0x29   : > { %1263 = vst [vmem:[#allocation8_spill] sm:$0xff] %v1021_v54  ;;  %1264 = vst [vmem:[#allocation9_spill] sm:$0xff] %v1024_v44  ;;  %v1266_v54 = vmax.f32 %v781_v16, 0.0  ;;  %v1267_v44 = vmax.f32 %v784_v17, 0.0  ;;  %v1271_v16 = vmax.f32 %v800_v25, 0.0  ;;  %v1272_v17 = vmax.f32 %v810_v33, 0.0 }
  0x2a   : > { %1265 = vst [vmem:[#allocation10_spill] sm:$0xff] %v1027_v40  ;;  %v1268_v40 = vmax.f32 %v787_v18, 0.0  ;;  %488 = vst [vmem:[%s923_s26 + $0x18] sm:$0xff] %v1269_v31  ;;  %v1273_v18 = vmax.f32 %v817_v38, 0.0  ;;  %v1277_v25 = vmax.f32 %v842_v55, 0.0  ;;  %v1278_v33 = vmax.f32 %v845_v56, 0.0 }
  0x2b   : > { %485 = vst [vmem:[%s923_s26] sm:$0xff] %v1266_v54  ;;  %486 = vst [vmem:[%s923_s26 + $0x8] sm:$0xff] %v1267_v44  ;;  %v1279_v38 = vmax.f32 %v848_v57, 0.0  ;;  %v1281_v44 = vmax.f32 %v865_v8, 0.0  ;;  %v1285_v55 = vmax.f32 %v890_v39, 0.0  ;;  %v1286_v56 = vmax.f32 %v893_v41, 0.0 }
  0x2c   : > { %487 = vst [vmem:[%s923_s26 + $0x10] sm:$0xff] %v1268_v40  ;;  %489 = vst [vmem:[%s923_s26 + $0x20] sm:$0xff] %v1270_v30  ;;  %v1280_v40 = vmax.f32 %v858_v3, 0.0  ;;  %v1287_v57 = vmax.f32 %v896_v42, 0.0  ;;  %v384_v3 = vadd.f32 %v764_v1, %v313_v28  ;;  %v385_v8 = vadd.f32 %v764_v1, %v314_v29 }
  0x2d   : > { %490 = vst [vmem:[%s923_s26 + $0x28] sm:$0xff] %v1271_v16  ;;  %491 = vst [vmem:[%s923_s26 + $0x30] sm:$0xff] %v1272_v17  ;;  %v445_v26 = vmax.f32 %v381_v9, 0.0  ;;  %v446_v39 = vmax.f32 %v382_v45, 0.0  ;;  %v447_v41 = vmax.f32 %v383_v46, 0.0  ;;  %v387_v42 = vadd.f32 %v764_v1, %v316_v47  ;;  %v1289_v34 = vld [vmem:[#allocation3_spill] sm:$0xff] }
  0x2e   : > { %492 = vst [vmem:[%s923_s26 + $0x38] sm:$0xff] %v1273_v18  ;;  %493 = vst [vmem:[%s923_s26 + $0x40] sm:$0xff] %v1274_v23  ;;  %v449_v58 = vmax.f32 %v385_v8, 0.0  ;;  %v388_v28 = vadd.f32 %v764_v1, %v317_v22  ;;  %v320_v54 = vmul.f32 %v752_v0, %v932_v13  ;;  %v321_v45 = vmul.f32 %v752_v0, %v935_v15 }
  0x2f   : > { %494 = vst [vmem:[%s923_s26 + $0x48] sm:$0xff] %v1275_v24  ;;  %495 = vst [vmem:[%s923_s26 + $0x50] sm:$0xff] %v1276_v32  ;;  %v451_v29 = vmax.f32 %v387_v42, 0.0  ;;  %v322_v46 = vmul.f32 %v752_v0, %v938_v19  ;;  %v323_v47 = vmul.f32 %v752_v0, %v941_v20  ;;  %v324_v31 = vmul.f32 %v752_v0, %v944_v27 }
  0x30   : > { %496 = vst [vmem:[%s923_s26 + $0x58] sm:$0xff] %v1277_v25  ;;  %497 = vst [vmem:[%s923_s26 + $0x60] sm:$0xff] %v1278_v33  ;;  %v452_v9 = vmax.f32 %v388_v28, 0.0  ;;  %v391_v13 = vadd.f32 %v764_v1, %v320_v54  ;;  %v392_v15 = vadd.f32 %v764_v1, %v321_v45  ;;  %v325_v30 = vmul.f32 %v752_v0, %v947_v43  ;;  %v1290_v45 = vld [vmem:[#allocation4_spill] sm:$0xff] }
  0x31   : > { %498 = vst [vmem:[%s923_s26 + $0x68] sm:$0xff] %v1279_v38  ;;  %499 = vst [vmem:[%s923_s26 + $0x70] sm:$0xff] %v1280_v40  ;;  %v393_v19 = vadd.f32 %v764_v1, %v322_v46  ;;  %v394_v20 = vadd.f32 %v764_v1, %v323_v47  ;;  %v453_v16 = vmax.f32 %v389_v11, 0.0  ;;  %v454_v17 = vmax.f32 %v390_v12, 0.0 }
  0x32   : > { %500 = vst [vmem:[%s923_s26 + $0x78] sm:$0xff] %v1281_v44  ;;  %501 = vst [vmem:[%s923_s26 + $0x80] sm:$0xff] %v1282_v48  ;;  %v455_v18 = vmax.f32 %v391_v13, 0.0  ;;  %v395_v23 = vadd.f32 %v764_v1, %v324_v31  ;;  %v456_v27 = vmax.f32 %v392_v15, 0.0  ;;  %v396_v25 = vadd.f32 %v764_v1, %v325_v30 }
  0x33   : > { %502 = vst [vmem:[%s923_s26 + $0x88] sm:$0xff] %v1283_v49  ;;  %503 = vst [vmem:[%s923_s26 + $0x90] sm:$0xff] %v1284_v50  ;;  %v457_v24 = vmax.f32 %v393_v19, 0.0  ;;  %v458_v32 = vmax.f32 %v394_v20, 0.0  ;;  %v326_v43 = vmul.f32 %v752_v0, %v950_v4  ;;  %v327_v38 = vmul.f32 %v752_v0, %v953_v61 }
  0x34   : > { %504 = vst [vmem:[%s923_s26 + $0x98] sm:$0xff] %v1285_v55  ;;  %505 = vst [vmem:[%s923_s26 + $0xa0] sm:$0xff] %v1286_v56  ;;  %v459_v33 = vmax.f32 %v395_v23, 0.0  ;;  %v328_v40 = vmul.f32 %v752_v0, %v956_v60  ;;  %v460_v44 = vmax.f32 %v396_v25, 0.0  ;;  %v329_v48 = vmul.f32 %v752_v0, %v959_v53  ;;  %v1293_v25 = vld [vmem:[#allocation7_spill] sm:$0xff] }
  0x35   : > { %506 = vst [vmem:[%s923_s26 + $0xa8] sm:$0xff] %v1287_v57  ;;  %507 = vst [vmem:[%s923_s26 + $0xb0] sm:$0xff] %v443_v35  ;;  %v448_v35 = vmax.f32 %v384_v3, 0.0  ;;  %v330_v49 = vmul.f32 %v752_v0, %v962_v52  ;;  %v331_v50 = vmul.f32 %v752_v0, %v965_v51  ;;  %v397_v4 = vadd.f32 %v764_v1, %v326_v43  ;;  %v1294_v43 = vld [vmem:[#allocation8_spill] sm:$0xff] }
  0x36   : > { %508 = vst [vmem:[%s923_s26 + $0xb8] sm:$0xff] %v444_v36  ;;  %v450_v36 = vmax.f32 %v386_v21, 0.0  ;;  %509 = vst [vmem:[%s923_s26 + $0xc0] sm:$0xff] %v445_v26  ;;  %v398_v61 = vadd.f32 %v764_v1, %v327_v38  ;;  %v399_v60 = vadd.f32 %v764_v1, %v328_v40  ;;  %v332_v55 = vmul.f32 %v752_v0, %v968_v14 }
  0x37   : > { %510 = vst [vmem:[%s923_s26 + $0xc8] sm:$0xff] %v446_v39  ;;  %511 = vst [vmem:[%s923_s26 + $0xd0] sm:$0xff] %v447_v41  ;;  %v400_v53 = vadd.f32 %v764_v1, %v329_v48  ;;  %v401_v52 = vadd.f32 %v764_v1, %v330_v49  ;;  %v402_v51 = vadd.f32 %v764_v1, %v331_v50  ;;  %v461_v57 = vmax.f32 %v397_v4, 0.0 }
  0x38   : > { %512 = vst [vmem:[%s923_s26 + $0xd8] sm:$0xff] %v448_v35  ;;  %513 = vst [vmem:[%s923_s26 + $0xe0] sm:$0xff] %v449_v58  ;;  %v333_v56 = vmul.f32 %v752_v0, %v971_v10  ;;  %v462_v3 = vmax.f32 %v398_v61, 0.0  ;;  %v463_v8 = vmax.f32 %v399_v60, 0.0  ;;  %v403_v21 = vadd.f32 %v764_v1, %v332_v55  ;;  %v1296_v61 = vld [vmem:[#allocation10_spill] sm:$0xff] }
  0x39   : > { %514 = vst [vmem:[%s923_s26 + $0xe8] sm:$0xff] %v450_v36  ;;  %515 = vst [vmem:[%s923_s26 + $0xf0] sm:$0xff] %v451_v29  ;;  %v464_v14 = vmax.f32 %v400_v53, 0.0  ;;  %v465_v22 = vmax.f32 %v401_v52, 0.0  ;;  %v466_v26 = vmax.f32 %v402_v51, 0.0  ;;  %v334_v10 = vmul.f32 %v752_v0, %v974_v7  ;;  %v1288_v29 = vld [vmem:[#allocation2_spill] sm:$0xff] }
  0x3a   : > { %516 = vst [vmem:[%s923_s26 + $0xf8] sm:$0xff] %v452_v9  ;;  %517 = vst [vmem:[%s923_s26 + $0x100] sm:$0xff] %v453_v16  ;;  %v404_v39 = vadd.f32 %v764_v1, %v333_v56  ;;  %v467_v41 = vmax.f32 %v403_v21, 0.0  ;;  %v335_v42 = vmul.f32 %v752_v0, %v977_v6  ;;  %v336_v35 = vmul.f32 %v752_v0, %v980_v5 }
  0x3b   : > { %518 = vst [vmem:[%s923_s26 + $0x108] sm:$0xff] %v454_v17  ;;  %519 = vst [vmem:[%s923_s26 + $0x110] sm:$0xff] %v455_v18  ;;  %v337_v36 = vmul.f32 %v752_v0, %v983_v2  ;;  %v338_v28 = vmul.f32 %v752_v0, %v986_v63  ;;  %v339_v59 = vmul.f32 %v752_v0, %v1288_v29  ;;  %v1291_v17 = vld [vmem:[#allocation5_spill] sm:$0xff] }
  0x3c   : > { %520 = vst [vmem:[%s923_s26 + $0x118] sm:$0xff] %v456_v27  ;;  %521 = vst [vmem:[%s923_s26 + $0x120] sm:$0xff] %v457_v24  ;;  %v468_v58 = vmax.f32 %v404_v39, 0.0  ;;  %v405_v7 = vadd.f32 %v764_v1, %v334_v10  ;;  %v406_v6 = vadd.f32 %v764_v1, %v335_v42  ;;  %v407_v5 = vadd.f32 %v764_v1, %v336_v35  ;;  %v1292_v24 = vld [vmem:[#allocation6_spill] sm:$0xff] }
  0x3d   : > { %522 = vst [vmem:[%s923_s26 + $0x128] sm:$0xff] %v458_v32  ;;  %523 = vst [vmem:[%s923_s26 + $0x130] sm:$0xff] %v459_v33  ;;  %v340_v54 = vmul.f32 %v752_v0, %v1289_v34  ;;  %v408_v2 = vadd.f32 %v764_v1, %v337_v36  ;;  %v409_v63 = vadd.f32 %v764_v1, %v338_v28 }
  0x3e   : > { %524 = vst [vmem:[%s923_s26 + $0x138] sm:$0xff] %v460_v44  ;;  %525 = vst [vmem:[%s923_s26 + $0x140] sm:$0xff] %v461_v57  ;;  %v410_v9 = vadd.f32 %v764_v1, %v339_v59  ;;  %v341_v46 = vmul.f32 %v752_v0, %v1290_v45  ;;  %v469_v47 = vmax.f32 %v405_v7, 0.0  ;;  %v470_v11 = vmax.f32 %v406_v6, 0.0  ;;  %v1295_v44 = vld [vmem:[#allocation9_spill] sm:$0xff] }
  0x3f   : > { %526 = vst [vmem:[%s923_s26 + $0x148] sm:$0xff] %v462_v3  ;;  %527 = vst [vmem:[%s923_s26 + $0x150] sm:$0xff] %v463_v8  ;;  %v471_v12 = vmax.f32 %v407_v5, 0.0  ;;  %v411_v13 = vadd.f32 %v764_v1, %v340_v54  ;;  %v472_v31 = vmax.f32 %v408_v2, 0.0  ;;  %v473_v15 = vmax.f32 %v409_v63, 0.0 }
  0x40   : > { %528 = vst [vmem:[%s923_s26 + $0x158] sm:$0xff] %v464_v14  ;;  %529 = vst [vmem:[%s923_s26 + $0x160] sm:$0xff] %v465_v22  ;;  %v474_v19 = vmax.f32 %v410_v9, 0.0  ;;  %v412_v20 = vadd.f32 %v764_v1, %v341_v46  ;;  %v342_v16 = vmul.f32 %v752_v0, %v998_v37  ;;  %v343_v18 = vmul.f32 %v752_v0, %v1291_v17 }
  0x41   : > { %530 = vst [vmem:[%s923_s26 + $0x168] sm:$0xff] %v466_v26  ;;  %531 = vst [vmem:[%s923_s26 + $0x170] sm:$0xff] %v467_v41  ;;  %v475_v30 = vmax.f32 %v411_v13, 0.0  ;;  %v344_v23 = vmul.f32 %v752_v0, %v1008_v62  ;;  %v345_v32 = vmul.f32 %v752_v0, %v1292_v24  ;;  %v346_v33 = vmul.f32 %v752_v0, %v1293_v25 }
  0x42   : > { %532 = vst [vmem:[%s923_s26 + $0x178] sm:$0xff] %v468_v58  ;;  %533 = vst [vmem:[%s923_s26 + $0x180] sm:$0xff] %v469_v47  ;;  %v476_v27 = vmax.f32 %v412_v20, 0.0  ;;  %v347_v38 = vmul.f32 %v752_v0, %v1294_v43  ;;  %v413_v37 = vadd.f32 %v764_v1, %v342_v16  ;;  %v414_v40 = vadd.f32 %v764_v1, %v343_v18 }
  0x43   : > { %534 = vst [vmem:[%s923_s26 + $0x188] sm:$0xff] %v470_v11  ;;  %535 = vst [vmem:[%s923_s26 + $0x190] sm:$0xff] %v471_v12  ;;  %v415_v62 = vadd.f32 %v764_v1, %v344_v23  ;;  %v348_v48 = vmul.f32 %v752_v0, %v1295_v44  ;;  %v416_v49 = vadd.f32 %v764_v1, %v345_v32 }
  0x44   : > { %536 = vst [vmem:[%s923_s26 + $0x198] sm:$0xff] %v472_v31  ;;  %537 = vst [vmem:[%s923_s26 + $0x1a0] sm:$0xff] %v473_v15  ;;  %v417_v50 = vadd.f32 %v764_v1, %v346_v33  ;;  %v418_v4 = vadd.f32 %v764_v1, %v347_v38  ;;  %v349_v60 = vmul.f32 %v752_v0, %v1296_v61  ;;  %v477_v55 = vmax.f32 %v413_v37, 0.0 }
  0x45   : > { %538 = vst [vmem:[%s923_s26 + $0x1a8] sm:$0xff] %v474_v19  ;;  %539 = vst [vmem:[%s923_s26 + $0x1b0] sm:$0xff] %v475_v30  ;;  %v478_v53 = vmax.f32 %v414_v40, 0.0  ;;  %v479_v52 = vmax.f32 %v415_v62, 0.0  ;;  %v419_v51 = vadd.f32 %v764_v1, %v348_v48  ;;  %v480_v56 = vmax.f32 %v416_v49, 0.0 }
  0x46   : > { %540 = vst [vmem:[%s923_s26 + $0x1b8] sm:$0xff] %v476_v27  ;;  %v481_v57 = vmax.f32 %v417_v50, 0.0  ;;  %v482_v3 = vmax.f32 %v418_v4, 0.0  ;;  %v420_v8 = vadd.f32 %v764_v1, %v349_v60  ;;  %541 = vst [vmem:[%s923_s26 + $0x1c0] sm:$0xff] %v477_v55 }
  0x47   : > { %542 = vst [vmem:[%s923_s26 + $0x1c8] sm:$0xff] %v478_v53  ;;  %543 = vst [vmem:[%s923_s26 + $0x1d0] sm:$0xff] %v479_v52  ;;  %v483_v21 = vmax.f32 %v419_v51, 0.0 }
  0x48   : > { %544 = vst [vmem:[%s923_s26 + $0x1d8] sm:$0xff] %v480_v56  ;;  %545 = vst [vmem:[%s923_s26 + $0x1e0] sm:$0xff] %v481_v57  ;;  %v484_v0 = vmax.f32 %v420_v8, 0.0 }
  0x49   : > { %546 = vst [vmem:[%s923_s26 + $0x1e8] sm:$0xff] %v482_v3  ;;  %547 = vst [vmem:[%s923_s26 + $0x1f0] sm:$0xff] %v483_v21 }
  0x4a   : > { %548 = vst [vmem:[%s923_s26 + $0x1f8] sm:$0xff] %v484_v0 }
  0x4b PF: > { %s13_s14 = sadd.s32 1, %s706_s14   ;;  %s1297_s12 = smov %s702_s13 }
  0x4c   : > { %p10_p5 = scmp.ge.s32.totalorder %s13_s14, 4   ;;  %s1298_s13 = smov %s1300_s15 }
  0x4e   :  { %12 = sbr.rel (!%p10_p5) target bundleno = 2 (0x2), region = 62 }

// kernel: decoder_center_forward.2
= control target key start
LH: loop header
LB: loop body
LE: loop exit
PB: predicated region body
PF: predicated region fallthrough
CT: control target
= control target key end

     0   :  { %s9375_s24 = smov 0   ;;  %s14075_s0 = inlined_call_operand.vmem [shape: bf16[2,16,16,4], index: 0, kind: input, shape index: {}]   ;;  %s14076_s1 = inlined_call_operand.vmem [shape: bf16[36,8], index: 1, kind: input, shape index: {}]   ;;  %s14077_s2 = inlined_call_operand.vmem [shape: f32[1,8], index: 2, kind: input, shape index: {}]   ;;  %s14078_s3 = inlined_call_operand.vmem [shape: bf16[48,128], index: 3, kind: input, shape index: {}]   ;;  %s14079_s4 = inlined_call_operand.vmem [shape: bf16[48,128], index: 4, kind: input, shape index: {}]   ;;  %s14080_s5 = inlined_call_operand.vmem [shape: f32[1,128], index: 5, kind: input, shape index: {}]   ;;  %s14081_s6 = inlined_call_operand.vmem [shape: f32[2,16,2,16,128], index: 6, kind: output, shape index: {0}]   ;;  %s14082_s7 = inlined_call_operand.vmem [shape: f32[2,2,128], index: 7, kind: output, shape index: {1}]  }
   0x1 LB: > { %s8431_s25 = sadd.s32 4294967295, %s9323_s24   ;;  %p8435_p0 = scmp.ge.s32.totalorder %s9323_s24, 1  ;;  %s9323_s24 = sphi %s9375_s24, %s18_s24  }
   0x2   : > { %p240_p1 = scmp.lt.s32.totalorder %s9323_s24, 3 }
   0x4   : > { %p241_p2 = pnand %p8435_p0, %p240_p1 }
   0x6   : > { %244 = sbr.rel (%p241_p2) target bundleno = 1304 (0x518), region = 44 }
   0xd   : > { %vm291_vm0 = vcmask 27648   ;;  %vm294_vm1 = vcmask 24576   ;;  %vm14091_vm2 = vsmask.f32 256  ;;  %v14083_v0 = vmov 0   ;;  %p276_p3 = scmp.lt.s32.totalorder %s8431_s25, 1 }
   0xe   : > { %292 = vst.msk [vmem:[#allocation2] sm:$0xf] %vm291_vm0, %v14083_v0  ;;  %293 = vst.msk [vmem:[#allocation2 + $0x4] sm:$0xf] %vm291_vm0, %v14083_v0  ;;  %vm14089_vm4 = vcmask 60416   ;;  %vm1381_vm7 = vcmask 1042432  }
   0xf   : > { %295 = vst.msk [vmem:[#allocation2 + $0x8] sm:$0x1] %vm294_vm1, %v14083_v0  ;;  %vm9391_vm3 = vmand %vm294_vm1, %vm14091_vm2  ;;  %vm14090_vm5 = vsmask.f32 7938  ;;  %v306_v2 = vld [vmem:[#allocation2 + $0xc] sm:$0x1] }
  0x10   : > { %297 = vst.msk [vmem:[#allocation2 + $0xcc] sm:$0xf] %vm291_vm0, %v14083_v0  ;;  %298 = vst.msk [vmem:[#allocation2 + $0xd0] sm:$0xf] %vm291_vm0, %v14083_v0  ;;  %s14529_s25 = smov (!%p276_p3, %s8431_s25), 1  ;;  %v307_v3 = vsel %vm9391_vm3, 0, %v306_v2 }
  0x11   : > { %299 = vst.msk [vmem:[#allocation2 + $0xd4] sm:$0x1] %vm294_vm1, %v14083_v0  ;;  %v309_v4 = vld [vmem:[#allocation2 + $0x18] sm:$0x1]  ;;  %v312_v5 = vld [vmem:[#allocation2 + $0x24] sm:$0x1]  ;;  %vm9419_vm6 = vmand %vm294_vm1, %vm14090_vm5 }
  0x12   : > { %3987 = vst.msk [vmem:[#allocation3] sm:$0xf] %vm14089_vm4, %v14083_v0  ;;  %3988 = vst.msk [vmem:[#allocation3 + $0x4] sm:$0xf] %vm14089_vm4, %v14083_v0  ;;  %v310_v6 = vsel %vm9391_vm3, 0, %v309_v4  ;;  %v313_v7 = vsel %vm9391_vm3, 0, %v312_v5 }
  0x13   : > { %3992 = vst.msk [vmem:[#allocation3 + $0xcc] sm:$0xf] %vm14089_vm4, %v14083_v0  ;;  %3993 = vst.msk [vmem:[#allocation3 + $0xd0] sm:$0xf] %vm14089_vm4, %v14083_v0  ;;  %s8951_s26 = sshll.u32 %s14529_s25, 7  ;;  %vm1382_vm8 = vcmask 1046532  }
  0x14   : > { %308 = vst [vmem:[#allocation2 + $0xc] sm:$0x1] %v307_v3  ;;  %311 = vst [vmem:[#allocation2 + $0x18] sm:$0x1] %v310_v6  ;;  %v362_v9 = vld [vmem:[#allocation2 + $0x14] sm:$0x1]  ;;  %s9427_s29 = scalar_lea.vmem %s14075_s0, %s8951_s26 }
  0x15   : > { %314 = vst [vmem:[#allocation2 + $0x24] sm:$0x1] %v313_v7  ;;  %v365_v10 = vld [vmem:[#allocation2 + $0x20] sm:$0x1]  ;;  %vm445_vm9 = vsmask.f32 4368  ;;  %vm9446_vm10 = vmor %vm1381_vm7, %vm1382_vm8 }
  0x16   : > { %v363_v11 = vsel %vm9419_vm6, 0, %v362_v9  ;;  %v366_v12 = vsel %vm9419_vm6, 0, %v365_v10  ;;  %v413_v13 = vld [vmem:[%s9427_s29] sm:$0xf]  ;;  %v414_v14 = vld [vmem:[%s9427_s29 + $0x4] sm:$0xf]  ;;  %vm9452_vm11 = vmand %vm291_vm0, %vm14090_vm5 }
  0x17   : > { %v415_v15 = vld [vmem:[%s9427_s29 + $0x8] sm:$0xf]  ;;  %364 = vst [vmem:[#allocation2 + $0x14] sm:$0x1] %v363_v11  ;;  %367 = vst [vmem:[#allocation2 + $0x20] sm:$0x1] %v366_v12 }
  0x18   : > { %v359_v16 = vld [vmem:[#allocation2 + $0x8] sm:$0x1]  ;;  %v9436_v17 = vld [vmem:[#allocation2 + $0x4] sm:$0xf]  ;;  %v1317_v18 = vld [vmem:[#allocation2] sm:$0xe] }
  0x19   : > { %v360_v19 = vsel %vm9419_vm6, 0, %v359_v16  ;;  %v8441_v20 = vrot.slane %v1317_v18, 9  ;;  %v1386_v21 = vrot.slane %v9436_v17, 5  ;;  %v303_v22 = vld [vmem:[#allocation2] sm:$0x1]  ;;  %v448_v23 = vshrl.u32 %v413_v13, 16  ;;  %vm9458_vm12 = vmor %vm14091_vm2, %vm445_vm9 }
  0x1a   : > { %361 = vst [vmem:[#allocation2 + $0x8] sm:$0x1] %v360_v19  ;;  %v304_v24 = vsel %vm9391_vm3, 0, %v303_v22  ;;  %v451_v25 = vshll.u32 %v413_v13, 16  ;;  %v456_v26 = vshrl.u32 %v414_v14, 16  ;;  %v459_v27 = vshll.u32 %v414_v14, 16 }
  0x1b   : > { %v416_v28 = vld [vmem:[%s9427_s29 + $0xc] sm:$0xf]  ;;  %305 = vst [vmem:[#allocation2] sm:$0x1] %v304_v24  ;;  %v450_v30 = vrot.slane %v448_v23, 7  ;;  %v465_v31 = vshrl.u32 %v415_v15, 16  ;;  %v1387_v44 = vsel %vm9446_vm10, %v8441_v20, %v1386_v21 }
  0x1c   : > { %v458_v33 = vrot.slane %v456_v26, 7  ;;  %v770_v34 = vld [vmem:[#allocation2 + $0xc] sm:$0xf]  ;;  %v468_v35 = vshll.u32 %v415_v15, 16  ;;  %v473_v36 = vshrl.u32 %v416_v28, 16  ;;  %v476_v37 = vshll.u32 %v416_v28, 16 }
  0x1d   : > { %v1388_v38 = vrot.slane %v1386_v21, 4  ;;  %v453_v40 = vor.u32 %v451_v25, %v450_v30  ;;  %v454_v41 = vrot.slane %v450_v30, 4  ;;  %v467_v42 = vrot.slane %v465_v31, 7  ;;  %v417_v43 = vld [vmem:[%s9427_s29 + $0x10] sm:$0xf]  ;;  %s9326_s30 = smov 8  }
  0x1e   : > { %v461_v45 = vor.u32 %v459_v27, %v458_v33  ;;  %v475_v46 = vrot.slane %v473_v36, 7  ;;  %v777_v47 = vld [vmem:[#allocation2 + $0x18] sm:$0xf]  ;;  %v418_v48 = vld [vmem:[%s9427_s29 + $0x14] sm:$0xf]  ;;  %v482_v49 = vshrl.u32 %v417_v43, 16 }
  0x1f   : > { %v771_v50 = vsel %vm9452_vm11, %v453_v40, %v770_v34  ;;  %v470_v51 = vor.u32 %v468_v35, %v467_v42  ;;  %v471_v52 = vrot.slane %v467_v42, 4  ;;  %v485_v53 = vshll.u32 %v417_v43, 16  ;;  %v784_v58 = vld [vmem:[#allocation2 + $0x24] sm:$0xf]  ;;  %v774_v12 = vld [vmem:[#allocation2 + $0x14] sm:$0x1] }
  0x20   : > { %v462_v54 = vsel %vm9458_vm12, %v454_v41, %v461_v45  ;;  %v463_v55 = vrot.slane %v458_v33, 4  ;;  %772 = vst [vmem:[#allocation2 + $0xc] sm:$0xf] %v771_v50  ;;  %v478_v56 = vor.u32 %v476_v37, %v475_v46  ;;  %v484_v57 = vrot.slane %v482_v49, 7  ;;  %v781_v18 = vld [vmem:[#allocation2 + $0x20] sm:$0x1] }
  0x21   : > { %v914_v59 = vld [vmem:[#allocation2 + $0x8] sm:$0x1]  ;;  %773 = vst.msk [vmem:[#allocation2 + $0x10] sm:$0xf] %vm291_vm0, %v462_v54  ;;  %v778_v60 = vsel %vm9452_vm11, %v470_v51, %v777_v47  ;;  %v490_v61 = vshrl.u32 %v418_v48, 16  ;;  %v493_v62 = vshll.u32 %v418_v48, 16 }
  0x22   : > { %v943_v63 = vshll.u32 %v9436_v17, 16  ;;  %v1389_v2 = vrot.slane %v914_v59, 5  ;;  %v479_v3 = vsel %vm9458_vm12, %v471_v52, %v478_v56  ;;  %v480_v4 = vrot.slane %v475_v46, 4  ;;  %779 = vst [vmem:[#allocation2 + $0x18] sm:$0xf] %v778_v60  ;;  %s9327_s8 = smov 12  }
  0x23   : > { %v487_v5 = vor.u32 %v485_v53, %v484_v57  ;;  %v882_v6 = vld [vmem:[#allocation2] sm:$0xf]  ;;  %780 = vst.msk [vmem:[#allocation2 + $0x1c] sm:$0xf] %vm291_vm0, %v479_v3  ;;  %v488_v7 = vrot.slane %v484_v57, 4  ;;  %v9477_v9 = vrot.slane %v490_v61, 7  ;;  %v775_v25 = vsel %vm9391_vm3, %v463_v55, %v774_v12 }
  0x24   : > { %v934_v10 = vshrl.u32 %v882_v6, 16  ;;  %v937_v11 = vshll.u32 %v882_v6, 16  ;;  %v953_v13 = vshll.u32 %v914_v59, 16  ;;  %v1390_v14 = vsel %vm9446_vm10, %v1388_v38, %v1389_v2  ;;  %776 = vst [vmem:[#allocation2 + $0x14] sm:$0x1] %v775_v25  ;;  %s9328_s9 = smov 24  }
  0x25   : > { %v785_v15 = vsel %vm9452_vm11, %v487_v5, %v784_v58  ;;  %v947_v16 = vshrl.u32 %v9436_v17, 16  ;;  %v8521_v19 = vcombine.low %v1387_v44, %v1390_v14  ;;  %v495_v20 = vor.u32 %v493_v62, %v9477_v9  ;;  %s9329_s10 = smov 4   ;;  %s9330_s11 = smov 20  }
  0x26   : > { %786 = vst [vmem:[#allocation2 + $0x24] sm:$0xf] %v785_v15  ;;  %v936_v21 = vrot.slane %v934_v10, 4  ;;  %v9485_v22 = vrot.slane %v943_v63, 5  ;;  %v939_v23 = vrot.slane %v937_v11, 5  ;;  %v782_v27 = vsel %vm9391_vm3, %v480_v4, %v781_v18  ;;  %s9331_s12 = smov 32  }
  0x27   : > { %v949_v24 = vrot.slane %v947_v16, 4  ;;  %2905 = vrot.lane.b32.xlu1 %v8521_v19, %s9326_s30  ;;  %v1496_v26 = vld [vmem:[#allocation2 + $0xc] sm:$0xf]  ;;  %v496_v17 = vsel %vm9458_vm12, %v488_v7, %v495_v20  ;;  %vm930_vm13 = vsmask.f32 3328  ;;  %v497_v33 = vrot.slane %v9477_v9, 4 }
  0x28   : > { %vm931_vm14 = vsmask.f32 7440  ;;  %v9494_v28 = vld [vmem:[#allocation2 + $0x10] sm:$0xf]  ;;  %v1545_v30 = vshrl.u32 %v1496_v26, 16  ;;  %v1548_v31 = vshll.u32 %v1496_v26, 16  ;;  %v940_v40 = vor.u32 %v939_v23, %v936_v21 }
  0x29   : > { %787 = vst.msk [vmem:[#allocation2 + $0x28] sm:$0xf] %vm291_vm0, %v496_v17  ;;  %v955_v34 = vrot.slane %v953_v13, 5  ;;  %783 = vst [vmem:[#allocation2 + $0x20] sm:$0x1] %v782_v27  ;;  %v1558_v35 = vshrl.u32 %v9494_v28, 16  ;;  %v8537_v36 = vcombine.low %v1496_v26, %v9494_v28  ;;  %v950_v41 = vor.u32 %v949_v24, %v9485_v22 }
  0x2a   : > { %v1498_v37 = vld [vmem:[#allocation2 + $0x18] sm:$0xf]  ;;  %v9503_v42 = vrot.slane %v1545_v30, 4  ;;  %v9505_v43 = vrot.slane %v1548_v31, 5  ;;  %v9507_v44 = vld [vmem:[#allocation2 + $0x1c] sm:$0xf]  ;;  %vm9533_vm15 = vmor %vm930_vm13, %vm931_vm14 }
  0x2b   : > { %v9500_v38 = vld [vmem:[#allocation2 + $0x18] sm:$0xf]  ;;  %v1569_v45 = vshrl.u32 %v1498_v37, 16  ;;  %v1572_v46 = vshll.u32 %v1498_v37, 16  ;;  %v9509_v47 = vld [vmem:[#allocation2 + $0x10] sm:$0xf]  ;;  %3001 = vrot.lane.b32.xlu0 %v8537_v36, %s9327_s8  ;;  %v8538_v51 = vcombine.low %v1498_v37, %v9507_v44 }
  0x2c   : > { %v1318_v48 = vld [vmem:[#allocation2 + $0xc] sm:$0xe]  ;;  %v1554_v49 = vshll.u32 %v9494_v28, 16  ;;  %v9512_v50 = vrot.slane %v1558_v35, 4  ;;  %v9516_v52 = vld [vmem:[#allocation2 + $0x1c] sm:$0xf]  ;;  %v1551_v3 = vor.u32 %v9505_v43, %v9503_v42 }
  0x2d   : > { %v2154_v53 = vshrl.u32 %v9500_v38, 16  ;;  %v1582_v54 = vshrl.u32 %v9507_v44, 16  ;;  %v9520_v55 = vrot.slane %v1569_v45, 4  ;;  %v9522_v56 = vrot.slane %v1572_v46, 5  ;;  %v2107_v58 = vld [vmem:[#allocation2 + $0x24] sm:$0xf]  ;;  %3003 = vrot.lane.b32.xlu1 %v8538_v51, %s9327_s8 }
  0x2e   : > { %v2157_v57 = vshll.u32 %v9500_v38, 16  ;;  %v2167_v60 = vshrl.u32 %v9516_v52, 16  ;;  %v8585_v61 = vcombine.low %v9500_v38, %v9516_v52  ;;  %v2178_v62 = vshrl.u32 %v2107_v58, 16  ;;  %v1928_v2 = vld [vmem:[#allocation2 + $0xc] sm:$0xe]  ;;  %s9332_s13 = smov 16  }
  0x2f   : > { %v9526_v59 = vrot.slane %v2154_v53, 4  ;;  %v2181_v4 = vshll.u32 %v2107_v58, 16  ;;  %v941_v5 = vrot.slane %v940_v40, 4  ;;  %v9539_v6 = vld [vmem:[#allocation2 + $0x14] sm:$0x1]  ;;  %v951_v12 = vrot.slane %v950_v41, 4 }
  0x30   : > { %v1929_v7 = vld [vmem:[#allocation2 + $0x18] sm:$0xe]  ;;  %3257 = vrot.lane.b32.xlu0 %v8585_v61, %s9328_s9  ;;  %v9542_v10 = vld [vmem:[#allocation2 + $0x28] sm:$0xf]  ;;  %v9544_v11 = vrot.slane %v2178_v62, 4  ;;  %v8442_v13 = vrot.slane %v1318_v48, 9  ;;  %v1575_v62 = vor.u32 %v9522_v56, %v9520_v55 }
  0x31   : > { %v1393_v14 = vrot.slane %v9509_v47, 5  ;;  %v9547_v15 = vrot.slane %v2181_v4, 5  ;;  %v2191_v16 = vshrl.u32 %v9542_v10, 16  ;;  %v8586_v18 = vcombine.low %v2107_v58, %v9542_v10  ;;  %v9554_v20 = vld [vmem:[#allocation2 + $0x14] sm:$0x1]  ;;  %s9333_s14 = smov 28  }
  0x32   : > { %v946_v19 = vsel %vm9533_vm15, %v941_v5, %v9485_v22  ;;  %v1529_v21 = vld [vmem:[#allocation2 + $0x20] sm:$0x1]  ;;  %v956_v23 = vsel %vm9533_vm15, %v951_v12, %v955_v34  ;;  %v1396_v26 = vrot.slane %v9539_v6, 5  ;;  %v2537_v17 = vld [vmem:[#allocation2 + $0x18] sm:$0xe]  ;;  %v8457_v30 = vrot.slane %v1928_v2, 9 }
  0x33   : > { %v1394_v24 = vsel %vm9446_vm10, %v8442_v13, %v1393_v14  ;;  %v1395_v25 = vrot.slane %v1393_v14, 4  ;;  %3259 = vrot.lane.b32.xlu1 %v8586_v18, %s9328_s9  ;;  %v8505_v27 = vcombine.low %v946_v19, %v956_v23  ;;  %v1994_v31 = vrot.slane %v9494_v28, 5  ;;  %v9564_v35 = vld [vmem:[#allocation2 + $0x20] sm:$0x1]  ;;  %v368_v58 = vld [vmem:[#allocation2 + $0x2c] sm:$0x1] }
  0x34   : > { %v1997_v22 = vrot.slane %v9554_v20, 5  ;;  %v8458_v36 = vrot.slane %v1929_v7, 9  ;;  %v2001_v37 = vrot.slane %v9507_v44, 5  ;;  %v2004_v40 = vrot.slane %v1529_v21, 5  ;;  %v2538_v5 = vld [vmem:[#allocation2 + $0x24] sm:$0xe] }
  0x35   : > { %v1397_v34 = vsel %vm9446_vm10, %v1395_v25, %v1396_v26  ;;  %2825 = vrot.lane.b32.xlu0 %v8505_v27, %s9329_s10  ;;  %v1995_v42 = vsel %vm9446_vm10, %v8457_v30, %v1994_v31  ;;  %v1996_v43 = vrot.slane %v1994_v31, 4  ;;  %v8473_v45 = vrot.slane %v2537_v17, 9  ;;  %v884_v56 = vld [vmem:[#allocation2 + $0xc] sm:$0xf]  ;;  %s9334_s23 = smov 40   ;;  %s8440_s27 = sshll.u32 %s14529_s25, 1 }
  0x36   : > { %v8522_v41 = vcombine.low %v1394_v24, %v1397_v34  ;;  %v2002_v46 = vsel %vm9446_vm10, %v8458_v36, %v2001_v37  ;;  %v2003_v48 = vrot.slane %v2001_v37, 4  ;;  %v2603_v51 = vrot.slane %v9516_v52, 5 }
  0x37   : > { %v2606_v53 = vrot.slane %v9564_v35, 5  ;;  %v1998_v61 = vsel %vm9446_vm10, %v1996_v43, %v1997_v22  ;;  %v1578_v2 = vshll.u32 %v9507_v44, 16  ;;  %v1584_v4 = vrot.slane %v1582_v54, 4 }
  0x38   : > { %2907 = vrot.lane.b32.xlu1 %v8522_v41, %s9326_s30  ;;  %v8569_v7 = vcombine.low %v1995_v42, %v1998_v61  ;;  %v2005_v12 = vsel %vm9446_vm10, %v2003_v48, %v2004_v40  ;;  %v2604_v13 = vsel %vm9446_vm10, %v8473_v45, %v2603_v51  ;;  %v2605_v14 = vrot.slane %v2603_v51, 4  ;;  %v9616_v45 = vld [vmem:[#allocation2 + $0x1c] sm:$0xf] }
  0x39   : > { %v8570_v18 = vcombine.low %v2002_v46, %v2005_v12  ;;  %v1576_v19 = vrot.slane %v1575_v62, 4  ;;  %v1580_v23 = vrot.slane %v1578_v2, 5  ;;  %v1588_v24 = vshll.u32 %v1529_v21, 16  ;;  %v9623_v62 = vld [vmem:[#allocation2 + $0x20] sm:$0x1] }
  0x3a   : > { %v9586_v25 = vrot.slane %v1551_v3, 4  ;;  %3161 = vrot.lane.b32.xlu0 %v8569_v7, %s9330_s11  ;;  %v2607_v44 = vsel %vm9446_vm10, %v2605_v14, %v2606_v53  ;;  %v369_v54 = vsel %vm9419_vm6, 0, %v368_v58  ;;  %v8474_v55 = vrot.slane %v2538_v5, 9 }
  0x3b   : > { %v9595_v26 = vrot.slane %v2157_v57, 5  ;;  %v8617_v21 = vcombine.low %v2604_v13, %v2607_v44  ;;  %v1585_v3 = vor.u32 %v1584_v4, %v1580_v23  ;;  %v1590_v17 = vrot.slane %v1588_v24, 5  ;;  %370 = vst [vmem:[#allocation2 + $0x2c] sm:$0x1] %v369_v54 }
  0x3c   : > { %3163 = vrot.lane.b32.xlu1 %v8570_v18, %s9330_s11  ;;  %v1581_v27 = vsel %vm9533_vm15, %v1576_v19, %v1580_v23  ;;  %v2610_v30 = vrot.slane %v9542_v10, 5  ;;  %v2184_v31 = vor.u32 %v9547_v15, %v9544_v11  ;;  %v2187_v22 = vshll.u32 %v9542_v10, 16  ;;  %v886_v11 = vld [vmem:[#allocation2 + $0x18] sm:$0xf]  ;;  %v888_v23 = vld [vmem:[#allocation2 + $0x24] sm:$0xf] }
  0x3d   : > { %v1586_v34 = vrot.slane %v1585_v3, 4  ;;  %v2193_v38 = vrot.slane %v2191_v16, 4  ;;  %v958_v57 = vshrl.u32 %v884_v56, 16  ;;  %v961_v36 = vshll.u32 %v884_v56, 16 }
  0x3e   : > { %3417 = vrot.lane.b32.xlu0 %v8617_v21, %s9331_s12  ;;  %v9607_v37 = vsel %vm9446_vm10, %v8474_v55, %v2610_v30  ;;  %v9609_v40 = vrot.slane %v2187_v22, 5  ;;  %v967_v41 = vshll.u32 %v9509_v47, 16  ;;  %v971_v42 = vshrl.u32 %v9509_v47, 16 }
  0x3f   : > { %v1591_v10 = vsel %vm9533_vm15, %v1586_v34, %v1590_v17  ;;  %v960_v15 = vrot.slane %v958_v57, 4  ;;  %v963_v16 = vrot.slane %v961_v36, 5  ;;  %v977_v43 = vshll.u32 %v9539_v6, 16 }
  0x40   : > { %v8554_v46 = vcombine.low %v1581_v27, %v1591_v10  ;;  %v9618_v48 = vrot.slane %v2610_v30, 4  ;;  %v9620_v51 = vrot.slane %v2184_v31, 4  ;;  %v969_v53 = vrot.slane %v967_v41, 5  ;;  %v9642_v30 = vld [vmem:[#allocation2 + $0x28] sm:$0xf] }
  0x41   : > { %v2194_v58 = vor.u32 %v2193_v38, %v9609_v40  ;;  %v964_v61 = vor.u32 %v963_v16, %v960_v15  ;;  %v973_v47 = vrot.slane %v971_v42, 4  ;;  %v982_v2 = vshrl.u32 %v886_v11, 16 }
  0x42   : > { %3083 = vrot.lane.b32.xlu1 %v8554_v46, %s9332_s13  ;;  %v788_v4 = vld [vmem:[#allocation2 + $0x2c] sm:$0x1]  ;;  %v979_v6 = vrot.slane %v977_v43, 5  ;;  %v985_v5 = vshll.u32 %v886_v11, 16  ;;  %v991_v7 = vshll.u32 %v9616_v45, 16  ;;  %v995_v12 = vshrl.u32 %v9616_v45, 16 }
  0x43   : > { %v789_v13 = vsel %vm9391_vm3, %v497_v33, %v788_v4  ;;  %v965_v14 = vrot.slane %v964_v61, 4  ;;  %v974_v18 = vor.u32 %v973_v47, %v969_v53  ;;  %v984_v19 = vrot.slane %v982_v2, 4 }
  0x44   : > { %790 = vst [vmem:[#allocation2 + $0x2c] sm:$0x1] %v789_v13  ;;  %v987_v24 = vrot.slane %v985_v5, 5  ;;  %v993_v44 = vrot.slane %v991_v7, 5  ;;  %v997_v54 = vrot.slane %v995_v12, 4  ;;  %v1001_v55 = vshll.u32 %v9623_v62, 16 }
  0x45   : > { %v2190_v56 = vsel %vm9533_vm15, %v9620_v51, %v9609_v40  ;;  %v975_v21 = vrot.slane %v974_v18, 4  ;;  %v9639_v9 = vrot.slane %v1554_v49, 5  ;;  %v1564_v33 = vshll.u32 %v9554_v20, 16  ;;  %v1320_v5 = vld [vmem:[#allocation2 + $0x24] sm:$0xe] }
  0x46   : > { %v988_v3 = vor.u32 %v987_v24, %v984_v19  ;;  %v998_v17 = vor.u32 %v997_v54, %v993_v44  ;;  %v1003_v27 = vrot.slane %v1001_v55, 5  ;;  %v1006_v31 = vshrl.u32 %v888_v23, 16  ;;  %v1319_v19 = vld [vmem:[#allocation2 + $0x18] sm:$0xe]  ;;  %v315_v55 = vld [vmem:[#allocation2 + $0x30] sm:$0x1] }
  0x47   : > { %v2195_v22 = vrot.slane %v2194_v58, 4  ;;  %v970_v34 = vsel %vm9533_vm15, %v965_v14, %v969_v53  ;;  %v980_v38 = vsel %vm9533_vm15, %v975_v21, %v979_v6  ;;  %v1561_v28 = vor.u32 %v9512_v50, %v9639_v9 }
  0x48   : > { %v989_v49 = vrot.slane %v988_v3, 4  ;;  %v999_v57 = vrot.slane %v998_v17, 4  ;;  %v1566_v36 = vrot.slane %v1564_v33, 5  ;;  %v1008_v20 = vrot.slane %v1006_v31, 4  ;;  %v419_v3 = vld [vmem:[%s9427_s29 + $0x18] sm:$0xf] }
  0x49   : > { %v1562_v40 = vrot.slane %v1561_v28, 4  ;;  %v1009_v41 = vshll.u32 %v888_v23, 16  ;;  %v1015_v42 = vshll.u32 %v9642_v30, 16  ;;  %v1019_v11 = vshrl.u32 %v9642_v30, 16 }
  0x4a   : > { %v994_v10 = vsel %vm9533_vm15, %v989_v49, %v993_v44  ;;  %v1004_v15 = vsel %vm9533_vm15, %v999_v57, %v1003_v27  ;;  %v2160_v16 = vor.u32 %v9595_v26, %v9526_v59  ;;  %v2163_v50 = vshll.u32 %v9516_v52, 16  ;;  %v420_v27 = vld [vmem:[%s9427_s29 + $0x1c] sm:$0xf] }
  0x4b   : > { %v2138_v43 = vld [vmem:[#allocation2 + $0x2c] sm:$0x1]  ;;  %v8506_v46 = vcombine.low %v970_v34, %v980_v38  ;;  %v1557_v51 = vsel %vm9533_vm15, %v9586_v25, %v9639_v9  ;;  %v1011_v58 = vrot.slane %v1009_v41, 5  ;;  %v1017_v61 = vrot.slane %v1015_v42, 5 }
  0x4c   : > { %v917_v53 = vld [vmem:[#allocation2 + $0x2c] sm:$0x1]  ;;  %v2613_v47 = vrot.slane %v2138_v43, 5  ;;  %v2197_v2 = vshll.u32 %v2138_v43, 16  ;;  %v8507_v4 = vcombine.low %v994_v10, %v1004_v15  ;;  %v1021_v6 = vrot.slane %v1019_v11, 4 }
  0x4d   : > { %v1012_v7 = vor.u32 %v1011_v58, %v1008_v20  ;;  %v1025_v12 = vshll.u32 %v917_v53, 16  ;;  %v2161_v59 = vrot.slane %v2160_v16, 4  ;;  %v2165_v26 = vrot.slane %v2163_v50, 5  ;;  %v9696_v15 = vld [vmem:[#allocation2 + $0x28] sm:$0xf] }
  0x4e   : > { %v2614_v13 = vsel %vm9446_vm10, %v9618_v48, %v2613_v47  ;;  %v2199_v14 = vrot.slane %v2197_v2, 5  ;;  %v1022_v18 = vor.u32 %v1021_v6, %v1017_v61  ;;  %v2169_v25 = vrot.slane %v2167_v60, 4  ;;  %v371_v58 = vld [vmem:[#allocation2 + $0x38] sm:$0x1] }
  0x4f   : > { %v8618_v23 = vcombine.low %v9607_v37, %v2614_v13  ;;  %v1567_v24 = vsel %vm9533_vm15, %v1562_v40, %v1566_v36  ;;  %v1013_v44 = vrot.slane %v1012_v7, 4  ;;  %v1027_v54 = vrot.slane %v1025_v12, 5  ;;  %v9689_v40 = vld [vmem:[#allocation2 + $0x24] sm:$0xf] }
  0x50   : > { %v2200_v21 = vsel %vm9533_vm15, %v2195_v22, %v2199_v14  ;;  %v1023_v9 = vrot.slane %v1022_v18, 4  ;;  %v2170_v48 = vor.u32 %v2169_v25, %v2165_v26  ;;  %v2173_v33 = vshll.u32 %v9564_v35, 16 }
  0x51   : > { %3419 = vrot.lane.b32.xlu0 %v8618_v23, %s9331_s12  ;;  %v8602_v52 = vcombine.low %v2190_v56, %v2200_v21  ;;  %v1018_v60 = vsel %vm9533_vm15, %v1013_v44, %v1017_v61  ;;  %v8444_v37 = vrot.slane %v1320_v5, 9  ;;  %v1407_v17 = vrot.slane %v9642_v30, 5  ;;  %v1530_v5 = vld [vmem:[#allocation2 + $0x2c] sm:$0x1] }
  0x52   : > { %v1028_v31 = vsel %vm9533_vm15, %v1023_v9, %v1027_v54  ;;  %v2171_v34 = vrot.slane %v2170_v48, 4  ;;  %v2175_v22 = vrot.slane %v2173_v33, 5  ;;  %v1410_v38 = vrot.slane %v917_v53, 5 }
  0x53   : > { %3339 = vrot.lane.b32.xlu1 %v8602_v52, %s9333_s14  ;;  %v8553_v35 = vcombine.low %v1557_v51, %v1567_v24  ;;  %v2166_v56 = vsel %vm9533_vm15, %v2161_v59, %v2165_v26  ;;  %v1409_v28 = vrot.slane %v1407_v17, 4  ;;  %v8443_v49 = vrot.slane %v1319_v19, 9  ;;  %v1930_v26 = vld [vmem:[#allocation2 + $0x24] sm:$0xe]  ;;  %v318_v19 = vld [vmem:[#allocation2 + $0x3c] sm:$0x1] }
  0x54   : > { %v8508_v57 = vcombine.low %v1018_v60, %v1028_v31  ;;  %v1400_v36 = vrot.slane %v9616_v45, 5  ;;  %v1403_v30 = vrot.slane %v9623_v62, 5  ;;  %v316_v20 = vsel %vm9391_vm3, 0, %v315_v55  ;;  %v421_v55 = vld [vmem:[%s9427_s29 + $0x20] sm:$0xf] }
  0x55   : > { %2827 = vrot.lane.b32.xlu0 %v8506_v46, %s9329_s10  ;;  %v2176_v41 = vsel %vm9533_vm15, %v2171_v34, %v2175_v22  ;;  %v1408_v42 = vsel %vm9446_vm10, %v8444_v37, %v1407_v17  ;;  %317 = vst [vmem:[#allocation2 + $0x30] sm:$0x1] %v316_v20  ;;  %v499_v11 = vshrl.u32 %v419_v3, 16  ;;  %v502_v10 = vshll.u32 %v419_v3, 16  ;;  %v422_v52 = vld [vmem:[%s9427_s29 + $0x24] sm:$0xf] }
  0x56   : > { %v1411_v45 = vsel %vm9446_vm10, %v1409_v28, %v1410_v38  ;;  %v1401_v62 = vsel %vm9446_vm10, %v8443_v49, %v1400_v36  ;;  %v1402_v16 = vrot.slane %v1400_v36, 4  ;;  %v507_v50 = vshrl.u32 %v420_v27, 16  ;;  %v374_v31 = vld [vmem:[#allocation2 + $0x44] sm:$0x1] }
  0x57   : > { %2829 = vrot.lane.b32.xlu1 %v8507_v4, %s9329_s10  ;;  %v501_v43 = vrot.slane %v499_v11, 7  ;;  %v510_v46 = vshll.u32 %v420_v27, 16  ;;  %v1593_v51 = vshrl.u32 %v9689_v40, 16  ;;  %v1596_v53 = vshll.u32 %v9689_v40, 16 }
  0x58   : > { %v8601_v61 = vcombine.low %v2166_v56, %v2176_v41  ;;  %v1404_v47 = vsel %vm9446_vm10, %v1402_v16, %v1403_v30  ;;  %v9707_v2 = vrot.slane %v507_v50, 7  ;;  %v1606_v6 = vshrl.u32 %v9696_v15, 16  ;;  %v321_v56 = vld [vmem:[#allocation2 + $0x48] sm:$0x1] }
  0x59   : > { %3081 = vrot.lane.b32.xlu0 %v8553_v35, %s9332_s13  ;;  %v8524_v7 = vcombine.low %v1408_v42, %v1411_v45  ;;  %v504_v4 = vor.u32 %v502_v10, %v501_v43  ;;  %v505_v12 = vrot.slane %v501_v43, 4  ;;  %v1595_v59 = vrot.slane %v1593_v51, 4 }
  0x5a   : > { %v8523_v13 = vcombine.low %v1401_v62, %v1404_v47  ;;  %v512_v14 = vor.u32 %v510_v46, %v9707_v2  ;;  %v1598_v18 = vrot.slane %v1596_v53, 5  ;;  %v372_v25 = vsel %vm9419_vm6, 0, %v371_v58 }
  0x5b   : > { %2831 = vrot.lane.b32.xlu1 %v8508_v57, %s9329_s10  ;;  %v514_v23 = vrot.slane %v9707_v2, 4  ;;  %373 = vst [vmem:[#allocation2 + $0x38] sm:$0x1] %v372_v25  ;;  %v1602_v24 = vshll.u32 %v9696_v15, 16  ;;  %v1608_v44 = vrot.slane %v1606_v6, 4  ;;  %v1612_v54 = vshll.u32 %v1530_v5, 16 }
  0x5c   : > { %v513_v21 = vsel %vm9458_vm12, %v505_v12, %v512_v14  ;;  %v791_v9 = vld [vmem:[#allocation2 + $0x30] sm:$0xf]  ;;  %v1599_v48 = vor.u32 %v1598_v18, %v1595_v59  ;;  %v8459_v33 = vrot.slane %v1930_v26, 9  ;;  %v2008_v3 = vrot.slane %v9696_v15, 5 }
  0x5d   : > { %3337 = vrot.lane.b32.xlu0 %v8601_v61, %s9333_s14  ;;  %v792_v60 = vsel %vm9452_vm11, %v504_v4, %v791_v9  ;;  %794 = vst.msk [vmem:[#allocation2 + $0x34] sm:$0xf] %vm291_vm0, %v513_v21  ;;  %v1604_v37 = vrot.slane %v1602_v24, 5  ;;  %v2011_v17 = vrot.slane %v1530_v5, 5  ;;  %v319_v27 = vsel %vm9391_vm3, 0, %v318_v19 }
  0x5e   : > { %793 = vst [vmem:[#allocation2 + $0x30] sm:$0xf] %v792_v60  ;;  %v1600_v34 = vrot.slane %v1599_v48, 4  ;;  %v1614_v22 = vrot.slane %v1612_v54, 5  ;;  %v2010_v38 = vrot.slane %v2008_v3, 4  ;;  %v516_v35 = vshrl.u32 %v421_v55, 16 }
  0x5f   : > { %320 = vst [vmem:[#allocation2 + $0x3c] sm:$0x1] %v319_v27  ;;  %2911 = vrot.lane.b32.xlu1 %v8524_v7, %s9326_s30  ;;  %v1609_v28 = vor.u32 %v1608_v44, %v1604_v37  ;;  %v519_v49 = vshll.u32 %v421_v55, 16  ;;  %v524_v57 = vshrl.u32 %v422_v52, 16  ;;  %v527_v36 = vshll.u32 %v422_v52, 16 }
  0x60   : > { %v8539_v30 = vcombine.low %v9689_v40, %v9696_v15  ;;  %v9733_v20 = vsel %vm9446_vm10, %v8459_v33, %v2008_v3  ;;  %v518_v41 = vrot.slane %v516_v35, 7  ;;  %v375_v42 = vsel %vm9419_vm6, 0, %v374_v31  ;;  %v9745_v15 = vld [vmem:[%s9427_s29 + $0x28] sm:$0xf] }
  0x61   : > { %2909 = vrot.lane.b32.xlu0 %v8523_v13, %s9326_s30  ;;  %v1610_v11 = vrot.slane %v1609_v28, 4  ;;  %v9740_v10 = vsel %vm9446_vm10, %v2010_v38, %v2011_v17  ;;  %v526_v45 = vrot.slane %v524_v57, 7  ;;  %376 = vst [vmem:[#allocation2 + $0x44] sm:$0x1] %v375_v42  ;;  %v322_v40 = vsel %vm9391_vm3, 0, %v321_v56 }
  0x62   : > { %v795_v62 = vld [vmem:[#allocation2 + $0x38] sm:$0x1]  ;;  %v1605_v16 = vsel %vm9533_vm15, %v1600_v34, %v1604_v37  ;;  %v522_v50 = vrot.slane %v518_v41, 4  ;;  %323 = vst [vmem:[#allocation2 + $0x48] sm:$0x1] %v322_v40  ;;  %v521_v51 = vor.u32 %v519_v49, %v518_v41  ;;  %v8571_v61 = vcombine.low %v9733_v20, %v9740_v10 }
  0x63   : > { %v796_v43 = vsel %vm9391_vm3, %v514_v23, %v795_v62  ;;  %v1615_v46 = vsel %vm9533_vm15, %v1610_v11, %v1614_v22  ;;  %v529_v53 = vor.u32 %v527_v36, %v526_v45  ;;  %v531_v47 = vrot.slane %v526_v45, 4 }
  0x64   : > { %v1503_v58 = vld [vmem:[#allocation2 + $0x34] sm:$0xf]  ;;  %797 = vst [vmem:[#allocation2 + $0x38] sm:$0x1] %v796_v43  ;;  %v533_v6 = vshrl.u32 %v9745_v15, 16  ;;  %v8555_v12 = vcombine.low %v1605_v16, %v1615_v46  ;;  %v536_v17 = vshll.u32 %v9745_v15, 16 }
  0x65   : > { %v9755_v2 = vld [vmem:[#allocation2 + $0x34] sm:$0xf]  ;;  %v1502_v5 = vld [vmem:[#allocation2 + $0x30] sm:$0xf]  ;;  %v1630_v7 = vshrl.u32 %v1503_v58, 16  ;;  %3005 = vrot.lane.b32.xlu0 %v8539_v30, %s9327_s8  ;;  %v1626_v4 = vshll.u32 %v1503_v58, 16  ;;  %v530_v26 = vsel %vm9458_vm12, %v522_v50, %v529_v53 }
  0x66   : > { %v1931_v59 = vld [vmem:[#allocation2 + $0x30] sm:$0xe]  ;;  %v1617_v13 = vshrl.u32 %v1502_v5, 16  ;;  %v1620_v14 = vshll.u32 %v1502_v5, 16  ;;  %v8540_v18 = vcombine.low %v1502_v5, %v1503_v58  ;;  %v798_v19 = vld [vmem:[#allocation2 + $0x3c] sm:$0xf] }
  0x67   : > { %v8460_v25 = vrot.slane %v1931_v59, 9  ;;  %801 = vst.msk [vmem:[#allocation2 + $0x40] sm:$0xf] %vm291_vm0, %v530_v26  ;;  %v1628_v23 = vrot.slane %v1626_v4, 5  ;;  %v1632_v24 = vrot.slane %v1630_v7, 4  ;;  %v2015_v44 = vrot.slane %v1503_v58, 5 }
  0x68   : > { %v799_v54 = vsel %vm9452_vm11, %v521_v51, %v798_v19  ;;  %v2109_v55 = vld [vmem:[#allocation2 + $0x30] sm:$0xf]  ;;  %v1619_v21 = vrot.slane %v1617_v13, 4  ;;  %v1622_v9 = vrot.slane %v1620_v14, 5  ;;  %3007 = vrot.lane.b32.xlu1 %v8540_v18, %s9327_s8  ;;  %v802_v3 = vld [vmem:[#allocation2 + $0x44] sm:$0x1] }
  0x69   : > { %800 = vst [vmem:[#allocation2 + $0x3c] sm:$0xf] %v799_v54  ;;  %v2202_v48 = vshrl.u32 %v2109_v55, 16  ;;  %v2205_v33 = vshll.u32 %v2109_v55, 16  ;;  %v1633_v52 = vor.u32 %v1632_v24, %v1628_v23  ;;  %3085 = vrot.lane.b32.xlu0 %v8555_v12, %s9332_s13  ;;  %v9768_v60 = vsel %vm9446_vm10, %v8460_v25, %v2015_v44  ;;  %v9772_v38 = vld [vmem:[#allocation2 + $0x30] sm:$0xf] }
  0x6a   : > { %v2215_v37 = vshrl.u32 %v9755_v2, 16  ;;  %v1623_v27 = vor.u32 %v1622_v9, %v1619_v21  ;;  %v2017_v31 = vrot.slane %v2015_v44, 4  ;;  %14166 = vst [vmem:[#allocation4_spill] sm:$0xff] %v9772_v38  ;;  %v8587_v28 = vcombine.low %v2109_v55, %v9755_v2  ;;  %v9800_v59 = vld [vmem:[#allocation2 + $0x34] sm:$0xf]  ;;  %v9200_v54 = vld [vmem:[%s14076_s1] sm:$0xff]  }
  0x6b   : > { %v2204_v34 = vrot.slane %v2202_v48, 4  ;;  %v2207_v22 = vrot.slane %v2205_v33, 5  ;;  %v1531_v35 = vld [vmem:[#allocation2 + $0x38] sm:$0x1]  ;;  %v1634_v56 = vrot.slane %v1633_v52, 4  ;;  %v803_v49 = vsel %vm9391_vm3, %v531_v47, %v802_v3  ;;  %14167 = vst [vmem:[#allocation5_spill] sm:$0xff] %v9800_v59  ;;  %9042 = vmatprep.subr.bf16.mxu0 %v9200_v54  ;;  %9156 = vmatprep.subr.bf16.mxu1 %v9200_v54 }
  0x6c   : > { %v9777_v57 = vld [vmem:[#allocation2 + $0x38] sm:$0x1]  ;;  %v2211_v36 = vshll.u32 %v9755_v2, 16  ;;  %v1624_v30 = vrot.slane %v1623_v27, 4  ;;  %v1636_v20 = vshll.u32 %v1531_v35, 16  ;;  %v2018_v41 = vrot.slane %v1531_v35, 5  ;;  %9043 = vmatpush3.bf16.msra.mxu0 %v9200_v54  ;;  %9159 = vmatpush3.bf16.msra.mxu1 %v9200_v54 }
  0x6d   : > { %804 = vst [vmem:[#allocation2 + $0x44] sm:$0x1] %v803_v49  ;;  %v2208_v42 = vor.u32 %v2207_v22, %v2204_v34  ;;  %3165 = vrot.lane.b32.xlu0 %v8571_v61, %s9330_s11  ;;  %v2217_v45 = vrot.slane %v2215_v37, 4  ;;  %v2221_v40 = vshll.u32 %v9777_v57, 16  ;;  %v1030_v62 = vshrl.u32 %v9772_v38, 16 }
  0x6e   : > { %v9781_v11 = vld [vmem:[#allocation2 + $0x40] sm:$0xf]  ;;  %v2213_v10 = vrot.slane %v2211_v36, 5  ;;  %v1629_v16 = vsel %vm9533_vm15, %v1624_v30, %v1628_v23  ;;  %v1638_v50 = vrot.slane %v1636_v20, 5  ;;  %v2019_v43 = vsel %vm9446_vm10, %v2017_v31, %v2018_v41  ;;  %v9805_v25 = vld [vmem:[#allocation2 + $0x38] sm:$0x1] }
  0x6f   : > { %v2239_v46 = vshrl.u32 %v9781_v11, 16  ;;  %v8572_v51 = vcombine.low %v9768_v60, %v2019_v43  ;;  %v2235_v58 = vshll.u32 %v9781_v11, 16  ;;  %v2209_v61 = vrot.slane %v2208_v42, 4  ;;  %v2539_v27 = vld [vmem:[#allocation2 + $0x30] sm:$0xe] }
  0x70   : > { %v9791_v53 = vld [vmem:[#allocation2 + $0x3c] sm:$0xf]  ;;  %v2218_v47 = vor.u32 %v2217_v45, %v2213_v10  ;;  %v1639_v5 = vsel %vm9533_vm15, %v1634_v56, %v1638_v50  ;;  %v2223_v44 = vrot.slane %v2221_v40, 5  ;;  %v1032_v9 = vrot.slane %v1030_v62, 4  ;;  %v893_v30 = vld [vmem:[#allocation2 + $0x40] sm:$0xf] }
  0x71   : > { %v2226_v7 = vshrl.u32 %v9791_v53, 16  ;;  %v2229_v4 = vshll.u32 %v9791_v53, 16  ;;  %v8588_v12 = vcombine.low %v9791_v53, %v9781_v11  ;;  %v8556_v26 = vcombine.low %v1629_v16, %v1639_v5  ;;  %3261 = vrot.lane.b32.xlu0 %v8587_v28, %s9328_s9  ;;  %v892_v45 = vld [vmem:[#allocation2 + $0x3c] sm:$0xf]  ;;  %v324_v15 = vld [vmem:[#allocation2 + $0x54] sm:$0x1] }
  0x72   : > { %v2237_v13 = vrot.slane %v2235_v58, 5  ;;  %v2241_v14 = vrot.slane %v2239_v46, 4  ;;  %v2214_v18 = vsel %vm9533_vm15, %v2209_v61, %v2213_v10  ;;  %v2219_v24 = vrot.slane %v2218_v47, 4 }
  0x73   : > { %v2228_v19 = vrot.slane %v2226_v7, 4  ;;  %v2231_v23 = vrot.slane %v2229_v4, 5  ;;  %3087 = vrot.lane.b32.xlu1 %v8556_v26, %s9332_s13  ;;  %v1033_v48 = vshll.u32 %v9772_v38, 16  ;;  %v1039_v33 = vshll.u32 %v9800_v59, 16 }
  0x74   : > { %v9811_v55 = vld [vmem:[#allocation2 + $0x44] sm:$0x1]  ;;  %v2242_v21 = vor.u32 %v2241_v14, %v2237_v13  ;;  %v2224_v60 = vsel %vm9533_vm15, %v2219_v24, %v2223_v44  ;;  %v1043_v37 = vshrl.u32 %v9800_v59, 16  ;;  %v1049_v36 = vshll.u32 %v9805_v25, 16  ;;  %v1322_v24 = vld [vmem:[#allocation2 + $0x3c] sm:$0xe] }
  0x75   : > { %v2232_v3 = vor.u32 %v2231_v23, %v2228_v19  ;;  %v2245_v52 = vshll.u32 %v9811_v55, 16  ;;  %v8603_v34 = vcombine.low %v2214_v18, %v2224_v60  ;;  %v1035_v22 = vrot.slane %v1033_v48, 5  ;;  %v919_v43 = vld [vmem:[#allocation2 + $0x44] sm:$0x1]  ;;  %v9201_v48 = vld [vmem:[%s14076_s1 + $0x8] sm:$0xff]  }
  0x76   : > { %v2243_v31 = vrot.slane %v2242_v21, 4  ;;  %v1041_v35 = vrot.slane %v1039_v33, 5  ;;  %v1045_v49 = vrot.slane %v1043_v37, 4  ;;  %v8475_v41 = vrot.slane %v2539_v27, 9  ;;  %9044 = vmatprep.subr.bf16.mxu0 %v9201_v48  ;;  %9157 = vmatprep.subr.bf16.mxu1 %v9201_v48 }
  0x77   : > { %v2233_v56 = vrot.slane %v2232_v3, 4  ;;  %v2247_v28 = vrot.slane %v2245_v52, 5  ;;  %3167 = vrot.lane.b32.xlu1 %v8572_v51, %s9330_s11  ;;  %3341 = vrot.lane.b32.xlu0 %v8603_v34, %s9333_s14  ;;  %v1036_v20 = vor.u32 %v1035_v22, %v1032_v9  ;;  %v2617_v42 = vrot.slane %v9755_v2, 5  ;;  %v1321_v9 = vld [vmem:[#allocation2 + $0x30] sm:$0xe] }
  0x78   : > { %v2620_v10 = vrot.slane %v9777_v57, 5  ;;  %v1046_v16 = vor.u32 %v1045_v49, %v1041_v35  ;;  %v1051_v50 = vrot.slane %v1049_v36, 5  ;;  %v1054_v2 = vshrl.u32 %v892_v45, 16  ;;  %9045 = vmatpush3.bf16.msra.mxu0 %v9201_v48  ;;  %9160 = vmatpush3.bf16.msra.mxu1 %v9201_v48 }
  0x79   : > { %v2238_v40 = vsel %vm9533_vm15, %v2233_v56, %v2237_v13  ;;  %v2248_v62 = vsel %vm9533_vm15, %v2243_v31, %v2247_v28  ;;  %v1037_v51 = vrot.slane %v1036_v20, 4  ;;  %v2618_v53 = vsel %vm9446_vm10, %v8475_v41, %v2617_v42  ;;  %v2540_v13 = vld [vmem:[#allocation2 + $0x3c] sm:$0xe] }
  0x7a   : > { %v8604_v46 = vcombine.low %v2238_v40, %v2248_v62  ;;  %v2619_v58 = vrot.slane %v2617_v42, 4  ;;  %v1047_v61 = vrot.slane %v1046_v16, 4  ;;  %v1057_v47 = vshll.u32 %v892_v45, 16  ;;  %v424_v42 = vld [vmem:[%s9427_s29 + $0x2c] sm:$0xf] }
  0x7b   : > { %v1063_v57 = vshll.u32 %v893_v30, 16  ;;  %3263 = vrot.lane.b32.xlu1 %v8588_v12, %s9328_s9  ;;  %v1042_v5 = vsel %vm9533_vm15, %v1037_v51, %v1041_v35  ;;  %v1067_v4 = vshrl.u32 %v893_v30, 16  ;;  %v1073_v26 = vshll.u32 %v919_v43, 16  ;;  %v1504_v45 = vld [vmem:[#allocation2 + $0x3c] sm:$0xf] }
  0x7c   : > { %v2621_v7 = vsel %vm9446_vm10, %v2619_v58, %v2620_v10  ;;  %v1052_v14 = vsel %vm9533_vm15, %v1047_v61, %v1051_v50  ;;  %v1056_v19 = vrot.slane %v1054_v2, 4  ;;  %v1059_v23 = vrot.slane %v1057_v47, 5  ;;  %v805_v50 = vld [vmem:[#allocation2 + $0x48] sm:$0xf]  ;;  %v377_v47 = vld [vmem:[#allocation2 + $0x50] sm:$0x1] }
  0x7d   : > { %v8619_v18 = vcombine.low %v2618_v53, %v2621_v7  ;;  %v8509_v44 = vcombine.low %v1042_v5, %v1052_v14  ;;  %v1065_v54 = vrot.slane %v1063_v57, 5  ;;  %v1069_v21 = vrot.slane %v1067_v4, 4 }
  0x7e   : > { %v1075_v12 = vrot.slane %v1073_v26, 5  ;;  %v1060_v33 = vor.u32 %v1059_v23, %v1056_v19  ;;  %v8476_v3 = vrot.slane %v2540_v13, 9  ;;  %v2624_v52 = vrot.slane %v9781_v11, 5  ;;  %v1532_v26 = vld [vmem:[#allocation2 + $0x44] sm:$0x1] }
  0x7f   : > { %3421 = vrot.lane.b32.xlu0 %v8619_v18, %s9331_s12  ;;  %v2627_v60 = vrot.slane %v9811_v55, 5  ;;  %3343 = vrot.lane.b32.xlu1 %v8604_v46, %s9333_s14  ;;  %v1070_v37 = vor.u32 %v1069_v21, %v1065_v54  ;;  %v8446_v27 = vrot.slane %v1322_v24, 9  ;;  %v1421_v31 = vrot.slane %v893_v30, 5  ;;  %v1932_v19 = vld [vmem:[#allocation2 + $0x3c] sm:$0xe] }
  0x80   : > { %v1424_v34 = vrot.slane %v919_v43, 5  ;;  %v1061_v22 = vrot.slane %v1060_v33, 4  ;;  %v2625_v35 = vsel %vm9446_vm10, %v8476_v3, %v2624_v52  ;;  %v2626_v56 = vrot.slane %v2624_v52, 4  ;;  %v9862_v43 = vld [vmem:[#allocation2 + $0x40] sm:$0xf] }
  0x81   : > { %v8445_v28 = vrot.slane %v1321_v9, 9  ;;  %v1071_v49 = vrot.slane %v1070_v37, 4  ;;  %v1422_v11 = vsel %vm9446_vm10, %v8446_v27, %v1421_v31  ;;  %v1423_v55 = vrot.slane %v1421_v31, 4  ;;  %v425_v21 = vld [vmem:[%s9427_s29 + $0x30] sm:$0xf] }
  0x82   : > { %v1414_v36 = vrot.slane %v9800_v59, 5  ;;  %v1066_v30 = vsel %vm9533_vm15, %v1061_v22, %v1065_v54  ;;  %v2628_v20 = vsel %vm9446_vm10, %v2626_v56, %v2627_v60  ;;  %v1417_v41 = vrot.slane %v9805_v25, 5  ;;  %v426_v37 = vld [vmem:[%s9427_s29 + $0x34] sm:$0xf] }
  0x83   : > { %v535_v10 = vrot.slane %v533_v6, 7  ;;  %2833 = vrot.lane.b32.xlu1 %v8509_v44, %s9329_s10  ;;  %v1076_v40 = vsel %vm9533_vm15, %v1071_v49, %v1075_v12  ;;  %v8620_v62 = vcombine.low %v2625_v35, %v2628_v20  ;;  %v1425_v16 = vsel %vm9446_vm10, %v1423_v55, %v1424_v34  ;;  %v380_v35 = vld [vmem:[#allocation2 + $0x5c] sm:$0x1] }
  0x84   : > { %v8510_v46 = vcombine.low %v1066_v30, %v1076_v40  ;;  %v1415_v25 = vsel %vm9446_vm10, %v8445_v28, %v1414_v36  ;;  %v1416_v51 = vrot.slane %v1414_v36, 4  ;;  %v8526_v53 = vcombine.low %v1422_v11, %v1425_v16 }
  0x85   : > { %v538_v6 = vor.u32 %v536_v17, %v535_v10  ;;  %3423 = vrot.lane.b32.xlu0 %v8620_v62, %s9331_s12  ;;  %v541_v58 = vshrl.u32 %v424_v42, 16  ;;  %v544_v61 = vshll.u32 %v424_v42, 16  ;;  %v1641_v2 = vshrl.u32 %v1504_v45, 16 }
  0x86   : > { %v1418_v57 = vsel %vm9446_vm10, %v1416_v51, %v1417_v41  ;;  %v1644_v7 = vshll.u32 %v1504_v45, 16  ;;  %v1654_v4 = vshrl.u32 %v9862_v43, 16  ;;  %v539_v13 = vrot.slane %v535_v10, 4 }
  0x87   : > { %v806_v5 = vsel %vm9452_vm11, %v538_v6, %v805_v50  ;;  %2835 = vrot.lane.b32.xlu1 %v8510_v46, %s9329_s10  ;;  %v8525_v17 = vcombine.low %v1415_v25, %v1418_v57  ;;  %v543_v14 = vrot.slane %v541_v58, 7  ;;  %v1643_v18 = vrot.slane %v1641_v2, 4 }
  0x88   : > { %807 = vst [vmem:[#allocation2 + $0x48] sm:$0xf] %v806_v5  ;;  %v1646_v23 = vrot.slane %v1644_v7, 5  ;;  %v378_v24 = vsel %vm9419_vm6, 0, %v377_v47  ;;  %v1650_v44 = vshll.u32 %v9862_v43, 16  ;;  %v1656_v54 = vrot.slane %v1654_v4, 4 }
  0x89   : > { %2913 = vrot.lane.b32.xlu0 %v8525_v17, %s9326_s30  ;;  %v546_v12 = vor.u32 %v544_v61, %v543_v14  ;;  %v8541_v9 = vcombine.low %v1504_v45, %v9862_v43  ;;  %379 = vst [vmem:[#allocation2 + $0x50] sm:$0x1] %v378_v24  ;;  %v1660_v48 = vshll.u32 %v1532_v26, 16  ;;  %v8461_v52 = vrot.slane %v1932_v19, 9  ;;  %v9907_v17 = vld [vmem:[#allocation2] sm:$0xf] }
  0x8a   : > { %v1647_v33 = vor.u32 %v1646_v23, %v1643_v18  ;;  %v1652_v3 = vrot.slane %v1650_v44, 5  ;;  %v2022_v60 = vrot.slane %v9862_v43, 5  ;;  %v2025_v31 = vrot.slane %v1532_v26, 5 }
  0x8b   : > { %2915 = vrot.lane.b32.xlu1 %v8526_v53, %s9326_s30  ;;  %v547_v27 = vsel %vm9458_vm12, %v539_v13, %v546_v12  ;;  %v325_v34 = vsel %vm9391_vm3, 0, %v324_v15  ;;  %v550_v22 = vshrl.u32 %v425_v21, 16  ;;  %v1662_v49 = vrot.slane %v1660_v48, 5  ;;  %v9905_v15 = vld [vmem:[#allocation2 + $0x4] sm:$0xf] }
  0x8c   : > { %808 = vst.msk [vmem:[#allocation2 + $0x4c] sm:$0xf] %vm291_vm0, %v547_v27  ;;  %v1648_v56 = vrot.slane %v1647_v33, 4  ;;  %v1657_v28 = vor.u32 %v1656_v54, %v1652_v3  ;;  %v2024_v11 = vrot.slane %v2022_v60, 4  ;;  %326 = vst [vmem:[#allocation2 + $0x54] sm:$0x1] %v325_v34  ;;  %v2023_v43 = vsel %vm9446_vm10, %v8461_v52, %v2022_v60 }
  0x8d   : > { %v548_v55 = vrot.slane %v543_v14, 4  ;;  %3009 = vrot.lane.b32.xlu0 %v8541_v9, %s9327_s8  ;;  %v552_v36 = vrot.slane %v550_v22, 7  ;;  %v553_v30 = vshll.u32 %v425_v21, 16  ;;  %v558_v20 = vshrl.u32 %v426_v37, 16 }
  0x8e   : > { %v1653_v42 = vsel %vm9533_vm15, %v1648_v56, %v1652_v3  ;;  %v1658_v10 = vrot.slane %v1657_v28, 4  ;;  %v561_v45 = vshll.u32 %v426_v37, 16  ;;  %v381_v40 = vsel %vm9419_vm6, 0, %v380_v35 }
  0x8f   : > { %v1506_v41 = vld [vmem:[#allocation2 + $0x48] sm:$0xf]  ;;  %v2026_v46 = vsel %vm9446_vm10, %v2024_v11, %v2025_v31  ;;  %382 = vst [vmem:[#allocation2 + $0x5c] sm:$0x1] %v381_v40  ;;  %v555_v53 = vor.u32 %v553_v30, %v552_v36  ;;  %v556_v58 = vrot.slane %v552_v36, 4  ;;  %v560_v61 = vrot.slane %v558_v20, 7 }
  0x90   : > { %v1665_v62 = vshrl.u32 %v1506_v41, 16  ;;  %v1668_v16 = vshll.u32 %v1506_v41, 16  ;;  %v1933_v50 = vld [vmem:[#allocation2 + $0x48] sm:$0xe]  ;;  %v809_v51 = vld [vmem:[#allocation2 + $0x50] sm:$0x1]  ;;  %v1663_v6 = vsel %vm9533_vm15, %v1658_v10, %v1662_v49  ;;  %v8489_v13 = vcombine.low %v9907_v17, %v9905_v15 }
  0x91   : > { %v9898_v25 = vld [vmem:[#allocation2 + $0x48] sm:$0xf]  ;;  %v810_v57 = vsel %vm9391_vm3, %v548_v55, %v809_v51  ;;  %v8557_v5 = vcombine.low %v1653_v42, %v1663_v6  ;;  %v8462_v7 = vrot.slane %v1933_v50, 9  ;;  %v563_v4 = vor.u32 %v561_v45, %v560_v61 }
  0x92   : > { %v1667_v2 = vrot.slane %v1665_v62, 4  ;;  %v1670_v47 = vrot.slane %v1668_v16, 5  ;;  %811 = vst [vmem:[#allocation2 + $0x50] sm:$0x1] %v810_v57  ;;  %v2250_v26 = vshrl.u32 %v9898_v25, 16  ;;  %v8573_v19 = vcombine.low %v2023_v43, %v2026_v46 }
  0x93   : > { %v1507_v14 = vld [vmem:[#allocation2 + $0x4c] sm:$0xf]  ;;  %3089 = vrot.lane.b32.xlu0 %v8557_v5, %s9332_s13  ;;  %v565_v23 = vrot.slane %v560_v61, 4  ;;  %v812_v24 = vld [vmem:[#allocation2 + $0x54] sm:$0xf]  ;;  %v2253_v44 = vshll.u32 %v9898_v25, 16  ;;  %v564_v3 = vsel %vm9458_vm12, %v556_v58, %v563_v4 }
  0x94   : > { %v1671_v18 = vor.u32 %v1670_v47, %v1667_v2  ;;  %v1678_v54 = vshrl.u32 %v1507_v14, 16  ;;  %v8542_v21 = vcombine.low %v1506_v41, %v1507_v14  ;;  %v1674_v12 = vshll.u32 %v1507_v14, 16  ;;  %v9913_v48 = vld [vmem:[#allocation2 + $0x4c] sm:$0xf]  ;;  %v894_v37 = vld [vmem:[#allocation2 + $0x48] sm:$0xf] }
  0x95   : > { %v2029_v9 = vrot.slane %v1507_v14, 5  ;;  %v813_v52 = vsel %vm9452_vm11, %v555_v53, %v812_v24  ;;  %v2252_v60 = vrot.slane %v2250_v26, 4  ;;  %815 = vst.msk [vmem:[#allocation2 + $0x58] sm:$0xf] %vm291_vm0, %v564_v3  ;;  %v2255_v56 = vrot.slane %v2253_v44, 5 }
  0x96   : > { %v1672_v33 = vrot.slane %v1671_v18, 4  ;;  %3011 = vrot.lane.b32.xlu1 %v8542_v21, %s9327_s8  ;;  %v1676_v27 = vrot.slane %v1674_v12, 5  ;;  %v1680_v31 = vrot.slane %v1678_v54, 4  ;;  %814 = vst [vmem:[#allocation2 + $0x54] sm:$0xf] %v813_v52  ;;  %v2263_v28 = vshrl.u32 %v9913_v48, 16 }
  0x97   : > { %v9922_v34 = vsel %vm9446_vm10, %v8462_v7, %v2029_v9  ;;  %v2031_v22 = vrot.slane %v2029_v9, 4  ;;  %v816_v35 = vld [vmem:[#allocation2 + $0x5c] sm:$0x1]  ;;  %3169 = vrot.lane.b32.xlu0 %v8573_v19, %s9330_s11  ;;  %v8589_v49 = vcombine.low %v9898_v25, %v9913_v48  ;;  %v2259_v30 = vshll.u32 %v9913_v48, 16  ;;  %v9934_v20 = vld [vmem:[#allocation2 + $0x4c] sm:$0xf] }
  0x98   : > { %v817_v11 = vsel %vm9391_vm3, %v565_v23, %v816_v35  ;;  %v1677_v55 = vsel %vm9533_vm15, %v1672_v33, %v1676_v27  ;;  %v1681_v36 = vor.u32 %v1680_v31, %v1676_v27  ;;  %v1078_v41 = vshrl.u32 %v894_v37, 16  ;;  %v2541_v3 = vld [vmem:[#allocation2 + $0x48] sm:$0xe] }
  0x99   : > { %818 = vst [vmem:[#allocation2 + $0x5c] sm:$0x1] %v817_v11  ;;  %v1533_v42 = vld [vmem:[#allocation2 + $0x50] sm:$0x1]  ;;  %v2256_v45 = vor.u32 %v2255_v56, %v2252_v60  ;;  %v2265_v40 = vrot.slane %v2263_v28, 4  ;;  %v1081_v62 = vshll.u32 %v894_v37, 16 }
  0x9a   : > { %v9936_v10 = vld [vmem:[#allocation2 + $0x50] sm:$0x1]  ;;  %v1682_v50 = vrot.slane %v1681_v36, 4  ;;  %v1684_v43 = vshll.u32 %v1533_v42, 16  ;;  %v2032_v46 = vrot.slane %v1533_v42, 5  ;;  %v2261_v25 = vrot.slane %v2259_v30, 5 }
  0x9b   : > { %3265 = vrot.lane.b32.xlu0 %v8589_v49, %s9328_s9  ;;  %v2257_v51 = vrot.slane %v2256_v45, 4  ;;  %v2269_v6 = vshll.u32 %v9936_v10, 16  ;;  %v1080_v53 = vrot.slane %v1078_v41, 4  ;;  %v1083_v58 = vrot.slane %v1081_v62, 5  ;;  %v9958_v31 = vld [vmem:[#allocation2 + $0x50] sm:$0x1] }
  0x9c   : > { %v1686_v61 = vrot.slane %v1684_v43, 5  ;;  %v2033_v2 = vsel %vm9446_vm10, %v2031_v22, %v2032_v46  ;;  %v2266_v47 = vor.u32 %v2265_v40, %v2261_v25  ;;  %v1087_v57 = vshll.u32 %v9934_v20, 16  ;;  %v9946_v4 = vld [vmem:[#allocation2 + $0x58] sm:$0xf]  ;;  %v9967_v40 = vpop.permute.xlu1 %2905 }
  0x9d   : > { %v8574_v5 = vcombine.low %v9922_v34, %v2033_v2  ;;  %v2115_v7 = vld [vmem:[#allocation2 + $0x54] sm:$0xf]  ;;  %v2262_v26 = vsel %vm9533_vm15, %v2257_v51, %v2261_v25  ;;  %v2271_v14 = vrot.slane %v2269_v6, 5  ;;  %v1084_v18 = vor.u32 %v1083_v58, %v1080_v53  ;;  %v897_v25 = vld [vmem:[#allocation2 + $0x58] sm:$0xf] }
  0x9e   : > { %v1687_v19 = vsel %vm9533_vm15, %v1682_v50, %v1686_v61  ;;  %v2274_v23 = vshrl.u32 %v2115_v7, 16  ;;  %v2277_v24 = vshll.u32 %v2115_v7, 16  ;;  %v2287_v44 = vshrl.u32 %v9946_v4, 16  ;;  %v896_v36 = vld [vmem:[#allocation2 + $0x54] sm:$0xf]  ;;  %v9973_v61 = vpop.permute.xlu0 %3001 }
  0x9f   : > { %v8558_v54 = vcombine.low %v1677_v55, %v1687_v19  ;;  %v8590_v21 = vcombine.low %v2115_v7, %v9946_v4  ;;  %v2283_v9 = vshll.u32 %v9946_v4, 16  ;;  %v2267_v33 = vrot.slane %v2266_v47, 4 }
  0xa0   : > { %v9954_v12 = vld [vmem:[#allocation2 + $0x5c] sm:$0x1]  ;;  %v2276_v52 = vrot.slane %v2274_v23, 4  ;;  %v2279_v60 = vrot.slane %v2277_v24, 5  ;;  %v2289_v37 = vrot.slane %v2287_v44, 4  ;;  %v1085_v35 = vrot.slane %v1084_v18, 4 }
  0xa1   : > { %v2293_v27 = vshll.u32 %v9954_v12, 16  ;;  %3091 = vrot.lane.b32.xlu1 %v8558_v54, %s9332_s13  ;;  %v2285_v34 = vrot.slane %v2283_v9, 5  ;;  %v2272_v22 = vsel %vm9533_vm15, %v2267_v33, %v2271_v14  ;;  %v1089_v56 = vrot.slane %v1087_v57, 5  ;;  %v2542_v18 = vld [vmem:[#allocation2 + $0x54] sm:$0xe] }
  0xa2   : > { %v2280_v28 = vor.u32 %v2279_v60, %v2276_v52  ;;  %v8605_v11 = vcombine.low %v2262_v26, %v2272_v22  ;;  %v1091_v55 = vshrl.u32 %v9934_v20, 16  ;;  %v1097_v42 = vshll.u32 %v9958_v31, 16  ;;  %v1324_v52 = vld [vmem:[#allocation2 + $0x54] sm:$0xe]  ;;  %v9984_v60 = vpop.permute.xlu1 %3003 }
  0xa3   : > { %v2295_v49 = vrot.slane %v2293_v27, 5  ;;  %v2290_v30 = vor.u32 %v2289_v37, %v2285_v34  ;;  %v1090_v41 = vsel %vm9533_vm15, %v1085_v35, %v1089_v56  ;;  %v8477_v45 = vrot.slane %v2541_v3, 9  ;;  %v1323_v35 = vld [vmem:[#allocation2 + $0x48] sm:$0xe] }
  0xa4   : > { %v2281_v62 = vrot.slane %v2280_v28, 4  ;;  %3345 = vrot.lane.b32.xlu0 %v8605_v11, %s9333_s14  ;;  %v1093_v50 = vrot.slane %v1091_v55, 4  ;;  %v2631_v43 = vrot.slane %v9913_v48, 5  ;;  %v2634_v46 = vrot.slane %v9936_v10, 5  ;;  %v921_v48 = vld [vmem:[#allocation2 + $0x5c] sm:$0x1]  ;;  %v9991_v11 = vpop.permute.xlu0 %3257 }
  0xa5   : > { %3171 = vrot.lane.b32.xlu1 %v8574_v5, %s9330_s11  ;;  %v2291_v51 = vrot.slane %v2290_v30, 4  ;;  %v1099_v6 = vrot.slane %v1097_v42, 5  ;;  %v1102_v53 = vshrl.u32 %v896_v36, 16  ;;  %v1105_v58 = vshll.u32 %v896_v36, 16 }
  0xa6   : > { %v2286_v2 = vsel %vm9533_vm15, %v2281_v62, %v2285_v34  ;;  %v1094_v47 = vor.u32 %v1093_v50, %v1089_v56  ;;  %v2632_v57 = vsel %vm9446_vm10, %v8477_v45, %v2631_v43  ;;  %v2633_v7 = vrot.slane %v2631_v43, 4  ;;  %v327_v45 = vld [vmem:[#allocation2 + $0x60] sm:$0x1]  ;;  %v427_v43 = vld [vmem:[%s9427_s29 + $0x38] sm:$0xf] }
  0xa7   : > { %v2296_v10 = vsel %vm9533_vm15, %v2291_v51, %v2295_v49  ;;  %v1104_v26 = vrot.slane %v1102_v53, 4  ;;  %v1107_v5 = vrot.slane %v1105_v58, 5  ;;  %v1111_v14 = vshll.u32 %v897_v25, 16  ;;  %v428_v53 = vld [vmem:[%s9427_s29 + $0x3c] sm:$0xf] }
  0xa8   : > { %v8606_v19 = vcombine.low %v2286_v2, %v2296_v10  ;;  %v1095_v23 = vrot.slane %v1094_v47, 4  ;;  %v2635_v24 = vsel %vm9446_vm10, %v2633_v7, %v2634_v46  ;;  %v1115_v44 = vshrl.u32 %v897_v25, 16  ;;  %v1508_v10 = vld [vmem:[#allocation2 + $0x54] sm:$0xf] }
  0xa9   : > { %3267 = vrot.lane.b32.xlu1 %v8590_v21, %s9328_s9  ;;  %v8621_v54 = vcombine.low %v2632_v57, %v2635_v24  ;;  %v1108_v9 = vor.u32 %v1107_v5, %v1104_v26  ;;  %v1113_v33 = vrot.slane %v1111_v14, 5  ;;  %v1121_v3 = vshll.u32 %v921_v48, 16  ;;  %v10010_v57 = vpop.permute.xlu1 %3259 }
  0xaa   : > { %v1100_v37 = vsel %vm9533_vm15, %v1095_v23, %v1099_v6  ;;  %v1117_v27 = vrot.slane %v1115_v44, 4  ;;  %v8478_v34 = vrot.slane %v2542_v18, 9  ;;  %v2638_v22 = vrot.slane %v9946_v4, 5  ;;  %v10022_v23 = vpop.permute.xlu0 %2825 }
  0xab   : > { %v8511_v56 = vcombine.low %v1090_v41, %v1100_v37  ;;  %3425 = vrot.lane.b32.xlu0 %v8621_v54, %s9331_s12  ;;  %v1109_v21 = vrot.slane %v1108_v9, 4  ;;  %v1123_v28 = vrot.slane %v1121_v3, 5  ;;  %v2641_v49 = vrot.slane %v9954_v12, 5  ;;  %v383_v9 = vld [vmem:[#allocation2 + $0x68] sm:$0x1] }
  0xac   : > { %v1118_v55 = vor.u32 %v1117_v27, %v1113_v33  ;;  %v2639_v36 = vsel %vm9446_vm10, %v8478_v34, %v2638_v22  ;;  %v2640_v30 = vrot.slane %v2638_v22, 4  ;;  %v8448_v42 = vrot.slane %v1324_v52, 9  ;;  %v10028_v3 = vld [vmem:[#allocation2 + $0xc] sm:$0xf] }
  0xad   : > { %3347 = vrot.lane.b32.xlu1 %v8606_v19, %s9333_s14  ;;  %v1114_v4 = vsel %vm9533_vm15, %v1109_v21, %v1113_v33  ;;  %v1435_v41 = vrot.slane %v897_v25, 5  ;;  %v1438_v62 = vrot.slane %v921_v48, 5  ;;  %v8447_v50 = vrot.slane %v1323_v35, 9  ;;  %v10020_v19 = vld [vmem:[#allocation2 + $0x58] sm:$0xf] }
  0xae   : > { %v1119_v12 = vrot.slane %v1118_v55, 4  ;;  %v2642_v46 = vsel %vm9446_vm10, %v2640_v30, %v2641_v49  ;;  %v1428_v51 = vrot.slane %v9934_v20, 5  ;;  %v1431_v6 = vrot.slane %v9958_v31, 5  ;;  %v10026_v33 = vld [vmem:[#allocation2 + $0x10] sm:$0xf] }
  0xaf   : > { %v8622_v58 = vcombine.low %v2639_v36, %v2642_v46  ;;  %v10006_v2 = vsel %vm9446_vm10, %v8448_v42, %v1435_v41  ;;  %v1437_v47 = vrot.slane %v1435_v41, 4  ;;  %v328_v25 = vsel %vm9391_vm3, 0, %v327_v45  ;;  %v10034_v35 = vld [vmem:[#allocation2 + $0x5c] sm:$0x1]  ;;  %v1934_v45 = vld [vmem:[#allocation2 + $0x54] sm:$0xe]  ;;  %v10042_v41 = vpop.permute.xlu1 %2907 }
  0xb0   : > { %v1124_v7 = vsel %vm9533_vm15, %v1119_v12, %v1123_v28  ;;  %v1429_v20 = vsel %vm9446_vm10, %v8447_v50, %v1428_v51  ;;  %v1430_v48 = vrot.slane %v1428_v51, 4  ;;  %329 = vst [vmem:[#allocation2 + $0x60] sm:$0x1] %v328_v25  ;;  %v567_v31 = vshrl.u32 %v427_v43, 16  ;;  %v429_v46 = vld [vmem:[%s9427_s29 + $0x40] sm:$0xf] }
  0xb1   : > { %2837 = vrot.lane.b32.xlu1 %v8511_v56, %s9329_s10  ;;  %v8512_v26 = vcombine.low %v1114_v4, %v1124_v7  ;;  %3427 = vrot.lane.b32.xlu0 %v8622_v58, %s9331_s12  ;;  %v1439_v5 = vsel %vm9446_vm10, %v1437_v47, %v1438_v62  ;;  %v570_v14 = vshll.u32 %v427_v43, 16  ;;  %v575_v18 = vshrl.u32 %v428_v53, 16  ;;  %v330_v4 = vld [vmem:[#allocation2 + $0x6c] sm:$0x1]  ;;  %v10053_v47 = vpop.permute.xlu0 %3161  ;;  %v10055_v25 = vld [vmem:[#allocation2 + $0x18] sm:$0xf] }
  0xb2   : > { %v1432_v24 = vsel %vm9446_vm10, %v1430_v48, %v1431_v6  ;;  %v569_v44 = vrot.slane %v567_v31, 7  ;;  %v578_v54 = vshll.u32 %v428_v53, 16  ;;  %v1689_v34 = vshrl.u32 %v1508_v10, 16  ;;  %v10057_v7 = vld [vmem:[#allocation2 + $0x1c] sm:$0xf] }
  0xb3   : > { %v8527_v37 = vcombine.low %v1429_v20, %v1432_v24  ;;  %v10032_v27 = vrot.slane %v575_v18, 7  ;;  %v1692_v22 = vshll.u32 %v1508_v10, 16  ;;  %v8528_v56 = vcombine.low %v10006_v2, %v1439_v5  ;;  %v430_v2 = vld [vmem:[%s9427_s29 + $0x44] sm:$0xf]  ;;  %v386_v5 = vld [vmem:[#allocation2 + $0x74] sm:$0x1] }
  0xb4   : > { %v572_v21 = vor.u32 %v570_v14, %v569_v44  ;;  %v573_v28 = vrot.slane %v569_v44, 4  ;;  %v1702_v49 = vshrl.u32 %v10020_v19, 16  ;;  %v1691_v36 = vrot.slane %v1689_v34, 4  ;;  %v333_v34 = vld [vmem:[#allocation2 + $0x78] sm:$0x1] }
  0xb5   : > { %2839 = vrot.lane.b32.xlu1 %v8512_v26, %s9329_s10  ;;  %2917 = vrot.lane.b32.xlu0 %v8527_v37, %s9326_s30  ;;  %v580_v55 = vor.u32 %v578_v54, %v10032_v27  ;;  %v1694_v30 = vrot.slane %v1692_v22, 5  ;;  %v8543_v42 = vcombine.low %v1508_v10, %v10020_v19  ;;  %v384_v62 = vsel %vm9419_vm6, 0, %v383_v9 }
  0xb6   : > { %v1698_v50 = vshll.u32 %v10020_v19, 16  ;;  %v1704_v43 = vrot.slane %v1702_v49, 4  ;;  %v1708_v12 = vshll.u32 %v10034_v35, 16  ;;  %385 = vst [vmem:[#allocation2 + $0x68] sm:$0x1] %v384_v62  ;;  %v2036_v58 = vrot.slane %v10020_v19, 5 }
  0xb7   : > { %v581_v51 = vsel %vm9458_vm12, %v573_v28, %v580_v55  ;;  %v819_v6 = vld [vmem:[#allocation2 + $0x60] sm:$0xf]  ;;  %v1695_v53 = vor.u32 %v1694_v30, %v1691_v36  ;;  %v8463_v26 = vrot.slane %v1934_v45, 9  ;;  %v2039_v19 = vrot.slane %v10034_v35, 5  ;;  %v10072_v28 = vpop.permute.xlu1 %3163  ;;  %v10074_v49 = vld [vmem:[#allocation2 + $0x24] sm:$0xf] }
  0xb8   : > { %v820_v48 = vsel %vm9452_vm11, %v572_v21, %v819_v6  ;;  %822 = vst.msk [vmem:[#allocation2 + $0x64] sm:$0xf] %vm291_vm0, %v581_v51  ;;  %v1700_v31 = vrot.slane %v1698_v50, 5  ;;  %v1710_v10 = vrot.slane %v1708_v12, 5  ;;  %v2038_v18 = vrot.slane %v2036_v58, 4  ;;  %v10089_v50 = vpop.permute.xlu0 %3417 }
  0xb9   : > { %2919 = vrot.lane.b32.xlu1 %v8528_v56, %s9326_s30  ;;  %821 = vst [vmem:[#allocation2 + $0x60] sm:$0xf] %v820_v48  ;;  %3013 = vrot.lane.b32.xlu0 %v8543_v42, %s9327_s8  ;;  %v1696_v14 = vrot.slane %v1695_v53, 4  ;;  %v331_v24 = vsel %vm9391_vm3, 0, %v330_v4  ;;  %v584_v54 = vshrl.u32 %v429_v46, 16  ;;  %v587_v9 = vshll.u32 %v429_v46, 16 }
  0xba   : > { %v1705_v44 = vor.u32 %v1704_v43, %v1700_v31  ;;  %332 = vst [vmem:[#allocation2 + $0x6c] sm:$0x1] %v331_v24  ;;  %v592_v37 = vshrl.u32 %v430_v2, 16  ;;  %v582_v22 = vrot.slane %v10032_v27, 4  ;;  %v595_v56 = vshll.u32 %v430_v2, 16 }
  0xbb   : > { %v387_v21 = vsel %vm9419_vm6, 0, %v386_v5  ;;  %v10076_v35 = vld [vmem:[#allocation2 + $0x28] sm:$0xf]  ;;  %v1701_v36 = vsel %vm9533_vm15, %v1696_v14, %v1700_v31  ;;  %v586_v42 = vrot.slane %v584_v54, 7  ;;  %v2037_v4 = vsel %vm9446_vm10, %v8463_v26, %v2036_v58 }
  0xbc   : > { %v1706_v30 = vrot.slane %v1705_v44, 4  ;;  %v594_v45 = vrot.slane %v592_v37, 7  ;;  %388 = vst [vmem:[#allocation2 + $0x74] sm:$0x1] %v387_v21  ;;  %v10083_v27 = vld [vmem:[%s9427_s29 + $0x48] sm:$0xf]  ;;  %v2040_v62 = vsel %vm9446_vm10, %v2038_v18, %v2039_v19 }
  0xbd   : > { %vm3449_vm1 = vcmask 31744   ;;  %v334_v43 = vsel %vm9391_vm3, 0, %v333_v34  ;;  %v823_v12 = vld [vmem:[#allocation2 + $0x68] sm:$0x1]  ;;  %v589_v51 = vor.u32 %v587_v9, %v586_v42  ;;  %v590_v6 = vrot.slane %v586_v42, 4 }
  0xbe   : > { %v1711_v46 = vsel %vm9533_vm15, %v1706_v30, %v1710_v10  ;;  %v597_v53 = vor.u32 %v595_v56, %v594_v45  ;;  %335 = vst [vmem:[#allocation2 + $0x78] sm:$0x1] %v334_v43  ;;  %v824_v58 = vsel %vm9391_vm3, %v582_v22, %v823_v12  ;;  %v599_v31 = vrot.slane %v594_v45, 4  ;;  %v10104_v56 = vpop.permute.xlu1 %3083 }
  0xbf   : > { %v1511_v2 = vld [vmem:[#allocation2 + $0x64] sm:$0xf]  ;;  %v8559_v48 = vcombine.low %v1701_v36, %v1711_v46  ;;  %825 = vst [vmem:[#allocation2 + $0x68] sm:$0x1] %v824_v58  ;;  %v8575_v10 = vcombine.low %v2037_v4, %v2040_v62  ;;  %vm14094_vm7 = vcmask 64512   ;;  %vm14093_vm8 = vcmask 97280  }
  0xc0   : > { %v10097_v26 = vld [vmem:[#allocation2 + $0x64] sm:$0xf]  ;;  %v1510_v14 = vld [vmem:[#allocation2 + $0x60] sm:$0xf]  ;;  %v1726_v18 = vshrl.u32 %v1511_v2, 16  ;;  %v1722_v19 = vshll.u32 %v1511_v2, 16  ;;  %v598_v44 = vsel %vm9458_vm12, %v590_v6, %v597_v53 }
  0xc1   : > { %v1935_v24 = vld [vmem:[#allocation2 + $0x60] sm:$0xe]  ;;  %v1713_v54 = vshrl.u32 %v1510_v14, 16  ;;  %v1716_v9 = vshll.u32 %v1510_v14, 16  ;;  %v8544_v37 = vcombine.low %v1510_v14, %v1511_v2  ;;  %3093 = vrot.lane.b32.xlu0 %v8559_v48, %s9332_s13  ;;  %v826_v22 = vld [vmem:[#allocation2 + $0x6c] sm:$0xf] }
  0xc2   : > { %v8464_v34 = vrot.slane %v1935_v24, 9  ;;  %829 = vst.msk [vmem:[#allocation2 + $0x70] sm:$0xf] %vm291_vm0, %v598_v44  ;;  %v1724_v21 = vrot.slane %v1722_v19, 5  ;;  %v1728_v36 = vrot.slane %v1726_v18, 4  ;;  %v2043_v30 = vrot.slane %v1511_v2, 5 }
  0xc3   : > { %v827_v42 = vsel %vm9452_vm11, %v589_v51, %v826_v22  ;;  %v2117_v45 = vld [vmem:[#allocation2 + $0x60] sm:$0xf]  ;;  %v1715_v4 = vrot.slane %v1713_v54, 4  ;;  %v1718_v62 = vrot.slane %v1716_v9, 5  ;;  %3015 = vrot.lane.b32.xlu1 %v8544_v37, %s9327_s8  ;;  %v830_v46 = vld [vmem:[#allocation2 + $0x74] sm:$0x1]  ;;  %v10109_v6 = vpop.permute.xlu0 %3419  ;;  %v10117_v51 = vsel %vm3449_vm1, %v8489_v13, %v10022_v23 }
  0xc4   : > { %828 = vst [vmem:[#allocation2 + $0x6c] sm:$0xf] %v827_v42  ;;  %v2298_v43 = vshrl.u32 %v2117_v45, 16  ;;  %v2301_v12 = vshll.u32 %v2117_v45, 16  ;;  %v1729_v53 = vor.u32 %v1728_v36, %v1724_v21  ;;  %v2045_v58 = vrot.slane %v2043_v30, 4 }
  0xc5   : > { %v2311_v48 = vshrl.u32 %v10097_v26, 16  ;;  %v10119_v2 = vld [vmem:[#allocation2 + $0x60] sm:$0xf]  ;;  %v1719_v14 = vor.u32 %v1718_v62, %v1715_v4  ;;  %3173 = vrot.lane.b32.xlu0 %v8575_v10, %s9330_s11  ;;  %v8591_v24 = vcombine.low %v2117_v45, %v10097_v26  ;;  %v831_v54 = vsel %vm9391_vm3, %v599_v31, %v830_v46  ;;  %v10133_v36 = vpop.permute.xlu1 %3339 }
  0xc6   : > { %v2300_v18 = vrot.slane %v2298_v43, 4  ;;  %v2303_v19 = vrot.slane %v2301_v12, 5  ;;  %v1730_v44 = vrot.slane %v1729_v53, 4  ;;  %v2307_v9 = vshll.u32 %v10097_v26, 16  ;;  %v1535_v15 = vld [vmem:[#allocation2 + $0x68] sm:$0x1] }
  0xc7   : > { %v2313_v37 = vrot.slane %v2311_v48, 4  ;;  %v1720_v17 = vrot.slane %v1719_v14, 4  ;;  %v10128_v13 = vsel %vm9446_vm10, %v8464_v34, %v2043_v30  ;;  %832 = vst [vmem:[#allocation2 + $0x74] sm:$0x1] %v831_v54  ;;  %v10130_v23 = vld [vmem:[#allocation2 + $0x68] sm:$0x1]  ;;  %v10135_v42 = vpop.permute.xlu0 %2827 }
  0xc8   : > { %v2304_v10 = vor.u32 %v2303_v19, %v2300_v18  ;;  %v1126_v22 = vshrl.u32 %v10119_v2, 16  ;;  %v1732_v31 = vshll.u32 %v1535_v15, 16  ;;  %v2046_v45 = vrot.slane %v1535_v15, 5  ;;  %v10154_v15 = vld [vmem:[#allocation2 + $0x64] sm:$0xf] }
  0xc9   : > { %v10137_v4 = vld [vmem:[#allocation2 + $0x70] sm:$0xf]  ;;  %v2309_v62 = vrot.slane %v2307_v9, 5  ;;  %v2317_v43 = vshll.u32 %v10130_v23, 16  ;;  %v1725_v34 = vsel %vm9533_vm15, %v1720_v17, %v1724_v21  ;;  %3269 = vrot.lane.b32.xlu0 %v8591_v24, %s9328_s9  ;;  %v10162_v0 = vld [vmem:[#allocation2 + $0x68] sm:$0x1]  ;;  %v10164_v16 = vpop.permute.xlu1 %2829 }
  0xca   : > { %v2335_v30 = vshrl.u32 %v10137_v4, 16  ;;  %v2331_v12 = vshll.u32 %v10137_v4, 16  ;;  %v2305_v46 = vrot.slane %v2304_v10, 4  ;;  %v1734_v53 = vrot.slane %v1732_v31, 5  ;;  %v10183_v59 = vld [vmem:[#allocation2 + $0x70] sm:$0xf] }
  0xcb   : > { %v2047_v48 = vsel %vm9446_vm10, %v2045_v58, %v2046_v45  ;;  %v10147_v14 = vld [vmem:[#allocation2 + $0x6c] sm:$0xf]  ;;  %v2314_v18 = vor.u32 %v2313_v37, %v2309_v62  ;;  %v2319_v19 = vrot.slane %v2317_v43, 5  ;;  %v10156_v17 = vpop.permute.xlu0 %3081  ;;  %v1128_v20 = vrot.slane %v1126_v22, 4 }
  0xcc   : > { %v8576_v54 = vcombine.low %v10128_v13, %v2047_v48  ;;  %v2322_v9 = vshrl.u32 %v10147_v14, 16  ;;  %v2325_v21 = vshll.u32 %v10147_v14, 16  ;;  %v8592_v24 = vcombine.low %v10147_v14, %v10137_v4 }
  0xcd   : > { %v1735_v58 = vsel %vm9533_vm15, %v1730_v44, %v1734_v53  ;;  %v2333_v10 = vrot.slane %v2331_v12, 5  ;;  %v2337_v31 = vrot.slane %v2335_v30, 4  ;;  %v2310_v37 = vsel %vm9533_vm15, %v2305_v46, %v2309_v62  ;;  %v2543_v46 = vld [vmem:[#allocation2 + $0x60] sm:$0xe] }
  0xce   : > { %v8560_v13 = vcombine.low %v1725_v34, %v1735_v58  ;;  %v2324_v45 = vrot.slane %v2322_v9, 4  ;;  %v2327_v43 = vrot.slane %v2325_v21, 5  ;;  %v2315_v48 = vrot.slane %v2314_v18, 4  ;;  %v10166_v14 = vld [vmem:[#allocation2 + $0x74] sm:$0x1] }
  0xcf   : > { %v2338_v55 = vor.u32 %v2337_v31, %v2333_v10  ;;  %v1129_v52 = vshll.u32 %v10119_v2, 16  ;;  %v1135_v44 = vshll.u32 %v10154_v15, 16  ;;  %v2341_v62 = vshll.u32 %v10166_v14, 16  ;;  %v10175_v53 = vpop.permute.xlu0 %3337 }
  0xd0   : > { %3095 = vrot.lane.b32.xlu1 %v8560_v13, %s9332_s13  ;;  %v2328_v30 = vor.u32 %v2327_v43, %v2324_v45  ;;  %v2320_v34 = vsel %vm9533_vm15, %v2315_v48, %v2319_v19  ;;  %v1139_v12 = vshrl.u32 %v10154_v15, 16  ;;  %v1145_v13 = vshll.u32 %v10162_v0, 16  ;;  %v10178_v45 = vld [vmem:[#allocation2 + $0x6c] sm:$0xf] }
  0xd1   : > { %v2339_v18 = vrot.slane %v2338_v55, 4  ;;  %v8607_v9 = vcombine.low %v2310_v37, %v2320_v34  ;;  %v1131_v22 = vrot.slane %v1129_v52, 5  ;;  %v1137_v21 = vrot.slane %v1135_v44, 5  ;;  %14168 = vst [vmem:[#allocation6_spill] sm:$0xff] %v10178_v45 }
  0xd2   : > { %v2329_v2 = vrot.slane %v2328_v30, 4  ;;  %v2343_v58 = vrot.slane %v2341_v62, 5  ;;  %v1141_v31 = vrot.slane %v1139_v12, 4  ;;  %v8479_v19 = vrot.slane %v2543_v46, 9  ;;  %v923_v30 = vld [vmem:[#allocation2 + $0x74] sm:$0x1] }
  0xd3   : > { %3349 = vrot.lane.b32.xlu0 %v8607_v9, %s9333_s14  ;;  %v1132_v43 = vor.u32 %v1131_v22, %v1128_v20  ;;  %v2645_v48 = vrot.slane %v10097_v26, 5  ;;  %v2648_v5 = vrot.slane %v10130_v23, 5  ;;  %v1147_v44 = vrot.slane %v1145_v13, 5  ;;  %v10190_v20 = vpop.permute.xlu1 %2831  ;;  %v10192_v62 = vpop.permute.xlu0 %2909 }
  0xd4   : > { %3175 = vrot.lane.b32.xlu1 %v8576_v54, %s9330_s11  ;;  %v2334_v52 = vsel %vm9533_vm15, %v2329_v2, %v2333_v10  ;;  %v2344_v55 = vsel %vm9533_vm15, %v2339_v18, %v2343_v58  ;;  %v1142_v37 = vor.u32 %v1141_v31, %v1137_v21  ;;  %14169 = vst [vmem:[#allocation7_spill] sm:$0xff] %v10192_v62  ;;  %v1150_v10 = vshrl.u32 %v10178_v45, 16  ;;  %v2544_v31 = vld [vmem:[#allocation2 + $0x6c] sm:$0xe] }
  0xd5   : > { %v8608_v26 = vcombine.low %v2334_v52, %v2344_v55  ;;  %v1133_v23 = vrot.slane %v1132_v43, 4  ;;  %v2646_v34 = vsel %vm9446_vm10, %v8479_v19, %v2645_v48  ;;  %v2647_v54 = vrot.slane %v2645_v48, 4  ;;  %v1326_v52 = vld [vmem:[#allocation2 + $0x6c] sm:$0xe] }
  0xd6   : > { %v1143_v12 = vrot.slane %v1142_v37, 4  ;;  %v1153_v46 = vshll.u32 %v10178_v45, 16  ;;  %v1159_v18 = vshll.u32 %v10183_v59, 16  ;;  %v1163_v2 = vshrl.u32 %v10183_v59, 16 }
  0xd7   : > { %v1138_v9 = vsel %vm9533_vm15, %v1133_v23, %v1137_v21  ;;  %v2649_v22 = vsel %vm9446_vm10, %v2647_v54, %v2648_v5  ;;  %v1169_v58 = vshll.u32 %v923_v30, 16  ;;  %v1152_v19 = vrot.slane %v1150_v10, 4  ;;  %v10207_v55 = vpop.permute.xlu0 %3005  ;;  %v1325_v5 = vld [vmem:[#allocation2 + $0x60] sm:$0xe] }
  0xd8   : > { %3271 = vrot.lane.b32.xlu1 %v8592_v24, %s9328_s9  ;;  %v1148_v13 = vsel %vm9533_vm15, %v1143_v12, %v1147_v44  ;;  %v8623_v43 = vcombine.low %v2646_v34, %v2649_v22  ;;  %v1155_v48 = vrot.slane %v1153_v46, 5  ;;  %v1161_v21 = vrot.slane %v1159_v18, 5  ;;  %v10212_v44 = vpop.permute.xlu1 %2911 }
  0xd9   : > { %v8513_v37 = vcombine.low %v1138_v9, %v1148_v13  ;;  %v1165_v23 = vrot.slane %v1163_v2, 4  ;;  %v1171_v45 = vrot.slane %v1169_v58, 5  ;;  %v8480_v38 = vrot.slane %v2544_v31, 9 }
  0xda   : > { %3429 = vrot.lane.b32.xlu0 %v8623_v43, %s9331_s12  ;;  %v1156_v54 = vor.u32 %v1155_v48, %v1152_v19  ;;  %v2652_v24 = vrot.slane %v10137_v4, 5  ;;  %v2655_v62 = vrot.slane %v10166_v14, 5  ;;  %v8450_v12 = vrot.slane %v1326_v52, 9  ;;  %v1512_v52 = vld [vmem:[#allocation2 + $0x6c] sm:$0xf] }
  0xdb   : > { %v1166_v34 = vor.u32 %v1165_v23, %v1161_v21  ;;  %v1449_v10 = vrot.slane %v10183_v59, 5  ;;  %v1452_v46 = vrot.slane %v923_v30, 5  ;;  %v8449_v2 = vrot.slane %v1325_v5, 9  ;;  %v10218_v58 = vpop.permute.xlu0 %3085 }
  0xdc   : > { %3351 = vrot.lane.b32.xlu1 %v8608_v26, %s9333_s14  ;;  %v1157_v18 = vrot.slane %v1156_v54, 4  ;;  %v2653_v9 = vsel %vm9446_vm10, %v8480_v38, %v2652_v24  ;;  %v2654_v22 = vrot.slane %v2652_v24, 4  ;;  %v1442_v13 = vrot.slane %v10154_v15, 5  ;;  %v432_v38 = vld [vmem:[%s9427_s29 + $0x4c] sm:$0xf] }
  0xdd   : > { %v1167_v4 = vrot.slane %v1166_v34, 4  ;;  %v1450_v14 = vsel %vm9446_vm10, %v8450_v12, %v1449_v10  ;;  %v1451_v31 = vrot.slane %v1449_v10, 4  ;;  %v1445_v43 = vrot.slane %v10162_v0, 5  ;;  %v10238_v54 = vld [vmem:[#allocation2 + $0x70] sm:$0xf]  ;;  %v10244_v12 = vpop.permute.xlu1 %3007 }
  0xde   : > { %v1162_v30 = vsel %vm9533_vm15, %v1157_v18, %v1161_v21  ;;  %v2656_v26 = vsel %vm9446_vm10, %v2654_v22, %v2655_v62  ;;  %v14170_v19 = vshrl.u32 %v10083_v27, 16  ;;  %v3500_v23 = vsel %vm14094_vm7, %v10117_v51, %v9967_v40 }
  0xdf   : > { %v1172_v15 = vsel %vm9533_vm15, %v1167_v4, %v1171_v45  ;;  %v8624_v5 = vcombine.low %v2653_v9, %v2656_v26  ;;  %v1453_v21 = vsel %vm9446_vm10, %v1451_v31, %v1452_v46  ;;  %v1443_v62 = vsel %vm9446_vm10, %v8449_v2, %v1442_v13  ;;  %v10246_v40 = vpop.permute.xlu0 %3165  ;;  %v833_v46 = vld [vmem:[#allocation2 + $0x78] sm:$0xf]  ;;  %v389_v4 = vld [vmem:[#allocation2 + $0x80] sm:$0x1] }
  0xe0   : > { %v603_v48 = vrot.slane %v14170_v19, 7  ;;  %2841 = vrot.lane.b32.xlu1 %v8513_v37, %s9329_s10  ;;  %v8514_v0 = vcombine.low %v1162_v30, %v1172_v15  ;;  %v1444_v24 = vrot.slane %v1442_v13, 4  ;;  %v604_v34 = vshll.u32 %v10083_v27, 16 }
  0xe1   : > { %3431 = vrot.lane.b32.xlu0 %v8624_v5, %s9331_s12  ;;  %v8530_v51 = vcombine.low %v1450_v14, %v1453_v21  ;;  %v609_v45 = vshrl.u32 %v432_v38, 16  ;;  %v612_v10 = vshll.u32 %v432_v38, 16  ;;  %v1737_v18 = vshrl.u32 %v1512_v52, 16 }
  0xe2   : > { %v1446_v37 = vsel %vm9446_vm10, %v1444_v24, %v1445_v43  ;;  %v606_v9 = vor.u32 %v604_v34, %v603_v48  ;;  %v1740_v22 = vshll.u32 %v1512_v52, 16  ;;  %v1750_v2 = vshrl.u32 %v10238_v54, 16  ;;  %v1536_v43 = vld [vmem:[#allocation2 + $0x74] sm:$0x1]  ;;  %v1936_v24 = vld [vmem:[#allocation2 + $0x6c] sm:$0xe] }
  0xe3   : > { %v8529_v27 = vcombine.low %v1443_v62, %v1446_v37  ;;  %v607_v31 = vrot.slane %v603_v48, 4  ;;  %v10252_v13 = vrot.slane %v609_v45, 7  ;;  %v1739_v30 = vrot.slane %v1737_v18, 4  ;;  %v10272_v45 = vpop.permute.xlu0 %3261 }
  0xe4   : > { %2843 = vrot.lane.b32.xlu1 %v8514_v0, %s9329_s10  ;;  %v834_v14 = vsel %vm9452_vm11, %v606_v9, %v833_v46  ;;  %v1742_v26 = vrot.slane %v1740_v22, 5  ;;  %v8545_v38 = vcombine.low %v1512_v52, %v10238_v54  ;;  %vm14092_vm9 = vcmask 130048   ;;  %v10279_v46 = vld [vmem:[#allocation2 + $0x3c] sm:$0xf] }
  0xe5   : > { %2921 = vrot.lane.b32.xlu0 %v8529_v27, %s9326_s30  ;;  %v614_v19 = vor.u32 %v612_v10, %v10252_v13  ;;  %835 = vst [vmem:[#allocation2 + $0x78] sm:$0xf] %v834_v14  ;;  %v14171_v48 = vcombine.low %v10028_v3, %v10026_v33  ;;  %v390_v5 = vsel %vm9419_vm6, 0, %v389_v4  ;;  %v1746_v0 = vshll.u32 %v10238_v54, 16  ;;  %v10270_v34 = vpop.permute.xlu1 %3087  ;;  %v10277_v10 = vld [vmem:[#allocation2 + $0x40] sm:$0xf] }
  0xe6   : > { %391 = vst [vmem:[#allocation2 + $0x80] sm:$0x1] %v390_v5  ;;  %v1743_v21 = vor.u32 %v1742_v26, %v1739_v30  ;;  %v1752_v62 = vrot.slane %v1750_v2, 4  ;;  %v616_v3 = vrot.slane %v10252_v13, 4  ;;  %v3533_v22 = vsel %vm14093_vm8, %v3500_v23, %v9973_v61 }
  0xe7   : > { %v3455_v15 = vsel %vm3449_vm1, %v14171_v48, %v10135_v42  ;;  %v615_v33 = vsel %vm9458_vm12, %v607_v31, %v614_v19  ;;  %v1756_v42 = vshll.u32 %v1536_v43, 16  ;;  %v1748_v9 = vrot.slane %v1746_v0, 5  ;;  %v9202_v2 = vld [vmem:[%s14076_s1 + $0x10] ss:$0 sps:$4 sm:$0x33]  }
  0xe8   : > { %v3502_v52 = vsel %vm14094_vm7, %v3455_v15, %v10042_v41  ;;  %v8494_v41 = vcombine.low %v10279_v46, %v10277_v10  ;;  %2923 = vrot.lane.b32.xlu1 %v8530_v51, %s9326_s30  ;;  %836 = vst.msk [vmem:[#allocation2 + $0x7c] sm:$0xf] %vm291_vm0, %v615_v33  ;;  %v1744_v37 = vrot.slane %v1743_v21, 4  ;;  %v14172_v51 = vcombine.low %v10055_v25, %v10057_v7  ;;  %v336_v0 = vld [vmem:[#allocation2 + $0x84] sm:$0x1] }
  0xe9   : > { %v3535_v18 = vsel %vm14093_vm8, %v3502_v52, %v9984_v60  ;;  %3017 = vrot.lane.b32.xlu0 %v8545_v38, %s9327_s8  ;;  %vm3597_vm13 = vcmask 162816   ;;  %v3566_v60 = vsel %vm14092_vm9, %v3533_v22, %v10156_v17  ;;  %v8465_v27 = vrot.slane %v1936_v24, 9  ;;  %v10305_v30 = vpop.permute.xlu1 %3167  ;;  %v10316_v38 = vpop.permute.xlu0 %3341 }
  0xea   : > { %v10298_v4 = vsel %vm3449_vm1, %v14172_v51, %v10164_v16  ;;  %v1753_v31 = vor.u32 %v1752_v62, %v1748_v9  ;;  %v1758_v61 = vrot.slane %v1756_v42, 5  ;;  %v3599_v23 = vsel %vm3597_vm13, %v3566_v60, %v10053_v47  ;;  %v433_v62 = vld [vmem:[%s9427_s29 + $0x50] sm:$0xf]  ;;  %v434_v60 = vld [vmem:[%s9427_s29 + $0x54] sm:$0xf] }
  0xeb   : > { %v2050_v13 = vrot.slane %v10238_v54, 5  ;;  %v10309_v25 = vsel %vm14092_vm9, %v3535_v18, %v10104_v56  ;;  %v2053_v16 = vrot.slane %v1536_v43, 5  ;;  %vm3789_vm14 = vcmask 1041408  }
  0xec   : > { %vm3630_vm4 = vcmask 195584   ;;  %v1514_v7 = vld [vmem:[#allocation2 + $0x78] sm:$0xf]  ;;  %v1749_v17 = vsel %vm9533_vm15, %v1744_v37, %v1748_v9  ;;  %v1754_v14 = vrot.slane %v1753_v31, 4  ;;  %9162 = vmatprep.subr.msk.bf16.mxu0 %vm3789_vm14, %v9202_v2  ;;  %9163 = vmatprep.subr.msk.bf16.mxu1 %vm3789_vm14, %v9202_v2  ;;  %vm3663_vm5 = vcmask 228352  }
  0xed   : > { %v1937_v26 = vld [vmem:[#allocation2 + $0x78] sm:$0xe]  ;;  %v2051_v47 = vsel %vm9446_vm10, %v8465_v27, %v2050_v13  ;;  %v2052_v54 = vrot.slane %v2050_v13, 4  ;;  %v1761_v56 = vshrl.u32 %v1514_v7, 16  ;;  %v1764_v43 = vshll.u32 %v1514_v7, 16  ;;  %v10328_v24 = vpop.permute.xlu1 %3263 }
  0xee   : > { %v837_v19 = vld [vmem:[#allocation2 + $0x80] sm:$0x1]  ;;  %v8466_v48 = vrot.slane %v1937_v26, 9  ;;  %v3632_v15 = vsel %vm3630_vm4, %v3599_v23, %v9991_v11  ;;  %v1759_v52 = vsel %vm9533_vm15, %v1754_v14, %v1758_v61  ;;  %v3791_v31 = vsel %vm3789_vm14, %v9202_v2, 0  ;;  %v2121_v13 = vld [vmem:[#allocation2 + $0x78] sm:$0xf] }
  0xef   : > { %v838_v5 = vsel %vm9391_vm3, %v616_v3, %v837_v19  ;;  %v2054_v21 = vsel %vm9446_vm10, %v2052_v54, %v2053_v16  ;;  %v1515_v33 = vld [vmem:[#allocation2 + $0x7c] sm:$0xf]  ;;  %v1763_v42 = vrot.slane %v1761_v56, 4  ;;  %v1766_v18 = vrot.slane %v1764_v43, 5  ;;  %9047 = vmatpush3.bf16.msra.mxu0 %v3791_v31  ;;  %9161 = vmatpush3.bf16.msra.mxu1 %v3791_v31 }
  0xf0   : > { %839 = vst [vmem:[#allocation2 + $0x80] sm:$0x1] %v838_v5  ;;  %v8561_v11 = vcombine.low %v1749_v17, %v1759_v52  ;;  %v8577_v37 = vcombine.low %v2051_v47, %v2054_v21  ;;  %v1774_v9 = vshrl.u32 %v1515_v33, 16  ;;  %v8546_v3 = vcombine.low %v1514_v7, %v1515_v33 }
  0xf1   : > { %v1770_v22 = vshll.u32 %v1515_v33, 16  ;;  %v2057_v51 = vrot.slane %v1515_v33, 5  ;;  %v1767_v27 = vor.u32 %v1766_v18, %v1763_v42  ;;  %v337_v61 = vsel %vm9391_vm3, 0, %v336_v0  ;;  %v10343_v2 = vpop.permute.xlu1 %3343  ;;  %v10345_v47 = vpop.permute.xlu0 %3421  ;;  %v10354_v0 = vld [vmem:[#allocation2 + $0x7c] sm:$0xf] }
  0xf2   : > { %3097 = vrot.lane.b32.xlu0 %v8561_v11, %s9332_s13  ;;  %v618_v23 = vshrl.u32 %v433_v62, 16  ;;  %3019 = vrot.lane.b32.xlu1 %v8546_v3, %s9327_s8  ;;  %v1776_v17 = vrot.slane %v1774_v9, 4  ;;  %v14173_v7 = vcombine.low %v10074_v49, %v10076_v35  ;;  %v3665_v26 = vsel %vm3663_vm5, %v3632_v15, %v10175_v53  ;;  %338 = vst [vmem:[#allocation2 + $0x84] sm:$0x1] %v337_v61 }
  0xf3   : > { %v1772_v16 = vrot.slane %v1770_v22, 5  ;;  %v1768_v54 = vrot.slane %v1767_v27, 4  ;;  %v621_v43 = vshll.u32 %v433_v62, 16  ;;  %v626_v19 = vshrl.u32 %v434_v60, 16 }
  0xf4   : > { %v3461_v14 = vsel %vm3449_vm1, %v14173_v7, %v10190_v20  ;;  %v620_v56 = vrot.slane %v618_v23, 7  ;;  %v629_v52 = vshll.u32 %v434_v60, 16  ;;  %v2346_v21 = vshrl.u32 %v2121_v13, 16 }
  0xf5   : > { %v1777_v5 = vor.u32 %v1776_v17, %v1772_v16  ;;  %v2349_v49 = vshll.u32 %v2121_v13, 16  ;;  %v10349_v35 = vsel %vm9446_vm10, %v8466_v48, %v2057_v51  ;;  %v2059_v53 = vrot.slane %v2057_v51, 4  ;;  %v392_v51 = vld [vmem:[#allocation2 + $0x8c] sm:$0x1]  ;;  %v10359_v60 = vpop.permute.xlu1 %2833 }
  0xf6   : > { %3177 = vrot.lane.b32.xlu0 %v8577_v37, %s9330_s11  ;;  %v624_v20 = vrot.slane %v620_v56, 4  ;;  %v10352_v15 = vrot.slane %v626_v19, 7  ;;  %v1773_v62 = vsel %vm9533_vm15, %v1768_v54, %v1772_v16  ;;  %v623_v18 = vor.u32 %v621_v43, %v620_v56 }
  0xf7   : > { %v1537_v33 = vld [vmem:[#allocation2 + $0x80] sm:$0x1]  ;;  %v1778_v42 = vrot.slane %v1777_v5, 4  ;;  %v2348_v11 = vrot.slane %v2346_v21, 4  ;;  %v2351_v22 = vrot.slane %v2349_v49, 5  ;;  %v2359_v37 = vshrl.u32 %v10354_v0, 16  ;;  %v10363_v31 = vpop.permute.xlu0 %3423 }
  0xf8   : > { %v1780_v9 = vshll.u32 %v1537_v33, 16  ;;  %v2060_v3 = vrot.slane %v1537_v33, 5  ;;  %v631_v48 = vor.u32 %v629_v52, %v10352_v15  ;;  %v8593_v27 = vcombine.low %v2121_v13, %v10354_v0 }
  0xf9   : > { %vm3696_vm14 = vcmask 261120   ;;  %vm3756_vm2 = vcmask 293888   ;;  %v840_v17 = vld [vmem:[#allocation2 + $0x84] sm:$0xf]  ;;  %v3506_v13 = vsel %vm14094_vm7, %v3461_v14, %v10212_v44  ;;  %v3601_v56 = vsel %vm3597_vm13, %v10309_v25, %v10072_v28  ;;  %v2545_v14 = vld [vmem:[#allocation2 + $0x78] sm:$0xe]  ;;  %v2836_v33 = vpop.permute.xlu1 %2835 }
  0xfa   : > { %v1782_v61 = vrot.slane %v1780_v9, 5  ;;  %v2061_v23 = vsel %vm9446_vm10, %v2059_v53, %v2060_v3  ;;  %v632_v16 = vsel %vm9458_vm12, %v624_v20, %v631_v48  ;;  %v3698_v7 = vsel %vm3696_vm14, %v3665_v26, %v10089_v50  ;;  %3273 = vrot.lane.b32.xlu0 %v8593_v27, %s9328_s9  ;;  %v2145_v50 = vld [vmem:[#allocation2 + $0x80] sm:$0x1] }
  0xfb   : > { %v841_v54 = vsel %vm9452_vm11, %v623_v18, %v840_v17  ;;  %843 = vst.msk [vmem:[#allocation2 + $0x88] sm:$0xf] %vm291_vm0, %v632_v16  ;;  %9048 = vmatprep.mubr.msk.bf16.mxu0 %vm3756_vm2, %v3698_v7  ;;  %v393_v43 = vsel %vm9419_vm6, 0, %v392_v51  ;;  %v8578_v19 = vcombine.low %v10349_v35, %v2061_v23  ;;  %v3634_v5 = vsel %vm3630_vm4, %v3601_v56, %v10010_v57  ;;  %v10391_v49 = vpop.permute.xlu0 %2913  ;;  %v14175_v7 = vld [vmem:[#allocation4_spill] sm:$0xff] }
  0xfc   : > { %v1783_v26 = vsel %vm9533_vm15, %v1778_v42, %v1782_v61  ;;  %842 = vst [vmem:[#allocation2 + $0x84] sm:$0xf] %v841_v54  ;;  %394 = vst [vmem:[#allocation2 + $0x8c] sm:$0x1] %v393_v43  ;;  %v2352_v44 = vor.u32 %v2351_v22, %v2348_v11  ;;  %v3667_v28 = vsel %vm3663_vm5, %v3634_v5, %v10133_v36  ;;  %v2355_v25 = vshll.u32 %v10354_v0, 16  ;;  %v14176_v54 = vld [vmem:[#allocation5_spill] sm:$0xff] }
  0xfd   : > { %v8562_v52 = vcombine.low %v1773_v62, %v1783_v26  ;;  %v2361_v21 = vrot.slane %v2359_v37, 4  ;;  %v3700_v53 = vsel %vm3696_vm14, %v3667_v28, %v10109_v6  ;;  %v2365_v20 = vshll.u32 %v2145_v50, 16  ;;  %v14174_v62 = vld [vmem:[#allocation7_spill] sm:$0xff] }
  0xfe   : > { %v2353_v35 = vrot.slane %v2352_v44, 4  ;;  %v3539_v57 = vsel %vm14093_vm8, %v3506_v13, %v10244_v12  ;;  %9049 = vmatmul.mubr.msk.bf16.vlgmr.msra.gmra.mrb[0].mxu0 %vm3756_vm2, %v3700_v53  ;;  %v3504_v36 = vsel %vm14094_vm7, %v10298_v4, %v14174_v62  ;;  %v2357_v42 = vrot.slane %v2355_v25, 5 }
  0xff   : > { %3099 = vrot.lane.b32.xlu1 %v8562_v52, %s9332_s13  ;;  %v8481_v18 = vrot.slane %v2545_v14, 9  ;;  %v2659_v11 = vrot.slane %v10354_v0, 5  ;;  %v633_v6 = vrot.slane %v10352_v15, 4  ;;  %v2367_v9 = vrot.slane %v2365_v20, 5  ;;  %v3010_v4 = vpop.permute.xlu0 %3009 }
 0x100   : > { %v3537_v3 = vsel %vm14093_vm8, %v3504_v36, %v10207_v55  ;;  %v2662_v12 = vrot.slane %v2145_v50, 5  ;;  %v2362_v48 = vor.u32 %v2361_v21, %v2357_v42  ;;  %v3572_v51 = vsel %vm14092_vm9, %v3539_v57, %v10270_v34 }
 0x101   : > { %v2661_v22 = vrot.slane %v2659_v11, 4  ;;  %v3570_v37 = vsel %vm14092_vm9, %v3537_v3, %v10218_v58  ;;  %v2358_v0 = vsel %vm9533_vm15, %v2353_v35, %v2357_v42  ;;  %v10414_v15 = vsel %vm9446_vm10, %v8481_v18, %v2659_v11  ;;  %v902_v11 = vld [vmem:[#allocation2 + $0x78] sm:$0xf] }
 0x102   : > { %v2124_v27 = vld [vmem:[#allocation2 + $0x88] sm:$0xf]  ;;  %v3605_v55 = vsel %vm3597_vm13, %v3572_v51, %v10305_v30  ;;  %v3603_v61 = vsel %vm3597_vm13, %v3570_v37, %v10246_v40  ;;  %v14177_v13 = vcombine.low %v14175_v7, %v14176_v54  ;;  %v2363_v14 = vrot.slane %v2362_v48, 4  ;;  %v924_v37 = vld [vmem:[#allocation2 + $0x80] sm:$0x1] }
 0x103   : > { %3179 = vrot.lane.b32.xlu1 %v8578_v19, %s9330_s11  ;;  %v2123_v34 = vld [vmem:[#allocation2 + $0x84] sm:$0xf]  ;;  %v2383_v23 = vshrl.u32 %v2124_v27, 16  ;;  %v844_v58 = vld [vmem:[#allocation2 + $0x8c] sm:$0x1]  ;;  %v2379_v16 = vshll.u32 %v2124_v27, 16  ;;  %v2663_v17 = vsel %vm9446_vm10, %v2661_v22, %v2662_v12  ;;  %v2916_v19 = vpop.permute.xlu1 %2915  ;;  %v3467_v52 = vsel %vm3449_vm1, %v8494_v41, %v2836_v33 }
 0x104   : > { %v3464_v56 = vsel %vm3449_vm1, %v14177_v13, %v10359_v60  ;;  %v2370_v43 = vshrl.u32 %v2123_v34, 16  ;;  %v2373_v30 = vshll.u32 %v2123_v34, 16  ;;  %v8594_v50 = vcombine.low %v2123_v34, %v2124_v27  ;;  %v2546_v26 = vld [vmem:[#allocation2 + $0x84] sm:$0xe]  ;;  %v10464_v48 = vld [vmem:[#allocation2 + $0x48] sm:$0xf] }
 0x105   : > { %v845_v40 = vsel %vm9391_vm3, %v633_v6, %v844_v58  ;;  %v10430_v5 = vrot.slane %v2379_v16, 5  ;;  %v2385_v44 = vrot.slane %v2383_v23, 4  ;;  %v8482_v25 = vrot.slane %v2546_v26, 9  ;;  %v3090_v62 = vpop.permute.xlu0 %3089  ;;  %v10466_v22 = vld [vmem:[#allocation2 + $0x4c] sm:$0xf] }
 0x106   : > { %846 = vst [vmem:[#allocation2 + $0x8c] sm:$0x1] %v845_v40  ;;  %v2372_v28 = vrot.slane %v2370_v43, 4  ;;  %v2375_v60 = vrot.slane %v2373_v30, 5  ;;  %v2666_v21 = vrot.slane %v2124_v27, 5  ;;  %v2368_v35 = vsel %vm9533_vm15, %v2363_v14, %v2367_v9 }
 0x107   : > { %3275 = vrot.lane.b32.xlu1 %v8594_v50, %s9328_s9  ;;  %v2386_v53 = vor.u32 %v2385_v44, %v10430_v5  ;;  %v8625_v20 = vcombine.low %v10414_v15, %v2663_v17  ;;  %v3638_v57 = vsel %vm3630_vm4, %v3605_v55, %v10328_v24  ;;  %v8609_v46 = vcombine.low %v2358_v0, %v2368_v35  ;;  %v10474_v15 = vld [vmem:[#allocation2 + $0x54] sm:$0xf]  ;;  %v1327_v58 = vld [vmem:[#allocation2 + $0x78] sm:$0xe]  ;;  %v905_v35 = vld [vmem:[#allocation2 + $0x88] sm:$0xf] }
 0x108   : > { %v2376_v10 = vor.u32 %v2375_v60, %v2372_v28  ;;  %v3636_v41 = vsel %vm3630_vm4, %v3603_v61, %v10272_v45  ;;  %v3671_v33 = vsel %vm3663_vm5, %v3638_v57, %v10343_v2  ;;  %v2667_v36 = vsel %vm9446_vm10, %v8482_v25, %v2666_v21  ;;  %v3012_v3 = vpop.permute.xlu1 %3011  ;;  %v14178_v61 = vld [vmem:[#allocation6_spill] sm:$0xff] }
 0x109   : > { %v3669_v42 = vsel %vm3663_vm5, %v3636_v41, %v10316_v38  ;;  %v3704_v18 = vsel %vm3696_vm14, %v3671_v33, %v10363_v31  ;;  %v3510_v24 = vsel %vm14094_vm7, %v3467_v52, %v2916_v19  ;;  %3353 = vrot.lane.b32.xlu0 %v8609_v46, %s9333_s14  ;;  %v2668_v9 = vrot.slane %v2666_v21, 4  ;;  %v3170_v0 = vpop.permute.xlu0 %3169 }
 0x10a   : > { %v2377_v6 = vrot.slane %v2376_v10, 4  ;;  %v3702_v45 = vsel %vm3696_vm14, %v3669_v42, %v10345_v47  ;;  %v3508_v2 = vsel %vm14094_vm7, %v3464_v56, %v10391_v49  ;;  %v2387_v12 = vrot.slane %v2386_v53, 4  ;;  %v903_v47 = vld [vmem:[#allocation2 + $0x7c] sm:$0xf] }
 0x10b   : > { %9052 = vmatprep.mubr.msk.bf16.mxu0 %vm3756_vm2, %v3702_v45  ;;  %v10461_v38 = vsel %vm14093_vm8, %v3510_v24, %v3012_v3  ;;  %v3541_v31 = vsel %vm14093_vm8, %v3508_v2, %v3010_v4  ;;  %v8495_v51 = vcombine.low %v10464_v48, %v10466_v22  ;;  %v10476_v4 = vld [vmem:[#allocation2 + $0x58] sm:$0xf]  ;;  %v8498_v34 = vcombine.low %v14178_v61, %v10183_v59 }
 0x10c   : > { %v2382_v49 = vsel %vm9533_vm15, %v2377_v6, %v10430_v5  ;;  %9053 = vmatmul.mubr.msk.bf16.gmra.mrb[4].mxu0 %vm3756_vm2, %v3704_v18  ;;  %v8496_v55 = vcombine.low %v10474_v15, %v10476_v4  ;;  %v1174_v23 = vshrl.u32 %v902_v11, 16  ;;  %v3574_v7 = vsel %vm14092_vm9, %v3541_v31, %v3090_v62  ;;  %v904_v5 = vld [vmem:[#allocation2 + $0x84] sm:$0xf] }
 0x10d   : > { %v2146_v27 = vld [vmem:[#allocation2 + $0x8c] sm:$0x1]  ;;  %v1177_v54 = vshll.u32 %v902_v11, 16  ;;  %3433 = vrot.lane.b32.xlu0 %v8625_v20, %s9331_s12  ;;  %v1183_v56 = vshll.u32 %v903_v47, 16  ;;  %v1187_v43 = vshrl.u32 %v903_v47, 16  ;;  %v1193_v30 = vshll.u32 %v924_v37, 16  ;;  %v3266_v57 = vpop.permute.xlu0 %3265 }
 0x10e   : > { %v2389_v16 = vshll.u32 %v2146_v27, 16  ;;  %v2669_v17 = vrot.slane %v2146_v27, 5  ;;  %v1176_v13 = vrot.slane %v1174_v23, 4  ;;  %v8451_v19 = vrot.slane %v1327_v58, 9  ;;  %v10490_v46 = vld [vmem:[#allocation2 + $0x8c] sm:$0x1] }
 0x10f   : > { %v1179_v26 = vrot.slane %v1177_v54, 5  ;;  %v3607_v14 = vsel %vm3597_vm13, %v3574_v7, %v3170_v0  ;;  %v1185_v52 = vrot.slane %v1183_v56, 5  ;;  %v1189_v28 = vrot.slane %v1187_v43, 4  ;;  %v1328_v58 = vld [vmem:[#allocation2 + $0x84] sm:$0xe] }
 0x110   : > { %v2391_v50 = vrot.slane %v2389_v16, 5  ;;  %v2670_v40 = vsel %vm9446_vm10, %v2668_v9, %v2669_v17  ;;  %v1195_v21 = vrot.slane %v1193_v30, 5  ;;  %v1456_v53 = vrot.slane %v903_v47, 5  ;;  %v1516_v47 = vld [vmem:[#allocation2 + $0x84] sm:$0xf] }
 0x111   : > { %v8626_v44 = vcombine.low %v2667_v36, %v2670_v40  ;;  %v1180_v25 = vor.u32 %v1179_v26, %v1176_v13  ;;  %v1190_v62 = vor.u32 %v1189_v28, %v1185_v52  ;;  %v1459_v10 = vrot.slane %v924_v37, 5  ;;  %v10500_v37 = vld [vmem:[#allocation2 + $0x88] sm:$0xf] }
 0x112   : > { %v2392_v60 = vsel %vm9533_vm15, %v2387_v12, %v2391_v50  ;;  %v1198_v41 = vshrl.u32 %v904_v5, 16  ;;  %v1457_v36 = vsel %vm9446_vm10, %v8451_v19, %v1456_v53  ;;  %v1458_v42 = vrot.slane %v1456_v53, 4 }
 0x113   : > { %v8610_v20 = vcombine.low %v2382_v49, %v2392_v60  ;;  %3435 = vrot.lane.b32.xlu0 %v8626_v44, %s9331_s12  ;;  %v1181_v33 = vrot.slane %v1180_v25, 4  ;;  %v1201_v18 = vshll.u32 %v904_v5, 16  ;;  %v1191_v24 = vrot.slane %v1190_v62, 4  ;;  %v3092_v45 = vpop.permute.xlu1 %3091  ;;  %v10512_v25 = vld [vmem:[#allocation2 + $0x8c] sm:$0x1] }
 0x114   : > { %v1200_v11 = vrot.slane %v1198_v41, 4  ;;  %v1207_v6 = vshll.u32 %v905_v35, 16  ;;  %v1211_v9 = vshrl.u32 %v905_v35, 16  ;;  %v1460_v3 = vsel %vm9446_vm10, %v1458_v42, %v1459_v10 }
 0x115   : > { %3355 = vrot.lane.b32.xlu1 %v8610_v20, %s9333_s14  ;;  %v1186_v2 = vsel %vm9533_vm15, %v1181_v33, %v1185_v52  ;;  %v1203_v12 = vrot.slane %v1201_v18, 5  ;;  %v1217_v31 = vshll.u32 %v10490_v46, 16  ;;  %v3640_v27 = vsel %vm3630_vm4, %v3607_v14, %v3266_v57 }
 0x116   : > { %v1196_v49 = vsel %vm9533_vm15, %v1191_v24, %v1195_v21  ;;  %v8531_v0 = vcombine.low %v1457_v36, %v1460_v3  ;;  %v1209_v23 = vrot.slane %v1207_v6, 5  ;;  %v3576_v16 = vsel %vm14092_vm9, %v10461_v38, %v3092_v45  ;;  %v3346_v13 = vpop.permute.xlu0 %3345  ;;  %v339_v38 = vld [vmem:[#allocation2 + $0x90] sm:$0x1]  ;;  %v1938_v3 = vld [vmem:[#allocation2 + $0x84] sm:$0xe] }
 0x117   : > { %v8515_v17 = vcombine.low %v1186_v2, %v1196_v49  ;;  %v1204_v7 = vor.u32 %v1203_v12, %v1200_v11  ;;  %v1213_v54 = vrot.slane %v1211_v9, 4  ;;  %v1785_v56 = vshrl.u32 %v1516_v47, 16  ;;  %v3172_v40 = vpop.permute.xlu1 %3171  ;;  %v436_v11 = vld [vmem:[%s9427_s29 + $0x5c] sm:$0xf] }
 0x118   : > { %2925 = vrot.lane.b32.xlu0 %v8531_v0, %s9326_s30  ;;  %v1788_v43 = vshll.u32 %v1516_v47, 16  ;;  %v1798_v30 = vshrl.u32 %v10500_v37, 16  ;;  %v8547_v50 = vcombine.low %v1516_v47, %v10500_v37  ;;  %v1219_v5 = vrot.slane %v1217_v31, 5 }
 0x119   : > { %2845 = vrot.lane.b32.xlu1 %v8515_v17, %s9329_s10  ;;  %v1205_v26 = vrot.slane %v1204_v7, 4  ;;  %v1214_v19 = vor.u32 %v1213_v54, %v1209_v23  ;;  %v8452_v44 = vrot.slane %v1328_v58, 9  ;;  %v3673_v14 = vsel %vm3663_vm5, %v3640_v27, %v3346_v13  ;;  %v395_v17 = vld [vmem:[#allocation2 + $0x98] sm:$0x1] }
 0x11a   : > { %v1787_v52 = vrot.slane %v1785_v56, 4  ;;  %v1790_v28 = vrot.slane %v1788_v43, 5  ;;  %v1463_v60 = vrot.slane %v905_v35, 5  ;;  %v1466_v20 = vrot.slane %v10490_v46, 5  ;;  %v435_v35 = vld [vmem:[%s9427_s29 + $0x58] sm:$0xf] }
 0x11b   : > { %v1210_v21 = vsel %vm9533_vm15, %v1205_v26, %v1209_v23  ;;  %v1215_v53 = vrot.slane %v1214_v19, 4  ;;  %v1794_v57 = vshll.u32 %v10500_v37, 16  ;;  %v1800_v33 = vrot.slane %v1798_v30, 4  ;;  %v3268_v36 = vpop.permute.xlu1 %3267  ;;  %v342_v30 = vld [vmem:[#allocation2 + $0x9c] sm:$0x1] }
 0x11c   : > { %3021 = vrot.lane.b32.xlu0 %v8547_v50, %s9327_s8  ;;  %v1464_v62 = vsel %vm9446_vm10, %v8452_v44, %v1463_v60  ;;  %v1465_v10 = vrot.slane %v1463_v60, 4  ;;  %v1791_v41 = vor.u32 %v1790_v28, %v1787_v52  ;;  %v1804_v24 = vshll.u32 %v10512_v25, 16  ;;  %v438_v28 = vld [vmem:[%s9427_s29 + $0x64] sm:$0xf] }
 0x11d   : > { %v1220_v42 = vsel %vm9533_vm15, %v1215_v53, %v1219_v5  ;;  %v1796_v18 = vrot.slane %v1794_v57, 5  ;;  %v340_v46 = vsel %vm9391_vm3, 0, %v339_v38  ;;  %v3609_v6 = vsel %vm3597_vm13, %v3576_v16, %v3172_v40  ;;  %v3426_v12 = vpop.permute.xlu0 %3425  ;;  %v437_v5 = vld [vmem:[%s9427_s29 + $0x60] sm:$0xf]  ;;  %v398_v60 = vld [vmem:[#allocation2 + $0xa4] sm:$0x1] }
 0x11e   : > { %v8516_v9 = vcombine.low %v1210_v21, %v1220_v42  ;;  %v1467_v45 = vsel %vm9446_vm10, %v1465_v10, %v1466_v20  ;;  %v1792_v2 = vrot.slane %v1791_v41, 4  ;;  %341 = vst [vmem:[#allocation2 + $0x90] sm:$0x1] %v340_v46  ;;  %v1806_v27 = vrot.slane %v1804_v24, 5  ;;  %v345_v20 = vld [vmem:[#allocation2 + $0xa8] sm:$0x1] }
 0x11f   : > { %v8532_v31 = vcombine.low %v1464_v62, %v1467_v45  ;;  %v1801_v47 = vor.u32 %v1800_v33, %v1796_v18  ;;  %v635_v49 = vshrl.u32 %v435_v35, 16  ;;  %v3706_v0 = vsel %vm3696_vm14, %v3673_v14, %v3426_v12  ;;  %v3348_v7 = vpop.permute.xlu1 %3347  ;;  %v10552_v57 = vld [vmem:[%s9427_s29 + $0x68] sm:$0xf] }
 0x120   : > { %2847 = vrot.lane.b32.xlu1 %v8516_v9, %s9329_s10  ;;  %v1797_v23 = vsel %vm9533_vm15, %v1792_v2, %v1796_v18  ;;  %v638_v58 = vshll.u32 %v435_v35, 16  ;;  %v643_v16 = vshrl.u32 %v436_v11, 16  ;;  %9056 = vmatprep.mubr.msk.bf16.mxu0 %vm3756_vm2, %v3706_v0  ;;  %v646_v56 = vshll.u32 %v436_v11, 16 }
 0x121   : > { %v1802_v54 = vrot.slane %v1801_v47, 4  ;;  %v637_v13 = vrot.slane %v635_v49, 7  ;;  %v8467_v43 = vrot.slane %v1938_v3, 9  ;;  %v3642_v50 = vsel %vm3630_vm4, %v3609_v6, %v3268_v36  ;;  %v10569_v3 = vld [vmem:[%s9427_s29 + $0x6c] sm:$0xf] }
 0x122   : > { %v10537_v40 = vrot.slane %v643_v16, 7  ;;  %v2064_v26 = vrot.slane %v10500_v37, 5  ;;  %v2067_v19 = vrot.slane %v10512_v25, 5  ;;  %v396_v52 = vsel %vm9419_vm6, 0, %v395_v17  ;;  %v401_v49 = vld [vmem:[#allocation2 + $0xb0] sm:$0x1] }
 0x123   : > { %v1807_v44 = vsel %vm9533_vm15, %v1802_v54, %v1806_v27  ;;  %v640_v38 = vor.u32 %v638_v58, %v637_v13  ;;  %v641_v14 = vrot.slane %v637_v13, 4  ;;  %v3675_v21 = vsel %vm3663_vm5, %v3642_v50, %v3348_v7  ;;  %397 = vst [vmem:[#allocation2 + $0x98] sm:$0x1] %v396_v52  ;;  %v2838_v62 = vpop.permute.xlu1 %2837  ;;  %v3428_v10 = vpop.permute.xlu0 %3427  ;;  %v10580_v16 = vld [vmem:[#allocation2 + $0x60] sm:$0xf] }
 0x124   : > { %2927 = vrot.lane.b32.xlu1 %v8532_v31, %s9326_s30  ;;  %v8563_v53 = vcombine.low %v1797_v23, %v1807_v44  ;;  %v648_v37 = vor.u32 %v646_v56, %v10537_v40  ;;  %v650_v25 = vrot.slane %v10537_v40, 4  ;;  %v2065_v33 = vsel %vm9446_vm10, %v8467_v43, %v2064_v26  ;;  %v10582_v17 = vld [vmem:[#allocation2 + $0x64] sm:$0xf]  ;;  %v348_v56 = vld [vmem:[#allocation2 + $0xb4] sm:$0x1] }
 0x125   : > { %v847_v41 = vld [vmem:[#allocation2 + $0x90] sm:$0xf]  ;;  %v2066_v35 = vrot.slane %v2064_v26, 4  ;;  %v343_v36 = vsel %vm9391_vm3, 0, %v342_v30  ;;  %v652_v42 = vshrl.u32 %v437_v5, 16  ;;  %v3708_v18 = vsel %vm3696_vm14, %v3675_v21, %v3428_v10 }
 0x126   : > { %3101 = vrot.lane.b32.xlu0 %v8563_v53, %s9332_s13  ;;  %v649_v24 = vsel %vm9458_vm12, %v641_v14, %v648_v37  ;;  %v848_v46 = vsel %vm9452_vm11, %v640_v38, %v847_v41  ;;  %344 = vst [vmem:[#allocation2 + $0x9c] sm:$0x1] %v343_v36  ;;  %v655_v11 = vshll.u32 %v437_v5, 16  ;;  %9057 = vmatmul.mubr.msk.bf16.gmra.mrb[8].mxu0 %vm3756_vm2, %v3708_v18  ;;  %v660_v45 = vshrl.u32 %v438_v28, 16  ;;  %v10594_v30 = vld [vmem:[%s9427_s29 + $0x70] sm:$0xf] }
 0x127   : > { %849 = vst [vmem:[#allocation2 + $0x90] sm:$0xf] %v848_v46  ;;  %850 = vst.msk [vmem:[#allocation2 + $0x94] sm:$0xf] %vm291_vm0, %v649_v24  ;;  %v2068_v6 = vsel %vm9446_vm10, %v2066_v35, %v2067_v19  ;;  %v654_v9 = vrot.slane %v652_v42, 7  ;;  %v663_v2 = vshll.u32 %v438_v28, 16  ;;  %v3470_v0 = vsel %vm3449_vm1, %v8495_v51, %v2838_v62  ;;  %v2840_v23 = vpop.permute.xlu1 %2839  ;;  %v2918_v58 = vpop.permute.xlu0 %2917 }
 0x128   : > { %v8579_v12 = vcombine.low %v2065_v33, %v2068_v6  ;;  %v399_v31 = vsel %vm9419_vm6, 0, %v398_v60  ;;  %v346_v47 = vsel %vm9391_vm3, 0, %v345_v20  ;;  %v669_v27 = vshrl.u32 %v10552_v57, 16 }
 0x129   : > { %v8497_v7 = vcombine.low %v10580_v16, %v10582_v17  ;;  %v658_v54 = vrot.slane %v654_v9, 4  ;;  %v10586_v13 = vrot.slane %v660_v45, 7  ;;  %400 = vst [vmem:[#allocation2 + $0xa4] sm:$0x1] %v399_v31  ;;  %347 = vst [vmem:[#allocation2 + $0xa8] sm:$0x1] %v346_v47  ;;  %v657_v48 = vor.u32 %v655_v11, %v654_v9 }
 0x12a   : > { %3181 = vrot.lane.b32.xlu0 %v8579_v12, %s9330_s11  ;;  %v10589_v22 = vrot.slane %v669_v27, 7  ;;  %v672_v51 = vshll.u32 %v10552_v57, 16  ;;  %v677_v43 = vshrl.u32 %v10569_v3, 16  ;;  %v3473_v50 = vsel %vm3449_vm1, %v8496_v55, %v2840_v23  ;;  %v851_v40 = vld [vmem:[#allocation2 + $0x98] sm:$0x1] }
 0x12b   : > { %v665_v26 = vor.u32 %v663_v2, %v10586_v13  ;;  %v667_v19 = vrot.slane %v10586_v13, 4  ;;  %v402_v5 = vsel %vm9419_vm6, 0, %v401_v49  ;;  %v852_v44 = vsel %vm9391_vm3, %v650_v25, %v851_v40  ;;  %v2920_v15 = vpop.permute.xlu1 %2919  ;;  %v3014_v41 = vpop.permute.xlu0 %3013 }
 0x12c   : > { %v675_v38 = vrot.slane %v10589_v22, 4  ;;  %v10607_v14 = vrot.slane %v677_v43, 7  ;;  %v680_v52 = vshll.u32 %v10569_v3, 16  ;;  %403 = vst [vmem:[#allocation2 + $0xb0] sm:$0x1] %v402_v5  ;;  %v349_v28 = vsel %vm9391_vm3, 0, %v348_v56 }
 0x12d   : > { %853 = vst [vmem:[#allocation2 + $0x98] sm:$0x1] %v852_v44  ;;  %v666_v4 = vsel %vm9458_vm12, %v658_v54, %v665_v26  ;;  %v854_v55 = vld [vmem:[#allocation2 + $0x9c] sm:$0xf]  ;;  %v686_v60 = vshrl.u32 %v10594_v30, 16  ;;  %v689_v21 = vshll.u32 %v10594_v30, 16  ;;  %v10617_v53 = vsel %vm14094_vm7, %v3473_v50, %v2920_v15 }
 0x12e   : > { %v3512_v37 = vsel %vm14094_vm7, %v3470_v0, %v2918_v58  ;;  %v1518_v25 = vld [vmem:[#allocation2 + $0x90] sm:$0xf]  ;;  %v1519_v20 = vld [vmem:[#allocation2 + $0x94] sm:$0xf]  ;;  %v855_v62 = vsel %vm9452_vm11, %v657_v48, %v854_v55  ;;  %857 = vst.msk [vmem:[#allocation2 + $0xa0] sm:$0xf] %vm291_vm0, %v666_v4  ;;  %v10624_v10 = vor.u32 %v672_v51, %v10589_v22  ;;  %v10635_v26 = vor.u32 %v680_v52, %v10607_v14 }
 0x12f   : > { %v2125_v57 = vld [vmem:[#allocation2 + $0x90] sm:$0xf]  ;;  %350 = vst [vmem:[#allocation2 + $0xb4] sm:$0x1] %v349_v28  ;;  %v1809_v33 = vshrl.u32 %v1518_v25, 16  ;;  %v1812_v35 = vshll.u32 %v1518_v25, 16  ;;  %v8548_v42 = vcombine.low %v1518_v25, %v1519_v20  ;;  %v3545_v23 = vsel %vm14093_vm8, %v3512_v37, %v3014_v41 }
 0x130   : > { %v1822_v36 = vshrl.u32 %v1519_v20, 16  ;;  %v10626_v18 = vld [vmem:[#allocation2 + $0x94] sm:$0xf]  ;;  %856 = vst [vmem:[#allocation2 + $0x9c] sm:$0xf] %v855_v62  ;;  %v1818_v24 = vshll.u32 %v1519_v20, 16 }
 0x131   : > { %v2394_v46 = vshrl.u32 %v2125_v57, 16  ;;  %v2397_v11 = vshll.u32 %v2125_v57, 16  ;;  %v2407_v6 = vshrl.u32 %v10626_v18, 16  ;;  %v1939_v9 = vld [vmem:[#allocation2 + $0x90] sm:$0xe]  ;;  %v1811_v45 = vrot.slane %v1809_v33, 4  ;;  %3023 = vrot.lane.b32.xlu1 %v8548_v42, %s9327_s8 }
 0x132   : > { %v1814_v2 = vrot.slane %v1812_v35, 5  ;;  %v1824_v3 = vrot.slane %v1822_v36, 4  ;;  %v8595_v12 = vcombine.low %v2125_v57, %v10626_v18  ;;  %v1820_v31 = vrot.slane %v1818_v24, 5  ;;  %v2547_v0 = vld [vmem:[#allocation2 + $0x90] sm:$0xe] }
 0x133   : > { %v2396_v47 = vrot.slane %v2394_v46, 4  ;;  %v2399_v27 = vrot.slane %v2397_v11, 5  ;;  %v8468_v49 = vrot.slane %v1939_v9, 9  ;;  %v2071_v54 = vrot.slane %v1519_v20, 5  ;;  %v3094_v5 = vpop.permute.xlu0 %3093 }
 0x134   : > { %v1815_v58 = vor.u32 %v1814_v2, %v1811_v45  ;;  %3277 = vrot.lane.b32.xlu0 %v8595_v12, %s9328_s9  ;;  %v2403_v56 = vshll.u32 %v10626_v18, 16  ;;  %v1539_v48 = vld [vmem:[#allocation2 + $0x98] sm:$0x1]  ;;  %v1825_v51 = vor.u32 %v1824_v3, %v1820_v31  ;;  %v2409_v40 = vrot.slane %v2407_v6, 4  ;;  %v858_v3 = vld [vmem:[#allocation2 + $0xa4] sm:$0x1] }
 0x135   : > { %v2147_v43 = vld [vmem:[#allocation2 + $0x98] sm:$0x1]  ;;  %v2400_v50 = vor.u32 %v2399_v27, %v2396_v47  ;;  %v1828_v15 = vshll.u32 %v1539_v48, 16  ;;  %v2073_v4 = vrot.slane %v2071_v54, 4  ;;  %v8483_v55 = vrot.slane %v2547_v0, 9 }
 0x136   : > { %v1816_v44 = vrot.slane %v1815_v58, 4  ;;  %v1826_v28 = vrot.slane %v1825_v51, 4  ;;  %v2072_v37 = vsel %vm9446_vm10, %v8468_v49, %v2071_v54  ;;  %v2074_v25 = vrot.slane %v1539_v48, 5  ;;  %v10645_v36 = vld [vmem:[#allocation2 + $0xa0] sm:$0xf] }
 0x137   : > { %v2401_v20 = vrot.slane %v2400_v50, 4  ;;  %v10639_v57 = vld [vmem:[#allocation2 + $0x9c] sm:$0xf]  ;;  %v1830_v41 = vrot.slane %v1828_v15, 5  ;;  %v2405_v33 = vrot.slane %v2403_v56, 5  ;;  %v2413_v52 = vshll.u32 %v2147_v43, 16  ;;  %v3174_v6 = vpop.permute.xlu0 %3173  ;;  %v3016_v50 = vpop.permute.xlu1 %3015 }
 0x138   : > { %v1821_v62 = vsel %vm9533_vm15, %v1816_v44, %v1820_v31  ;;  %v2075_v35 = vsel %vm9446_vm10, %v2073_v4, %v2074_v25  ;;  %v2418_v42 = vshrl.u32 %v10639_v57, 16  ;;  %v2421_v24 = vshll.u32 %v10639_v57, 16  ;;  %v906_v4 = vld [vmem:[#allocation2 + $0x90] sm:$0xf] }
 0x139   : > { %v2673_v46 = vrot.slane %v10626_v18, 5  ;;  %v3578_v11 = vsel %vm14092_vm9, %v3545_v23, %v3094_v5  ;;  %v1831_v9 = vsel %vm9533_vm15, %v1826_v28, %v1830_v41  ;;  %v8580_v45 = vcombine.low %v2072_v37, %v2075_v35  ;;  %v2548_v23 = vld [vmem:[#allocation2 + $0x9c] sm:$0xe]  ;;  %v10667_v28 = vld [vmem:[#allocation2 + $0x94] sm:$0xf] }
 0x13a   : > { %v2410_v2 = vor.u32 %v2409_v40, %v2405_v33  ;;  %v8564_v12 = vcombine.low %v1821_v62, %v1831_v9  ;;  %v2406_v31 = vsel %vm9533_vm15, %v2401_v20, %v2405_v33  ;;  %v2415_v47 = vrot.slane %v2413_v52, 5  ;;  %v10674_v33 = vld [vmem:[#allocation2 + $0x98] sm:$0x1] }
 0x13b   : > { %v2420_v27 = vrot.slane %v2418_v42, 4  ;;  %v3611_v49 = vsel %vm3597_vm13, %v3578_v11, %v3174_v6  ;;  %v2423_v58 = vrot.slane %v2421_v24, 5  ;;  %v2431_v18 = vshrl.u32 %v10645_v36, 16  ;;  %v908_v24 = vld [vmem:[#allocation2 + $0x9c] sm:$0xf] }
 0x13c   : > { %v2411_v0 = vrot.slane %v2410_v2, 4  ;;  %3103 = vrot.lane.b32.xlu1 %v8564_v12, %s9332_s13  ;;  %v2674_v54 = vsel %vm9446_vm10, %v8483_v55, %v2673_v46  ;;  %v2675_v56 = vrot.slane %v2673_v46, 4  ;;  %v2676_v48 = vrot.slane %v2147_v43, 5  ;;  %v3270_v55 = vpop.permute.xlu0 %3269 }
 0x13d   : > { %v859_v51 = vsel %vm9391_vm3, %v667_v19, %v858_v3  ;;  %v2424_v5 = vor.u32 %v2423_v58, %v2420_v27  ;;  %v2427_v44 = vshll.u32 %v10645_v36, 16  ;;  %v2433_v15 = vrot.slane %v2431_v18, 4 }
 0x13e   : > { %v2416_v40 = vsel %vm9533_vm15, %v2411_v0, %v2415_v47  ;;  %860 = vst [vmem:[#allocation2 + $0xa4] sm:$0x1] %v859_v51  ;;  %v8596_v13 = vcombine.low %v10639_v57, %v10645_v36  ;;  %v2677_v19 = vsel %vm9446_vm10, %v2675_v56, %v2676_v48  ;;  %v8484_v43 = vrot.slane %v2548_v23, 9  ;;  %v10688_v0 = vld [vmem:[#allocation2 + $0xa0] sm:$0xf] }
 0x13f   : > { %v8611_v37 = vcombine.low %v2406_v31, %v2416_v40  ;;  %v8627_v25 = vcombine.low %v2674_v54, %v2677_v19  ;;  %v2425_v20 = vrot.slane %v2424_v5, 4  ;;  %v2429_v62 = vrot.slane %v2427_v44, 5 }
 0x140   : > { %v2680_v41 = vrot.slane %v10645_v36, 5  ;;  %3183 = vrot.lane.b32.xlu1 %v8580_v45, %s9330_s11  ;;  %v1222_v52 = vshrl.u32 %v906_v4, 16  ;;  %v1225_v35 = vshll.u32 %v906_v4, 16  ;;  %v1231_v42 = vshll.u32 %v10667_v28, 16 }
 0x141   : > { %3357 = vrot.lane.b32.xlu0 %v8611_v37, %s9333_s14  ;;  %v1235_v57 = vshrl.u32 %v10667_v28, 16  ;;  %v3547_v46 = vsel %vm14093_vm8, %v10617_v53, %v3016_v50  ;;  %v3644_v11 = vsel %vm3630_vm4, %v3611_v49, %v3270_v55  ;;  %v2430_v36 = vsel %vm9533_vm15, %v2425_v20, %v2429_v62 }
 0x142   : > { %v2434_v6 = vor.u32 %v2433_v15, %v2429_v62  ;;  %v1224_v9 = vrot.slane %v1222_v52, 4  ;;  %v1227_v45 = vrot.slane %v1225_v35, 5  ;;  %v1233_v2 = vrot.slane %v1231_v42, 5  ;;  %v3096_v12 = vpop.permute.xlu1 %3095  ;;  %v1329_v35 = vld [vmem:[#allocation2 + $0x90] sm:$0xe] }
 0x143   : > { %v1237_v3 = vrot.slane %v1235_v57, 4  ;;  %v2681_v31 = vsel %vm9446_vm10, %v8484_v43, %v2680_v41  ;;  %v2682_v47 = vrot.slane %v2680_v41, 4  ;;  %v1241_v27 = vshll.u32 %v10674_v33, 16 }
 0x144   : > { %v1246_v53 = vshrl.u32 %v908_v24, 16  ;;  %3279 = vrot.lane.b32.xlu1 %v8596_v13, %s9328_s9  ;;  %v2435_v58 = vrot.slane %v2434_v6, 4  ;;  %v1228_v18 = vor.u32 %v1227_v45, %v1224_v9  ;;  %v1249_v54 = vshll.u32 %v908_v24, 16  ;;  %v1330_v6 = vld [vmem:[#allocation2 + $0x9c] sm:$0xe] }
 0x145   : > { %3437 = vrot.lane.b32.xlu0 %v8627_v25, %s9331_s12  ;;  %v2148_v49 = vld [vmem:[#allocation2 + $0xa4] sm:$0x1]  ;;  %v1238_v23 = vor.u32 %v1237_v3, %v1233_v2  ;;  %v1243_v51 = vrot.slane %v1241_v27, 5  ;;  %v3350_v40 = vpop.permute.xlu0 %3349  ;;  %v1255_v4 = vshll.u32 %v10688_v0, 16  ;;  %v1473_v19 = vrot.slane %v10674_v33, 5 }
 0x146   : > { %v2437_v56 = vshll.u32 %v2148_v49, 16  ;;  %v2683_v48 = vrot.slane %v2148_v49, 5  ;;  %v1248_v50 = vrot.slane %v1246_v53, 4  ;;  %v1229_v5 = vrot.slane %v1228_v18, 4  ;;  %v3176_v55 = vpop.permute.xlu1 %3175  ;;  %v927_v43 = vld [vmem:[#allocation2 + $0xa4] sm:$0x1] }
 0x147   : > { %v1239_v44 = vrot.slane %v1238_v23, 4  ;;  %v1251_v15 = vrot.slane %v1249_v54, 5  ;;  %v1259_v25 = vshrl.u32 %v10688_v0, 16  ;;  %v3580_v20 = vsel %vm14092_vm9, %v3547_v46, %v3096_v12 }
 0x148   : > { %v2439_v37 = vrot.slane %v2437_v56, 5  ;;  %v2684_v13 = vsel %vm9446_vm10, %v2682_v47, %v2683_v48  ;;  %v1234_v41 = vsel %vm9533_vm15, %v1229_v5, %v1233_v2  ;;  %v3677_v42 = vsel %vm3663_vm5, %v3644_v11, %v3350_v40  ;;  %v10707_v2 = vld [vmem:[#allocation2 + $0x9c] sm:$0xf] }
 0x149   : > { %v8628_v62 = vcombine.low %v2681_v31, %v2684_v13  ;;  %v1244_v52 = vsel %vm9533_vm15, %v1239_v44, %v1243_v51  ;;  %v1252_v24 = vor.u32 %v1251_v15, %v1248_v50  ;;  %v1257_v33 = vrot.slane %v1255_v4, 5 }
 0x14a   : > { %v2440_v57 = vsel %vm9533_vm15, %v2435_v58, %v2439_v37  ;;  %v3613_v9 = vsel %vm3597_vm13, %v3580_v20, %v3176_v55  ;;  %v1261_v46 = vrot.slane %v1259_v25, 4  ;;  %v1265_v3 = vshll.u32 %v927_v43, 16  ;;  %v3272_v12 = vpop.permute.xlu1 %3271  ;;  %v861_v37 = vld [vmem:[#allocation2 + $0xa8] sm:$0xf] }
 0x14b   : > { %v8612_v45 = vcombine.low %v2430_v36, %v2440_v57  ;;  %3439 = vrot.lane.b32.xlu0 %v8628_v62, %s9331_s12  ;;  %v8517_v31 = vcombine.low %v1234_v41, %v1244_v52  ;;  %v1253_v47 = vrot.slane %v1252_v24, 4  ;;  %v8453_v27 = vrot.slane %v1329_v35, 9  ;;  %v10712_v36 = vld [vmem:[#allocation2 + $0xa0] sm:$0xf]  ;;  %v1540_v62 = vld [vmem:[#allocation2 + $0xa4] sm:$0x1] }
 0x14c   : > { %v1470_v11 = vrot.slane %v10667_v28, 5  ;;  %v1262_v53 = vor.u32 %v1261_v46, %v1257_v33  ;;  %v1267_v49 = vrot.slane %v1265_v3, 5  ;;  %v8454_v58 = vrot.slane %v1330_v6, 9  ;;  %v3430_v23 = vpop.permute.xlu0 %3429 }
 0x14d   : > { %3359 = vrot.lane.b32.xlu1 %v8612_v45, %s9333_s14  ;;  %v1477_v18 = vrot.slane %v10688_v0, 5  ;;  %v1480_v54 = vrot.slane %v927_v43, 5  ;;  %v1833_v51 = vshrl.u32 %v10707_v2, 16  ;;  %v3710_v50 = vsel %vm3696_vm14, %v3677_v42, %v3430_v23  ;;  %v865_v42 = vld [vmem:[#allocation2 + $0xb0] sm:$0x1] }
 0x14e   : > { %v1471_v56 = vsel %vm9446_vm10, %v8453_v27, %v1470_v11  ;;  %v1472_v48 = vrot.slane %v1470_v11, 4  ;;  %v1258_v28 = vsel %vm9533_vm15, %v1253_v47, %v1257_v33  ;;  %v1263_v40 = vrot.slane %v1262_v53, 4  ;;  %v3352_v44 = vpop.permute.xlu1 %3351  ;;  %9060 = vmatprep.mubr.msk.bf16.mxu0 %vm3756_vm2, %v3710_v50 }
 0x14f   : > { %v1479_v5 = vrot.slane %v1477_v18, 4  ;;  %v1835_v15 = vrot.slane %v1833_v51, 4  ;;  %v1836_v4 = vshll.u32 %v10707_v2, 16  ;;  %v1846_v55 = vshrl.u32 %v10712_v36, 16 }
 0x150   : > { %v1474_v0 = vsel %vm9446_vm10, %v1472_v48, %v1473_v19  ;;  %v3646_v13 = vsel %vm3630_vm4, %v3613_v9, %v3272_v12  ;;  %v1268_v43 = vsel %vm9533_vm15, %v1263_v40, %v1267_v49  ;;  %v1478_v20 = vsel %vm9446_vm10, %v8454_v58, %v1477_v18  ;;  %v1940_v9 = vld [vmem:[#allocation2 + $0x9c] sm:$0xe]  ;;  %v10754_v49 = vld [vmem:[%s9427_s29 + $0x74] sm:$0xf] }
 0x151   : > { %2849 = vrot.lane.b32.xlu1 %v8517_v31, %s9329_s10  ;;  %v8533_v25 = vcombine.low %v1471_v56, %v1474_v0  ;;  %v8518_v41 = vcombine.low %v1258_v28, %v1268_v43  ;;  %v1481_v19 = vsel %vm9446_vm10, %v1479_v5, %v1480_v54  ;;  %v1838_v52 = vrot.slane %v1836_v4, 5  ;;  %v404_v31 = vld [vmem:[#allocation2 + $0xbc] sm:$0x1]  ;;  %v868_v56 = vld [vmem:[#allocation2 + $0xb4] sm:$0xf] }
 0x152   : > { %v8549_v35 = vcombine.low %v10707_v2, %v10712_v36  ;;  %v683_v57 = vsel %vm9458_vm12, %v675_v38, %v10635_v26  ;;  %v684_v24 = vrot.slane %v10607_v14, 4  ;;  %v862_v33 = vsel %vm9452_vm11, %v10624_v10, %v861_v37  ;;  %v2842_v46 = vpop.permute.xlu1 %2841 }
 0x153   : > { %2929 = vrot.lane.b32.xlu0 %v8533_v25, %s9326_s30  ;;  %v1842_v6 = vshll.u32 %v10712_v36, 16  ;;  %v3679_v45 = vsel %vm3663_vm5, %v3646_v13, %v3352_v44  ;;  %863 = vst [vmem:[#allocation2 + $0xa8] sm:$0xf] %v862_v33  ;;  %864 = vst.msk [vmem:[#allocation2 + $0xac] sm:$0xf] %vm291_vm0, %v683_v57  ;;  %v1839_v22 = vor.u32 %v1838_v52, %v1835_v15  ;;  %v1848_v3 = vrot.slane %v1846_v55, 4  ;;  %v3432_v38 = vpop.permute.xlu0 %3431 }
 0x154   : > { %v1852_v2 = vshll.u32 %v1540_v62, 16  ;;  %v8534_v14 = vcombine.low %v1478_v20, %v1481_v19  ;;  %v866_v10 = vsel %vm9391_vm3, %v684_v24, %v865_v42  ;;  %v2078_v12 = vrot.slane %v10712_v36, 5 }
 0x155   : > { %2851 = vrot.lane.b32.xlu1 %v8518_v41, %s9329_s10  ;;  %v1844_v26 = vrot.slane %v1842_v6, 5  ;;  %v3712_v47 = vsel %vm3696_vm14, %v3679_v45, %v3432_v38  ;;  %v1840_v27 = vrot.slane %v1839_v22, 4  ;;  %867 = vst [vmem:[#allocation2 + $0xb0] sm:$0x1] %v866_v10  ;;  %v8469_v11 = vrot.slane %v1940_v9, 9 }
 0x156   : > { %v2081_v53 = vrot.slane %v1540_v62, 5  ;;  %9061 = vmatmul.mubr.msk.bf16.gmra.mrb[12].mxu0 %vm3756_vm2, %v3712_v47  ;;  %v1854_v18 = vrot.slane %v1852_v2, 5  ;;  %v2080_v23 = vrot.slane %v2078_v12, 4  ;;  %v10760_v54 = vrot.slane %v686_v60, 7  ;;  %v2844_v40 = vpop.permute.xlu1 %2843 }
 0x157   : > { %3025 = vrot.lane.b32.xlu0 %v8549_v35, %s9327_s8  ;;  %v1849_v58 = vor.u32 %v1848_v3, %v1844_v26  ;;  %v3476_v36 = vsel %vm3449_vm1, %v8497_v7, %v2842_v46  ;;  %v405_v48 = vsel %vm9419_vm6, 0, %v404_v31  ;;  %v2922_v51 = vpop.permute.xlu0 %2921  ;;  %v694_v60 = vshrl.u32 %v10754_v49, 16 }
 0x158   : > { %v691_v28 = vor.u32 %v689_v21, %v10760_v54  ;;  %406 = vst [vmem:[#allocation2 + $0xbc] sm:$0x1] %v405_v48  ;;  %v1845_v16 = vsel %vm9533_vm15, %v1840_v27, %v1844_v26  ;;  %v2079_v17 = vsel %vm9446_vm10, %v8469_v11, %v2078_v12  ;;  %v2082_v7 = vsel %vm9446_vm10, %v2080_v23, %v2081_v53 }
 0x159   : > { %2931 = vrot.lane.b32.xlu1 %v8534_v14, %s9326_s30  ;;  %v1850_v50 = vrot.slane %v1849_v58, 4  ;;  %v697_v5 = vshll.u32 %v10754_v49, 16  ;;  %v3479_v30 = vsel %vm3449_vm1, %v8498_v34, %v2844_v40  ;;  %v10785_v21 = vsel %vm14094_vm7, %v3476_v36, %v2922_v51 }
 0x15a   : > { %v1522_v44 = vld [vmem:[#allocation2 + $0xa8] sm:$0xf]  ;;  %v1523_v0 = vld [vmem:[#allocation2 + $0xac] sm:$0xf]  ;;  %v869_v55 = vsel %vm9452_vm11, %v691_v28, %v868_v56  ;;  %v8581_v20 = vcombine.low %v2079_v17, %v2082_v7  ;;  %v696_v41 = vrot.slane %v694_v60, 7  ;;  %v692_v2 = vrot.slane %v10760_v54, 4  ;;  %v2924_v11 = vpop.permute.xlu1 %2923 }
 0x15b   : > { %v1855_v15 = vsel %vm9533_vm15, %v1850_v50, %v1854_v18  ;;  %v1941_v4 = vld [vmem:[#allocation2 + $0xa8] sm:$0xe]  ;;  %v1857_v37 = vshrl.u32 %v1522_v44, 16  ;;  %v1860_v13 = vshll.u32 %v1522_v44, 16  ;;  %v1870_v43 = vshrl.u32 %v1523_v0, 16  ;;  %v3018_v45 = vpop.permute.xlu0 %3017 }
 0x15c   : > { %v8550_v25 = vcombine.low %v1522_v44, %v1523_v0  ;;  %870 = vst [vmem:[#allocation2 + $0xb4] sm:$0xf] %v869_v55  ;;  %v8565_v59 = vcombine.low %v1845_v16, %v1855_v15  ;;  %v1541_v61 = vld [vmem:[#allocation2 + $0xb0] sm:$0x1]  ;;  %v1866_v34 = vshll.u32 %v1523_v0, 16  ;;  %v8470_v42 = vrot.slane %v1941_v4, 9 }
 0x15d   : > { %v2129_v62 = vld [vmem:[#allocation2 + $0xa8] sm:$0xf]  ;;  %v1859_v19 = vrot.slane %v1857_v37, 4  ;;  %v1862_v52 = vrot.slane %v1860_v13, 5  ;;  %v1872_v35 = vrot.slane %v1870_v43, 4  ;;  %v1876_v33 = vshll.u32 %v1541_v61, 16 }
 0x15e   : > { %3027 = vrot.lane.b32.xlu1 %v8550_v25, %s9327_s8  ;;  %v10792_v57 = vld [vmem:[#allocation2 + $0xac] sm:$0xf]  ;;  %3105 = vrot.lane.b32.xlu0 %v8565_v59, %s9332_s13  ;;  %v1868_v24 = vrot.slane %v1866_v34, 5  ;;  %v2085_v6 = vrot.slane %v1523_v0, 5  ;;  %v2088_v9 = vrot.slane %v1541_v61, 5  ;;  %v2442_v22 = vshrl.u32 %v2129_v62, 16 }
 0x15f   : > { %v1863_v46 = vor.u32 %v1862_v52, %v1859_v19  ;;  %v2445_v3 = vshll.u32 %v2129_v62, 16  ;;  %v1878_v14 = vrot.slane %v1876_v33, 5  ;;  %v2455_v10 = vshrl.u32 %v10792_v57, 16  ;;  %v2149_v51 = vld [vmem:[#allocation2 + $0xb0] sm:$0x1] }
 0x160   : > { %v1873_v38 = vor.u32 %v1872_v35, %v1868_v24  ;;  %v2087_v26 = vrot.slane %v2085_v6, 4  ;;  %v2086_v31 = vsel %vm9446_vm10, %v8470_v42, %v2085_v6  ;;  %v2444_v47 = vrot.slane %v2442_v22, 4  ;;  %v872_v16 = vld [vmem:[#allocation2 + $0xbc] sm:$0x1]  ;;  %v2549_v17 = vld [vmem:[#allocation2 + $0xa8] sm:$0xe] }
 0x161   : > { %v1864_v12 = vrot.slane %v1863_v46, 4  ;;  %v2447_v27 = vrot.slane %v2445_v3, 5  ;;  %v8597_v58 = vcombine.low %v2129_v62, %v10792_v57  ;;  %v699_v18 = vor.u32 %v697_v5, %v696_v41  ;;  %v910_v43 = vld [vmem:[#allocation2 + $0xa8] sm:$0xf]  ;;  %v10824_v19 = vld [vmem:[#allocation2 + $0xac] sm:$0xf] }
 0x162   : > { %v1874_v53 = vrot.slane %v1873_v38, 4  ;;  %3185 = vrot.lane.b32.xlu0 %v8581_v20, %s9330_s11  ;;  %v2089_v49 = vsel %vm9446_vm10, %v2087_v26, %v2088_v9  ;;  %v701_v36 = vrot.slane %v696_v41, 4  ;;  %v2451_v40 = vshll.u32 %v10792_v57, 16 }
 0x163   : > { %v10803_v23 = vld [vmem:[#allocation2 + $0xb4] sm:$0xf]  ;;  %v1869_v54 = vsel %vm9533_vm15, %v1864_v12, %v1868_v24  ;;  %v700_v28 = vsel %vm9458_vm12, %v692_v2, %v699_v18  ;;  %v2448_v60 = vor.u32 %v2447_v27, %v2444_v47  ;;  %v3518_v7 = vsel %vm14094_vm7, %v3479_v30, %v2924_v11  ;;  %v10829_v24 = vld [vmem:[#allocation2 + $0xb0] sm:$0x1] }
 0x164   : > { %v2466_v56 = vshrl.u32 %v10803_v23, 16  ;;  %v2469_v48 = vshll.u32 %v10803_v23, 16  ;;  %v1879_v50 = vsel %vm9533_vm15, %v1874_v53, %v1878_v14  ;;  %v3098_v5 = vpop.permute.xlu0 %3097  ;;  %871 = vst.msk [vmem:[#allocation2 + $0xb8] sm:$0xf] %vm291_vm0, %v700_v28  ;;  %v3549_v4 = vsel %vm14093_vm8, %v10785_v21, %v3018_v45  ;;  %v3020_v34 = vpop.permute.xlu1 %3019  ;;  %v2550_v38 = vld [vmem:[#allocation2 + $0xb4] sm:$0xe] }
 0x165   : > { %v8566_v44 = vcombine.low %v1869_v54, %v1879_v50  ;;  %v2449_v55 = vrot.slane %v2448_v60, 4  ;;  %v2453_v37 = vrot.slane %v2451_v40, 5  ;;  %v2457_v13 = vrot.slane %v2455_v10, 4 }
 0x166   : > { %v2468_v0 = vrot.slane %v2466_v56, 4  ;;  %v2471_v15 = vrot.slane %v2469_v48, 5  ;;  %3281 = vrot.lane.b32.xlu0 %v8597_v58, %s9328_s9  ;;  %v8582_v25 = vcombine.low %v2086_v31, %v2089_v49  ;;  %v2461_v59 = vshll.u32 %v2149_v51, 16  ;;  %v912_v56 = vld [vmem:[#allocation2 + $0xb4] sm:$0xf] }
 0x167   : > { %3107 = vrot.lane.b32.xlu1 %v8566_v44, %s9332_s13  ;;  %v873_v30 = vsel %vm9391_vm3, %v701_v36, %v872_v16  ;;  %v8485_v61 = vrot.slane %v2549_v17, 9  ;;  %v3582_v20 = vsel %vm14092_vm9, %v3549_v4, %v3098_v5  ;;  %v2458_v62 = vor.u32 %v2457_v13, %v2453_v37 }
 0x168   : > { %874 = vst [vmem:[#allocation2 + $0xbc] sm:$0x1] %v873_v30  ;;  %v2687_v21 = vrot.slane %v10792_v57, 5  ;;  %v2690_v41 = vrot.slane %v2149_v51, 5  ;;  %v10827_v52 = vsel %vm14093_vm8, %v3518_v7, %v3020_v34  ;;  %v2463_v35 = vrot.slane %v2461_v59, 5  ;;  %v3178_v47 = vpop.permute.xlu0 %3177 }
 0x169   : > { %v2472_v42 = vor.u32 %v2471_v15, %v2468_v0  ;;  %v1270_v33 = vshrl.u32 %v910_v43, 16  ;;  %v2454_v6 = vsel %vm9533_vm15, %v2449_v55, %v2453_v37  ;;  %v2459_v9 = vrot.slane %v2458_v62, 4  ;;  %v1332_v62 = vld [vmem:[#allocation2 + $0xb4] sm:$0xe] }
 0x16a   : > { %v2689_v45 = vrot.slane %v2687_v21, 4  ;;  %v1273_v46 = vshll.u32 %v910_v43, 16  ;;  %v2688_v57 = vsel %vm9446_vm10, %v8485_v61, %v2687_v21  ;;  %v1279_v3 = vshll.u32 %v10824_v19, 16 }
 0x16b   : > { %3187 = vrot.lane.b32.xlu1 %v8582_v25, %s9330_s11  ;;  %v1272_v22 = vrot.slane %v1270_v33, 4  ;;  %v1283_v2 = vshrl.u32 %v10824_v19, 16  ;;  %v2132_v14 = vld [vmem:[#allocation2 + $0xb8] sm:$0xf]  ;;  %v2464_v26 = vsel %vm9533_vm15, %v2459_v9, %v2463_v35  ;;  %v1289_v31 = vshll.u32 %v10829_v24, 16 }
 0x16c   : > { %v2691_v10 = vsel %vm9446_vm10, %v2689_v45, %v2690_v41  ;;  %v1275_v12 = vrot.slane %v1273_v46, 5  ;;  %v2479_v27 = vshrl.u32 %v2132_v14, 16  ;;  %v8598_v11 = vcombine.low %v10803_v23, %v2132_v14  ;;  %v913_v0 = vld [vmem:[#allocation2 + $0xb8] sm:$0xf]  ;;  %v3274_v25 = vpop.permute.xlu0 %3273  ;;  %v1331_v46 = vld [vmem:[#allocation2 + $0xa8] sm:$0xe] }
 0x16d   : > { %v8613_v53 = vcombine.low %v2454_v6, %v2464_v26  ;;  %v2475_v49 = vshll.u32 %v2132_v14, 16  ;;  %v2473_v58 = vrot.slane %v2472_v42, 4  ;;  %v1281_v54 = vrot.slane %v1279_v3, 5 }
 0x16e   : > { %v1276_v18 = vor.u32 %v1275_v12, %v1272_v22  ;;  %v8486_v36 = vrot.slane %v2550_v38, 9  ;;  %v2481_v50 = vrot.slane %v2479_v27, 4  ;;  %v8629_v28 = vcombine.low %v2688_v57, %v2691_v10  ;;  %v351_v38 = vld [vmem:[#allocation2 + $0xc0] sm:$0x1] }
 0x16f   : > { %3283 = vrot.lane.b32.xlu1 %v8598_v11, %s9328_s9  ;;  %3361 = vrot.lane.b32.xlu0 %v8613_v53, %s9333_s14  ;;  %v2150_v48 = vld [vmem:[#allocation2 + $0xbc] sm:$0x1]  ;;  %v2477_v51 = vrot.slane %v2475_v49, 5  ;;  %v1285_v60 = vrot.slane %v1283_v2, 4  ;;  %v1291_v17 = vrot.slane %v1289_v31, 5  ;;  %v2694_v23 = vrot.slane %v2132_v14, 5 }
 0x170   : > { %v2485_v40 = vshll.u32 %v2150_v48, 16  ;;  %v1277_v16 = vrot.slane %v1276_v18, 4  ;;  %v2697_v44 = vrot.slane %v2150_v48, 5  ;;  %v10846_v15 = vld [vmem:[#allocation2 + $0xbc] sm:$0x1]  ;;  %v1294_v4 = vshrl.u32 %v912_v56, 16 }
 0x171   : > { %v2482_v7 = vor.u32 %v2481_v50, %v2477_v51  ;;  %v1286_v5 = vor.u32 %v1285_v60, %v1281_v54  ;;  %v3615_v55 = vsel %vm3597_vm13, %v3582_v20, %v3178_v47  ;;  %v2478_v37 = vsel %vm9533_vm15, %v2473_v58, %v2477_v51  ;;  %v3100_v21 = vpop.permute.xlu1 %3099  ;;  %v443_v53 = vld [vmem:[%s9427_s29 + $0x78] sm:$0xf] }
 0x172   : > { %v2487_v13 = vrot.slane %v2485_v40, 5  ;;  %v1282_v43 = vsel %vm9533_vm15, %v1277_v16, %v1281_v54  ;;  %v2695_v61 = vsel %vm9446_vm10, %v8486_v36, %v2694_v23  ;;  %v2696_v34 = vrot.slane %v2694_v23, 4  ;;  %v444_v36 = vld [vmem:[%s9427_s29 + $0x7c] sm:$0xf] }
 0x173   : > { %v2483_v59 = vrot.slane %v2482_v7, 4  ;;  %3441 = vrot.lane.b32.xlu0 %v8629_v28, %s9331_s12  ;;  %v1287_v30 = vrot.slane %v1286_v5, 4  ;;  %v1297_v41 = vshll.u32 %v912_v56, 16  ;;  %v1303_v20 = vshll.u32 %v913_v0, 16 }
 0x174   : > { %v1307_v35 = vshrl.u32 %v913_v0, 16  ;;  %v1313_v42 = vshll.u32 %v10846_v15, 16  ;;  %v2698_v9 = vsel %vm9446_vm10, %v2696_v34, %v2697_v44  ;;  %v1296_v45 = vrot.slane %v1294_v4, 4 }
 0x175   : > { %v2488_v33 = vsel %vm9533_vm15, %v2483_v59, %v2487_v13  ;;  %v1292_v6 = vsel %vm9533_vm15, %v1287_v30, %v1291_v17  ;;  %v3648_v57 = vsel %vm3630_vm4, %v3615_v55, %v3274_v25  ;;  %v8630_v3 = vcombine.low %v2695_v61, %v2698_v9  ;;  %v10876_v48 = vpop.permute.xlu1 %3179  ;;  %v10883_v17 = vld [vmem:[#allocation2 + $0xb4] sm:$0xf]  ;;  %v10907_v9 = vld [vmem:[#allocation2 + $0xbc] sm:$0x1] }
 0x176   : > { %v8614_v22 = vcombine.low %v2478_v37, %v2488_v33  ;;  %v8456_v2 = vrot.slane %v1332_v62, 9  ;;  %v8519_v14 = vcombine.low %v1282_v43, %v1292_v6  ;;  %v1299_v26 = vrot.slane %v1297_v41, 5  ;;  %v407_v62 = vld [vmem:[#allocation2 + $0xc8] sm:$0x1]  ;;  %v4003_v6 = vld [vmem:[#allocation3 + $0x18] sm:$0x1] }
 0x177   : > { %v1305_v10 = vrot.slane %v1303_v20, 5  ;;  %v1309_v12 = vrot.slane %v1307_v35, 4  ;;  %3443 = vrot.lane.b32.xlu0 %v8630_v3, %s9331_s12  ;;  %v1315_v31 = vrot.slane %v1313_v42, 5  ;;  %v1491_v47 = vrot.slane %v913_v0, 5  ;;  %v10888_v0 = vld [vmem:[#allocation2 + $0xb8] sm:$0xf] }
 0x178   : > { %3363 = vrot.lane.b32.xlu1 %v8614_v22, %s9333_s14  ;;  %v8455_v27 = vrot.slane %v1331_v46, 9  ;;  %v1484_v11 = vrot.slane %v10824_v19, 5  ;;  %v1300_v49 = vor.u32 %v1299_v26, %v1296_v45  ;;  %v1494_v18 = vrot.slane %v10846_v15, 5 }
 0x179   : > { %v1310_v58 = vor.u32 %v1309_v12, %v1305_v10  ;;  %v352_v54 = vsel %vm9391_vm3, 0, %v351_v38  ;;  %v10874_v56 = vsel %vm14092_vm9, %v10827_v52, %v3100_v21  ;;  %v10880_v51 = vsel %vm9446_vm10, %v8456_v2, %v1491_v47  ;;  %v3276_v21 = vpop.permute.xlu1 %3275  ;;  %v4000_v2 = vld [vmem:[#allocation3 + $0xc] sm:$0x1]  ;;  %v4055_v12 = vld [vmem:[#allocation3 + $0x14] sm:$0x1] }
 0x17a   : > { %v1493_v19 = vrot.slane %v1491_v47, 4  ;;  %v1487_v50 = vrot.slane %v10829_v24, 5  ;;  %353 = vst [vmem:[#allocation2 + $0xc0] sm:$0x1] %v352_v54  ;;  %v1301_v28 = vrot.slane %v1300_v49, 4  ;;  %v1486_v40 = vrot.slane %v1484_v11, 4 }
 0x17b   : > { %v1311_v60 = vrot.slane %v1310_v58, 4  ;;  %v703_v16 = vshrl.u32 %v443_v53, 16  ;;  %v3354_v23 = vpop.permute.xlu0 %3353  ;;  %v1485_v52 = vsel %vm9446_vm10, %v8455_v27, %v1484_v11  ;;  %v706_v7 = vshll.u32 %v443_v53, 16  ;;  %v1942_v49 = vld [vmem:[#allocation2 + $0xb4] sm:$0xe] }
 0x17c   : > { %2853 = vrot.lane.b32.xlu1 %v8519_v14, %s9329_s10  ;;  %v711_v5 = vshrl.u32 %v444_v36, 16  ;;  %v714_v44 = vshll.u32 %v444_v36, 16  ;;  %v3681_v24 = vsel %vm3663_vm5, %v3648_v57, %v3354_v23  ;;  %v1306_v15 = vsel %vm9533_vm15, %v1301_v28, %v1305_v10  ;;  %v4058_v10 = vld [vmem:[#allocation3 + $0x20] sm:$0x1] }
 0x17d   : > { %v1316_v4 = vsel %vm9533_vm15, %v1311_v60, %v1315_v31  ;;  %v1495_v55 = vsel %vm9446_vm10, %v1493_v19, %v1494_v18  ;;  %v1488_v13 = vsel %vm9446_vm10, %v1486_v40, %v1487_v50  ;;  %v705_v43 = vrot.slane %v703_v16, 7  ;;  %v354_v19 = vld [vmem:[#allocation2 + $0xcc] sm:$0x1]  ;;  %v410_v60 = vld [vmem:[#allocation2 + $0xd4] sm:$0x1] }
 0x17e   : > { %v8520_v37 = vcombine.low %v1306_v15, %v1316_v4  ;;  %v10899_v25 = vrot.slane %v711_v5, 7  ;;  %v8535_v59 = vcombine.low %v1485_v52, %v1488_v13  ;;  %v1881_v30 = vshrl.u32 %v10883_v17, 16 }
 0x17f   : > { %v1884_v61 = vshll.u32 %v10883_v17, 16  ;;  %v1894_v34 = vshrl.u32 %v10888_v0, 16  ;;  %v3434_v41 = vpop.permute.xlu0 %3433  ;;  %v8536_v20 = vcombine.low %v10880_v51, %v1495_v55  ;;  %v708_v35 = vor.u32 %v706_v7, %v705_v43 }
 0x180   : > { %2855 = vrot.lane.b32.xlu1 %v8520_v37, %s9329_s10  ;;  %v709_v42 = vrot.slane %v705_v43, 4  ;;  %v716_v33 = vor.u32 %v714_v44, %v10899_v25  ;;  %v3714_v45 = vsel %vm3696_vm14, %v3681_v24, %v3434_v41  ;;  %2933 = vrot.lane.b32.xlu0 %v8535_v59, %s9326_s30  ;;  %v1883_v57 = vrot.slane %v1881_v30, 4 }
 0x181   : > { %v875_v46 = vld [vmem:[#allocation2 + $0xc0] sm:$0xf]  ;;  %v1886_v22 = vrot.slane %v1884_v61, 5  ;;  %v8551_v3 = vcombine.low %v10883_v17, %v10888_v0  ;;  %9064 = vmatprep.mubr.msk.bf16.mxu1 %vm3756_vm2, %v3714_v45  ;;  %vm3989_vm9 = vcmask 57344   ;;  %v408_v26 = vsel %vm9419_vm6, 0, %v407_v62 }
 0x182   : > { %v717_v38 = vsel %vm9458_vm12, %v709_v42, %v716_v33  ;;  %v876_v14 = vsel %vm9452_vm11, %v708_v35, %v875_v46  ;;  %vm14179_vm8 = vsmask.f32 256  ;;  %v14180_v31 = vmov 0  ;;  %409 = vst [vmem:[#allocation2 + $0xc8] sm:$0x1] %v408_v26 }
 0x183   : > { %877 = vst [vmem:[#allocation2 + $0xc0] sm:$0xf] %v876_v14  ;;  %878 = vst.msk [vmem:[#allocation2 + $0xc4] sm:$0xf] %vm291_vm0, %v717_v38  ;;  %v14183_v47 = vmov 0   ;;  %v1887_v32 = vor.u32 %v1886_v22, %v1883_v57  ;;  %v1890_v27 = vshll.u32 %v10888_v0, 16  ;;  %v3617_v58 = vsel %vm3597_vm13, %v10874_v56, %v10876_v48 }
 0x184   : > { %vm10923_vm7 = vmand %vm3989_vm9, %vm14179_vm8  ;;  %3990 = vst.msk [vmem:[#allocation3 + $0x8] sm:$0x1] %vm3989_vm9, %v14183_v47  ;;  %v1896_v11 = vrot.slane %v1894_v34, 4  ;;  %v1900_v53 = vshll.u32 %v10907_v9, 16  ;;  %2935 = vrot.lane.b32.xlu1 %v8536_v20, %s9326_s30  ;;  %vm14184_vm0 = vsmask.f32 7938  ;;  %v3650_v50 = vsel %vm3630_vm4, %v3617_v58, %v3276_v21  ;;  %3029 = vrot.lane.b32.xlu0 %v8551_v3, %s9327_s8 }
 0x185   : > { %v14181_v31 = vsel %vm10923_vm7, 4294967295, %v14180_v31  ;;  %3994 = vst.msk [vmem:[#allocation3 + $0xd4] sm:$0x1] %vm3989_vm9, %v14183_v47  ;;  %v4004_v18 = vsel %vm10923_vm7, 0, %v4003_v6  ;;  %v4001_v54 = vsel %vm10923_vm7, 0, %v4000_v2  ;;  %vm10943_vm11 = vmand %vm3989_vm9, %vm14184_vm0  ;;  %v14185_v36 = vmov 0  ;;  %v3436_v56 = vpop.permute.xlu0 %3435 }
 0x186   : > { %14182 = vst [vmem:[#allocation7_spill] sm:$0xff] %v14181_v31  ;;  %v14186_v36 = vsel %vm10943_vm11, 4294967295, %v14185_v36  ;;  %v2092_v51 = vrot.slane %v10888_v0, 5  ;;  %4005 = vst [vmem:[#allocation3 + $0x18] sm:$0x1] %v4004_v18  ;;  %v4059_v48 = vsel %vm10943_vm11, 0, %v4058_v10 }
 0x187   : > { %14187 = vst [vmem:[#allocation4_spill] sm:$0xff] %v14186_v36  ;;  %4002 = vst [vmem:[#allocation3 + $0xc] sm:$0x1] %v4001_v54  ;;  %v1892_v28 = vrot.slane %v1890_v27, 5  ;;  %v3356_v40 = vpop.permute.xlu1 %3355  ;;  %v718_v16 = vrot.slane %v10899_v25, 4  ;;  %v1888_v17 = vrot.slane %v1887_v32, 4 }
 0x188   : > { %4060 = vst [vmem:[#allocation3 + $0x20] sm:$0x1] %v4059_v48  ;;  %v4056_v23 = vsel %vm10943_vm11, 0, %v4055_v12  ;;  %v8471_v52 = vrot.slane %v1942_v49, 9  ;;  %v3683_v7 = vsel %vm3663_vm5, %v3650_v50, %v3356_v40  ;;  %v1902_v44 = vrot.slane %v1900_v53, 5 }
 0x189   : > { %v1897_v5 = vor.u32 %v1896_v11, %v1892_v28  ;;  %4057 = vst [vmem:[#allocation3 + $0x14] sm:$0x1] %v4056_v23  ;;  %v355_v0 = vsel %vm9391_vm3, 0, %v354_v19  ;;  %v3716_v24 = vsel %vm3696_vm14, %v3683_v7, %v3436_v56  ;;  %v2094_v15 = vrot.slane %v2092_v51, 4  ;;  %v879_v25 = vld [vmem:[#allocation2 + $0xc8] sm:$0x1] }
 0x18a   : > { %v2095_v4 = vrot.slane %v10907_v9, 5  ;;  %356 = vst [vmem:[#allocation2 + $0xcc] sm:$0x1] %v355_v0  ;;  %v411_v55 = vsel %vm9419_vm6, 0, %v410_v60  ;;  %9065 = vmatmul.mubr.msk.bf16.vlgmr.msra.gmra.mrb[0].mxu1 %vm3756_vm2, %v3716_v24  ;;  %v1526_v13 = vld [vmem:[#allocation2 + $0xc0] sm:$0xf]  ;;  %v1893_v59 = vsel %vm9533_vm15, %v1888_v17, %v1892_v28  ;;  %v2093_v30 = vsel %vm9446_vm10, %v8471_v52, %v2092_v51 }
 0x18b   : > { %v1898_v37 = vrot.slane %v1897_v5, 4  ;;  %412 = vst [vmem:[#allocation2 + $0xd4] sm:$0x1] %v411_v55  ;;  %v10963_v43 = vld [vmem:[#allocation2 + $0xc4] sm:$0xf]  ;;  %v1905_v61 = vshrl.u32 %v1526_v13, 16  ;;  %v880_v21 = vsel %vm9391_vm3, %v718_v16, %v879_v25  ;;  %v2846_v25 = vpop.permute.xlu1 %2845 }
 0x18c   : > { %v1908_v34 = vshll.u32 %v1526_v13, 16  ;;  %v1918_v62 = vshrl.u32 %v10963_v43, 16  ;;  %v8552_v8 = vcombine.low %v1526_v13, %v10963_v43  ;;  %v1914_v41 = vshll.u32 %v10963_v43, 16  ;;  %881 = vst [vmem:[#allocation2 + $0xc8] sm:$0x1] %v880_v21 }
 0x18d   : > { %v1903_v20 = vsel %vm9533_vm15, %v1898_v37, %v1902_v44  ;;  %v2096_v35 = vsel %vm9446_vm10, %v2094_v15, %v2095_v4  ;;  %v1907_v42 = vrot.slane %v1905_v61, 4  ;;  %v10979_v45 = vld [vmem:[#allocation2 + $0xd0] sm:$0xf]  ;;  %v2099_v1 = vrot.slane %v10963_v43, 5  ;;  %v2133_v57 = vld [vmem:[#allocation2 + $0xc0] sm:$0xf]  ;;  %v11000_v44 = vpop.permute.xlu0 %2925 }
 0x18e   : > { %v1910_v33 = vrot.slane %v1908_v34, 5  ;;  %3031 = vrot.lane.b32.xlu1 %v8552_v8, %s9327_s8  ;;  %v1920_v6 = vrot.slane %v1918_v62, 4  ;;  %v8567_v9 = vcombine.low %v1893_v59, %v1903_v20  ;;  %v1916_v46 = vrot.slane %v1914_v41, 5  ;;  %v10985_v38 = vld [vmem:[#allocation2 + $0xc4] sm:$0xf]  ;;  %s289_s8 = scalar_lea.vmem %s14082_s7, %s8440_s27 }
 0x18f   : > { %v8583_v3 = vcombine.low %v2093_v30, %v2096_v35  ;;  %v2490_v14 = vshrl.u32 %v2133_v57, 16  ;;  %v2493_v26 = vshll.u32 %v2133_v57, 16  ;;  %v1943_v12 = vld [vmem:[#allocation2 + $0xc0] sm:$0xe]  ;;  %v2527_v32 = vshrl.u32 %v10979_v45, 16 }
 0x190   : > { %v1911_v22 = vor.u32 %v1910_v33, %v1907_v42  ;;  %3109 = vrot.lane.b32.xlu0 %v8567_v9, %s9332_s13  ;;  %v1921_v10 = vor.u32 %v1920_v6, %v1916_v46  ;;  %v2523_v27 = vshll.u32 %v10979_v45, 16  ;;  %v9272_v49 = vld [vmem:[#allocation2 + $0x78] sm:$0xf]  ;;  %v9273_v58 = vld [vmem:[#allocation2 + $0x7c] sm:$0xf]  ;;  %v2503_v50 = vshrl.u32 %v10985_v38, 16 }
 0x191   : > { %v10983_v2 = vld [vmem:[#allocation2 + $0xcc] sm:$0xf]  ;;  %v2492_v53 = vrot.slane %v2490_v14, 4  ;;  %v8499_v18 = vcombine.low %v9272_v49, %v9273_v58  ;;  %v2495_v19 = vrot.slane %v2493_v26, 5  ;;  %v8472_v48 = vrot.slane %v1943_v12, 9  ;;  %v11026_v14 = vpop.permute.xlu0 %3021 }
 0x192   : > { %v2514_v47 = vshrl.u32 %v10983_v2, 16  ;;  %v2517_v11 = vshll.u32 %v10983_v2, 16  ;;  %v1912_v54 = vrot.slane %v1911_v22, 4  ;;  %v10992_v56 = vld [vmem:[#allocation2 + $0xcc] sm:$0xe]  ;;  %v2101_v28 = vrot.slane %v2099_v1, 4 }
 0x193   : > { %v8599_v40 = vcombine.low %v2133_v57, %v10985_v38  ;;  %v10996_v16 = vld [vmem:[#allocation2 + $0xd4] sm:$0x1]  ;;  %v1543_v17 = vld [vmem:[#allocation2 + $0xc8] sm:$0x1]  ;;  %v1922_v23 = vrot.slane %v1921_v10, 4  ;;  %v10998_v52 = vrot.slane %v2523_v27, 5  ;;  %v2496_v5 = vor.u32 %v2495_v19, %v2492_v53 }
 0x194   : > { %v2516_v51 = vrot.slane %v2514_v47, 4  ;;  %3189 = vrot.lane.b32.xlu0 %v8583_v3, %s9330_s11  ;;  %v2519_v60 = vrot.slane %v2517_v11, 5  ;;  %v2529_v7 = vrot.slane %v2527_v32, 4  ;;  %v1924_v0 = vshll.u32 %v1543_v17, 16  ;;  %v11002_v4 = vld [vmem:[#allocation2 + $0xc8] sm:$0x1] }
 0x195   : > { %v2102_v24 = vrot.slane %v1543_v17, 5  ;;  %v2499_v55 = vshll.u32 %v10985_v38, 16  ;;  %v1917_v37 = vsel %vm9533_vm15, %v1912_v54, %v1916_v46  ;;  %v2505_v13 = vrot.slane %v2503_v50, 4  ;;  %v2551_v6 = vld [vmem:[#allocation2 + $0xc0] sm:$0xe]  ;;  %v11037_v54 = vpop.permute.xlu1 %2847 }
 0x196   : > { %v2520_v15 = vor.u32 %v2519_v60, %v2516_v51  ;;  %v8488_v43 = vrot.slane %v10992_v56, 9  ;;  %v1926_v59 = vrot.slane %v1924_v0, 5  ;;  %v2533_v30 = vshll.u32 %v10996_v16, 16  ;;  %v3997_v9 = vld [vmem:[#allocation3] sm:$0x1] }
 0x197   : > { %v2497_v61 = vrot.slane %v2496_v5, 4  ;;  %v2501_v34 = vrot.slane %v2499_v55, 5  ;;  %v2100_v62 = vsel %vm9446_vm10, %v8472_v48, %v2099_v1  ;;  %v2103_v8 = vsel %vm9446_vm10, %v2101_v28, %v2102_v24  ;;  %v4052_v3 = vld [vmem:[#allocation3 + $0x8] sm:$0x1]  ;;  %v11030_v32 = vld [vmem:[#allocation3 + $0x4] sm:$0xf] }
 0x198   : > { %3285 = vrot.lane.b32.xlu0 %v8599_v40, %s9328_s9  ;;  %v2509_v21 = vshll.u32 %v11002_v4, 16  ;;  %v11016_v41 = vsel %vm3449_vm1, %v8499_v18, %v2846_v25  ;;  %v1927_v20 = vsel %vm9533_vm15, %v1922_v23, %v1926_v59  ;;  %v11020_v35 = vrot.slane %v2520_v15, 4  ;;  %v4009_v27 = vld [vmem:[#allocation3 + $0x30] sm:$0x1]  ;;  %v4006_v18 = vld [vmem:[#allocation3 + $0x24] sm:$0x1]  ;;  %v3102_v25 = vpop.permute.xlu0 %3101 }
 0x199   : > { %v2530_v42 = vor.u32 %v2529_v7, %v10998_v52  ;;  %v2506_v33 = vor.u32 %v2505_v13, %v2501_v34  ;;  %v8568_v46 = vcombine.low %v1917_v37, %v1927_v20  ;;  %v8600_v1 = vcombine.low %v10983_v2, %v10979_v45  ;;  %v4064_v48 = vld [vmem:[#allocation3 + $0x38] sm:$0x1]  ;;  %v4061_v28 = vld [vmem:[#allocation3 + $0x2c] sm:$0x1]  ;;  %v4015_v7 = vld [vmem:[#allocation3 + $0x48] sm:$0x1] }
 0x19a   : > { %v2511_v57 = vrot.slane %v2509_v21, 5  ;;  %v2708_v22 = vrot.slane %v10979_v45, 5  ;;  %v8584_v26 = vcombine.low %v2100_v62, %v2103_v8  ;;  %v2535_v10 = vrot.slane %v2533_v30, 5  ;;  %v4012_v5 = vld [vmem:[#allocation3 + $0x3c] sm:$0x1] }
 0x19b   : > { %v2502_v12 = vsel %vm9533_vm15, %v2497_v61, %v2501_v34  ;;  %v2507_v47 = vrot.slane %v2506_v33, 4  ;;  %3111 = vrot.lane.b32.xlu1 %v8568_v46, %s9332_s13  ;;  %v8487_v11 = vrot.slane %v2551_v6, 9  ;;  %v2701_v53 = vrot.slane %v10985_v38, 5  ;;  %v4067_v59 = vld [vmem:[#allocation3 + $0x44] sm:$0x1] }
 0x19c   : > { %v2704_v49 = vrot.slane %v11002_v4, 5  ;;  %v3998_v58 = vsel %vm10923_vm7, 0, %v3997_v9  ;;  %v2526_v51 = vsel %vm9533_vm15, %v11020_v35, %v10998_v52  ;;  %v2531_v19 = vrot.slane %v2530_v42, 4  ;;  %v4070_v4 = vld [vmem:[#allocation3 + $0x50] sm:$0x1]  ;;  %v2928_v35 = vpop.permute.xlu1 %2927 }
 0x19d   : > { %v2512_v50 = vsel %vm9533_vm15, %v2507_v47, %v2511_v57  ;;  %3999 = vst [vmem:[#allocation3] sm:$0x1] %v3998_v58  ;;  %v4053_v38 = vsel %vm10943_vm11, 0, %v4052_v3  ;;  %v2710_v40 = vrot.slane %v2708_v22, 4  ;;  %v2702_v17 = vsel %vm9446_vm10, %v8487_v11, %v2701_v53  ;;  %v5069_v8 = vld [vmem:[#allocation3] sm:$0xe] }
 0x19e   : > { %v8615_v60 = vcombine.low %v2502_v12, %v2512_v50  ;;  %v2703_v23 = vrot.slane %v2701_v53, 4  ;;  %4054 = vst [vmem:[#allocation3 + $0x8] sm:$0x1] %v4053_v38  ;;  %v2711_v52 = vrot.slane %v10996_v16, 5  ;;  %v4695_v0 = vshll.u32 %v11030_v32, 16 }
 0x19f   : > { %v4699_v24 = vshrl.u32 %v11030_v32, 16  ;;  %v4010_v15 = vsel %vm10923_vm7, 0, %v4009_v27  ;;  %3191 = vrot.lane.b32.xlu1 %v8584_v26, %s9330_s11  ;;  %v4007_v37 = vsel %vm10923_vm7, 0, %v4006_v18  ;;  %v4065_v16 = vsel %vm10943_vm11, 0, %v4064_v48  ;;  %v9275_v50 = vld [vmem:[#allocation2 + $0x88] sm:$0xf] }
 0x1a0   : > { %3365 = vrot.lane.b32.xlu0 %v8615_v60, %s9333_s14  ;;  %v2705_v55 = vsel %vm9446_vm10, %v2703_v23, %v2704_v49  ;;  %4011 = vst [vmem:[#allocation3 + $0x30] sm:$0x1] %v4010_v15  ;;  %v4062_v13 = vsel %vm10943_vm11, 0, %v4061_v28  ;;  %v2536_v30 = vsel %vm9533_vm15, %v2531_v19, %v2535_v10  ;;  %v5135_v34 = vrot.slane %v11030_v32, 5  ;;  %4008 = vst [vmem:[#allocation3 + $0x24] sm:$0x1] %v4007_v37  ;;  %v3182_v10 = vpop.permute.xlu0 %3181 }
 0x1a1   : > { %v8631_v61 = vcombine.low %v2702_v17, %v2705_v55  ;;  %v4697_v62 = vrot.slane %v4695_v0, 5  ;;  %4066 = vst [vmem:[#allocation3 + $0x38] sm:$0x1] %v4065_v16  ;;  %4063 = vst [vmem:[#allocation3 + $0x2c] sm:$0x1] %v4062_v13  ;;  %v4701_v21 = vrot.slane %v4699_v24, 4  ;;  %v2709_v33 = vsel %vm9446_vm10, %v8488_v43, %v2708_v22 }
 0x1a2   : > { %vm14188_vm3 = vcmask 64512   ;;  %v4016_v42 = vsel %vm10923_vm7, 0, %v4015_v7  ;;  %v4013_v6 = vsel %vm10923_vm7, 0, %v4012_v5  ;;  %v4071_v9 = vsel %vm10943_vm11, 0, %v4070_v4  ;;  %v9274_v19 = vld [vmem:[#allocation2 + $0x84] sm:$0xf] }
 0x1a3   : > { %v3520_v20 = vsel %vm14188_vm3, %v11016_v41, %v11000_v44  ;;  %4017 = vst [vmem:[#allocation3 + $0x48] sm:$0x1] %v4016_v42  ;;  %v4068_v46 = vsel %vm10943_vm11, 0, %v4067_v59  ;;  %3287 = vrot.lane.b32.xlu1 %v8600_v1, %s9328_s9  ;;  %v8616_v44 = vcombine.low %v2526_v51, %v2536_v30  ;;  %v2712_v56 = vsel %vm9446_vm10, %v2710_v40, %v2711_v52  ;;  %v3024_v49 = vpop.permute.xlu1 %3023  ;;  %v4021_v17 = vld [vmem:[#allocation3 + $0x60] sm:$0x1]  ;;  %vm14191_vm9 = vmmov %vm14188_vm3 }
 0x1a4   : > { %3445 = vrot.lane.b32.xlu0 %v8631_v61, %s9331_s12  ;;  %v11089_v43 = vld [vmem:[#allocation3] sm:$0xf]  ;;  %v4702_v41 = vor.u32 %v4701_v21, %v4697_v62  ;;  %4014 = vst [vmem:[#allocation3 + $0x3c] sm:$0x1] %v4013_v6  ;;  %4072 = vst [vmem:[#allocation3 + $0x50] sm:$0x1] %v4071_v9  ;;  %v8632_v27 = vcombine.low %v2709_v33, %v2712_v56  ;;  %v8500_v38 = vcombine.low %v9274_v19, %v9275_v50 }
 0x1a5   : > { %4069 = vst [vmem:[#allocation3 + $0x44] sm:$0x1] %v4068_v46  ;;  %v4669_v57 = vld [vmem:[#allocation3 + $0x8] sm:$0x1]  ;;  %v8685_v22 = vrot.slane %v5069_v8, 9  ;;  %v5137_v3 = vrot.slane %v5135_v34, 4 }
 0x1a6   : > { %v4686_v26 = vshrl.u32 %v11089_v43, 16  ;;  %v4689_v45 = vshll.u32 %v11089_v43, 16  ;;  %v5138_v2 = vrot.slane %v4669_v57, 5  ;;  %v4705_v1 = vshll.u32 %v4669_v57, 16  ;;  %v3278_v40 = vpop.permute.xlu0 %3277  ;;  %v4018_v30 = vld [vmem:[#allocation3 + $0x54] sm:$0x1] }
 0x1a7   : > { %v4703_v32 = vrot.slane %v4702_v41, 4  ;;  %3367 = vrot.lane.b32.xlu1 %v8616_v44, %s9333_s14  ;;  %vm14189_vm6 = vcmask 97280   ;;  %v5136_v58 = vsel %vm9446_vm10, %v8685_v22, %v5135_v34  ;;  %vm14190_vm8 = vcmask 130048   ;;  %v9276_v41 = vld [vmem:[#allocation2 + $0x90] sm:$0xf] }
 0x1a8   : > { %v4688_v12 = vrot.slane %v4686_v26, 4  ;;  %v4691_v47 = vrot.slane %v4689_v45, 5  ;;  %v4707_v11 = vrot.slane %v4705_v1, 5  ;;  %v3553_v53 = vsel %vm14189_vm6, %v3520_v20, %v11026_v14  ;;  %vm14192_vm0 = vmmov %vm14189_vm6  ;;  %v4073_v20 = vld [vmem:[#allocation3 + $0x5c] sm:$0x1] }
 0x1a9   : > { %v5139_v18 = vsel %vm9446_vm10, %v5137_v3, %v5138_v2  ;;  %v3586_v60 = vsel %vm14190_vm8, %v3553_v53, %v3102_v25  ;;  %v3485_v7 = vsel %vm3449_vm1, %v8500_v38, %v11037_v54  ;;  %v4022_v5 = vsel %vm10923_vm7, 0, %v4021_v17  ;;  %vm14193_vm3 = vmmov %vm14190_vm8  ;;  %v9277_v57 = vld [vmem:[#allocation2 + $0x94] sm:$0xf]  ;;  %v11135_v2 = vld [vmem:[%s14077_s2] ss:$0 sm:$0xff] }
 0x1aa   : > { %v4692_v51 = vor.u32 %v4691_v47, %v4688_v12  ;;  %v4708_v28 = vsel %vm9533_vm15, %v4703_v32, %v4707_v11  ;;  %v8765_v14 = vcombine.low %v5136_v58, %v5139_v18  ;;  %v3619_v0 = vsel %vm3597_vm13, %v3586_v60, %v3182_v10  ;;  %4023 = vst [vmem:[#allocation3 + $0x60] sm:$0x1] %v4022_v5  ;;  %vm14194_vm6 = vmmov %vm14191_vm9  ;;  %v9278_v17 = vld [vmem:[#allocation2 + $0x9c] sm:$0xf] }
 0x1ab   : > { %3447 = vrot.lane.b32.xlu1 %v8632_v27, %s9331_s12  ;;  %v3522_v15 = vsel %vm14191_vm9, %v3485_v7, %v2928_v35  ;;  %v3652_v4 = vsel %vm3630_vm4, %v3619_v0, %v3278_v40  ;;  %v4019_v34 = vsel %vm10923_vm7, 0, %v4018_v30  ;;  %v4074_v35 = vsel %vm10943_vm11, 0, %v4073_v20  ;;  %vm14195_vm8 = vmmov %vm14192_vm0 }
 0x1ac   : > { %v4693_v48 = vrot.slane %v4692_v51, 4  ;;  %v3555_v54 = vsel %vm14192_vm0, %v3522_v15, %v3024_v49  ;;  %4020 = vst [vmem:[#allocation3 + $0x54] sm:$0x1] %v4019_v34  ;;  %4075 = vst [vmem:[#allocation3 + $0x5c] sm:$0x1] %v4074_v35  ;;  %v8501_v22 = vcombine.low %v9276_v41, %v9277_v57 }
 0x1ad   : > { %vm14196_vm9 = vmmov %vm14193_vm3  ;;  %vm14197_vm0 = vsmask.f32 7938  ;;  %v4536_v35 = vld [vmem:[#allocation3 + $0x20] sm:$0x1] }
 0x1ae   : > { %v4698_v23 = vsel %vm9533_vm15, %v4693_v48, %v4697_v62  ;;  %v3104_v24 = vpop.permute.xlu1 %3103  ;;  %v4076_v62 = vld [vmem:[#allocation3 + $0x68] sm:$0x1] }
 0x1af   : > { %v8749_v52 = vcombine.low %v4698_v23, %v4708_v28  ;;  %6654 = vrot.lane.b32.xlu1 %v8765_v14, %s9332_s13  ;;  %v3588_v13 = vsel %vm14193_vm3, %v3555_v54, %v3104_v24  ;;  %v4077_v21 = vsel %vm10943_vm11, 0, %v4076_v62  ;;  %v9279_v23 = vld [vmem:[#allocation2 + $0xa0] sm:$0xf]  ;;  %vm14198_vm3 = vcmask 60416  }
 0x1b0   : > { %4078 = vst [vmem:[#allocation3 + $0x68] sm:$0x1] %v4077_v21  ;;  %v8502_v7 = vcombine.low %v9278_v17, %v9279_v23 }
 0x1b1   : > { %6574 = vrot.lane.b32.xlu0 %v8749_v52, %s9326_s30 }
 0x1b2   : > { %v3184_v55 = vpop.permute.xlu1 %3183 }
 0x1b3   : > { %v3358_v37 = vpop.permute.xlu0 %3357  ;;  %v3621_v8 = vsel %vm3597_vm13, %v3588_v13, %v3184_v55  ;;  %v4532_v13 = vld [vmem:[#allocation3 + $0x18] sm:$0xf] }
 0x1b4   : > { %v3685_v16 = vsel %vm3663_vm5, %v3652_v4, %v3358_v37 }
 0x1b6   : > { %v3280_v61 = vpop.permute.xlu1 %3279 }
 0x1b7   : > { %v3438_v25 = vpop.permute.xlu0 %3437  ;;  %v3654_v42 = vsel %vm3630_vm4, %v3621_v8, %v3280_v61  ;;  %v4525_v8 = vld [vmem:[#allocation3 + $0xc] sm:$0xf] }
 0x1b8   : > { %v3718_v59 = vsel %vm3696_vm14, %v3685_v16, %v3438_v25 }
 0x1b9   : > { %9068 = vmatprep.mubr.msk.bf16.mxu1 %vm3756_vm2, %v3718_v59 }
 0x1bd   : > { %v3440_v33 = vpop.permute.xlu0 %3439 }
 0x1bf   : > { %v3360_v6 = vpop.permute.xlu1 %3359 }
 0x1c0   : > { %v3687_v9 = vsel %vm3663_vm5, %v3654_v42, %v3360_v6 }
 0x1c1   : > { %v3720_v46 = vsel %vm3696_vm14, %v3687_v9, %v3440_v33 }
 0x1c2   : > { %9069 = vmatmul.mubr.msk.bf16.gmra.mrb[4].mxu1 %vm3756_vm2, %v3720_v46 }
 0x1c3   : > { %v2850_v56 = vpop.permute.xlu1 %2849 }
 0x1c4   : > { %v3488_v45 = vsel %vm3449_vm1, %v8501_v22, %v2850_v56 }
 0x1c5   : > { %v2930_v44 = vpop.permute.xlu0 %2929 }
 0x1c6   : > { %v3524_v10 = vsel %vm14194_vm6, %v3488_v45, %v2930_v44  ;;  %vm11151_vm6 = vmand %vm14198_vm3, %vm14197_vm0  ;;  %v4529_v44 = vld [vmem:[#allocation3 + $0x14] sm:$0x1]  ;;  %v4027_v45 = vld [vmem:[#allocation3 + $0x78] sm:$0x1]  ;;  %vm14203_vm0 = vcmask 64512  }
 0x1c7   : > { %v2852_v26 = vpop.permute.xlu1 %2851 }
 0x1c8   : > { %v3491_v61 = vsel %vm3449_vm1, %v8502_v7, %v2852_v26 }
 0x1c9   : > { %v3026_v3 = vpop.permute.xlu0 %3025 }
 0x1ca   : > { %v3557_v49 = vsel %vm14195_vm8, %v3524_v10, %v3026_v3  ;;  %vm14201_vm8 = vmmov %vm14198_vm3 }
 0x1cb   : > { %v11138_v47 = vpop.permute.xlu1 %2931 }
 0x1d0   : > { %v3106_v1 = vpop.permute.xlu0 %3105  ;;  %v11146_v5 = vpop.permute.xlu1 %3027 }
 0x1d1   : > { %v9050_v12 = vpop.f32.mrb[0].mxu0  ;;  %v3590_v60 = vsel %vm14196_vm9, %v3557_v49, %v3106_v1  ;;  %vm14202_vm9 = vmmov %vm14198_vm3  ;;  %vm14204_vm3 = vcmask 97280  }
 0x1d2   : > { %v3836_v32 = vadd.f32 %v9050_v12, %v11135_v2  ;;  %v3827_v27 = vpop.f32.mrb[1].mxu0 }
 0x1d3   : > { %v3828_v11 = vadd.f32 %v11135_v2, %v3827_v27  ;;  %v9051_v53 = vpop.f32.mrb[2].mxu0 }
 0x1d4   : > { %v3956_v58 = vmax.f32 %v3836_v32, 0.0  ;;  %v3839_v18 = vadd.f32 %v9051_v53, %v11135_v2  ;;  %v3830_v51 = vpop.f32.mrb[3].mxu0  ;;  %v3186_v38 = vpop.permute.xlu0 %3185 }
 0x1d5   : > { %v3954_v19 = vmax.f32 %v3828_v11, 0.0  ;;  %v3831_v50 = vadd.f32 %v11135_v2, %v3830_v51  ;;  %v3623_v4 = vsel %vm3597_vm13, %v3590_v60, %v3186_v38 }
 0x1d6   : > { %v8955_v48 = vpack.c.bf16 %v3956_v58, %v3956_v58  ;;  %v3957_v28 = vmax.f32 %v3839_v18, 0.0  ;;  %v4028_v18 = vsel %vm10923_vm7, 0, %v4027_v45 }
 0x1d7   : > { %v8953_v14 = vpack.c.bf16 %v3954_v19, %v3954_v19  ;;  %v3955_v40 = vmax.f32 %v3831_v50, 0.0  ;;  %4029 = vst [vmem:[#allocation3 + $0x78] sm:$0x1] %v4028_v18 }
 0x1d8   : > { %v4220_v52 = vshrl.u32 %v8955_v48, 16  ;;  %v8956_v0 = vpack.c.bf16 %v3957_v28, %v3957_v28  ;;  %v4223_v37 = vshll.u32 %v8955_v48, 16  ;;  %v3282_v34 = vpop.permute.xlu0 %3281 }
 0x1d9   : > { %v4203_v24 = vshrl.u32 %v8953_v14, 16  ;;  %v8954_v15 = vpack.c.bf16 %v3955_v40, %v3955_v40  ;;  %v4206_v59 = vshll.u32 %v8953_v14, 16  ;;  %v3656_v42 = vsel %vm3630_vm4, %v3623_v4, %v3282_v34  ;;  %v3108_v56 = vpop.permute.xlu1 %3107 }
 0x1da   : > { %v4222_v55 = vrot.slane %v4220_v52, 7  ;;  %v4228_v54 = vshrl.u32 %v8956_v0, 16  ;;  %v4231_v20 = vshll.u32 %v8956_v0, 16  ;;  %v3526_v40 = vsel %vm14203_vm0, %v3491_v61, %v11138_v47  ;;  %vm14208_vm0 = vmmov %vm14202_vm9 }
 0x1db   : > { %v4205_v25 = vrot.slane %v4203_v24, 7  ;;  %v4211_v30 = vshrl.u32 %v8954_v15, 16  ;;  %v4214_v46 = vshll.u32 %v8954_v15, 16  ;;  %v3559_v15 = vsel %vm14204_vm3, %v3526_v40, %v11146_v5 }
 0x1dc   : > { %v4225_v62 = vor.u32 %v4223_v37, %v4222_v55  ;;  %v4230_v21 = vrot.slane %v4228_v54, 7  ;;  %v4226_v33 = vrot.slane %v4222_v55, 4  ;;  %vm14209_vm3 = vcmask 64512  }
 0x1dd   : > { %v4208_v6 = vor.u32 %v4206_v59, %v4205_v25  ;;  %v4213_v9 = vrot.slane %v4211_v30, 7  ;;  %v4209_v57 = vrot.slane %v4205_v25, 4  ;;  %v3188_v17 = vpop.permute.xlu1 %3187 }
 0x1de   : > { %v4533_v41 = vsel %vm11151_vm6, %v4225_v62, %v4532_v13  ;;  %v4233_v22 = vor.u32 %v4231_v20, %v4230_v21  ;;  %v4235_v3 = vrot.slane %v4230_v21, 4 }
 0x1df   : > { %v9054_v26 = vpop.f32.mrb[4].mxu0  ;;  %4534 = vst [vmem:[#allocation3 + $0x18] sm:$0xf] %v4533_v41  ;;  %v4526_v1 = vsel %vm11151_vm6, %v4208_v6, %v4525_v8  ;;  %v4216_v10 = vor.u32 %v4214_v46, %v4213_v9  ;;  %v4218_v12 = vrot.slane %v4213_v9, 4 }
 0x1e0   : > { %v3852_v32 = vadd.f32 %v9054_v26, %v11135_v2  ;;  %v3843_v27 = vpop.f32.mrb[5].mxu0  ;;  %4527 = vst [vmem:[#allocation3 + $0xc] sm:$0xf] %v4526_v1  ;;  %v4234_v11 = vsel %vm9458_vm12, %v4226_v33, %v4233_v22  ;;  %v4537_v53 = vsel %vm10923_vm7, %v4235_v3, %v4536_v35  ;;  %v4546_v35 = vld [vmem:[#allocation3 + $0x30] sm:$0xf] }
 0x1e1   : > { %v3844_v49 = vadd.f32 %v11135_v2, %v3843_v27  ;;  %v9055_v58 = vpop.f32.mrb[6].mxu0  ;;  %4535 = vst.msk [vmem:[#allocation3 + $0x1c] sm:$0xf] %vm14201_vm8, %v4234_v11  ;;  %4538 = vst [vmem:[#allocation3 + $0x20] sm:$0x1] %v4537_v53  ;;  %v4217_v51 = vsel %vm9458_vm12, %v4209_v57, %v4216_v10  ;;  %v4530_v19 = vsel %vm10923_vm7, %v4218_v12, %v4529_v44  ;;  %v3362_v28 = vpop.permute.xlu0 %3361  ;;  %vm14205_vm8 = vcmask 130048  }
 0x1e2   : > { %v3960_v50 = vmax.f32 %v3852_v32, 0.0  ;;  %v3855_v38 = vadd.f32 %v9055_v58, %v11135_v2  ;;  %v3846_v48 = vpop.f32.mrb[7].mxu0  ;;  %4528 = vst.msk [vmem:[#allocation3 + $0x10] sm:$0xf] %vm14202_vm9, %v4217_v51  ;;  %4531 = vst [vmem:[#allocation3 + $0x14] sm:$0x1] %v4530_v19  ;;  %v3689_v23 = vsel %vm3663_vm5, %v3656_v42, %v3362_v28  ;;  %v3592_v30 = vsel %vm14205_vm8, %v3559_v15, %v3108_v56  ;;  %v3284_v62 = vpop.permute.xlu1 %3283 }
 0x1e3   : > { %v3958_v60 = vmax.f32 %v3844_v49, 0.0  ;;  %v3847_v14 = vadd.f32 %v11135_v2, %v3846_v48  ;;  %v4539_v42 = vld [vmem:[#allocation3 + $0x24] sm:$0xf]  ;;  %v3625_v6 = vsel %vm3597_vm13, %v3592_v30, %v3188_v17  ;;  %v4543_v48 = vld [vmem:[#allocation3 + $0x2c] sm:$0x1]  ;;  %vm14210_vm8 = vcmask 97280  }
 0x1e4   : > { %v8959_v7 = vpack.c.bf16 %v3960_v50, %v3960_v50  ;;  %v3961_v0 = vmax.f32 %v3855_v38, 0.0  ;;  %v4550_v38 = vld [vmem:[#allocation3 + $0x38] sm:$0x1] }
 0x1e5   : > { %v8957_v52 = vpack.c.bf16 %v3958_v60, %v3958_v60  ;;  %v3959_v24 = vmax.f32 %v3847_v14, 0.0  ;;  %v3442_v4 = vpop.permute.xlu0 %3441 }
 0x1e6   : > { %v3722_v55 = vsel %vm3696_vm14, %v3689_v23, %v3442_v4  ;;  %v11183_v37 = vld [vmem:[#allocation3 + $0x18] sm:$0xf]  ;;  %v4254_v13 = vshrl.u32 %v8959_v7, 16  ;;  %v8960_v59 = vpack.c.bf16 %v3961_v0, %v3961_v0  ;;  %v4257_v20 = vshll.u32 %v8959_v7, 16 }
 0x1e7   : > { %9072 = vmatprep.mubr.msk.bf16.mxu1 %vm3756_vm2, %v3722_v55  ;;  %v4237_v25 = vshrl.u32 %v8957_v52, 16  ;;  %v11193_v5 = vld [vmem:[#allocation3 + $0x18] sm:$0xf]  ;;  %v8958_v34 = vpack.c.bf16 %v3959_v24, %v3959_v24  ;;  %v11205_v9 = vld [vmem:[#allocation3 + $0xc] sm:$0xf]  ;;  %v4240_v56 = vshll.u32 %v8957_v52, 16  ;;  %v3658_v4 = vsel %vm3630_vm4, %v3625_v6, %v3284_v62 }
 0x1e8   : > { %v11186_v54 = vld [vmem:[#allocation3 + $0x1c] sm:$0xf]  ;;  %v6286_v33 = vld [vmem:[#allocation3 + $0x18] sm:$0xe]  ;;  %v4256_v46 = vrot.slane %v4254_v13, 7  ;;  %v4262_v41 = vshrl.u32 %v8960_v59, 16 }
 0x1e9   : > { %v11188_v47 = vld [vmem:[#allocation3 + $0x1c] sm:$0xf]  ;;  %v8849_v61 = vcombine.low %v11183_v37, %v11186_v54  ;;  %v11199_v21 = vld [vmem:[#allocation3 + $0x10] sm:$0xf]  ;;  %v4239_v44 = vrot.slane %v4237_v25, 7  ;;  %v4265_v22 = vshll.u32 %v8960_v59, 16  ;;  %v3444_v60 = vpop.permute.xlu0 %3443 }
 0x1ea   : > { %v11197_v8 = vcombine.low %v11193_v5, %v11188_v47  ;;  %v11209_v57 = vcombine.low %v11205_v9, %v11199_v21  ;;  %v4245_v3 = vshrl.u32 %v8958_v34, 16  ;;  %v11211_v26 = vld [vmem:[#allocation3 + $0x20] sm:$0x1]  ;;  %v6352_v45 = vrot.slane %v11186_v54, 5  ;;  %v11216_v58 = vld [vmem:[#allocation3 + $0x1c] sm:$0xf]  ;;  %v3364_v18 = vpop.permute.xlu1 %3363 }
 0x1eb   : > { %7610 = vrot.lane.b32.xlu1 %v8849_v61, %s9328_s9  ;;  %v4259_v1 = vor.u32 %v4257_v20, %v4256_v46  ;;  %v4242_v10 = vor.u32 %v4240_v56, %v4239_v44  ;;  %v4248_v12 = vshll.u32 %v8958_v34, 16  ;;  %v8717_v32 = vrot.slane %v6286_v33, 9  ;;  %v11223_v7 = vld [vmem:[#allocation3 + $0x20] sm:$0x1]  ;;  %v5071_v24 = vld [vmem:[#allocation3 + $0x18] sm:$0xe] }
 0x1ec   : > { %14206 = vst [vmem:[#allocation5_spill] sm:$0xff] %v11197_v8  ;;  %6752 = vrot.lane.b32.xlu0 %v11197_v8, %s9328_s9  ;;  %14207 = vst [vmem:[#allocation6_spill] sm:$0xff] %v11209_v57  ;;  %v4260_v27 = vrot.slane %v4256_v46, 4  ;;  %v4264_v11 = vrot.slane %v4262_v41, 7  ;;  %v4247_v53 = vrot.slane %v4245_v3, 7  ;;  %v6354_v49 = vrot.slane %v6352_v45, 4 }
 0x1ed   : > { %v4547_v51 = vsel %vm11151_vm6, %v4259_v1, %v4546_v35  ;;  %v4243_v19 = vrot.slane %v4239_v44, 4  ;;  %v4540_v50 = vsel %vm11151_vm6, %v4242_v10, %v4539_v42  ;;  %v6355_v28 = vrot.slane %v11211_v26, 5  ;;  %v11239_v30 = vld [vmem:[#allocation3 + $0x14] sm:$0x1]  ;;  %v4024_v42 = vld [vmem:[#allocation3 + $0x6c] sm:$0x1] }
 0x1ee   : > { %4548 = vst [vmem:[#allocation3 + $0x30] sm:$0xf] %v4547_v51  ;;  %4541 = vst [vmem:[#allocation3 + $0x24] sm:$0xf] %v4540_v50  ;;  %v4267_v14 = vor.u32 %v4265_v22, %v4264_v11  ;;  %v4269_v40 = vrot.slane %v4264_v11, 4  ;;  %v4250_v17 = vor.u32 %v4248_v12, %v4247_v53  ;;  %v4252_v23 = vrot.slane %v4247_v53, 4  ;;  %v2854_v46 = vpop.permute.xlu1 %2853 }
 0x1ef   : > { %6750 = vrot.lane.b32.xlu1 %v11209_v57, %s9328_s9  ;;  %v6353_v52 = vsel %vm9446_vm10, %v8717_v32, %v6352_v45  ;;  %v6356_v0 = vsel %vm9446_vm10, %v6354_v49, %v6355_v28  ;;  %v5149_v15 = vrot.slane %v11216_v58, 5  ;;  %v5152_v62 = vrot.slane %v11223_v7, 5  ;;  %v4082_v44 = vld [vmem:[#allocation3 + $0x80] sm:$0x1]  ;;  %v4079_v56 = vld [vmem:[#allocation3 + $0x74] sm:$0x1] }
 0x1f0   : > { %v4268_v55 = vsel %vm9458_vm12, %v4260_v27, %v4267_v14  ;;  %v4551_v13 = vsel %vm10923_vm7, %v4269_v40, %v4550_v38  ;;  %v4251_v25 = vsel %vm9458_vm12, %v4243_v19, %v4250_v17  ;;  %v4544_v59 = vsel %vm10923_vm7, %v4252_v23, %v4543_v48  ;;  %v5677_v22 = vld [vmem:[#allocation3 + $0xc] sm:$0xe]  ;;  %v9281_v14 = vld [vmem:[#allocation2 + $0xac] sm:$0xf] }
 0x1f1   : > { %4549 = vst.msk [vmem:[#allocation3 + $0x34] sm:$0xf] %vm14202_vm9, %v4268_v55  ;;  %4552 = vst [vmem:[#allocation3 + $0x38] sm:$0x1] %v4551_v13  ;;  %v8881_v61 = vcombine.low %v6353_v52, %v6356_v0  ;;  %v5151_v34 = vrot.slane %v5149_v15, 4  ;;  %v5743_v20 = vrot.slane %v11199_v21, 5  ;;  %v3691_v6 = vsel %vm3663_vm5, %v3658_v4, %v3364_v18 }
 0x1f2   : > { %4542 = vst.msk [vmem:[#allocation3 + $0x28] sm:$0xf] %vm14208_vm0, %v4251_v25  ;;  %4545 = vst [vmem:[#allocation3 + $0x2c] sm:$0x1] %v4544_v59  ;;  %v11245_v35 = vpop.permute.xlu0 %2933  ;;  %v8687_v33 = vrot.slane %v5071_v24, 9  ;;  %v3724_v45 = vsel %vm3696_vm14, %v3691_v6, %v3444_v60  ;;  %v5746_v10 = vrot.slane %v11239_v30, 5  ;;  %v11269_v17 = vpop.permute.xlu1 %2855 }
 0x1f3   : > { %7770 = vrot.lane.b32.xlu1 %v8881_v61, %s9334_s23  ;;  %v5153_v41 = vsel %vm9446_vm10, %v5151_v34, %v5152_v62  ;;  %v5745_v3 = vrot.slane %v5743_v20, 4  ;;  %9073 = vmatmul.mubr.msk.bf16.gmra.mrb[8].mxu1 %vm3756_vm2, %v3724_v45  ;;  %v4025_v12 = vsel %vm10923_vm7, 0, %v4024_v42  ;;  %v4083_v27 = vsel %vm10943_vm11, 0, %v4082_v44  ;;  %v9280_v60 = vld [vmem:[#allocation2 + $0xa8] sm:$0xf]  ;;  %vm14211_vm9 = vmmov %vm14208_vm0 }
 0x1f4   : > { %v5150_v1 = vsel %vm9446_vm10, %v8687_v33, %v5149_v15  ;;  %4026 = vst [vmem:[#allocation3 + $0x6c] sm:$0x1] %v4025_v12  ;;  %v4080_v11 = vsel %vm10943_vm11, 0, %v4079_v56  ;;  %v8701_v53 = vrot.slane %v5677_v22, 9  ;;  %4084 = vst [vmem:[#allocation3 + $0x80] sm:$0x1] %v4083_v27  ;;  %v8503_v40 = vcombine.low %v9280_v60, %v9281_v14 }
 0x1f5   : > { %v8767_v32 = vcombine.low %v5150_v1, %v5153_v41  ;;  %v5747_v49 = vsel %vm9446_vm10, %v5745_v3, %v5746_v10  ;;  %4081 = vst [vmem:[#allocation3 + $0x74] sm:$0x1] %v4080_v11  ;;  %v5903_v23 = vshrl.u32 %v11183_v37, 16  ;;  %v5906_v4 = vshll.u32 %v11183_v37, 16  ;;  %v9282_v61 = vld [vmem:[#allocation2 + $0xb4] sm:$0xf] }
 0x1f6   : > { %v3030_v50 = vpop.permute.xlu0 %3029  ;;  %v5744_v38 = vsel %vm9446_vm10, %v8701_v53, %v5743_v20  ;;  %v9283_v34 = vld [vmem:[#allocation2 + $0xb8] sm:$0xf]  ;;  %v5318_v20 = vshrl.u32 %v11193_v5, 16  ;;  %v3494_v6 = vsel %vm3449_vm1, %v8503_v40, %v2854_v46  ;;  %v5321_v37 = vshll.u32 %v11193_v5, 16  ;;  %v2936_v12 = vpop.permute.xlu1 %2935  ;;  %v4564_v40 = vld [vmem:[#allocation3 + $0x50] sm:$0x1] }
 0x1f7   : > { %6658 = vrot.lane.b32.xlu1 %v8767_v32, %s9332_s13  ;;  %v8813_v52 = vcombine.low %v5744_v38, %v5747_v49  ;;  %v8504_v62 = vcombine.low %v9282_v61, %v9283_v34  ;;  %v11278_v44 = vrot.slane %v5903_v23, 4  ;;  %v5908_v3 = vrot.slane %v5906_v4, 5  ;;  %v4560_v49 = vld [vmem:[#allocation3 + $0x48] sm:$0xf] }
 0x1f8   : > { %v5916_v45 = vshrl.u32 %v11186_v54, 16  ;;  %v3528_v46 = vsel %vm14209_vm3, %v3494_v6, %v11245_v35  ;;  %v5320_v53 = vrot.slane %v5318_v20, 4  ;;  %vm14212_vm3 = vcmask 130048  }
 0x1f9   : > { %v9058_v18 = vpop.f32.mrb[8].mxu0  ;;  %v3497_v6 = vsel %vm3449_vm1, %v8504_v62, %v11269_v17  ;;  %v5909_v17 = vor.u32 %v5908_v3, %v11278_v44  ;;  %v5912_v62 = vshll.u32 %v11186_v54, 16  ;;  %vm14213_vm1 = vcmask 64512  }
 0x1fa   : > { %v3868_v51 = vadd.f32 %v9058_v18, %v11135_v2  ;;  %v3859_v19 = vpop.f32.mrb[9].mxu0  ;;  %v5307_v54 = vshrl.u32 %v11199_v21, 16 }
 0x1fb   : > { %v3860_v48 = vadd.f32 %v11135_v2, %v3859_v19  ;;  %v9059_v28 = vpop.f32.mrb[10].mxu0  ;;  %7514 = vrot.lane.b32.xlu1 %v8813_v52, %s9332_s13  ;;  %v5323_v19 = vrot.slane %v5321_v37, 5  ;;  %v5294_v37 = vshrl.u32 %v11205_v9, 16 }
 0x1fc   : > { %v3964_v0 = vmax.f32 %v3868_v51, 0.0  ;;  %v3871_v24 = vadd.f32 %v9059_v28, %v11135_v2  ;;  %v3862_v15 = vpop.f32.mrb[11].mxu0 }
 0x1fd   : > { %v3962_v55 = vmax.f32 %v3860_v48, 0.0  ;;  %v3863_v13 = vadd.f32 %v11135_v2, %v3862_v15  ;;  %v4553_v48 = vld [vmem:[#allocation3 + $0x3c] sm:$0xf] }
 0x1fe   : > { %v8963_v25 = vpack.c.bf16 %v3964_v0, %v3964_v0  ;;  %v3965_v59 = vmax.f32 %v3871_v24, 0.0  ;;  %v3561_v0 = vsel %vm14210_vm8, %v3528_v46, %v3030_v50  ;;  %v5918_v46 = vrot.slane %v5916_v45, 4 }
 0x1ff   : > { %v8961_v42 = vpack.c.bf16 %v3962_v55, %v3962_v55  ;;  %v3963_v33 = vmax.f32 %v3863_v13, 0.0  ;;  %6910 = vrot.lane.b32.xlu1 %v8813_v52, %s9334_s23  ;;  %v4557_v13 = vld [vmem:[#allocation3 + $0x44] sm:$0x1] }
 0x200   : > { %v4288_v56 = vshrl.u32 %v8963_v25, 16  ;;  %v8964_v41 = vpack.c.bf16 %v3965_v59, %v3965_v59  ;;  %v4291_v27 = vshll.u32 %v8963_v25, 16  ;;  %v3032_v20 = vpop.permute.xlu1 %3031 }
 0x201   : > { %v4271_v1 = vshrl.u32 %v8961_v42, 16  ;;  %v8962_v10 = vpack.c.bf16 %v3963_v33, %v3963_v33  ;;  %v4274_v18 = vshll.u32 %v8961_v42, 16  ;;  %v5331_v42 = vshrl.u32 %v11188_v47, 16 }
 0x202   : > { %v3110_v22 = vpop.permute.xlu0 %3109  ;;  %v4290_v32 = vrot.slane %v4288_v56, 7  ;;  %v4296_v11 = vshrl.u32 %v8964_v41, 16  ;;  %v4299_v60 = vshll.u32 %v8964_v41, 16 }
 0x203   : > { %v4273_v5 = vrot.slane %v4271_v1, 7  ;;  %v4279_v51 = vshrl.u32 %v8962_v10, 16  ;;  %v4282_v52 = vshll.u32 %v8962_v10, 16  ;;  %v5297_v1 = vshll.u32 %v11205_v9, 16 }
 0x204   : > { %v4293_v38 = vor.u32 %v4291_v27, %v4290_v32  ;;  %v4298_v28 = vrot.slane %v4296_v11, 7  ;;  %v4294_v15 = vrot.slane %v4290_v32, 4  ;;  %v3594_v10 = vsel %vm14212_vm3, %v3561_v0, %v3110_v22  ;;  %v11306_v32 = vld [vmem:[#allocation3 + $0x20] sm:$0x1] }
 0x205   : > { %v4276_v14 = vor.u32 %v4274_v18, %v4273_v5  ;;  %v4281_v23 = vrot.slane %v4279_v51, 7  ;;  %v4277_v25 = vrot.slane %v4273_v5, 4  ;;  %v3530_v27 = vsel %vm14213_vm1, %v3497_v6, %v2936_v12 }
 0x206   : > { %v3190_v24 = vpop.permute.xlu0 %3189  ;;  %v4561_v35 = vsel %vm11151_vm6, %v4293_v38, %v4560_v49  ;;  %v4301_v4 = vor.u32 %v4299_v60, %v4298_v28  ;;  %v4303_v55 = vrot.slane %v4298_v28, 4  ;;  %v5324_v49 = vor.u32 %v5323_v19, %v5320_v53 }
 0x207   : > { %4562 = vst [vmem:[#allocation3 + $0x48] sm:$0xf] %v4561_v35  ;;  %v4554_v59 = vsel %vm11151_vm6, %v4276_v14, %v4553_v48  ;;  %v4284_v61 = vor.u32 %v4282_v52, %v4281_v23  ;;  %v4286_v34 = vrot.slane %v4281_v23, 4  ;;  %v5327_v5 = vshll.u32 %v11188_v47, 16 }
 0x208   : > { %4555 = vst [vmem:[#allocation3 + $0x3c] sm:$0xf] %v4554_v59  ;;  %v4302_v50 = vsel %vm9458_vm12, %v4294_v15, %v4301_v4  ;;  %v4565_v33 = vsel %vm10923_vm7, %v4303_v55, %v4564_v40  ;;  %v5910_v18 = vrot.slane %v5909_v17, 4  ;;  %v5914_v9 = vrot.slane %v5912_v62, 5 }
 0x209   : > { %4563 = vst.msk [vmem:[#allocation3 + $0x4c] sm:$0xf] %vm14211_vm9, %v4302_v50  ;;  %4566 = vst [vmem:[#allocation3 + $0x50] sm:$0x1] %v4565_v33  ;;  %v4285_v56 = vsel %vm9458_vm12, %v4277_v25, %v4284_v61  ;;  %v4558_v41 = vsel %vm10923_vm7, %v4286_v34, %v4557_v13  ;;  %v5922_v51 = vshll.u32 %v11211_v26, 16  ;;  %v5333_v38 = vrot.slane %v5331_v42, 4 }
 0x20a   : > { %4556 = vst.msk [vmem:[#allocation3 + $0x40] sm:$0xf] %vm14208_vm0, %v4285_v56  ;;  %4559 = vst [vmem:[#allocation3 + $0x44] sm:$0x1] %v4558_v41  ;;  %v3286_v11 = vpop.permute.xlu0 %3285  ;;  %v3627_v22 = vsel %vm3597_vm13, %v3594_v10, %v3190_v24  ;;  %v5325_v28 = vrot.slane %v5324_v49, 4  ;;  %v5329_v60 = vrot.slane %v5327_v5, 5  ;;  %v5915_v3 = vsel %vm9533_vm15, %v5910_v18, %v5914_v9 }
 0x20b   : > { %v5337_v44 = vshll.u32 %v11306_v32, 16  ;;  %v5919_v45 = vor.u32 %v5918_v46, %v5914_v9  ;;  %v5296_v12 = vrot.slane %v5294_v37, 4  ;;  %v3563_v53 = vsel %vm14210_vm8, %v3530_v27, %v3032_v20  ;;  %vm14214_vm9 = vmmov %vm14212_vm3 }
 0x20c   : > { %v5330_v26 = vsel %vm9533_vm15, %v5325_v28, %v5329_v60  ;;  %v5334_v19 = vor.u32 %v5333_v38, %v5329_v60  ;;  %v5299_v14 = vrot.slane %v5297_v1, 5  ;;  %v3660_v40 = vsel %vm3630_vm4, %v3627_v22, %v3286_v11 }
 0x20d   : > { %v3112_v48 = vpop.permute.xlu1 %3111  ;;  %v5920_v23 = vrot.slane %v5919_v45, 4  ;;  %v5924_v52 = vrot.slane %v5922_v51, 5  ;;  %v5339_v35 = vrot.slane %v5337_v44, 5  ;;  %v5303_v20 = vshll.u32 %v11199_v21, 16 }
 0x20e   : > { %v5335_v15 = vrot.slane %v5334_v19, 4  ;;  %v3596_v4 = vsel %vm14214_vm9, %v3563_v53, %v3112_v48  ;;  %v5300_v34 = vor.u32 %v5299_v14, %v5296_v12  ;;  %v5309_v42 = vrot.slane %v5307_v54, 4 }
 0x20f   : > { %v5925_v55 = vsel %vm9533_vm15, %v5920_v23, %v5924_v52  ;;  %v5305_v41 = vrot.slane %v5303_v20, 5  ;;  %v5313_v1 = vshll.u32 %v11239_v30, 16 }
 0x210   : > { %v11326_v25 = vcombine.low %v5915_v3, %v5925_v55  ;;  %v5340_v59 = vsel %vm9533_vm15, %v5335_v15, %v5339_v35  ;;  %v5301_v56 = vrot.slane %v5300_v34, 4  ;;  %v4574_v15 = vld [vmem:[#allocation3 + $0x60] sm:$0xf] }
 0x211   : > { %v3192_v0 = vpop.permute.xlu1 %3191  ;;  %v11330_v61 = vcombine.low %v5330_v26, %v5340_v59  ;;  %v5310_v62 = vor.u32 %v5309_v42, %v5305_v41  ;;  %v5315_v11 = vrot.slane %v5313_v1, 5  ;;  %v4567_v59 = vld [vmem:[#allocation3 + $0x54] sm:$0xf] }
 0x212   : > { %v3366_v24 = vpop.permute.xlu0 %3365  ;;  %v3629_v50 = vsel %vm3597_vm13, %v3596_v4, %v3192_v0  ;;  %v5306_v17 = vsel %vm9533_vm15, %v5301_v56, %v5305_v41  ;;  %vm14223_vm13 = vmmov %vm14213_vm1 }
 0x213   : > { %v3693_v13 = vsel %vm3663_vm5, %v3660_v40, %v3366_v24  ;;  %v5311_v27 = vrot.slane %v5310_v62, 4 }
 0x215   : > { %v3288_v33 = vpop.permute.xlu1 %3287  ;;  %v5316_v49 = vsel %vm9533_vm15, %v5311_v27, %v5315_v11 }
 0x216   : > { %v3446_v6 = vpop.permute.xlu0 %3445  ;;  %v3662_v10 = vsel %vm3630_vm4, %v3629_v50, %v3288_v33  ;;  %v11343_v18 = vcombine.low %v5306_v17, %v5316_v49  ;;  %v4578_v50 = vld [vmem:[#allocation3 + $0x68] sm:$0x1] }
 0x217   : > { %v3726_v37 = vsel %vm3696_vm14, %v3693_v13, %v3446_v6 }
 0x218   : > { %9076 = vmatprep.mubr.msk.bf16.mxu1 %vm3756_vm2, %v3726_v37  ;;  %14215 = vst [vmem:[#allocation8_spill] sm:$0xff] %v11343_v18 }
 0x219   : > { %v3368_v21 = vpop.permute.xlu1 %3367 }
 0x21a   : > { %v3695_v46 = vsel %vm3663_vm5, %v3662_v10, %v3368_v21  ;;  %v4571_v10 = vld [vmem:[#allocation3 + $0x5c] sm:$0x1]  ;;  %vm14217_vm5 = vmmov %vm14208_vm0 }
 0x21d   : > { %v3448_v5 = vpop.permute.xlu1 %3447 }
 0x21e   : > { %v3728_v30 = vsel %vm3696_vm14, %v3695_v46, %v3448_v5 }
 0x21f   : > { %9077 = vmatmul.mubr.msk.bf16.gmra.mrb[12].mxu1 %vm3756_vm2, %v3728_v30  ;;  %vm14216_vm2 = vmmov %vm14208_vm0  ;;  %v4640_v30 = vld [vmem:[#allocation3 + $0x10] sm:$0xf] }
 0x220   : > { %vm14228_vm0 = vmmov %vm14212_vm3 }
 0x221   : > { %vm14237_vm3 = vmmov %vm14216_vm2 }
 0x222   : > { %vm14238_vm1 = vmmov %vm14216_vm2 }
 0x223   : > { %vm14286_vm8 = vmmov %vm14238_vm1 }
 0x224   : > { %vm14293_vm9 = vmmov %vm14238_vm1 }
 0x229   : > { %v9062_v9 = vpop.f32.mrb[12].mxu0 }
 0x22a   : > { %v3884_v51 = vadd.f32 %v9062_v9, %v11135_v2  ;;  %v3875_v38 = vpop.f32.mrb[13].mxu0  ;;  %v5750_v9 = vrot.slane %v11188_v47, 5  ;;  %v4743_v47 = vshll.u32 %v11216_v58, 16 }
 0x22b   : > { %v3876_v48 = vadd.f32 %v11135_v2, %v3875_v38  ;;  %v9063_v22 = vpop.f32.mrb[14].mxu0  ;;  %v5678_v38 = vld [vmem:[#allocation3 + $0x18] sm:$0xe] }
 0x22c   : > { %v3968_v28 = vmax.f32 %v3884_v51, 0.0  ;;  %v3887_v60 = vadd.f32 %v9063_v22, %v11135_v2  ;;  %v3878_v44 = vpop.f32.mrb[15].mxu0  ;;  %v5142_v51 = vrot.slane %v4640_v30, 5  ;;  %v5752_v22 = vrot.slane %v5750_v9, 4 }
 0x22d   : > { %v3966_v54 = vmax.f32 %v3876_v48, 0.0  ;;  %v3879_v3 = vadd.f32 %v11135_v2, %v3878_v44  ;;  %v11366_v48 = vld [vmem:[#allocation3 + $0x14] sm:$0x1]  ;;  %v8702_v44 = vrot.slane %v5678_v38, 9 }
 0x22e   : > { %v8967_v45 = vpack.c.bf16 %v3968_v28, %v3968_v28  ;;  %v3969_v12 = vmax.f32 %v3887_v60, 0.0  ;;  %v5144_v28 = vrot.slane %v5142_v51, 4  ;;  %v5070_v60 = vld [vmem:[#allocation3 + $0xc] sm:$0xe] }
 0x22f   : > { %v8965_v53 = vpack.c.bf16 %v3966_v54, %v3966_v54  ;;  %v3967_v26 = vmax.f32 %v3879_v3, 0.0  ;;  %v5753_v54 = vrot.slane %v11306_v32, 5  ;;  %v5145_v3 = vrot.slane %v11366_v48, 5 }
 0x230   : > { %v4322_v19 = vshrl.u32 %v8967_v45, 16  ;;  %v8968_v14 = vpack.c.bf16 %v3969_v12, %v3969_v12  ;;  %v4325_v0 = vshll.u32 %v8967_v45, 16  ;;  %v4641_v45 = vld [vmem:[#allocation3 + $0x18] sm:$0xf]  ;;  %v11370_v12 = vld [vmem:[#allocation3 + $0x4] sm:$0xf] }
 0x231   : > { %v4305_v40 = vshrl.u32 %v8965_v53, 16  ;;  %v8966_v23 = vpack.c.bf16 %v3967_v26, %v3967_v26  ;;  %v4308_v4 = vshll.u32 %v8965_v53, 16  ;;  %v8733_v53 = vcombine.low %v11089_v43, %v11370_v12  ;;  %v11374_v26 = vld [vmem:[#allocation3 + $0x30] sm:$0xf]  ;;  %v11476_v12 = vld [vmem:[#allocation3 + $0x2c] sm:$0x1] }
 0x232   : > { %v4324_v52 = vrot.slane %v4322_v19, 7  ;;  %v4330_v24 = vshrl.u32 %v8968_v14, 16  ;;  %v4333_v20 = vshll.u32 %v8968_v14, 16  ;;  %v4747_v19 = vshrl.u32 %v11216_v58, 16  ;;  %v4639_v14 = vld [vmem:[#allocation3 + $0xc] sm:$0xf] }
 0x233   : > { %v4307_v35 = vrot.slane %v4305_v40, 7  ;;  %v4313_v55 = vshrl.u32 %v8966_v23, 16  ;;  %v4316_v6 = vshll.u32 %v8966_v23, 16  ;;  %v5751_v40 = vsel %vm9446_vm10, %v8702_v44, %v5750_v9 }
 0x234   : > { %v4327_v13 = vor.u32 %v4325_v0, %v4324_v52  ;;  %v4332_v34 = vrot.slane %v4330_v24, 7  ;;  %v4328_v37 = vrot.slane %v4324_v52, 4  ;;  %v5754_v32 = vsel %vm9446_vm10, %v5752_v22, %v5753_v54  ;;  %v5251_v0 = vld [vmem:[#allocation3 + $0x30] sm:$0xf]  ;;  %v11386_v24 = vld [vmem:[#allocation3 + $0x34] sm:$0xf] }
 0x235   : > { %v4310_v42 = vor.u32 %v4308_v4, %v4307_v35  ;;  %v4315_v33 = vrot.slane %v4313_v55, 7  ;;  %v4311_v17 = vrot.slane %v4307_v35, 4  ;;  %v8686_v23 = vrot.slane %v5070_v60, 9  ;;  %v11414_v22 = vld [vmem:[#allocation3 + $0x24] sm:$0xf] }
 0x236   : > { %v4575_v56 = vsel %vm11151_vm6, %v4327_v13, %v4574_v15  ;;  %v4335_v41 = vor.u32 %v4333_v20, %v4332_v34  ;;  %v4337_v1 = vrot.slane %v4332_v34, 4  ;;  %v11384_v52 = vsel %vm9446_vm10, %v5144_v28, %v5145_v3  ;;  %14218 = vst [vmem:[#allocation9_spill] sm:$0xff] %v11414_v22  ;;  %v11421_v54 = vld [vmem:[#allocation3 + $0x28] sm:$0xf] }
 0x237   : > { %4576 = vst [vmem:[#allocation3 + $0x60] sm:$0xf] %v4575_v56  ;;  %v4568_v62 = vsel %vm11151_vm6, %v4310_v42, %v4567_v59  ;;  %v4318_v21 = vor.u32 %v4316_v6, %v4315_v33  ;;  %v4320_v27 = vrot.slane %v4315_v33, 4  ;;  %v4734_v15 = vshrl.u32 %v4641_v45, 16 }
 0x238   : > { %4569 = vst [vmem:[#allocation3 + $0x54] sm:$0xf] %v4568_v62  ;;  %v4336_v11 = vsel %vm9458_vm12, %v4328_v37, %v4335_v41  ;;  %v4579_v46 = vsel %vm10923_vm7, %v4337_v1, %v4578_v50  ;;  %v4737_v35 = vshll.u32 %v4641_v45, 16  ;;  %v4719_v4 = vshll.u32 %v4640_v30, 16  ;;  %v5249_v50 = vld [vmem:[#allocation3 + $0x24] sm:$0xf] }
 0x239   : > { %4577 = vst.msk [vmem:[#allocation3 + $0x64] sm:$0xf] %vm14216_vm2, %v4336_v11  ;;  %4580 = vst [vmem:[#allocation3 + $0x68] sm:$0x1] %v4579_v46  ;;  %v4319_v49 = vsel %vm9458_vm12, %v4311_v17, %v4318_v21  ;;  %v4572_v5 = vsel %vm10923_vm7, %v4320_v27, %v4571_v10  ;;  %v4723_v55 = vshrl.u32 %v4640_v30, 16  ;;  %v11390_v58 = vsel %vm9446_vm10, %v8686_v23, %v5142_v51 }
 0x23a   : > { %4570 = vst.msk [vmem:[#allocation3 + $0x58] sm:$0xf] %vm14217_vm5, %v4319_v49  ;;  %4573 = vst [vmem:[#allocation3 + $0x5c] sm:$0x1] %v4572_v5  ;;  %v5951_v13 = vshrl.u32 %v11374_v26, 16  ;;  %v4710_v59 = vshrl.u32 %v4639_v14, 16  ;;  %v11393_v20 = vcombine.low %v5751_v40, %v5754_v32 }
 0x23b   : > { %v4713_v34 = vshll.u32 %v4639_v14, 16  ;;  %v5954_v42 = vshll.u32 %v11374_v26, 16  ;;  %v11396_v33 = vrot.slane %v4743_v47, 5  ;;  %v4749_v6 = vrot.slane %v4747_v19, 4  ;;  %v11402_v41 = vld [vmem:[#allocation3 + $0x34] sm:$0xf]  ;;  %vm14350_vm2 = vmmov %vm14238_vm1 }
 0x23c   : > { %v5366_v1 = vshrl.u32 %v5251_v0, 16  ;;  %v5369_v10 = vshll.u32 %v5251_v0, 16  ;;  %v4736_v17 = vrot.slane %v4734_v15, 4  ;;  %v4739_v62 = vrot.slane %v4737_v35, 5  ;;  %v11408_v30 = vld [vmem:[#allocation3 + $0x34] sm:$0xf]  ;;  %vm14353_vm5 = vmmov %vm14238_vm1 }
 0x23d   : > { %v11404_v21 = vrot.slane %v4719_v4, 5  ;;  %v4725_v27 = vrot.slane %v4723_v55, 4  ;;  %v11406_v11 = vrot.slane %v5951_v13, 4  ;;  %v5342_v46 = vshrl.u32 %v5249_v50, 16  ;;  %v11424_v47 = vld [vmem:[#allocation3 + $0x28] sm:$0xf] }
 0x23e   : > { %v4712_v49 = vrot.slane %v4710_v59, 4  ;;  %v4715_v5 = vrot.slane %v4713_v34, 5  ;;  %v11410_v9 = vrot.slane %v5954_v42, 5  ;;  %v4750_v28 = vor.u32 %v4749_v6, %v11396_v33 }
 0x23f   : > { %v11417_v60 = vrot.slane %v5366_v1, 4  ;;  %v11419_v44 = vrot.slane %v5369_v10, 5  ;;  %v5345_v3 = vshll.u32 %v5249_v50, 16  ;;  %v6366_v45 = vrot.slane %v11386_v24, 5  ;;  %v11446_v10 = vld [vmem:[#allocation3 + $0x38] sm:$0x1] }
 0x240   : > { %v4740_v19 = vor.u32 %v4739_v62, %v4736_v17  ;;  %v4753_v14 = vshll.u32 %v11223_v7, 16  ;;  %v4726_v40 = vor.u32 %v4725_v27, %v11404_v21  ;;  %v5163_v32 = vrot.slane %v11408_v30, 5  ;;  %v11438_v7 = vld [vmem:[#allocation3 + $0x38] sm:$0x1] }
 0x241   : > { %v11430_v23 = vcombine.low %v5251_v0, %v11402_v41  ;;  %v11432_v15 = vrot.slane %v5342_v46, 4  ;;  %v5927_v35 = vshrl.u32 %v11414_v22, 16  ;;  %v4716_v4 = vor.u32 %v4715_v5, %v4712_v49  ;;  %v6288_v46 = vld [vmem:[#allocation3 + $0x30] sm:$0xe] }
 0x242   : > { %v5930_v13 = vshll.u32 %v11414_v22, 16  ;;  %v4751_v59 = vrot.slane %v4750_v28, 4  ;;  %v4729_v34 = vshll.u32 %v11366_v48, 16  ;;  %v11440_v42 = vrot.slane %v5345_v3, 5  ;;  %v5073_v3 = vld [vmem:[#allocation3 + $0x30] sm:$0xe] }
 0x243   : > { %14219 = vst [vmem:[#allocation10_spill] sm:$0xff] %v11430_v23  ;;  %v11443_v6 = vcombine.low %v5249_v50, %v11421_v54  ;;  %v6368_v1 = vrot.slane %v6366_v45, 4  ;;  %v4741_v17 = vrot.slane %v4740_v19, 4  ;;  %v4755_v62 = vrot.slane %v4753_v14, 5  ;;  %v6575_v50 = vpop.permute.xlu0 %6574 }
 0x244   : > { %v4727_v27 = vrot.slane %v4726_v40, 4  ;;  %v5165_v49 = vrot.slane %v5163_v32, 4  ;;  %v11448_v5 = vrot.slane %v5927_v35, 4  ;;  %v4717_v48 = vrot.slane %v4716_v4, 4 }
 0x245   : > { %14220 = vst [vmem:[#allocation11_spill] sm:$0xff] %v11443_v6  ;;  %v6369_v28 = vrot.slane %v11438_v7, 5  ;;  %v6359_v56 = vrot.slane %v11424_v47, 5  ;;  %v11452_v37 = vrot.slane %v5930_v13, 5  ;;  %v4756_v0 = vsel %vm9533_vm15, %v4751_v59, %v4755_v62  ;;  %v6287_v13 = vld [vmem:[#allocation3 + $0x24] sm:$0xe] }
 0x246   : > { %14221 = vst [vmem:[#allocation12_spill] sm:$0xff] %v11448_v5  ;;  %v4731_v55 = vrot.slane %v4729_v34, 5  ;;  %v5166_v19 = vrot.slane %v11446_v10, 5  ;;  %v6944_v14 = vsel %vm14223_vm13, %v8733_v53, %v6575_v50  ;;  %v8719_v35 = vrot.slane %v6288_v46, 9  ;;  %v6655_v53 = vpop.permute.xlu1 %6654  ;;  %v11496_v50 = vld [vmem:[#allocation3 + $0x2c] sm:$0x1] }
 0x247   : > { %14222 = vst [vmem:[#allocation13_spill] sm:$0xff] %v11452_v37  ;;  %v11465_v4 = vsel %vm9446_vm10, %v6368_v1, %v6369_v28  ;;  %v4746_v59 = vsel %vm9533_vm15, %v4741_v17, %v11396_v33  ;;  %v8689_v62 = vrot.slane %v5073_v3, 9  ;;  %v4722_v1 = vsel %vm9533_vm15, %v4717_v48, %v11404_v21  ;;  %v4592_v6 = vld [vmem:[#allocation3 + $0x80] sm:$0x1] }
 0x248   : > { %14224 = vst [vmem:[#allocation14_spill] sm:$0xff] %v11465_v4  ;;  %v4732_v34 = vsel %vm9533_vm15, %v4727_v27, %v4731_v55  ;;  %v11474_v43 = vsel %vm9446_vm10, %v5165_v49, %v5166_v19  ;;  %v11478_v46 = vcombine.low %v4746_v59, %v4756_v0  ;;  %v11485_v33 = vsel %vm9446_vm10, %v8719_v35, %v6366_v45  ;;  %v5679_v55 = vld [vmem:[#allocation3 + $0x24] sm:$0xe]  ;;  %v11504_v35 = vld [vmem:[#allocation3 + $0x38] sm:$0x1] }
 0x249   : > { %14225 = vst [vmem:[#allocation15_spill] sm:$0xff] %v11474_v43  ;;  %14227 = vst [vmem:[#allocation17_spill] sm:$0xff] %v11485_v33  ;;  %v6361_v17 = vrot.slane %v6359_v56, 4  ;;  %v11488_v28 = vsel %vm14228_vm0, %v6944_v14, %v6655_v53  ;;  %v11494_v0 = vsel %vm9446_vm10, %v8689_v62, %v5163_v32  ;;  %v8718_v3 = vrot.slane %v6287_v13, 9  ;;  %v5680_v59 = vld [vmem:[#allocation3 + $0x30] sm:$0xe] }
 0x24a   : > { %14226 = vst [vmem:[#allocation16_spill] sm:$0xff] %v11478_v46  ;;  %14229 = vst [vmem:[#allocation18_spill] sm:$0xff] %v11488_v28  ;;  %v11499_v48 = vcombine.low %v4722_v1, %v4732_v34  ;;  %v6362_v14 = vrot.slane %v11476_v12, 5  ;;  %v8703_v62 = vrot.slane %v5679_v55, 9  ;;  %v11512_v34 = vld [vmem:[#allocation3 + $0x48] sm:$0xf] }
 0x24b   : > { %14230 = vst [vmem:[#allocation19_spill] sm:$0xff] %v11494_v0  ;;  %v11509_v13 = vsel %vm9446_vm10, %v8718_v3, %v6359_v56  ;;  %v11517_v19 = vld [vmem:[%s14077_s2] ss:$0 sm:$0xff]  ;;  %v5760_v56 = vrot.slane %v11496_v50, 5  ;;  %v5767_v8 = vrot.slane %v11504_v35, 5  ;;  %v5999_v57 = vshrl.u32 %v11512_v34, 16 }
 0x24c   : > { %14231 = vst [vmem:[#allocation20_spill] sm:$0xff] %v11499_v48  ;;  %14232 = vst [vmem:[#allocation21_spill] sm:$0xff] %v11509_v13  ;;  %v6002_v43 = vshll.u32 %v11512_v34, 16  ;;  %vm7086_vm13 = vcmask 326656   ;;  %vm7150_vm0 = vcmask 392192  }
 0x24d   : > { %14233 = vst [vmem:[#allocation22_spill] sm:$0xff] %v11517_v19 }
 0x25d   : > { %v9066_v27 = vpop.f32.mrb[0].mxu1 }
 0x25e   : > { %v3900_v21 = vadd.f32 %v9066_v27, %v11135_v2  ;;  %v3891_v45 = vpop.f32.mrb[1].mxu1  ;;  %v5757_v27 = vrot.slane %v11421_v54, 5 }
 0x25f   : > { %v3892_v53 = vadd.f32 %v11135_v2, %v3891_v45  ;;  %v9067_v32 = vpop.f32.mrb[2].mxu1  ;;  %v11522_v2 = vsel %vm9446_vm10, %v6361_v17, %v6362_v14  ;;  %v8704_v45 = vrot.slane %v5680_v59, 9 }
 0x260   : > { %v3972_v1 = vmax.f32 %v3900_v21, 0.0  ;;  %v3903_v49 = vadd.f32 %v11517_v19, %v9067_v32  ;;  %v3894_v40 = vpop.f32.mrb[3].mxu1  ;;  %14234 = vst [vmem:[#allocation23_spill] sm:$0xff] %v11522_v2  ;;  %v5764_v21 = vrot.slane %v11402_v41, 5  ;;  %v11533_v14 = vsel %vm9446_vm10, %v8703_v62, %v5757_v27  ;;  %v4588_v62 = vld [vmem:[#allocation3 + $0x78] sm:$0xf] }
 0x261   : > { %v3970_v55 = vmax.f32 %v3892_v53, 0.0  ;;  %v3895_v3 = vadd.f32 %v11517_v19, %v3894_v40  ;;  %v5759_v59 = vrot.slane %v5757_v27, 4  ;;  %v4581_v19 = vld [vmem:[#allocation3 + $0x6c] sm:$0xf] }
 0x262   : > { %v8971_v38 = vpack.c.bf16 %v3972_v1, %v3972_v1  ;;  %v3973_v51 = vmax.f32 %v3903_v49, 0.0  ;;  %v11536_v1 = vld [vmem:[#allocation3 + $0x28] sm:$0xf]  ;;  %v5766_v13 = vrot.slane %v5764_v21, 4 }
 0x263   : > { %v8969_v32 = vpack.c.bf16 %v3970_v55, %v3970_v55  ;;  %v3971_v28 = vmax.f32 %v3895_v3, 0.0  ;;  %14235 = vst [vmem:[#allocation24_spill] sm:$0xff] %v11536_v1  ;;  %v5765_v55 = vsel %vm9446_vm10, %v8704_v45, %v5764_v21  ;;  %v5960_v3 = vshll.u32 %v11386_v24, 16 }
 0x264   : > { %v4356_v53 = vshrl.u32 %v8971_v38, 16  ;;  %v8972_v40 = vpack.c.bf16 %v3973_v51, %v3973_v51  ;;  %v4359_v17 = vshll.u32 %v8971_v38, 16  ;;  %v5156_v27 = vrot.slane %v11536_v1, 5  ;;  %v4585_v1 = vld [vmem:[#allocation3 + $0x74] sm:$0x1] }
 0x265   : > { %v4339_v49 = vshrl.u32 %v8969_v32, 16  ;;  %v8970_v0 = vpack.c.bf16 %v3971_v28, %v3971_v28  ;;  %v4342_v48 = vshll.u32 %v8969_v32, 16  ;;  %v14236_v28 = vshrl.u32 %v11386_v24, 16 }
 0x266   : > { %v4358_v4 = vrot.slane %v4356_v53, 7  ;;  %v4364_v2 = vshrl.u32 %v8972_v40, 16  ;;  %v4367_v36 = vshll.u32 %v8972_v40, 16  ;;  %v11544_v38 = vrot.slane %v5960_v3, 5  ;;  %v11565_v3 = vld [vmem:[#allocation3 + $0x4c] sm:$0xf] }
 0x267   : > { %v4341_v33 = vrot.slane %v4339_v49, 7  ;;  %v4347_v51 = vshrl.u32 %v8970_v0, 16  ;;  %v5966_v22 = vrot.slane %v14236_v28, 4  ;;  %v4350_v53 = vshll.u32 %v8970_v0, 16 }
 0x268   : > { %v4361_v46 = vor.u32 %v4359_v17, %v4358_v4  ;;  %v4366_v18 = vrot.slane %v4364_v2, 7  ;;  %v4362_v21 = vrot.slane %v4358_v4, 4 }
 0x269   : > { %v4344_v45 = vor.u32 %v4342_v48, %v4341_v33  ;;  %v4349_v37 = vrot.slane %v4347_v51, 7  ;;  %v4345_v17 = vrot.slane %v4341_v33, 4  ;;  %v5255_v48 = vld [vmem:[#allocation3 + $0x48] sm:$0xf]  ;;  %v5072_v33 = vld [vmem:[#allocation3 + $0x24] sm:$0xe] }
 0x26a   : > { %v4589_v32 = vsel %vm11151_vm6, %v4361_v46, %v4588_v62  ;;  %v4369_v49 = vor.u32 %v4367_v36, %v4366_v18  ;;  %v4371_v5 = vrot.slane %v4366_v18, 4  ;;  %v5761_v36 = vsel %vm9446_vm10, %v5759_v59, %v5760_v56  ;;  %v11558_v46 = vld [vmem:[#allocation3 + $0x2c] sm:$0x1] }
 0x26b   : > { %4590 = vst [vmem:[#allocation3 + $0x78] sm:$0xf] %v4589_v32  ;;  %v4582_v2 = vsel %vm11151_vm6, %v4344_v45, %v4581_v19  ;;  %v4352_v40 = vor.u32 %v4350_v53, %v4349_v37  ;;  %v4354_v28 = vrot.slane %v4349_v37, 4  ;;  %v5768_v18 = vsel %vm9446_vm10, %v5766_v13, %v5767_v8  ;;  %v11596_v32 = vld [vmem:[#allocation3 + $0x40] sm:$0xf] }
 0x26c   : > { %4583 = vst [vmem:[#allocation3 + $0x6c] sm:$0xf] %v4582_v2  ;;  %v4370_v0 = vsel %vm9458_vm12, %v4362_v21, %v4369_v49  ;;  %v4593_v4 = vsel %vm10923_vm7, %v4371_v5, %v4592_v6  ;;  %v5158_v6 = vrot.slane %v5156_v27, 4  ;;  %v5957_v5 = vor.u32 %v11410_v9, %v11406_v11  ;;  %v5253_v21 = vld [vmem:[#allocation3 + $0x3c] sm:$0xf] }
 0x26d   : > { %4591 = vst.msk [vmem:[#allocation3 + $0x7c] sm:$0xf] %vm14237_vm3, %v4370_v0  ;;  %4594 = vst [vmem:[#allocation3 + $0x80] sm:$0x1] %v4593_v4  ;;  %v4353_v37 = vsel %vm9458_vm12, %v4345_v17, %v4352_v40  ;;  %v4586_v19 = vsel %vm10923_vm7, %v4354_v28, %v4585_v1  ;;  %v11570_v8 = vrot.slane %v5999_v57, 4  ;;  %v5967_v13 = vor.u32 %v5966_v22, %v11544_v38 }
 0x26e   : > { %4584 = vst.msk [vmem:[#allocation3 + $0x70] sm:$0xf] %vm14238_vm1, %v4353_v37  ;;  %4587 = vst [vmem:[#allocation3 + $0x74] sm:$0x1] %v4586_v19  ;;  %v5970_v56 = vshll.u32 %v11438_v7, 16  ;;  %v5414_v59 = vshrl.u32 %v5255_v48, 16  ;;  %v11578_v53 = vcombine.low %v11533_v14, %v5761_v36  ;;  %v11580_v11 = vcombine.low %v5765_v55, %v5768_v18 }
 0x26f   : > { %v11574_v62 = vrot.slane %v6002_v43, 5  ;;  %v8688_v51 = vrot.slane %v5072_v33, 9  ;;  %v5159_v1 = vrot.slane %v11558_v46, 5  ;;  %v5417_v45 = vshll.u32 %v5255_v48, 16  ;;  %v11583_v57 = vld [vmem:[#allocation3 + $0x4c] sm:$0xf] }
 0x270   : > { %v5375_v22 = vshll.u32 %v11402_v41, 16  ;;  %v5958_v55 = vrot.slane %v5957_v5, 4  ;;  %v5968_v49 = vrot.slane %v5967_v13, 4  ;;  %v5972_v17 = vrot.slane %v5970_v56, 5  ;;  %v11644_v0 = vld [vmem:[#allocation3 + $0x3c] sm:$0xf] }
 0x271   : > { %v11590_v43 = vsel %vm9446_vm10, %v8688_v51, %v5156_v27  ;;  %v11594_v14 = vsel %vm9446_vm10, %v5158_v6, %v5159_v1  ;;  %v11598_v2 = vrot.slane %v5414_v59, 4  ;;  %v5351_v40 = vshll.u32 %v11421_v54, 16  ;;  %14249 = vst [vmem:[#allocation33_spill] sm:$0xff] %v11644_v0 }
 0x272   : > { %14239 = vst [vmem:[#allocation25_spill] sm:$0xff] %v11590_v43  ;;  %14240 = vst [vmem:[#allocation26_spill] sm:$0xff] %v11594_v14  ;;  %v11601_v28 = vrot.slane %v5417_v45, 5  ;;  %v5390_v4 = vshrl.u32 %v5253_v21, 16  ;;  %v5393_v27 = vshll.u32 %v5253_v21, 16  ;;  %v5372_v18 = vor.u32 %v11419_v44, %v11417_v60 }
 0x273   : > { %14241 = vst [vmem:[#allocation27_spill] sm:$0xff] %v11598_v2  ;;  %v11607_v33 = vrot.slane %v5375_v22, 5  ;;  %v14243_v37 = vshrl.u32 %v11402_v41, 16  ;;  %v11611_v6 = vld [vmem:[#allocation3 + $0x6c] sm:$0xf]  ;;  %v5963_v59 = vsel %vm9533_vm15, %v5958_v55, %v11544_v38  ;;  %v11623_v60 = vcombine.low %v5255_v48, %v11583_v57 }
 0x274   : > { %14242 = vst [vmem:[#allocation28_spill] sm:$0xff] %v11601_v28  ;;  %v11626_v44 = vcombine.low %v5253_v21, %v11596_v32  ;;  %v6293_v1 = vld [vmem:[#allocation3 + $0x6c] sm:$0xe]  ;;  %v5973_v45 = vsel %vm9533_vm15, %v5968_v49, %v5972_v17  ;;  %v11634_v22 = vrot.slane %v5351_v40, 5  ;;  %v11640_v21 = vrot.slane %v5390_v4, 4 }
 0x275   : > { %v5381_v19 = vrot.slane %v14243_v37, 4  ;;  %v11613_v5 = vld [vmem:[#allocation3 + $0x70] sm:$0xf]  ;;  %14244 = vst [vmem:[#allocation29_spill] sm:$0xff] %v11623_v60  ;;  %v11630_v51 = vld [vmem:[#allocation3 + $0x74] sm:$0x1] }
 0x276   : > { %v11615_v13 = vld [vmem:[#allocation3 + $0x70] sm:$0xf]  ;;  %14245 = vst [vmem:[#allocation30_spill] sm:$0xff] %v11626_v44  ;;  %v8856_v41 = vcombine.low %v11611_v6, %v11613_v5  ;;  %v14246_v37 = vshrl.u32 %v11421_v54, 16  ;;  %v6401_v48 = vrot.slane %v11613_v5, 5  ;;  %14247 = vst [vmem:[#allocation31_spill] sm:$0xff] %v11640_v21  ;;  %v5348_v54 = vor.u32 %v11440_v42, %v11432_v15 }
 0x277   : > { %v5799_v55 = vrot.slane %v11615_v13, 5  ;;  %v11642_v36 = vrot.slane %v5393_v27, 5  ;;  %v11647_v56 = vld [vmem:[#allocation3 + $0x74] sm:$0x1]  ;;  %v11649_v49 = vrot.slane %v5372_v18, 4  ;;  %v5385_v17 = vshll.u32 %v11504_v35, 16 }
 0x278   : > { %v5357_v38 = vrot.slane %v14246_v37, 4  ;;  %7624 = vrot.lane.b32.xlu0 %v8856_v41, %s9328_s9  ;;  %v5361_v40 = vshll.u32 %v11496_v50, 16  ;;  %v8724_v37 = vrot.slane %v6293_v1, 9  ;;  %v6403_v4 = vrot.slane %v6401_v48, 4  ;;  %v5685_v9 = vld [vmem:[#allocation3 + $0x6c] sm:$0xe] }
 0x279   : > { %14248 = vst [vmem:[#allocation32_spill] sm:$0xff] %v11642_v36  ;;  %v6404_v27 = vrot.slane %v11630_v51, 5  ;;  %v5801_v7 = vrot.slane %v5799_v55, 4  ;;  %v11656_v44 = vcombine.low %v5963_v59, %v5973_v45  ;;  %v5382_v41 = vor.u32 %v5381_v19, %v11607_v33  ;;  %v11667_v1 = vld [vmem:[#allocation3 + $0x30] sm:$0xf] }
 0x27a   : > { %v5358_v18 = vor.u32 %v5357_v38, %v11634_v22  ;;  %v5975_v36 = vshrl.u32 %v11644_v0, 16  ;;  %v6402_v35 = vsel %vm9446_vm10, %v8724_v37, %v6401_v48  ;;  %v5802_v42 = vrot.slane %v11647_v56, 5  ;;  %14251 = vst [vmem:[#allocation35_spill] sm:$0xff] %v11667_v1  ;;  %v11675_v38 = vld [vmem:[#allocation3 + $0x40] sm:$0xf] }
 0x27b   : > { %14250 = vst [vmem:[#allocation34_spill] sm:$0xff] %v11656_v44  ;;  %v6405_v15 = vsel %vm9446_vm10, %v6403_v4, %v6404_v27  ;;  %v6380_v50 = vrot.slane %v11565_v3, 5  ;;  %v5378_v59 = vsel %vm9533_vm15, %v11649_v49, %v11607_v33  ;;  %v5387_v45 = vrot.slane %v5385_v17, 5  ;;  %v11680_v28 = vld [vmem:[#allocation3 + $0x50] sm:$0x1] }
 0x27c   : > { %7516 = vrot.lane.b32.xlu0 %v11393_v20, %s9332_s13  ;;  %v8888_v19 = vcombine.low %v6402_v35, %v6405_v15  ;;  %v5978_v48 = vshll.u32 %v11644_v0, 16  ;;  %v8709_v37 = vrot.slane %v5685_v9, 9  ;;  %v5803_v4 = vsel %vm9446_vm10, %v5801_v7, %v5802_v42  ;;  %v6290_v2 = vld [vmem:[#allocation3 + $0x48] sm:$0xe]  ;;  %v11698_v42 = vld [vmem:[#allocation3 + $0x6c] sm:$0xf] }
 0x27d   : > { %v5349_v27 = vrot.slane %v5348_v54, 4  ;;  %v5363_v21 = vrot.slane %v5361_v40, 5  ;;  %v5383_v35 = vrot.slane %v5382_v41, 4  ;;  %v5359_v15 = vrot.slane %v5358_v18, 4  ;;  %v4085_v0 = vld [vmem:[#allocation3 + $0x8c] sm:$0x1] }
 0x27e   : > { %7784 = vrot.lane.b32.xlu1 %v8888_v19, %s9334_s23  ;;  %v4782_v33 = vshrl.u32 %v11667_v1, 16  ;;  %v4785_v49 = vshll.u32 %v11667_v1, 16  ;;  %v5800_v17 = vsel %vm9446_vm10, %v8709_v37, %v5799_v55  ;;  %v11687_v9 = vrot.slane %v5975_v36, 4  ;;  %v11706_v37 = vld [vmem:[#allocation3 + $0x4c] sm:$0xf] }
 0x27f   : > { %v6382_v60 = vrot.slane %v6380_v50, 4  ;;  %v4791_v7 = vshll.u32 %v11408_v30, 16  ;;  %v11692_v54 = vcombine.low %v5800_v17, %v5803_v4  ;;  %v11694_v40 = vrot.slane %v5978_v48, 5  ;;  %v11722_v55 = vld [vmem:[#allocation3 + $0x48] sm:$0xe] }
 0x280   : > { %14252 = vst [vmem:[#allocation36_spill] sm:$0xff] %v11687_v9  ;;  %6912 = vrot.lane.b32.xlu0 %v11393_v20, %s9334_s23  ;;  %v4795_v18 = vshrl.u32 %v11408_v30, 16  ;;  %v5354_v36 = vsel %vm9533_vm15, %v5349_v27, %v11634_v22  ;;  %v8721_v19 = vrot.slane %v6290_v2, 9  ;;  %v6383_v20 = vrot.slane %v11680_v28, 5  ;;  %v14266_v9 = vld [vmem:[#allocation11_spill] sm:$0xff] }
 0x281   : > { %14253 = vst [vmem:[#allocation37_spill] sm:$0xff] %v11692_v54  ;;  %14254 = vst [vmem:[#allocation38_spill] sm:$0xff] %v11694_v40  ;;  %v5388_v30 = vsel %vm9533_vm15, %v5383_v35, %v5387_v45  ;;  %v5364_v48 = vsel %vm9533_vm15, %v5359_v15, %v5363_v21  ;;  %v4784_v4 = vrot.slane %v4782_v33, 4  ;;  %v4787_v17 = vrot.slane %v4785_v49, 5  ;;  %v14265_v40 = vld [vmem:[#allocation13_spill] sm:$0xff] }
 0x282   : > { %7530 = vrot.lane.b32.xlu1 %v11692_v54, %s9332_s13  ;;  %v5495_v22 = vshll.u32 %v11615_v13, 16  ;;  %v5499_v27 = vshrl.u32 %v11615_v13, 16  ;;  %v11718_v2 = vsel %vm9446_vm10, %v6382_v60, %v6383_v20  ;;  %v11720_v41 = vrot.slane %v4791_v7, 5 }
 0x283   : > { %14255 = vst [vmem:[#allocation39_spill] sm:$0xff] %v11718_v2  ;;  %v14256_v45 = vcombine.low %v11390_v58, %v11384_v52  ;;  %v5486_v21 = vshrl.u32 %v11698_v42, 16  ;;  %v5489_v35 = vshll.u32 %v11698_v42, 16  ;;  %v4797_v15 = vrot.slane %v4795_v18, 4  ;;  %v5264_v58 = vld [vmem:[#allocation3 + $0x7c] sm:$0xf] }
 0x284   : > { %v11731_v49 = vcombine.low %v5378_v59, %v5388_v30  ;;  %v11733_v60 = vcombine.low %v5354_v36, %v5364_v48  ;;  %v11737_v7 = vsel %vm9446_vm10, %v8721_v19, %v6380_v50  ;;  %v5936_v20 = vshll.u32 %v11424_v47, 16  ;;  %v11747_v36 = vld [vmem:[#allocation3 + $0x50] sm:$0x1] }
 0x285   : > { %6656 = vrot.lane.b32.xlu0 %v14256_v45, %s9332_s13  ;;  %14259 = vst [vmem:[#allocation42_spill] sm:$0xff] %v11737_v7  ;;  %v14260_v52 = vcombine.low %v11374_v26, %v11386_v24  ;;  %v4788_v45 = vor.u32 %v4787_v17, %v4784_v4  ;;  %14261 = vst [vmem:[#allocation43_spill] sm:$0xff] %v11747_v36  ;;  %v6071_v50 = vshrl.u32 %v11611_v6, 16  ;;  %v6074_v19 = vshll.u32 %v11611_v6, 16  ;;  %v5263_v26 = vld [vmem:[#allocation3 + $0x78] sm:$0xf] }
 0x286   : > { %14257 = vst [vmem:[#allocation40_spill] sm:$0xff] %v11731_v49  ;;  %14258 = vst [vmem:[#allocation41_spill] sm:$0xff] %v11733_v60  ;;  %v11752_v48 = vrot.slane %v5495_v22, 5  ;;  %v5501_v33 = vrot.slane %v5499_v27, 4  ;;  %v5488_v24 = vrot.slane %v5486_v21, 4  ;;  %v4798_v4 = vor.u32 %v4797_v15, %v11720_v41  ;;  %v9233_v27 = vld [vmem:[%s14078_s3] sm:$0xff]  }
 0x287   : > { %7614 = vrot.lane.b32.xlu1 %v14260_v52, %s9328_s9  ;;  %v5491_v52 = vrot.slane %v5489_v35, 5  ;;  %v14262_v17 = vrot.slane %v11706_v37, 5  ;;  %v5519_v59 = vshll.u32 %v5264_v58, 16  ;;  %v5523_v30 = vshrl.u32 %v5264_v58, 16  ;;  %v11773_v58 = vld [vmem:[#allocation3 + $0x24] sm:$0xf]  ;;  %9080 = vmatprep.subr.bf16.mxu1 %v9233_v27 }
 0x288   : > { %v11759_v54 = vrot.slane %v5936_v20, 5  ;;  %v14263_v6 = vshrl.u32 %v11424_v47, 16  ;;  %v5510_v21 = vshrl.u32 %v5263_v26, 16  ;;  %v5513_v35 = vshll.u32 %v5263_v26, 16  ;;  %v4033_v2 = vld [vmem:[#allocation3 + $0x90] sm:$0x1]  ;;  %9081 = vmatpush3.bf16.msra.mxu1 %v9233_v27 }
 0x289   : > { %6756 = vrot.lane.b32.xlu0 %v11430_v23, %s9328_s9  ;;  %v5179_v18 = vrot.slane %v14262_v17, 4  ;;  %v11770_v15 = vrot.slane %v4788_v45, 4  ;;  %v5180_v17 = vrot.slane %v11747_v36, 5  ;;  %v6073_v20 = vrot.slane %v6071_v50, 4  ;;  %v5286_v45 = vld [vmem:[#allocation3 + $0x80] sm:$0x1] }
 0x28a   : > { %v11763_v22 = vrot.slane %v14263_v6, 4  ;;  %v6076_v23 = vrot.slane %v6074_v19, 5  ;;  %v5502_v6 = vor.u32 %v5501_v33, %v11752_v48  ;;  %v5505_v26 = vshll.u32 %v11647_v56, 16  ;;  %v14264_v36 = vld [vmem:[#allocation12_spill] sm:$0xff]  ;;  %v4030_v50 = vld [vmem:[#allocation3 + $0x84] sm:$0x1] }
 0x28b   : > { %7690 = vrot.lane.b32.xlu1 %v11326_v25, %s9331_s12  ;;  %v5492_v25 = vor.u32 %v5491_v52, %v5488_v24  ;;  %v11780_v7 = vrot.slane %v4798_v4, 4  ;;  %v11784_v19 = vrot.slane %v5519_v59, 5  ;;  %v5525_v33 = vrot.slane %v5523_v30, 4  ;;  %v4088_v52 = vld [vmem:[#allocation3 + $0x98] sm:$0x1]  ;;  %v9234_v56 = vld [vmem:[%s14078_s3 + $0x8] sm:$0xff]  }
 0x28c   : > { %v11788_v1 = vsel %vm9446_vm10, %v5179_v18, %v5180_v17  ;;  %v6084_v4 = vshrl.u32 %v11613_v5, 16  ;;  %v5512_v59 = vrot.slane %v5510_v21, 4  ;;  %v5515_v27 = vrot.slane %v5513_v35, 5  ;;  %9082 = vmatprep.subr.bf16.mxu1 %v9234_v56  ;;  %v14267_v49 = vld [vmem:[#allocation9_spill] sm:$0xff]  ;;  %v4656_v21 = vld [vmem:[#allocation3 + $0x70] sm:$0xf] }
 0x28d   : > { %7484 = vrot.lane.b32.xlu0 %v11330_v61, %s9326_s30  ;;  %v6080_v30 = vshll.u32 %v11613_v5, 16  ;;  %v5503_v18 = vrot.slane %v5502_v6, 4  ;;  %v6077_v17 = vor.u32 %v6076_v23, %v6073_v20  ;;  %v14268_v44 = vcombine.low %v14267_v49, %v11424_v47  ;;  %9083 = vmatpush3.bf16.msra.mxu1 %v9234_v56  ;;  %v4655_v35 = vld [vmem:[#allocation3 + $0x6c] sm:$0xf] }
 0x28e   : > { %v5493_v14 = vrot.slane %v5492_v25, 4  ;;  %v5507_v43 = vrot.slane %v5505_v26, 5  ;;  %v4034_v5 = vsel %vm10923_vm7, 0, %v4033_v2  ;;  %v5526_v23 = vor.u32 %v5525_v33, %v11784_v19 }
 0x28f   : > { %6754 = vrot.lane.b32.xlu1 %v14266_v9, %s9328_s9  ;;  %v5529_v9 = vshll.u32 %v5286_v45, 16  ;;  %4035 = vst [vmem:[#allocation3 + $0x90] sm:$0x1] %v4034_v5  ;;  %v4031_v20 = vsel %vm10923_vm7, 0, %v4030_v50  ;;  %v4089_v60 = vsel %vm10943_vm11, 0, %v4088_v52  ;;  %v4086_v47 = vsel %vm10943_vm11, 0, %v4085_v0 }
 0x290   : > { %v5516_v49 = vor.u32 %v5515_v27, %v5512_v59  ;;  %v11816_v25 = vrot.slane %v6080_v30, 5  ;;  %v6086_v2 = vrot.slane %v6084_v4, 4  ;;  %4032 = vst [vmem:[#allocation3 + $0x84] sm:$0x1] %v4031_v20  ;;  %4090 = vst [vmem:[#allocation3 + $0x98] sm:$0x1] %v4089_v60  ;;  %v5508_v50 = vsel %vm9533_vm15, %v5503_v18, %v5507_v43 }
 0x291   : > { %7612 = vrot.lane.b32.xlu0 %v14268_v44, %s9328_s9  ;;  %v14270_v44 = vld [vmem:[#allocation8_spill] sm:$0xff]  ;;  %4087 = vst [vmem:[#allocation3 + $0x8c] sm:$0x1] %v4086_v47  ;;  %v11824_v0 = vrot.slane %v6077_v17, 4  ;;  %v4911_v33 = vshll.u32 %v4656_v21, 16  ;;  %v4915_v52 = vshrl.u32 %v4656_v21, 16  ;;  %v5498_v30 = vsel %vm9533_vm15, %v5493_v14, %v11752_v48 }
 0x292   : > { %v9235_v45 = vld [vmem:[%s14078_s3 + $0x10] sm:$0xff]   ;;  %v6090_v56 = vshll.u32 %v11630_v51, 16  ;;  %v4902_v4 = vshrl.u32 %v4655_v35, 16  ;;  %v5527_v43 = vrot.slane %v5526_v23, 4  ;;  %v5531_v18 = vrot.slane %v5529_v9, 5  ;;  %v14273_v20 = vld [vmem:[#allocation22_spill] sm:$0xff] }
 0x293   : > { %7482 = vrot.lane.b32.xlu1 %v14270_v44, %s9326_s30  ;;  %v14271_v59 = vld [vmem:[#allocation24_spill] sm:$0xff]  ;;  %9084 = vmatprep.subr.bf16.mxu1 %v9235_v45  ;;  %v4905_v17 = vshll.u32 %v4655_v35, 16  ;;  %v5517_v51 = vrot.slane %v5516_v49, 4  ;;  %v6087_v21 = vor.u32 %v6086_v2, %v11816_v25  ;;  %v6083_v14 = vsel %vm9533_vm15, %v11824_v0, %v11816_v25 }
 0x294   : > { %9085 = vmatpush3.bf16.msra.mxu1 %v9235_v45  ;;  %v11844_v9 = vrot.slane %v4911_v33, 5  ;;  %v4917_v48 = vrot.slane %v4915_v52, 4  ;;  %v6092_v49 = vrot.slane %v6090_v56, 5  ;;  %v4678_v45 = vld [vmem:[#allocation3 + $0x74] sm:$0x1]  ;;  %v4904_v2 = vrot.slane %v4902_v4, 4 }
 0x295   : > { %6832 = vrot.lane.b32.xlu0 %v11330_v61, %s9331_s12  ;;  %v9070_v5 = vpop.f32.mrb[4].mxu1  ;;  %v11836_v61 = vcombine.low %v5498_v30, %v5508_v50  ;;  %v5532_v60 = vsel %vm9533_vm15, %v5527_v43, %v5531_v18  ;;  %v4907_v25 = vrot.slane %v4905_v17, 5  ;;  %v5522_v52 = vsel %vm9533_vm15, %v5517_v51, %v11784_v19  ;;  %v14275_v43 = vld [vmem:[#allocation20_spill] sm:$0xff]  ;;  %v14277_v51 = vld [vmem:[#allocation17_spill] sm:$0xff] }
 0x296   : > { %v3916_v47 = vadd.f32 %v14273_v20, %v9070_v5  ;;  %v3907_v27 = vpop.f32.mrb[5].mxu1  ;;  %v6088_v56 = vrot.slane %v6087_v21, 4  ;;  %v11861_v18 = vcombine.low %v5522_v52, %v5532_v60  ;;  %v14278_v21 = vld [vmem:[#allocation14_spill] sm:$0xff]  ;;  %vm14381_vm3 = vcmask 64512  }
 0x297   : > { %6830 = vrot.lane.b32.xlu1 %v14270_v44, %s9331_s12  ;;  %14272 = vst [vmem:[#allocation12_spill] sm:$0xff] %v11836_v61  ;;  %v3908_v23 = vadd.f32 %v14273_v20, %v3907_v27  ;;  %v9071_v35 = vpop.f32.mrb[6].mxu1  ;;  %v14274_v44 = vld [vmem:[#allocation16_spill] sm:$0xff] }
 0x298   : > { %v3976_v50 = vmax.f32 %v3916_v47, 0.0  ;;  %v3919_v30 = vadd.f32 %v14273_v20, %v9071_v35  ;;  %v3910_v5 = vpop.f32.mrb[7].mxu1  ;;  %v4918_v47 = vor.u32 %v4917_v48, %v11844_v9  ;;  %v4921_v35 = vshll.u32 %v4678_v45, 16  ;;  %14276 = vst [vmem:[#allocation13_spill] sm:$0xff] %v11861_v18 }
 0x299   : > { %6578 = vrot.lane.b32.xlu0 %v14274_v44, %s9326_s30  ;;  %v3974_v0 = vmax.f32 %v3908_v23, 0.0  ;;  %v3911_v33 = vadd.f32 %v14273_v20, %v3910_v5  ;;  %v4908_v5 = vor.u32 %v4907_v25, %v4904_v2  ;;  %v6093_v48 = vsel %vm9533_vm15, %v6088_v56, %v6092_v49  ;;  %v4606_v49 = vld [vmem:[#allocation3 + $0x98] sm:$0x1] }
 0x29a   : > { %v8975_v4 = vpack.c.bf16 %v3976_v50, %v3976_v50  ;;  %v3977_v27 = vmax.f32 %v3919_v30, 0.0  ;;  %v14279_v50 = vcombine.low %v14277_v51, %v14278_v21  ;;  %v4919_v60 = vrot.slane %v4918_v47, 4  ;;  %v14281_v47 = vld [vmem:[#allocation15_spill] sm:$0xff] }
 0x29b   : > { %7498 = vrot.lane.b32.xlu1 %v11836_v61, %s9326_s30  ;;  %v8973_v44 = vpack.c.bf16 %v3974_v0, %v3974_v0  ;;  %v3975_v26 = vmax.f32 %v3911_v33, 0.0  ;;  %v4602_v33 = vld [vmem:[#allocation3 + $0x90] sm:$0xf]  ;;  %v4909_v51 = vrot.slane %v4908_v5, 4 }
 0x29c   : > { %v4390_v17 = vshrl.u32 %v8975_v4, 16  ;;  %v4393_v20 = vshll.u32 %v8975_v4, 16  ;;  %v8976_v23 = vpack.c.bf16 %v3977_v27, %v3977_v27 }
 0x29d   : > { %6576 = vrot.lane.b32.xlu0 %v14275_v43, %s9326_s30  ;;  %v4373_v24 = vshrl.u32 %v8973_v44, 16  ;;  %v4376_v61 = vshll.u32 %v8973_v44, 16  ;;  %v8974_v19 = vpack.c.bf16 %v3975_v26, %v3975_v26  ;;  %v4923_v26 = vrot.slane %v4921_v35, 5  ;;  %v4595_v44 = vld [vmem:[#allocation3 + $0x84] sm:$0xf] }
 0x29e   : > { %v4392_v45 = vrot.slane %v4390_v17, 7  ;;  %v4398_v30 = vshrl.u32 %v8976_v23, 16  ;;  %v4401_v0 = vshll.u32 %v8976_v23, 16  ;;  %v14280_v17 = vld [vmem:[#allocation19_spill] sm:$0xff] }
 0x29f   : > { %7774 = vrot.lane.b32.xlu1 %v14279_v50, %s9334_s23  ;;  %v4375_v52 = vrot.slane %v4373_v24, 7  ;;  %v4381_v4 = vshrl.u32 %v8974_v19, 16  ;;  %v4384_v27 = vshll.u32 %v8974_v19, 16  ;;  %v14282_v23 = vcombine.low %v14280_v17, %v14281_v47 }
 0x2a0   : > { %v4395_v2 = vor.u32 %v4393_v20, %v4392_v45  ;;  %v4396_v25 = vrot.slane %v4392_v45, 4  ;;  %v4400_v43 = vrot.slane %v4398_v30, 7  ;;  %v8872_v24 = vcombine.low %v6083_v14, %v6093_v48  ;;  %v4599_v20 = vld [vmem:[#allocation3 + $0x8c] sm:$0x1] }
 0x2a1   : > { %7500 = vrot.lane.b32.xlu0 %v11861_v18, %s9326_s30  ;;  %v4378_v21 = vor.u32 %v4376_v61, %v4375_v52  ;;  %v4379_v50 = vrot.slane %v4375_v52, 4  ;;  %v4383_v56 = vrot.slane %v4381_v4, 7  ;;  %v4924_v45 = vsel %vm9533_vm15, %v4919_v60, %v4923_v26 }
 0x2a2   : > { %v4603_v19 = vsel %vm11151_vm6, %v4395_v2, %v4602_v33  ;;  %v4403_v18 = vor.u32 %v4401_v0, %v4400_v43  ;;  %v4405_v35 = vrot.slane %v4400_v43, 4  ;;  %v14283_v14 = vor.u32 %v11763_v22, %v11759_v54 }
 0x2a3   : > { %6662 = vrot.lane.b32.xlu1 %v14282_v23, %s9332_s13  ;;  %4604 = vst [vmem:[#allocation3 + $0x90] sm:$0xf] %v4603_v19  ;;  %v4596_v61 = vsel %vm11151_vm6, %v4378_v21, %v4595_v44  ;;  %v4386_v5 = vor.u32 %v4384_v27, %v4383_v56  ;;  %v4388_v30 = vrot.slane %v4383_v56, 4  ;;  %v14284_v33 = vshrl.u32 %v11773_v58, 16  ;;  %v11894_v27 = vld [vmem:[#allocation3 + $0x44] sm:$0x1] }
 0x2a4   : > { %v5944_v48 = vrot.slane %v14283_v14, 4  ;;  %4597 = vst [vmem:[#allocation3 + $0x84] sm:$0xf] %v4596_v61  ;;  %v4404_v52 = vsel %vm9458_vm12, %v4396_v25, %v4403_v18  ;;  %v4607_v60 = vsel %vm10923_vm7, %v4405_v35, %v4606_v49  ;;  %v4914_v4 = vsel %vm9533_vm15, %v4909_v51, %v11844_v9  ;;  %v14287_v25 = vld [vmem:[#allocation21_spill] sm:$0xff]  ;;  %v14288_v44 = vld [vmem:[#allocation23_spill] sm:$0xff] }
 0x2a5   : > { %7704 = vrot.lane.b32.xlu0 %v8872_v24, %s9331_s12  ;;  %v4760_v0 = vrot.slane %v14284_v33, 4  ;;  %v14285_v26 = vshll.u32 %v11773_v58, 16  ;;  %4605 = vst.msk [vmem:[#allocation3 + $0x94] sm:$0xf] %vm14286_vm8, %v4404_v52  ;;  %4608 = vst [vmem:[#allocation3 + $0x98] sm:$0x1] %v4607_v60  ;;  %v4387_v2 = vsel %vm9458_vm12, %v4379_v50, %v4386_v5  ;;  %v4600_v18 = vsel %vm10923_vm7, %v4388_v30, %v4599_v20 }
 0x2a6   : > { %v14289_v43 = vcombine.low %v14287_v25, %v14288_v44  ;;  %v8758_v9 = vcombine.low %v4914_v4, %v4924_v45  ;;  %v6289_v51 = vld [vmem:[#allocation3 + $0x3c] sm:$0xe]  ;;  %v14290_v21 = vrot.slane %v11675_v38, 5  ;;  %v14291_v49 = vshll.u32 %v14271_v59, 16  ;;  %4598 = vst.msk [vmem:[#allocation3 + $0x88] sm:$0xf] %vm14293_vm9, %v4387_v2 }
 0x2a7   : > { %v4763_v22 = vrot.slane %v14285_v26, 5  ;;  %v14292_v17 = vshrl.u32 %v14271_v59, 16  ;;  %4601 = vst [vmem:[#allocation3 + $0x8c] sm:$0x1] %v4600_v18  ;;  %v14294_v47 = vshll.u32 %v11446_v10, 16  ;;  %v14295_v24 = vrot.slane %v11706_v37, 5 }
 0x2a8   : > { %7772 = vrot.lane.b32.xlu1 %v14289_v43, %s9334_s23  ;;  %v6375_v58 = vrot.slane %v14290_v21, 4  ;;  %v11911_v56 = vrot.slane %v14291_v49, 5  ;;  %v14296_v19 = vrot.slane %v11722_v55, 9  ;;  %v14297_v20 = vor.u32 %v14265_v40, %v14264_v36  ;;  %v11944_v52 = vld [vmem:[#allocation3 + $0x40] sm:$0xf] }
 0x2a9   : > { %v4773_v50 = vrot.slane %v14292_v17, 4  ;;  %v4803_v23 = vrot.slane %v14294_v47, 5  ;;  %v6008_v59 = vshll.u32 %v11565_v3, 16  ;;  %6592 = vrot.lane.b32.xlu0 %v8758_v9, %s9326_s30  ;;  %v4794_v10 = vsel %vm9533_vm15, %v11770_v15, %v11720_v41  ;;  %v5681_v60 = vld [vmem:[#allocation3 + $0x3c] sm:$0xe] }
 0x2aa   : > { %v11924_v35 = vsel %vm9446_vm10, %v14296_v19, %v14295_v24  ;;  %v5934_v45 = vrot.slane %v14297_v20, 4  ;;  %v14298_v61 = vshll.u32 %v11476_v12, 16  ;;  %v6376_v5 = vrot.slane %v11894_v27, 5  ;;  %v11976_v9 = vld [vmem:[#allocation3 + $0x50] sm:$0x1] }
 0x2ab   : > { %v5771_v30 = vrot.slane %v11596_v32, 5  ;;  %v4804_v40 = vsel %vm9533_vm15, %v11780_v7, %v4803_v23  ;;  %v8720_v14 = vrot.slane %v6289_v51, 9  ;;  %v4764_v33 = vor.u32 %v4763_v22, %v4760_v0  ;;  %v11955_v7 = vld [vmem:[#allocation3 + $0x44] sm:$0x1]  ;;  %v5682_v22 = vld [vmem:[#allocation3 + $0x48] sm:$0xe] }
 0x2ac   : > { %v5948_v55 = vrot.slane %v14298_v61, 5  ;;  %7518 = vrot.lane.b32.xlu1 %v11578_v53, %s9332_s13  ;;  %v11952_v41 = vsel %vm9446_vm10, %v6375_v58, %v6376_v5  ;;  %v4774_v15 = vor.u32 %v4773_v50, %v11911_v56  ;;  %v5778_v4 = vrot.slane %v11583_v57, 5  ;;  %v11986_v24 = vld [vmem:[#allocation3 + $0x60] sm:$0xf] }
 0x2ad   : > { %v5939_v0 = vsel %vm9533_vm15, %v5934_v45, %v11759_v54  ;;  %v4777_v26 = vshll.u32 %v11558_v46, 16  ;;  %v11962_v2 = vrot.slane %v6008_v59, 5  ;;  %7520 = vrot.lane.b32.xlu0 %v11580_v11, %s9332_s13  ;;  %v11968_v25 = vcombine.low %v4794_v10, %v4804_v40  ;;  %v11991_v59 = vld [vmem:[#allocation3 + $0x64] sm:$0xf] }
 0x2ae   : > { %v5949_v12 = vsel %vm9533_vm15, %v5944_v48, %v5948_v55  ;;  %v14299_v48 = vshrl.u32 %v11565_v3, 16  ;;  %v14300_v44 = vmov %v14290_v21  ;;  %v5773_v54 = vrot.slane %v5771_v30, 4  ;;  %v11993_v10 = vld [vmem:[#allocation3 + $0x44] sm:$0x1]  ;;  %v12127_v21 = vld [vmem:[#allocation3 + $0x58] sm:$0xf] }
 0x2af   : > { %v11974_v43 = vsel %vm9446_vm10, %v8720_v14, %v14300_v44  ;;  %v5170_v46 = vrot.slane %v11944_v52, 5  ;;  %v11979_v51 = vcombine.low %v5939_v0, %v5949_v12  ;;  %v4765_v58 = vrot.slane %v4764_v33, 4  ;;  %v5259_v14 = vld [vmem:[#allocation3 + $0x60] sm:$0xf]  ;;  %v12890_v31 = vld [vmem:[#allocation3 + $0x8c] sm:$0x1] }
 0x2b0   : > { %v6014_v18 = vrot.slane %v14299_v48, 4  ;;  %v8705_v49 = vrot.slane %v5681_v60, 9  ;;  %6914 = vrot.lane.b32.xlu1 %v11578_v53, %s9334_s23  ;;  %v4775_v17 = vrot.slane %v4774_v15, 4  ;;  %v5774_v50 = vrot.slane %v11955_v7, 5  ;;  %v11996_v53 = vpop.permute.xlu1 %7610 }
 0x2b1   : > { %v8706_v47 = vrot.slane %v5682_v22, 9  ;;  %v5780_v23 = vrot.slane %v5778_v4, 4  ;;  %v4779_v19 = vrot.slane %v4777_v26, 5  ;;  %v5781_v45 = vrot.slane %v11976_v9, 5  ;;  %14301 = vst [vmem:[#allocation9_spill] sm:$0xff] %v11996_v53  ;;  %6916 = vrot.lane.b32.xlu0 %v11580_v11, %s9334_s23 }
 0x2b2   : > { %v5772_v20 = vsel %vm9446_vm10, %v8705_v49, %v5771_v30  ;;  %v6015_v61 = vor.u32 %v6014_v18, %v11962_v2  ;;  %v5775_v55 = vsel %vm9446_vm10, %v5773_v54, %v5774_v50  ;;  %v5172_v30 = vrot.slane %v5170_v46, 4  ;;  %v5074_v11 = vld [vmem:[#allocation3 + $0x3c] sm:$0xe]  ;;  %v12036_v49 = vld [vmem:[#allocation3 + $0x64] sm:$0xf] }
 0x2b3   : > { %v5779_v5 = vsel %vm9446_vm10, %v8706_v47, %v5778_v4  ;;  %v6005_v40 = vor.u32 %v11574_v62, %v11570_v8  ;;  %v4770_v33 = vsel %vm9533_vm15, %v4765_v58, %v11911_v56  ;;  %v6047_v12 = vshrl.u32 %v11986_v24, 16 }
 0x2b4   : > { %v6050_v15 = vshll.u32 %v11986_v24, 16  ;;  %v6018_v60 = vshll.u32 %v11680_v28, 16  ;;  %v14302_v4 = vcombine.low %v11512_v34, %v11565_v3  ;;  %v4780_v8 = vsel %vm9533_vm15, %v4775_v17, %v4779_v19  ;;  %v14304_v34 = vld [vmem:[#allocation25_spill] sm:$0xff]  ;;  %v14305_v3 = vld [vmem:[#allocation26_spill] sm:$0xff] }
 0x2b5   : > { %v5782_v62 = vsel %vm9446_vm10, %v5780_v23, %v5781_v45  ;;  %v5173_v0 = vrot.slane %v11993_v10, 5  ;;  %v12022_v26 = vcombine.low %v5772_v20, %v5775_v55  ;;  %v6016_v22 = vrot.slane %v6015_v61, 4  ;;  %v5257_v23 = vld [vmem:[#allocation3 + $0x54] sm:$0xf]  ;;  %v9238_v19 = vld [vmem:[%s14079_s4] sm:$0xff]   ;;  %v6751_v20 = vpop.permute.xlu1 %6750 }
 0x2b6   : > { %7618 = vrot.lane.b32.xlu1 %v14302_v4, %s9328_s9  ;;  %v5462_v48 = vshrl.u32 %v5259_v14, 16  ;;  %v12026_v28 = vcombine.low %v11698_v42, %v11615_v13  ;;  %v14306_v18 = vcombine.low %v14304_v34, %v14305_v3  ;;  %v8690_v44 = vrot.slane %v5074_v11, 9  ;;  %v14307_v45 = vld [vmem:[#allocation34_spill] sm:$0xff]  ;;  %9118 = vmatprep.subr.bf16.mxu0 %v9238_v19  ;;  %v14308_v11 = vld [vmem:[#allocation29_spill] sm:$0xff]  ;;  %v14312_v34 = vld [vmem:[#allocation27_spill] sm:$0xff] }
 0x2b7   : > { %v12034_v54 = vsel %vm9446_vm10, %v5172_v30, %v5173_v0  ;;  %v6006_v58 = vrot.slane %v6005_v40, 4  ;;  %v5465_v17 = vshll.u32 %v5259_v14, 16  ;;  %v12038_v50 = vcombine.low %v4770_v33, %v4780_v8  ;;  %9119 = vmatpush3.bf16.msra.mxu0 %v9238_v19  ;;  %v14309_v0 = vld [vmem:[#allocation18_spill] sm:$0xff]  ;;  %v14313_v3 = vld [vmem:[#allocation28_spill] sm:$0xff] }
 0x2b8   : > { %14303 = vst [vmem:[#allocation8_spill] sm:$0xff] %v12026_v28  ;;  %6660 = vrot.lane.b32.xlu0 %v14306_v18, %s9332_s13  ;;  %v12040_v47 = vcombine.low %v5779_v5, %v5782_v62  ;;  %v12042_v13 = vrot.slane %v6047_v12, 4  ;;  %v6020_v42 = vrot.slane %v6018_v60, 5  ;;  %v12049_v61 = vrot.slane %v6050_v15, 5  ;;  %v9240_v62 = vld [vmem:[%s14079_s4 + $0x8] sm:$0xff]  }
 0x2b9   : > { %v12055_v5 = vsel %vm9446_vm10, %v8690_v44, %v5170_v46  ;;  %v5423_v30 = vshll.u32 %v11583_v57, 16  ;;  %v12062_v12 = vrot.slane %v5462_v48, 4  ;;  %v5399_v15 = vshll.u32 %v11596_v32, 16  ;;  %v14314_v18 = vld [vmem:[#allocation31_spill] sm:$0xff]  ;;  %v14315_v44 = vld [vmem:[#allocation32_spill] sm:$0xff]  ;;  %9120 = vmatprep.subr.bf16.mxu0 %v9240_v62 }
 0x2ba   : > { %7694 = vrot.lane.b32.xlu1 %v14307_v45, %s9331_s12  ;;  %v6021_v33 = vsel %vm9533_vm15, %v6016_v22, %v6020_v42  ;;  %v6011_v46 = vsel %vm9533_vm15, %v6006_v58, %v11962_v2  ;;  %v12070_v60 = vrot.slane %v5465_v17, 5  ;;  %v5438_v8 = vshrl.u32 %v5257_v23, 16  ;;  %v4649_v17 = vld [vmem:[#allocation3 + $0x48] sm:$0xf]  ;;  %v12091_v45 = vld [vmem:[#allocation3 + $0x58] sm:$0xf] }
 0x2bb   : > { %v12078_v22 = vsel %vm3630_vm4, %v14309_v0, %v6751_v20  ;;  %v12081_v48 = vcombine.low %v5259_v14, %v12036_v49  ;;  %v5420_v2 = vor.u32 %v14313_v3, %v14312_v34  ;;  %v5396_v58 = vor.u32 %v14315_v44, %v14314_v18  ;;  %v14316_v42 = vld [vmem:[#allocation30_spill] sm:$0xff]  ;;  %9121 = vmatpush3.bf16.msra.mxu0 %v9240_v62 }
 0x2bc   : > { %6760 = vrot.lane.b32.xlu0 %v14308_v11, %s9328_s9  ;;  %14310 = vst [vmem:[#allocation24_spill] sm:$0xff] %v12078_v22  ;;  %v12089_v19 = vcombine.low %v6011_v46, %v6021_v33  ;;  %v5441_v4 = vshll.u32 %v5257_v23, 16  ;;  %v12093_v20 = vrot.slane %v5423_v30, 5  ;;  %v14317_v14 = vshrl.u32 %v11583_v57, 16  ;;  %v12103_v33 = vld [vmem:[#allocation3 + $0x54] sm:$0xf] }
 0x2bd   : > { %14311 = vst [vmem:[#allocation22_spill] sm:$0xff] %v12081_v48  ;;  %v5433_v34 = vshll.u32 %v11976_v9, 16  ;;  %v12098_v3 = vrot.slane %v5399_v15, 5  ;;  %v14318_v18 = vshrl.u32 %v11596_v32, 16  ;;  %v5409_v56 = vshll.u32 %v11955_v7, 16  ;;  %v14319_v46 = vld [vmem:[#allocation40_spill] sm:$0xff] }
 0x2be   : > { %6758 = vrot.lane.b32.xlu1 %v14316_v42, %s9328_s9  ;;  %v5429_v0 = vrot.slane %v14317_v14, 4  ;;  %v12107_v30 = vrot.slane %v5438_v8, 4  ;;  %v4830_v40 = vshrl.u32 %v4649_v17, 16  ;;  %v4833_v57 = vshll.u32 %v4649_v17, 16  ;;  %v9242_v9 = vld [vmem:[%s14079_s4 + $0x10] sm:$0xff]   ;;  %v14320_v8 = vld [vmem:[#allocation41_spill] sm:$0xff] }
 0x2bf   : > { %v5405_v44 = vrot.slane %v14318_v18, 4  ;;  %v4839_v14 = vshll.u32 %v11706_v37, 16  ;;  %v12114_v15 = vrot.slane %v5420_v2, 4  ;;  %v12116_v7 = vrot.slane %v5396_v58, 4  ;;  %v4039_v2 = vld [vmem:[#allocation3 + $0xa8] sm:$0x1]  ;;  %9122 = vmatprep.subr.bf16.mxu0 %v9242_v9 }
 0x2c0   : > { %7488 = vrot.lane.b32.xlu0 %v14319_v46, %s9326_s30  ;;  %v4843_v18 = vshrl.u32 %v11706_v37, 16  ;;  %v12121_v55 = vrot.slane %v5441_v4, 5  ;;  %v12124_v17 = vcombine.low %v5257_v23, %v12091_v45  ;;  %v5430_v62 = vor.u32 %v5429_v0, %v12093_v20  ;;  %v12136_v11 = vld [vmem:[#allocation3 + $0x64] sm:$0xf]  ;;  %9123 = vmatpush3.bf16.msra.mxu0 %v9242_v9 }
 0x2c1   : > { %v6023_v32 = vshrl.u32 %v12103_v33, 16  ;;  %v12130_v58 = vrot.slane %v5433_v34, 5  ;;  %v5406_v37 = vor.u32 %v5405_v44, %v12098_v3  ;;  %v12133_v36 = vrot.slane %v5409_v56, 5  ;;  %v14322_v23 = vld [vmem:[#allocation33_spill] sm:$0xff]  ;;  %v4036_v34 = vld [vmem:[#allocation3 + $0x9c] sm:$0x1] }
 0x2c2   : > { %7486 = vrot.lane.b32.xlu1 %v14320_v8, %s9326_s30  ;;  %14321 = vst [vmem:[#allocation16_spill] sm:$0xff] %v12124_v17  ;;  %v6394_v4 = vrot.slane %v11991_v59, 5  ;;  %v14323_v0 = vcombine.low %v14322_v23, %v11675_v38  ;;  %v4832_v28 = vrot.slane %v4830_v40, 4  ;;  %v4835_v22 = vrot.slane %v4833_v57, 5  ;;  %v4094_v40 = vld [vmem:[#allocation3 + $0xb0] sm:$0x1] }
 0x2c3   : > { %v12143_v53 = vrot.slane %v4839_v14, 5  ;;  %v5426_v56 = vsel %vm9533_vm15, %v12114_v15, %v12093_v20  ;;  %v5402_v44 = vsel %vm9533_vm15, %v12116_v7, %v12098_v3  ;;  %v4845_v23 = vrot.slane %v4843_v18, 4  ;;  %v4091_v57 = vld [vmem:[#allocation3 + $0xa4] sm:$0x1]  ;;  %v12162_v15 = vld [vmem:[#allocation3 + $0x68] sm:$0x1] }
 0x2c4   : > { %7616 = vrot.lane.b32.xlu0 %v14323_v0, %s9328_s9  ;;  %v4040_v0 = vsel %vm10923_vm7, 0, %v4039_v2  ;;  %v5431_v14 = vrot.slane %v5430_v62, 4  ;;  %v12157_v9 = vrot.slane %v6023_v32, 4  ;;  %v5407_v3 = vrot.slane %v5406_v37, 4  ;;  %v6292_v7 = vld [vmem:[#allocation3 + $0x60] sm:$0xe] }
 0x2c5   : > { %4041 = vst [vmem:[#allocation3 + $0xa8] sm:$0x1] %v4040_v0  ;;  %v6396_v18 = vrot.slane %v6394_v4, 4  ;;  %v5191_v2 = vrot.slane %v12136_v11, 5  ;;  %v4037_v17 = vsel %vm10923_vm7, 0, %v4036_v34  ;;  %v4836_v32 = vor.u32 %v4835_v22, %v4832_v28  ;;  %v14326_v62 = vld [vmem:[#allocation38_spill] sm:$0xff] }
 0x2c6   : > { %6834 = vrot.lane.b32.xlu1 %v14320_v8, %s9331_s12  ;;  %14324 = vst [vmem:[#allocation20_spill] sm:$0xff] %v12157_v9  ;;  %v14325_v8 = vld [vmem:[#allocation36_spill] sm:$0xff]  ;;  %4038 = vst [vmem:[#allocation3 + $0x9c] sm:$0x1] %v4037_v17  ;;  %v4095_v20 = vsel %vm10943_vm11, 0, %v4094_v40  ;;  %v4092_v37 = vsel %vm10943_vm11, 0, %v4091_v57  ;;  %v4846_v9 = vor.u32 %v4845_v23, %v12143_v53  ;;  %v5436_v40 = vsel %vm9533_vm15, %v5431_v14, %v12130_v58 }
 0x2c7   : > { %v5981_v42 = vor.u32 %v14326_v62, %v14325_v8  ;;  %v6397_v0 = vrot.slane %v12162_v15, 5  ;;  %4096 = vst [vmem:[#allocation3 + $0xb0] sm:$0x1] %v4095_v20  ;;  %4093 = vst [vmem:[#allocation3 + $0xa4] sm:$0x1] %v4092_v37  ;;  %v14327_v22 = vld [vmem:[#allocation42_spill] sm:$0xff] }
 0x2c8   : > { %6836 = vrot.lane.b32.xlu0 %v14319_v46, %s9331_s12  ;;  %v14328_v46 = vld [vmem:[#allocation39_spill] sm:$0xff]  ;;  %v8723_v57 = vrot.slane %v6292_v7, 9  ;;  %v12188_v8 = vld [vmem:[#allocation3 + $0x68] sm:$0x1]  ;;  %v5077_v23 = vld [vmem:[#allocation3 + $0x60] sm:$0xe] }
 0x2c9   : > { %v14329_v17 = vcombine.low %v14327_v22, %v14328_v46  ;;  %v12192_v34 = vld [vmem:[#allocation3 + $0x1c] sm:$0xf]  ;;  %v12194_v20 = vld [vmem:[#allocation3 + $0x18] sm:$0xf]  ;;  %v5412_v22 = vsel %vm9533_vm15, %v5407_v3, %v12133_v36  ;;  %v12203_v58 = vsel %vm9446_vm10, %v6396_v18, %v6397_v0  ;;  %v14333_v14 = vld [vmem:[#allocation43_spill] sm:$0xff]  ;;  %v5193_v46 = vrot.slane %v5191_v2, 4 }
 0x2ca   : > { %14330 = vst [vmem:[#allocation17_spill] sm:$0xff] %v12192_v34  ;;  %14331 = vst [vmem:[#allocation14_spill] sm:$0xff] %v12194_v20  ;;  %v4849_v7 = vshll.u32 %v14333_v14, 16  ;;  %v4837_v62 = vrot.slane %v4836_v32, 4  ;;  %v12212_v37 = vld [vmem:[#allocation3 + $0x10] sm:$0xf]  ;;  %v14338_v32 = vcombine.low %v11924_v35, %v11788_v1  ;;  %v12230_v20 = vcombine.low %v5426_v56, %v5436_v40 }
 0x2cb   : > { %7778 = vrot.lane.b32.xlu1 %v14329_v17, %s9334_s23  ;;  %14332 = vst [vmem:[#allocation19_spill] sm:$0xff] %v12203_v58  ;;  %v12210_v17 = vsel %vm9446_vm10, %v8723_v57, %v6394_v4  ;;  %14334 = vst [vmem:[#allocation15_spill] sm:$0xff] %v12212_v37  ;;  %v12214_v28 = vld [vmem:[#allocation3 + $0xc] sm:$0xf]  ;;  %v12218_v3 = vld [vmem:[#allocation3 + $0x34] sm:$0xf]  ;;  %v12232_v36 = vcombine.low %v5402_v44, %v5412_v22 }
 0x2cc   : > { %6582 = vrot.lane.b32.xlu0 %v11968_v25, %s9326_s30  ;;  %14335 = vst [vmem:[#allocation21_spill] sm:$0xff] %v12214_v28  ;;  %14336 = vst [vmem:[#allocation23_spill] sm:$0xff] %v12218_v3  ;;  %v4847_v14 = vrot.slane %v4846_v9, 4  ;;  %v8693_v34 = vrot.slane %v5077_v23, 9  ;;  %v5194_v25 = vrot.slane %v12188_v8, 5  ;;  %v5984_v4 = vshll.u32 %v11675_v38, 16 }
 0x2cd   : > { %v12224_v57 = vld [vmem:[#allocation3 + $0x54] sm:$0xe]  ;;  %v14339_v37 = vshll.u32 %v12103_v33, 16  ;;  %v4851_v23 = vrot.slane %v4849_v7, 5  ;;  %v5994_v35 = vshll.u32 %v11894_v27, 16  ;;  %v4842_v44 = vsel %vm9533_vm15, %v4837_v62, %v12143_v53  ;;  %v9074_v22 = vpop.f32.mrb[8].mxu1 }
 0x2ce   : > { %v12242_v3 = vsel %vm9446_vm10, %v8693_v34, %v5191_v2  ;;  %v12246_v1 = vsel %vm9446_vm10, %v5193_v46, %v5194_v25  ;;  %v4647_v56 = vld [vmem:[#allocation3 + $0x3c] sm:$0xf]  ;;  %v12254_v40 = vrot.slane %v5981_v42, 4  ;;  %v12261_v27 = vrot.slane %v5984_v4, 5  ;;  %v3923_v42 = vpop.f32.mrb[9].mxu1 }
 0x2cf   : > { %6666 = vrot.lane.b32.xlu1 %v14338_v32, %s9332_s13  ;;  %v12236_v0 = vrot.slane %v14339_v37, 5  ;;  %14341 = vst [vmem:[#allocation26_spill] sm:$0xff] %v12242_v3  ;;  %14342 = vst [vmem:[#allocation34_spill] sm:$0xff] %v12246_v1  ;;  %v14343_v37 = vshrl.u32 %v11675_v38, 16  ;;  %v4852_v7 = vsel %vm9533_vm15, %v4847_v14, %v4851_v23  ;;  %v14137_v46 = vrot.slane %v12127_v21, 5  ;;  %v9075_v32 = vpop.f32.mrb[10].mxu1 }
 0x2d0   : > { %7692 = vrot.lane.b32.xlu0 %v11979_v51, %s9331_s12  ;;  %v12267_v51 = vld [vmem:[%s14077_s2] ss:$0 sm:$0xff]  ;;  %v14345_v38 = vcombine.low %v11974_v43, %v11952_v41  ;;  %v4806_v14 = vshrl.u32 %v4647_v56, 16  ;;  %v4809_v25 = vshll.u32 %v4647_v56, 16  ;;  %v12277_v23 = vrot.slane %v5994_v35, 5  ;;  %v3926_v34 = vpop.f32.mrb[11].mxu1 }
 0x2d1   : > { %14340 = vst [vmem:[#allocation25_spill] sm:$0xff] %v12236_v0  ;;  %v5990_v2 = vrot.slane %v14343_v37, 4  ;;  %14344 = vst [vmem:[#allocation18_spill] sm:$0xff] %v12267_v51  ;;  %v3932_v53 = vadd.f32 %v12267_v51, %v9074_v22  ;;  %v3924_v4 = vadd.f32 %v12267_v51, %v3923_v42  ;;  %v4815_v37 = vshll.u32 %v11944_v52, 16 }
 0x2d2   : > { %v3935_v22 = vadd.f32 %v12267_v51, %v9075_v32  ;;  %v12283_v41 = vcombine.low %v4842_v44, %v4852_v7  ;;  %v4819_v43 = vshrl.u32 %v11944_v52, 16  ;;  %v3927_v56 = vadd.f32 %v12267_v51, %v3926_v34  ;;  %v12292_v32 = vld [vmem:[#allocation3 + $0x5c] sm:$0x1] }
 0x2d3   : > { %7776 = vrot.lane.b32.xlu1 %v14345_v38, %s9334_s23  ;;  %v3980_v9 = vmax.f32 %v3932_v53, 0.0  ;;  %v3978_v38 = vmax.f32 %v3924_v4, 0.0  ;;  %v5991_v42 = vor.u32 %v5990_v2, %v12261_v27  ;;  %v6389_v35 = vrot.slane %v14137_v46, 4  ;;  %14347 = vst [vmem:[#allocation28_spill] sm:$0xff] %v12292_v32 }
 0x2d4   : > { %6580 = vrot.lane.b32.xlu0 %v12038_v50, %s9326_s30  ;;  %14346 = vst [vmem:[#allocation27_spill] sm:$0xff] %v12283_v41  ;;  %v3981_v53 = vmax.f32 %v3935_v22, 0.0  ;;  %v4808_v50 = vrot.slane %v4806_v14, 4  ;;  %v4811_v44 = vrot.slane %v4809_v25, 5  ;;  %v3979_v18 = vmax.f32 %v3927_v56, 0.0 }
 0x2d5   : > { %v8979_v62 = vpack.c.bf16 %v3980_v9, %v3980_v9  ;;  %v8977_v7 = vpack.c.bf16 %v3978_v38, %v3978_v38  ;;  %v12294_v52 = vrot.slane %v4815_v37, 5  ;;  %v4821_v2 = vrot.slane %v4819_v43, 4  ;;  %v4616_v37 = vld [vmem:[#allocation3 + $0xa8] sm:$0xf]  ;;  %v4609_v43 = vld [vmem:[#allocation3 + $0x9c] sm:$0xf] }
 0x2d6   : > { %v8980_v28 = vpack.c.bf16 %v3981_v53, %v3981_v53  ;;  %v8978_v46 = vpack.c.bf16 %v3979_v18, %v3979_v18  ;;  %v6390_v51 = vrot.slane %v12292_v32, 5  ;;  %v5992_v25 = vrot.slane %v5991_v42, 4 }
 0x2d7   : > { %7522 = vrot.lane.b32.xlu1 %v12022_v26, %s9332_s13  ;;  %v4424_v4 = vshrl.u32 %v8979_v62, 16  ;;  %v4427_v34 = vshll.u32 %v8979_v62, 16  ;;  %v4407_v9 = vshrl.u32 %v8977_v7, 16  ;;  %v4410_v22 = vshll.u32 %v8977_v7, 16 }
 0x2d8   : > { %7524 = vrot.lane.b32.xlu0 %v12040_v47, %s9332_s13  ;;  %v4432_v3 = vshrl.u32 %v8980_v28, 16  ;;  %v4435_v14 = vshll.u32 %v8980_v28, 16  ;;  %v4415_v62 = vshrl.u32 %v8978_v46, 16  ;;  %v4418_v56 = vshll.u32 %v8978_v46, 16 }
 0x2d9   : > { %v4426_v1 = vrot.slane %v4424_v4, 7  ;;  %v4409_v38 = vrot.slane %v4407_v9, 7  ;;  %v4812_v53 = vor.u32 %v4811_v44, %v4808_v50  ;;  %v4822_v18 = vor.u32 %v4821_v2, %v12294_v52  ;;  %v4620_v4 = vld [vmem:[#allocation3 + $0xb0] sm:$0x1]  ;;  %v4613_v44 = vld [vmem:[#allocation3 + $0xa4] sm:$0x1] }
 0x2da   : > { %v4434_v58 = vrot.slane %v4432_v3, 7  ;;  %v4417_v32 = vrot.slane %v4415_v62, 7  ;;  %v6056_v3 = vshll.u32 %v11991_v59, 16  ;;  %v5792_v62 = vrot.slane %v12036_v49, 5 }
 0x2db   : > { %6918 = vrot.lane.b32.xlu1 %v12022_v26, %s9334_s23  ;;  %v4429_v41 = vor.u32 %v4427_v34, %v4426_v1  ;;  %v4430_v0 = vrot.slane %v4426_v1, 4  ;;  %v4412_v7 = vor.u32 %v4410_v22, %v4409_v38  ;;  %v4413_v28 = vrot.slane %v4409_v38, 4  ;;  %v12307_v1 = vpop.permute.xlu1 %7770  ;;  %v5684_v38 = vld [vmem:[#allocation3 + $0x60] sm:$0xe] }
 0x2dc   : > { %6920 = vrot.lane.b32.xlu0 %v12040_v47, %s9334_s23  ;;  %v5785_v26 = vrot.slane %v12091_v45, 5  ;;  %v4437_v46 = vor.u32 %v4435_v14, %v4434_v58  ;;  %v4439_v50 = vrot.slane %v4434_v58, 4  ;;  %v14348_v47 = vcombine.low %v11986_v24, %v11991_v59 }
 0x2dd   : > { %v4617_v42 = vsel %vm11151_vm6, %v4429_v41, %v4616_v37  ;;  %v4610_v34 = vsel %vm11151_vm6, %v4412_v7, %v4609_v43  ;;  %v4420_v2 = vor.u32 %v4418_v56, %v4417_v32  ;;  %v4422_v9 = vrot.slane %v4417_v32, 4 }
 0x2de   : > { %4618 = vst [vmem:[#allocation3 + $0xa8] sm:$0xf] %v4617_v42  ;;  %v5997_v58 = vsel %vm9533_vm15, %v5992_v25, %v12277_v23  ;;  %v12321_v41 = vsel %vm9446_vm10, %v6389_v35, %v6390_v51  ;;  %4611 = vst [vmem:[#allocation3 + $0x9c] sm:$0xf] %v4610_v34  ;;  %v4438_v24 = vsel %vm9458_vm12, %v4430_v0, %v4437_v46  ;;  %v4813_v32 = vrot.slane %v4812_v53, 4 }
 0x2df   : > { %7622 = vrot.lane.b32.xlu1 %v14348_v47, %s9328_s9  ;;  %v4621_v22 = vsel %vm10923_vm7, %v4439_v50, %v4620_v4  ;;  %v14349_v14 = vcombine.low %v12055_v5, %v12034_v54  ;;  %v4825_v37 = vshll.u32 %v11993_v10, 16  ;;  %v5683_v23 = vld [vmem:[#allocation3 + $0x54] sm:$0xe]  ;;  %4619 = vst.msk [vmem:[#allocation3 + $0xac] sm:$0xf] %vm14350_vm2, %v4438_v24  ;;  %v4421_v51 = vsel %vm9458_vm12, %v4413_v28, %v4420_v2  ;;  %v12367_v50 = vpop.permute.xlu1 %6658  ;;  %v14356_v24 = vld [vmem:[#allocation16_spill] sm:$0xff]  ;;  %vm14417_vm2 = vmmov %vm14381_vm3 }
 0x2e0   : > { %4622 = vst [vmem:[#allocation3 + $0xb0] sm:$0x1] %v4621_v22  ;;  %v4614_v0 = vsel %vm10923_vm7, %v4422_v9, %v4613_v44  ;;  %v5987_v35 = vsel %vm9533_vm15, %v12254_v40, %v12261_v27  ;;  %v14351_v54 = vrot.slane %v12127_v21, 5  ;;  %v14352_v5 = vrot.slane %v12224_v57, 9  ;;  %v12349_v25 = vld [vmem:[#allocation3 + $0x5c] sm:$0x1] }
 0x2e1   : > { %6664 = vrot.lane.b32.xlu0 %v14349_v14, %s9332_s13  ;;  %v5447_v56 = vshll.u32 %v12091_v45, 16  ;;  %4612 = vst.msk [vmem:[#allocation3 + $0xa0] sm:$0xf] %vm14353_vm5, %v4421_v51  ;;  %4615 = vst [vmem:[#allocation3 + $0xa4] sm:$0x1] %v4614_v0  ;;  %v4823_v40 = vrot.slane %v4822_v18, 4  ;;  %v12360_v7 = vcombine.low %v5987_v35, %v5997_v58 }
 0x2e2   : > { %v12347_v10 = vsel %vm9446_vm10, %v14352_v5, %v14351_v54  ;;  %v5787_v27 = vrot.slane %v5785_v26, 4  ;;  %v12356_v57 = vrot.slane %v6056_v3, 5  ;;  %v14354_v53 = vshrl.u32 %v11991_v59, 16  ;;  %v12364_v42 = vld [vmem:[#allocation3 + $0x58] sm:$0xf] }
 0x2e3   : > { %7698 = vrot.lane.b32.xlu1 %v12089_v19, %s9331_s12  ;;  %v8886_v28 = vcombine.low %v12347_v10, %v12321_v41  ;;  %v8707_v4 = vrot.slane %v5683_v23, 9  ;;  %v5471_v46 = vshll.u32 %v12036_v49, 16  ;;  %v4818_v59 = vsel %vm9533_vm15, %v4813_v32, %v12294_v52  ;;  %v12377_v3 = vld [vmem:[#allocation3 + $0x68] sm:$0x1]  ;;  %v4653_v32 = vld [vmem:[#allocation3 + $0x60] sm:$0xf] }
 0x2e4   : > { %v6062_v43 = vrot.slane %v14354_v53, 4  ;;  %v4827_v19 = vrot.slane %v4825_v37, 5  ;;  %v5788_v18 = vrot.slane %v12349_v25, 5  ;;  %v8708_v44 = vrot.slane %v5684_v38, 9 }
 0x2e5   : > { %6764 = vrot.lane.b32.xlu0 %v12081_v48, %s9328_s9  ;;  %v5786_v47 = vsel %vm9446_vm10, %v8707_v4, %v5785_v26  ;;  %v5794_v34 = vrot.slane %v5792_v62, 4  ;;  %v12379_v2 = vrot.slane %v5447_v56, 5  ;;  %v14355_v9 = vshrl.u32 %v12091_v45, 16  ;;  %v12411_v4 = vpop.permute.xlu0 %6752 }
 0x2e6   : > { %v4828_v52 = vsel %vm9533_vm15, %v4823_v40, %v4827_v19  ;;  %v5789_v22 = vsel %vm9446_vm10, %v5787_v27, %v5788_v18  ;;  %v6063_v14 = vor.u32 %v6062_v43, %v12356_v57  ;;  %v5184_v26 = vrot.slane %v12364_v42, 5  ;;  %v12408_v40 = vld [vmem:[#allocation3 + $0x5c] sm:$0x1]  ;;  %v5076_v27 = vld [vmem:[#allocation3 + $0x54] sm:$0xe] }
 0x2e7   : > { %v5453_v58 = vrot.slane %v14355_v9, 4  ;;  %6762 = vrot.lane.b32.xlu1 %v14356_v24, %s9328_s9  ;;  %v12391_v37 = vrot.slane %v5471_v46, 5  ;;  %v14357_v23 = vshrl.u32 %v12036_v49, 16  ;;  %v4887_v51 = vshll.u32 %v12136_v11, 16 }
 0x2e8   : > { %v4891_v0 = vshrl.u32 %v12136_v11, 16  ;;  %v5793_v35 = vsel %vm9446_vm10, %v8708_v44, %v5792_v62  ;;  %v5795_v54 = vrot.slane %v12377_v3, 5  ;;  %v14358_v5 = vor.u32 %v12049_v61, %v12042_v13  ;;  %v12413_v62 = vpop.permute.xlu1 %7514 }
 0x2e9   : > { %v5477_v45 = vrot.slane %v14357_v23, 4  ;;  %7492 = vrot.lane.b32.xlu0 %v12230_v20, %s9326_s30  ;;  %v6066_v56 = vshll.u32 %v12162_v15, 16  ;;  %v12406_v49 = vcombine.low %v4818_v59, %v4828_v52  ;;  %v5454_v11 = vor.u32 %v5453_v58, %v12379_v2  ;;  %v4045_v59 = vld [vmem:[#allocation3 + $0xc0] sm:$0x1] }
 0x2ea   : > { %v6054_v38 = vrot.slane %v14358_v5, 4  ;;  %v4878_v53 = vshrl.u32 %v4653_v32, 16  ;;  %v4881_v43 = vshll.u32 %v4653_v32, 16  ;;  %v12417_v13 = vcombine.low %v5786_v47, %v5789_v22 }
 0x2eb   : > { %7490 = vrot.lane.b32.xlu1 %v12232_v36, %s9326_s30  ;;  %v5796_v61 = vsel %vm9446_vm10, %v5794_v34, %v5795_v54  ;;  %v6064_v15 = vrot.slane %v6063_v14, 4  ;;  %v5186_v46 = vrot.slane %v5184_v26, 4  ;;  %v5457_v19 = vshll.u32 %v12349_v25, 16  ;;  %v4042_v14 = vld [vmem:[#allocation3 + $0xb4] sm:$0x1] }
 0x2ec   : > { %v5478_v18 = vor.u32 %v5477_v45, %v12391_v37  ;;  %v12423_v44 = vrot.slane %v4887_v51, 5  ;;  %v4893_v9 = vrot.slane %v4891_v0, 4  ;;  %v14359_v58 = vcombine.low %v12103_v33, %v12127_v21  ;;  %v4100_v51 = vld [vmem:[#allocation3 + $0xc8] sm:$0x1]  ;;  %v12435_v0 = vpop.permute.xlu0 %7624 }
 0x2ed   : > { %v6068_v47 = vrot.slane %v6066_v56, 5  ;;  %v8692_v52 = vrot.slane %v5076_v27, 9  ;;  %v5187_v22 = vrot.slane %v12408_v40, 5  ;;  %v5481_v34 = vshll.u32 %v12377_v3, 16  ;;  %14360 = vst [vmem:[#allocation31_spill] sm:$0xff] %v12435_v0 }
 0x2ee   : > { %7620 = vrot.lane.b32.xlu0 %v14359_v58, %s9328_s9  ;;  %v5455_v32 = vrot.slane %v5454_v11, 4  ;;  %v4880_v23 = vrot.slane %v4878_v53, 4  ;;  %v4883_v25 = vrot.slane %v4881_v43, 5  ;;  %v4046_v45 = vsel %vm10923_vm7, 0, %v4045_v59 }
 0x2ef   : > { %6838 = vrot.lane.b32.xlu1 %v12232_v36, %s9331_s12  ;;  %v6059_v33 = vsel %vm9533_vm15, %v6054_v38, %v12356_v57  ;;  %v6069_v3 = vsel %vm9533_vm15, %v6064_v15, %v6068_v47  ;;  %v12444_v54 = vsel %vm9446_vm10, %v5186_v46, %v5187_v22  ;;  %v14361_v5 = vor.u32 %v12121_v55, %v12107_v30  ;;  %v12452_v57 = vpop.permute.xlu1 %6910  ;;  %v12464_v15 = vld [vmem:[#allocation3 + $0x78] sm:$0xf] }
 0x2f0   : > { %4047 = vst [vmem:[#allocation3 + $0xc0] sm:$0x1] %v4046_v45  ;;  %v5459_v27 = vrot.slane %v5457_v19, 5  ;;  %v5479_v36 = vrot.slane %v5478_v18, 4  ;;  %v4894_v11 = vor.u32 %v4893_v9, %v12423_v44  ;;  %v4043_v53 = vsel %vm10923_vm7, 0, %v4042_v14  ;;  %v14365_v47 = vld [vmem:[#allocation20_spill] sm:$0xff] }
 0x2f1   : > { %v5445_v56 = vrot.slane %v14361_v5, 4  ;;  %v12458_v38 = vsel %vm9446_vm10, %v8692_v52, %v5184_v26  ;;  %v14362_v55 = vor.u32 %v12070_v60, %v12062_v12  ;;  %v4897_v43 = vshll.u32 %v12188_v8, 16  ;;  %4044 = vst [vmem:[#allocation3 + $0xb4] sm:$0x1] %v4043_v53  ;;  %v14363_v12 = vld [vmem:[#allocation19_spill] sm:$0xff]  ;;  %v12475_v8 = vpop.permute.xlu0 %7516  ;;  %v14366_v52 = vld [vmem:[#allocation25_spill] sm:$0xff] }
 0x2f2   : > { %6840 = vrot.lane.b32.xlu0 %v12230_v20, %s9331_s12  ;;  %v4101_v46 = vsel %vm10943_vm11, 0, %v4100_v51  ;;  %v5460_v59 = vsel %vm9533_vm15, %v5455_v32, %v5459_v27  ;;  %v5483_v20 = vrot.slane %v5481_v34, 5  ;;  %v4884_v19 = vor.u32 %v4883_v25, %v4880_v23  ;;  %v14368_v25 = vld [vmem:[#allocation27_spill] sm:$0xff] }
 0x2f3   : > { %v5469_v30 = vrot.slane %v14362_v55, 4  ;;  %v6032_v26 = vshll.u32 %v12127_v21, 16  ;;  %4102 = vst [vmem:[#allocation3 + $0xc8] sm:$0x1] %v4101_v46  ;;  %v14364_v60 = vcombine.low %v12210_v17, %v14363_v12  ;;  %v12477_v18 = vcombine.low %v5793_v35, %v5796_v61  ;;  %v4651_v35 = vld [vmem:[#allocation3 + $0x54] sm:$0xf]  ;;  %v12491_v23 = vpop.permute.xlu1 %7784 }
 0x2f4   : > { %v12479_v9 = vcombine.low %v6059_v33, %v6069_v3  ;;  %v6029_v22 = vor.u32 %v14366_v52, %v14365_v47  ;;  %v5450_v34 = vsel %vm9533_vm15, %v5445_v56, %v12379_v2  ;;  %v5484_v17 = vsel %vm9533_vm15, %v5479_v36, %v5483_v20  ;;  %v4097_v61 = vld [vmem:[#allocation3 + $0xbc] sm:$0x1]  ;;  %14367 = vst [vmem:[#allocation32_spill] sm:$0xff] %v12491_v23  ;;  %v14371_v55 = vld [vmem:[#allocation26_spill] sm:$0xff] }
 0x2f5   : > { %7782 = vrot.lane.b32.xlu1 %v14364_v60, %s9334_s23  ;;  %v4895_v14 = vrot.slane %v4894_v11, 4  ;;  %v6095_v32 = vshrl.u32 %v12464_v15, 16  ;;  %v12495_v45 = vcombine.low %v5450_v34, %v5460_v59  ;;  %v5474_v51 = vsel %vm9533_vm15, %v5469_v30, %v12391_v37  ;;  %v12500_v33 = vld [vmem:[#allocation3 + $0x7c] sm:$0xf]  ;;  %v14372_v46 = vld [vmem:[#allocation34_spill] sm:$0xff]  ;;  %v12512_v20 = vpop.permute.xlu0 %6912 }
 0x2f6   : > { %6586 = vrot.lane.b32.xlu0 %v14368_v25, %s9326_s30  ;;  %v4899_v2 = vrot.slane %v4897_v43, 5  ;;  %v6098_v3 = vshll.u32 %v12464_v15, 16  ;;  %v4885_v5 = vrot.slane %v4884_v19, 4  ;;  %v12503_v56 = vrot.slane %v6032_v26, 5  ;;  %v14370_v11 = vld [vmem:[#allocation28_spill] sm:$0xff] }
 0x2f7   : > { %v14369_v27 = vshrl.u32 %v12127_v21, 16  ;;  %v6042_v53 = vshll.u32 %v14370_v11, 16  ;;  %v14373_v59 = vcombine.low %v14371_v55, %v14372_v46  ;;  %v12514_v37 = vcombine.low %v5474_v51, %v5484_v17  ;;  %v12525_v47 = vpop.permute.xlu1 %7530  ;;  %v12533_v34 = vld [vmem:[#allocation3 + $0x7c] sm:$0xf]  ;;  %v9293_v17 = vld [vmem:[#allocation3 + $0x78] sm:$0xf] }
 0x2f8   : > { %v12516_v30 = vrot.slane %v6029_v22, 4  ;;  %v4854_v43 = vshrl.u32 %v4651_v35, 16  ;;  %v4098_v19 = vsel %vm10943_vm11, 0, %v4097_v61  ;;  %v4900_v21 = vsel %vm9533_vm15, %v4895_v14, %v4899_v2  ;;  %14374 = vst [vmem:[#allocation40_spill] sm:$0xff] %v12525_v47  ;;  %v14376_v51 = vld [vmem:[#allocation18_spill] sm:$0xff] }
 0x2f9   : > { %v6038_v36 = vrot.slane %v14369_v27, 4  ;;  %6670 = vrot.lane.b32.xlu1 %v14373_v59, %s9332_s13  ;;  %v12522_v26 = vrot.slane %v6095_v32, 4  ;;  %v6108_v12 = vshrl.u32 %v12500_v33, 16  ;;  %v4857_v60 = vshll.u32 %v4651_v35, 16  ;;  %4099 = vst [vmem:[#allocation3 + $0xbc] sm:$0x1] %v4098_v19  ;;  %v12550_v27 = vpop.permute.xlu0 %6656 }
 0x2fa   : > { %7696 = vrot.lane.b32.xlu0 %v12360_v7, %s9331_s12  ;;  %v12529_v52 = vrot.slane %v6098_v3, 5  ;;  %v12536_v14 = vcombine.low %v9293_v17, %v12533_v34  ;;  %v4863_v32 = vshll.u32 %v12364_v42, 16  ;;  %v9078_v35 = vpop.f32.mrb[12].mxu1  ;;  %v4890_v61 = vsel %vm9533_vm15, %v4885_v5, %v12423_v44 }
 0x2fb   : > { %v6039_v7 = vor.u32 %v6038_v36, %v12503_v56  ;;  %v12543_v25 = vrot.slane %v6042_v53, 5  ;;  %v3948_v2 = vadd.f32 %v14376_v51, %v9078_v35  ;;  %v3939_v3 = vpop.f32.mrb[13].mxu1  ;;  %v12552_v11 = vcombine.low %v4890_v61, %v4900_v21  ;;  %v12565_v59 = vpop.permute.xlu1 %7614 }
 0x2fc   : > { %14375 = vst [vmem:[#allocation41_spill] sm:$0xff] %v12536_v14  ;;  %v12558_v5 = vrot.slane %v4854_v43, 4  ;;  %v3940_v36 = vadd.f32 %v14376_v51, %v3939_v3  ;;  %v9079_v53 = vpop.f32.mrb[14].mxu1  ;;  %v12561_v55 = vrot.slane %v4857_v60, 5  ;;  %v4867_v46 = vshrl.u32 %v12364_v42, 16 }
 0x2fd   : > { %7780 = vrot.lane.b32.xlu1 %v8886_v28, %s9334_s23  ;;  %v3984_v41 = vmax.f32 %v3948_v2, 0.0  ;;  %v3951_v10 = vadd.f32 %v14376_v51, %v9079_v53  ;;  %v3942_v28 = vpop.f32.mrb[15].mxu1  ;;  %v12569_v19 = vrot.slane %v4863_v32, 5  ;;  %v12573_v60 = vrot.slane %v6039_v7, 4  ;;  %v12579_v2 = vpop.permute.xlu0 %6756 }
 0x2fe   : > { %6584 = vrot.lane.b32.xlu0 %v12406_v49, %s9326_s30  ;;  %v3982_v21 = vmax.f32 %v3940_v36, 0.0  ;;  %v3943_v17 = vadd.f32 %v14376_v51, %v3942_v28  ;;  %v6101_v42 = vor.u32 %v12529_v52, %v12522_v26  ;;  %14377 = vst [vmem:[#allocation33_spill] sm:$0xff] %v12579_v2  ;;  %v12581_v49 = vld [vmem:[#allocation3 + $0x80] sm:$0x1]  ;;  %v6104_v32 = vshll.u32 %v12500_v33, 16 }
 0x2ff   : > { %v8983_v35 = vpack.c.bf16 %v3984_v41, %v3984_v41  ;;  %v3985_v61 = vmax.f32 %v3951_v10, 0.0  ;;  %v12584_v3 = vrot.slane %v6108_v12, 4  ;;  %v4869_v7 = vrot.slane %v4867_v46, 4  ;;  %v12586_v26 = vpop.permute.xlu1 %7690 }
 0x300   : > { %v8981_v36 = vpack.c.bf16 %v3982_v21, %v3982_v21  ;;  %v3983_v51 = vmax.f32 %v3943_v17, 0.0  ;;  %v4860_v52 = vor.u32 %v12561_v55, %v12558_v5  ;;  %v6114_v12 = vshll.u32 %v12581_v49, 16  ;;  %v4627_v24 = vld [vmem:[#allocation3 + $0xbc] sm:$0x1] }
 0x301   : > { %7526 = vrot.lane.b32.xlu1 %v12417_v13, %s9332_s13  ;;  %v4458_v53 = vshrl.u32 %v8983_v35, 16  ;;  %v4461_v28 = vshll.u32 %v8983_v35, 16  ;;  %v8984_v22 = vpack.c.bf16 %v3985_v61, %v3985_v61  ;;  %v12595_v46 = vpop.permute.xlu0 %7484  ;;  %v12597_v35 = vrot.slane %v6104_v32, 5  ;;  %v4630_v61 = vld [vmem:[#allocation3 + $0xc0] sm:$0xf] }
 0x302   : > { %7528 = vrot.lane.b32.xlu0 %v12477_v18, %s9332_s13  ;;  %v4441_v41 = vshrl.u32 %v8981_v36, 16  ;;  %v4444_v10 = vshll.u32 %v8981_v36, 16  ;;  %v8982_v44 = vpack.c.bf16 %v3983_v51, %v3983_v51  ;;  %v4870_v55 = vor.u32 %v4869_v7, %v12569_v19  ;;  %v12610_v7 = vld [vmem:[#allocation3 + $0x84] sm:$0xf] }
 0x303   : > { %v4460_v43 = vrot.slane %v4458_v53, 7  ;;  %v4466_v21 = vshrl.u32 %v8984_v22, 16  ;;  %v4469_v17 = vshll.u32 %v8984_v22, 16  ;;  %v4623_v53 = vld [vmem:[#allocation3 + $0xb4] sm:$0xf]  ;;  %v12600_v22 = vpop.permute.xlu1 %6754  ;;  %v12608_v47 = vrot.slane %v6101_v42, 4 }
 0x304   : > { %v4443_v58 = vrot.slane %v4441_v41, 7  ;;  %v4449_v23 = vshrl.u32 %v8982_v44, 16  ;;  %v4452_v5 = vshll.u32 %v8982_v44, 16  ;;  %v4634_v44 = vld [vmem:[#allocation3 + $0xc8] sm:$0x1]  ;;  %v14378_v16 = vcombine.low %v12458_v38, %v12444_v54 }
 0x305   : > { %6922 = vrot.lane.b32.xlu1 %v12417_v13, %s9334_s23  ;;  %v4463_v36 = vor.u32 %v4461_v28, %v4460_v43  ;;  %v4464_v51 = vrot.slane %v4460_v43, 4  ;;  %v4468_v0 = vrot.slane %v4466_v21, 7  ;;  %v6045_v13 = vsel %vm9533_vm15, %v12573_v60, %v12543_v25 }
 0x306   : > { %6924 = vrot.lane.b32.xlu0 %v12477_v18, %s9334_s23  ;;  %v4446_v32 = vor.u32 %v4444_v10, %v4443_v58  ;;  %v4447_v41 = vrot.slane %v4443_v58, 4  ;;  %v4451_v48 = vrot.slane %v4449_v23, 7  ;;  %v12616_v18 = vpop.permute.xlu0 %7612  ;;  %v12618_v25 = vrot.slane %v4860_v52, 4  ;;  %v12620_v58 = vld [vmem:[#allocation3 + $0x88] sm:$0xf] }
 0x307   : > { %v4631_v43 = vsel %vm11151_vm6, %v4463_v36, %v4630_v61  ;;  %v4471_v28 = vor.u32 %v4469_v17, %v4468_v0  ;;  %v4473_v21 = vrot.slane %v4468_v0, 4  ;;  %v12624_v10 = vrot.slane %v4870_v55, 4  ;;  %v7483_v17 = vpop.permute.xlu1 %7482  ;;  %v14380_v55 = vld [vmem:[#allocation6_spill] sm:$0xff] }
 0x308   : > { %4632 = vst [vmem:[#allocation3 + $0xc0] sm:$0xf] %v4631_v43  ;;  %v4624_v23 = vsel %vm11151_vm6, %v4446_v32, %v4623_v53  ;;  %v4454_v60 = vor.u32 %v4452_v5, %v4451_v48  ;;  %v4456_v42 = vrot.slane %v4451_v48, 4  ;;  %v6111_v0 = vor.u32 %v12584_v3, %v12597_v35  ;;  %vm14379_vm6 = vmmov %vm14238_vm1 }
 0x309   : > { %7702 = vrot.lane.b32.xlu1 %v12479_v9, %s9331_s12  ;;  %4625 = vst [vmem:[#allocation3 + $0xb4] sm:$0xf] %v4624_v23  ;;  %v4472_v9 = vsel %vm9458_vm12, %v4464_v51, %v4471_v28  ;;  %v4635_v52 = vsel %vm10923_vm7, %v4473_v21, %v4634_v44  ;;  %v5534_v48 = vshrl.u32 %v12610_v7, 16  ;;  %v5537_v61 = vshll.u32 %v12610_v7, 16  ;;  %v9294_v44 = vld [vmem:[#allocation3 + $0x70] sm:$0xf] }
 0x30a   : > { %6668 = vrot.lane.b32.xlu0 %v14378_v16, %s9332_s13  ;;  %4633 = vst.msk [vmem:[#allocation3 + $0xc4] sm:$0xf] %vm14379_vm6, %v4472_v9  ;;  %4636 = vst [vmem:[#allocation3 + $0xc8] sm:$0x1] %v4635_v52  ;;  %v4455_v3 = vsel %vm9458_vm12, %v4447_v41, %v4454_v60  ;;  %v4628_v5 = vsel %vm10923_vm7, %v4456_v42, %v4627_v24  ;;  %v7804_v36 = vsel %vm14381_vm3, %v14380_v55, %v7483_v17  ;;  %vm14383_vm8 = vcmask 130048   ;;  %v12654_v24 = vpop.permute.xlu0 %6832  ;;  %v14385_v28 = vld [vmem:[#allocation9_spill] sm:$0xff] }
 0x30b   : > { %v14382_v51 = vshll.u32 %v12408_v40, 16  ;;  %v5543_v38 = vshll.u32 %v12620_v58, 16  ;;  %v5547_v53 = vshrl.u32 %v12620_v58, 16  ;;  %4626 = vst.msk [vmem:[#allocation3 + $0xb8] sm:$0xf] %vm14238_vm1, %v4455_v3  ;;  %v7851_v39 = vsel %vm14383_vm8, %v7804_v36, %v12413_v62  ;;  %v14386_v9 = vld [vmem:[#allocation24_spill] sm:$0xff]  ;;  %vm14392_vm12 = vmmov %vm14381_vm3 }
 0x30c   : > { %4629 = vst [vmem:[#allocation3 + $0xbc] sm:$0x1] %v4628_v5  ;;  %v14384_v40 = vsel %vm9533_vm15, %v12516_v30, %v12503_v56  ;;  %v12663_v41 = vrot.slane %v6114_v12, 5  ;;  %v5198_v43 = vrot.slane %v9294_v44, 5  ;;  %v7883_v21 = vsel %vm3630_vm4, %v7851_v39, %v14385_v28  ;;  %v5078_v30 = vld [vmem:[#allocation3 + $0x6c] sm:$0xe]  ;;  %v6831_v12 = vpop.permute.xlu1 %6830  ;;  %vm14393_vm9 = vmmov %vm14383_vm8 }
 0x30d   : > { %v4875_v54 = vrot.slane %v14382_v51, 5  ;;  %7494 = vrot.lane.b32.xlu1 %v12495_v45, %s9326_s30  ;;  %v12661_v32 = vcombine.low %v14384_v40, %v6045_v13  ;;  %v4866_v62 = vsel %vm9533_vm15, %v12618_v25, %v12569_v19  ;;  %v12675_v56 = vrot.slane %v6111_v0, 4  ;;  %v12684_v19 = vld [vmem:[#allocation3 + $0x78] sm:$0xe]  ;;  %v12690_v17 = vld [vmem:[#allocation3 + $0x84] sm:$0xe]  ;;  %vm14419_vm5 = vmmov %vm14383_vm8 }
 0x30e   : > { %7496 = vrot.lane.b32.xlu0 %v12514_v37, %s9326_s30  ;;  %v7915_v13 = vsel %vm3696_vm14, %v7883_v21, %v12586_v26  ;;  %v5536_v25 = vrot.slane %v5534_v48, 4  ;;  %v5539_v42 = vrot.slane %v5537_v61, 5  ;;  %v7055_v0 = vsel %vm3696_vm14, %v14386_v9, %v6831_v12  ;;  %v12692_v16 = vld [vmem:[#allocation3 + $0x84] sm:$0xf]  ;;  %v12701_v48 = vpop.permute.xlu0 %6578  ;;  %v12704_v55 = vld [vmem:[#allocation3 + $0x8c] sm:$0x1]  ;;  %vm14421_vm6 = vmmov %vm14417_vm2 }
 0x30f   : > { %v4876_v60 = vsel %vm9533_vm15, %v12624_v10, %v4875_v54  ;;  %v7947_v52 = vsel %vm7086_vm13, %v7915_v13, %v12307_v1  ;;  %v12694_v3 = vrot.slane %v5543_v38, 5  ;;  %v5549_v26 = vrot.slane %v5547_v53, 4  ;;  %v12706_v36 = vld [vmem:[#allocation3 + $0x7c] sm:$0xf]  ;;  %v9295_v51 = vld [vmem:[#allocation3 + $0x74] sm:$0x1]  ;;  %vm14423_vm3 = vmmov %vm14417_vm2 }
 0x310   : > { %9124 = vmatprep.mubr.msk.bf16.mxu0 %vm7150_vm0, %v7947_v52  ;;  %v7088_v10 = vsel %vm7086_vm13, %v7055_v0, %v12452_v57  ;;  %v8694_v61 = vrot.slane %v5078_v30, 9  ;;  %v5200_v5 = vrot.slane %v5198_v43, 4  ;;  %v5806_v1 = vrot.slane %v12533_v34, 5  ;;  %v12711_v39 = vld [vmem:[#allocation3 + $0x88] sm:$0xf]  ;;  %v12713_v40 = vpop.permute.xlu1 %7498  ;;  %vm14424_vm1 = vmmov %vm14419_vm5 }
 0x311   : > { %6842 = vrot.lane.b32.xlu1 %v12495_v45, %s9331_s12  ;;  %9086 = vmatprep.mubr.msk.bf16.mxu1 %vm7150_vm0, %v7088_v10  ;;  %v5201_v54 = vrot.slane %v9295_v51, 5  ;;  %v8710_v38 = vrot.slane %v12684_v19, 9  ;;  %v9296_v45 = vld [vmem:[#allocation3 + $0x80] sm:$0x1]  ;;  %v6408_v57 = vrot.slane %v12500_v33, 5  ;;  %14387 = vst [vmem:[#allocation36_spill] sm:$0xff] %v12713_v40  ;;  %v12717_v34 = vcombine.low %v4866_v62, %v4876_v60  ;;  %vm14425_vm8 = vmmov %vm14424_vm1 }
 0x312   : > { %v5809_v53 = vrot.slane %v9296_v45, 5  ;;  %6844 = vrot.lane.b32.xlu0 %v12514_v37, %s9331_s12  ;;  %v12719_v44 = vld [vmem:[#allocation3 + $0x8c] sm:$0x1]  ;;  %v6415_v28 = vrot.slane %v12711_v39, 5  ;;  %v6119_v21 = vshrl.u32 %v12692_v16, 16  ;;  %v6122_v30 = vshll.u32 %v12692_v16, 16  ;;  %v6577_v60 = vpop.permute.xlu0 %6576 }
 0x313   : > { %v6117_v12 = vsel %vm9533_vm15, %v12675_v56, %v12663_v41  ;;  %v5540_v13 = vor.u32 %v5539_v42, %v5536_v25  ;;  %v5550_v19 = vor.u32 %v5549_v26, %v12694_v3  ;;  %v5553_v37 = vshll.u32 %v12704_v55, 16  ;;  %v14388_v62 = vld [vmem:[#allocation8_spill] sm:$0xff]  ;;  %v14389_v56 = vld [vmem:[#allocation21_spill] sm:$0xff]  ;;  %v14390_v25 = vld [vmem:[#allocation15_spill] sm:$0xff] }
 0x314   : > { %v12734_v9 = vsel %vm9446_vm10, %v8694_v61, %v5198_v43  ;;  %v12738_v0 = vsel %vm9446_vm10, %v5200_v5, %v5201_v54  ;;  %v5808_v52 = vrot.slane %v5806_v1, 4  ;;  %v8726_v41 = vrot.slane %v12690_v17, 9  ;;  %v12749_v61 = vpop.permute.xlu1 %7774 }
 0x315   : > { %6766 = vrot.lane.b32.xlu1 %v14388_v62, %s9328_s9  ;;  %v14391_v42 = vcombine.low %v14389_v56, %v14390_v25  ;;  %v6410_v10 = vrot.slane %v6408_v57, 4  ;;  %v6418_v51 = vrot.slane %v12719_v44, 5  ;;  %v5205_v45 = vrot.slane %v12706_v36, 5  ;;  %14394 = vst [vmem:[#allocation38_spill] sm:$0xff] %v12749_v61 }
 0x316   : > { %6590 = vrot.lane.b32.xlu0 %v12552_v11, %s9326_s30  ;;  %v6417_v5 = vrot.slane %v6415_v28, 4  ;;  %v6121_v17 = vrot.slane %v6119_v21, 4  ;;  %v6124_v54 = vrot.slane %v6122_v30, 5  ;;  %v5541_v25 = vrot.slane %v5540_v13, 4  ;;  %v12771_v13 = vld [vmem:[#allocation3 + $0x80] sm:$0x1] }
 0x317   : > { %v6947_v26 = vsel %vm14392_vm12, %v14391_v42, %v6577_v60  ;;  %v6294_v60 = vld [vmem:[#allocation3 + $0x78] sm:$0xe]  ;;  %v5551_v42 = vrot.slane %v5550_v19, 4  ;;  %v5555_v23 = vrot.slane %v5553_v37, 5  ;;  %v14397_v11 = vsel %vm9533_vm15, %v12608_v47, %v12597_v35  ;;  %vm14430_vm12 = vmmov %vm14417_vm2 }
 0x318   : > { %v6993_v43 = vsel %vm14393_vm9, %v6947_v26, %v12550_v27  ;;  %v14395_v27 = vcombine.low %v12464_v15, %v12500_v33  ;;  %v12761_v26 = vpop.permute.xlu0 %7500  ;;  %v5807_v21 = vsel %vm9446_vm10, %v8710_v38, %v5806_v1  ;;  %v6411_v30 = vrot.slane %v12581_v49, 5  ;;  %v5079_v19 = vld [vmem:[#allocation3 + $0x78] sm:$0xe]  ;;  %v12779_v47 = vpop.permute.xlu1 %6662  ;;  %vm14435_vm9 = vmmov %vm14417_vm2 }
 0x319   : > { %v7025_v56 = vsel %vm3630_vm4, %v6993_v43, %v12411_v4  ;;  %14396 = vst [vmem:[#allocation42_spill] sm:$0xff] %v12761_v26  ;;  %v8873_v4 = vcombine.low %v14397_v11, %v6117_v12  ;;  %v8774_v15 = vcombine.low %v12734_v9, %v12738_v0  ;;  %v5810_v33 = vsel %vm9446_vm10, %v5808_v52, %v5809_v53  ;;  %v14399_v12 = vld [vmem:[#allocation12_spill] sm:$0xff] }
 0x31a   : > { %v7057_v6 = vsel %vm3696_vm14, %v7025_v56, %v12654_v24  ;;  %7626 = vrot.lane.b32.xlu1 %v14395_v27, %s9328_s9  ;;  %v5207_v37 = vrot.slane %v5205_v45, 4  ;;  %14398 = vst [vmem:[#allocation39_spill] sm:$0xff] %v12779_v47  ;;  %7700 = vrot.lane.b32.xlu0 %v12661_v32, %s9331_s12  ;;  %v8725_v49 = vrot.slane %v6294_v60, 9  ;;  %v12786_v35 = vsel %vm9446_vm10, %v6410_v10, %v6411_v30  ;;  %v4657_v60 = vld [vmem:[#allocation3 + $0x78] sm:$0xf] }
 0x31b   : > { %v7090_v24 = vsel %vm7086_vm13, %v7057_v6, %v12512_v20  ;;  %v12790_v6 = vsel %vm9446_vm10, %v8726_v41, %v6415_v28  ;;  %v12794_v20 = vsel %vm9446_vm10, %v6417_v5, %v6418_v51  ;;  %v5546_v1 = vsel %vm9533_vm15, %v5541_v25, %v12694_v3  ;;  %v12814_v41 = vld [vmem:[#allocation3 + $0x84] sm:$0xe]  ;;  %v12840_v25 = vld [vmem:[#allocation3 + $0x88] sm:$0xf] }
 0x31c   : > { %9087 = vmatmul.mubr.msk.bf16.vlgmr.msra.gmra.mrb[16].mxu1 %vm7150_vm0, %v7090_v24  ;;  %v5556_v32 = vsel %vm9533_vm15, %v5551_v42, %v5555_v23  ;;  %v5208_v38 = vrot.slane %v12771_v13, 5  ;;  %v6125_v53 = vor.u32 %v6124_v54, %v6121_v17  ;;  %v12804_v9 = vpop.permute.xlu0 %7704  ;;  %v12806_v28 = vcombine.low %v5807_v21, %v5810_v33  ;;  %v12847_v21 = vld [vmem:[#allocation3 + $0x90] sm:$0xf] }
 0x31d   : > { %14400 = vst [vmem:[#allocation43_spill] sm:$0xff] %v12804_v9  ;;  %v12810_v0 = vsel %vm9446_vm10, %v8725_v49, %v6408_v57  ;;  %v8695_v52 = vrot.slane %v5079_v19, 9  ;;  %v6128_v10 = vshll.u32 %v12711_v39, 16  ;;  %v6132_v51 = vshrl.u32 %v12711_v39, 16  ;;  %v12826_v57 = vpop.permute.xlu1 %7772 }
 0x31e   : > { %6846 = vrot.lane.b32.xlu1 %v14399_v12, %s9331_s12  ;;  %v12818_v23 = vsel %vm9446_vm10, %v5207_v37, %v5208_v38  ;;  %v12824_v43 = vcombine.low %v12610_v7, %v12620_v58  ;;  %14402 = vst [vmem:[#allocation20_spill] sm:$0xff] %v12826_v57  ;;  %6588 = vrot.lane.b32.xlu0 %v12717_v34, %s9326_s30  ;;  %v4659_v7 = vld [vmem:[#allocation3 + $0x84] sm:$0xf]  ;;  %v12842_v42 = vrot.slane %v6125_v53, 4  ;;  %v6138_v34 = vshll.u32 %v12719_v44, 16 }
 0x31f   : > { %v8889_v5 = vcombine.low %v12810_v0, %v12786_v35  ;;  %v12834_v54 = vcombine.low %v5546_v1, %v5556_v32  ;;  %v12838_v56 = vsel %vm9446_vm10, %v8695_v52, %v5205_v45  ;;  %v4935_v33 = vshll.u32 %v12706_v36, 16  ;;  %v12857_v44 = vld [vmem:[#allocation3 + $0x94] sm:$0xf]  ;;  %v12861_v35 = vld [vmem:[#allocation3 + $0x90] sm:$0xf]  ;;  %v14404_v45 = vld [vmem:[#allocation37_spill] sm:$0xff] }
 0x320   : > { %14401 = vst [vmem:[#allocation19_spill] sm:$0xff] %v12824_v43  ;;  %v12850_v30 = vpop.permute.xlu0 %6592  ;;  %v4939_v19 = vshrl.u32 %v12706_v36, 16  ;;  %v12859_v37 = vrot.slane %v6128_v10, 5  ;;  %v6134_v49 = vrot.slane %v6132_v51, 4  ;;  %v4950_v1 = vshrl.u32 %v4659_v7, 16 }
 0x321   : > { %14403 = vst [vmem:[#allocation25_spill] sm:$0xff] %v12850_v30  ;;  %v12863_v32 = vpop.permute.xlu1 %7518  ;;  %v4926_v38 = vshrl.u32 %v4657_v60, 16  ;;  %v4929_v53 = vshll.u32 %v4657_v60, 16  ;;  %v12866_v12 = vld [vmem:[#allocation3 + $0x94] sm:$0xf]  ;;  %v4959_v0 = vshll.u32 %v12840_v25, 16 }
 0x322   : > { %7706 = vrot.lane.b32.xlu1 %v8873_v4, %s9331_s12  ;;  %v4953_v4 = vshll.u32 %v4659_v7, 16  ;;  %6672 = vrot.lane.b32.xlu0 %v8774_v15, %s9332_s13  ;;  %v4963_v36 = vshrl.u32 %v12840_v25, 16  ;;  %v5558_v52 = vshrl.u32 %v12847_v21, 16  ;;  %v5561_v10 = vshll.u32 %v12847_v21, 16 }
 0x323   : > { %v5567_v51 = vshll.u32 %v12857_v44, 16  ;;  %v5571_v7 = vshrl.u32 %v12857_v44, 16  ;;  %v12878_v60 = vrot.slane %v4935_v33, 5  ;;  %v4941_v3 = vrot.slane %v4939_v19, 4 }
 0x324   : > { %v12876_v15 = vpop.permute.xlu0 %7520  ;;  %v6143_v24 = vshrl.u32 %v12861_v35, 16  ;;  %v6146_v27 = vshll.u32 %v12861_v35, 16  ;;  %v6156_v17 = vshrl.u32 %v12866_v12, 16  ;;  %v4952_v11 = vrot.slane %v4950_v1, 4 }
 0x325   : > { %14405 = vst [vmem:[#allocation27_spill] sm:$0xff] %v12876_v15  ;;  %v4955_v30 = vrot.slane %v4953_v4, 5  ;;  %v6152_v26 = vshll.u32 %v12866_v12, 16  ;;  %v12884_v9 = vpop.permute.xlu1 %6914  ;;  %v4931_v15 = vrot.slane %v4929_v53, 5  ;;  %v12888_v33 = vrot.slane %v4959_v0, 5 }
 0x326   : > { %6926 = vrot.lane.b32.xlu1 %v14404_v45, %s9334_s23  ;;  %7532 = vrot.lane.b32.xlu0 %v12806_v28, %s9332_s13  ;;  %v4928_v45 = vrot.slane %v4926_v38, 4  ;;  %v4965_v19 = vrot.slane %v4963_v36, 4  ;;  %v5560_v47 = vrot.slane %v5558_v52, 4  ;;  %v5563_v2 = vrot.slane %v5561_v10, 5  ;;  %v12901_v36 = vld [vmem:[#allocation3 + $0x98] sm:$0x1] }
 0x327   : > { %v12892_v61 = vrot.slane %v5567_v51, 5  ;;  %v5573_v1 = vrot.slane %v5571_v7, 4  ;;  %v6135_v57 = vor.u32 %v6134_v49, %v12859_v37  ;;  %v14407_v62 = vrot.slane %v12620_v58, 5 }
 0x328   : > { %v12895_v4 = vpop.permute.xlu0 %6916  ;;  %v4942_v53 = vor.u32 %v4941_v3, %v12878_v60  ;;  %v6145_v0 = vrot.slane %v6143_v24, 4  ;;  %v6148_v40 = vrot.slane %v6146_v27, 5  ;;  %v4956_v52 = vor.u32 %v4955_v30, %v4952_v11  ;;  %v12912_v24 = vld [vmem:[#allocation3 + $0x98] sm:$0x1] }
 0x329   : > { %14406 = vst [vmem:[#allocation28_spill] sm:$0xff] %v12895_v4  ;;  %v5815_v38 = vrot.slane %v14407_v62, 4  ;;  %v12903_v10 = vrot.slane %v6152_v26, 5  ;;  %v6158_v51 = vrot.slane %v6156_v17, 4  ;;  %v12905_v7 = vpop.permute.xlu1 %7618  ;;  %v4945_v49 = vshll.u32 %v12771_v13, 16 }
 0x32a   : > { %7786 = vrot.lane.b32.xlu1 %v8889_v5, %s9334_s23  ;;  %6768 = vrot.lane.b32.xlu0 %v12536_v14, %s9328_s9  ;;  %v6140_v5 = vrot.slane %v6138_v34, 5  ;;  %v4966_v62 = vor.u32 %v4965_v19, %v12888_v33  ;;  %v4969_v3 = vshll.u32 %v12890_v31, 16  ;;  %v4932_v4 = vor.u32 %v4931_v15, %v4928_v45 }
 0x32b   : > { %v5564_v27 = vor.u32 %v5563_v2, %v5560_v47  ;;  %v5574_v26 = vor.u32 %v5573_v1, %v12892_v61  ;;  %v5577_v17 = vshll.u32 %v12901_v36, 16  ;;  %v14408_v11 = vcombine.low %v12790_v6, %v12794_v20 }
 0x32c   : > { %v12920_v34 = vpop.permute.xlu0 %6660  ;;  %v6136_v13 = vrot.slane %v6135_v57, 4  ;;  %v14409_v30 = vrot.slane %v12620_v58, 5  ;;  %v14410_v19 = vrot.slane %v12814_v41, 9  ;;  %v14411_v2 = vrot.slane %v12704_v55, 5 }
 0x32d   : > { %v4943_v45 = vrot.slane %v4942_v53, 4  ;;  %v4957_v1 = vrot.slane %v4956_v52, 4  ;;  %v6149_v14 = vor.u32 %v6148_v40, %v6145_v0  ;;  %v6159_v6 = vor.u32 %v6158_v51, %v12903_v10  ;;  %v12934_v57 = vpop.permute.xlu1 %7694  ;;  %v5080_v0 = vld [vmem:[#allocation3 + $0x84] sm:$0xe] }
 0x32e   : > { %7788 = vrot.lane.b32.xlu1 %v14408_v11, %s9334_s23  ;;  %v5814_v15 = vsel %vm9446_vm10, %v14410_v19, %v14409_v30  ;;  %v5817_v47 = vsel %vm9446_vm10, %v5815_v38, %v14411_v2  ;;  %v6162_v20 = vshll.u32 %v12912_v24, 16  ;;  %v14412_v58 = vcombine.low %v12692_v16, %v12711_v39  ;;  %v5688_v19 = vld [vmem:[#allocation3 + $0x90] sm:$0xe] }
 0x32f   : > { %v4947_v41 = vrot.slane %v4945_v49, 5  ;;  %v4967_v11 = vrot.slane %v4966_v62, 4  ;;  %v4971_v55 = vrot.slane %v4969_v3, 5  ;;  %v5212_v30 = vrot.slane %v12840_v25, 5 }
 0x330   : > { %7628 = vrot.lane.b32.xlu0 %v14412_v58, %s9328_s9  ;;  %v4933_v38 = vrot.slane %v4932_v4, 4  ;;  %v5565_v53 = vrot.slane %v5564_v27, 4  ;;  %v5575_v52 = vrot.slane %v5574_v26, 4  ;;  %v5579_v40 = vrot.slane %v5577_v17, 5  ;;  %v12943_v51 = vpop.permute.xlu0 %6760  ;;  %v14413_v17 = vld [vmem:[#allocation13_spill] sm:$0xff] }
 0x331   : > { %v6131_v16 = vsel %vm9533_vm15, %v12842_v42, %v12859_v37  ;;  %v6141_v39 = vsel %vm9533_vm15, %v6136_v13, %v6140_v5  ;;  %v12951_v49 = vcombine.low %v5814_v15, %v5817_v47  ;;  %v4948_v25 = vsel %vm9533_vm15, %v4943_v45, %v4947_v41  ;;  %v12958_v26 = vpop.permute.xlu1 %6758  ;;  %v14414_v47 = vld [vmem:[#allocation14_spill] sm:$0xff]  ;;  %v14415_v45 = vld [vmem:[#allocation17_spill] sm:$0xff]  ;;  %v12987_v41 = vld [vmem:[#allocation3 + $0x9c] sm:$0xf] }
 0x332   : > { %7502 = vrot.lane.b32.xlu1 %v12834_v54, %s9326_s30  ;;  %v4962_v4 = vsel %vm9533_vm15, %v4957_v1, %v12888_v33  ;;  %v6150_v62 = vrot.slane %v6149_v14, 4  ;;  %v6160_v3 = vrot.slane %v6159_v6, 4  ;;  %v6164_v27 = vrot.slane %v6162_v20, 5 }
 0x333   : > { %v4972_v42 = vsel %vm9533_vm15, %v4967_v11, %v4971_v55  ;;  %v8696_v37 = vrot.slane %v5080_v0, 9  ;;  %v5214_v5 = vrot.slane %v5212_v30, 4  ;;  %v5215_v13 = vrot.slane %v12890_v31, 5  ;;  %v5081_v0 = vld [vmem:[#allocation3 + $0x90] sm:$0xe] }
 0x334   : > { %6848 = vrot.lane.b32.xlu0 %v14413_v17, %s9331_s12  ;;  %v4938_v33 = vsel %vm9533_vm15, %v4933_v38, %v12878_v60  ;;  %v8859_v14 = vcombine.low %v12861_v35, %v12866_v12  ;;  %v5570_v15 = vsel %vm9533_vm15, %v5565_v53, %v12892_v61  ;;  %v5580_v2 = vsel %vm9533_vm15, %v5575_v52, %v5579_v40  ;;  %v12984_v6 = vpop.permute.xlu0 %7488  ;;  %v13001_v52 = vld [vmem:[#allocation3 + $0x28] sm:$0xf]  ;;  %v13003_v40 = vld [vmem:[#allocation3 + $0x24] sm:$0xf] }
 0x335   : > { %v14416_v1 = vcombine.low %v14414_v47, %v14415_v45  ;;  %v14418_v60 = vcombine.low %v12838_v56, %v12818_v23  ;;  %v8874_v20 = vcombine.low %v6131_v16, %v6141_v39  ;;  %v8759_v58 = vcombine.low %v4938_v33, %v4948_v25  ;;  %v12996_v23 = vld [vmem:[#allocation3 + $0xa0] sm:$0xf]  ;;  %v7487_v56 = vpop.permute.xlu1 %7486  ;;  %v13015_v39 = vld [vmem:[#allocation3 + $0x90] sm:$0xe]  ;;  %v6297_v47 = vld [vmem:[#allocation3 + $0x9c] sm:$0xe] }
 0x336   : > { %v5820_v61 = vrot.slane %v12857_v44, 5  ;;  %v12989_v11 = vcombine.low %v4962_v4, %v4972_v42  ;;  %v6155_v55 = vsel %vm9533_vm15, %v6150_v62, %v12903_v10  ;;  %v8712_v38 = vrot.slane %v5688_v19, 9  ;;  %v13020_v62 = vld [vmem:[#allocation3 + $0x9c] sm:$0xf]  ;;  %v13040_v33 = vld [vmem:[#allocation3 + $0xa0] sm:$0xf] }
 0x337   : > { %v6950_v31 = vsel %vm14417_vm2, %v14416_v1, %v12701_v48  ;;  %6674 = vrot.lane.b32.xlu1 %v14418_v60, %s9332_s13  ;;  %v6165_v48 = vsel %vm9533_vm15, %v6160_v3, %v6164_v27  ;;  %v12999_v53 = vcombine.low %v5570_v15, %v5580_v2  ;;  %v13009_v10 = vsel %vm9446_vm10, %v8696_v37, %v5212_v30  ;;  %v14420_v60 = vld [vmem:[#allocation11_spill] sm:$0xff]  ;;  %vm14436_vm2 = vmmov %vm14424_vm1 }
 0x338   : > { %7708 = vrot.lane.b32.xlu0 %v8874_v20, %s9331_s12  ;;  %v13013_v16 = vsel %vm9446_vm10, %v5214_v5, %v5215_v13  ;;  %v6995_v25 = vsel %vm14419_vm5, %v6950_v31, %v12367_v50  ;;  %v5823_v4 = vrot.slane %v12901_v36, 5  ;;  %v5582_v3 = vshrl.u32 %v12987_v41, 16  ;;  %v13026_v30 = vpop.permute.xlu0 %7616  ;;  %vm14450_vm5 = vmmov %vm14423_vm3 }
 0x339   : > { %v5585_v27 = vshll.u32 %v12987_v41, 16  ;;  %v13028_v17 = vcombine.low %v6155_v55, %v6165_v48  ;;  %v5822_v42 = vrot.slane %v5820_v61, 4  ;;  %v5591_v37 = vshll.u32 %v12996_v23, 16  ;;  %v6835_v15 = vpop.permute.xlu1 %6834  ;;  %v13052_v55 = vld [vmem:[#allocation3 + $0xa4] sm:$0x1] }
 0x33a   : > { %v5595_v50 = vshrl.u32 %v12996_v23, 16  ;;  %v13036_v5 = vsel %vm9446_vm10, %v8712_v38, %v5820_v61  ;;  %v8727_v13 = vrot.slane %v13015_v39, 9  ;;  %v6422_v19 = vrot.slane %v12866_v12, 5  ;;  %v13054_v48 = vld [vmem:[#allocation3 + $0xa4] sm:$0x1] }
 0x33b   : > { %7534 = vrot.lane.b32.xlu1 %v12951_v49, %s9332_s13  ;;  %v7027_v2 = vsel %vm3630_vm4, %v6995_v25, %v12600_v22  ;;  %v6429_v45 = vrot.slane %v13040_v33, 5  ;;  %v6167_v1 = vshrl.u32 %v13020_v62, 16  ;;  %v6170_v31 = vshll.u32 %v13020_v62, 16 }
 0x33c   : > { %6928 = vrot.lane.b32.xlu0 %v12806_v28, %s9334_s23  ;;  %v7810_v20 = vsel %vm14421_vm6, %v14420_v60, %v7487_v56  ;;  %v7059_v61 = vsel %vm3696_vm14, %v7027_v2, %v6835_v15  ;;  %v5584_v22 = vrot.slane %v5582_v3, 4  ;;  %v5587_v38 = vrot.slane %v5585_v27, 5  ;;  %v13060_v39 = vpop.permute.xlu0 %6836  ;;  %v14422_v2 = vld [vmem:[#allocation5_spill] sm:$0xff]  ;;  %vm14453_vm6 = vmmov %vm14424_vm1 }
 0x33d   : > { %v7092_v28 = vsel %vm7086_vm13, %v7059_v61, %v12884_v9  ;;  %v5824_v25 = vsel %vm9446_vm10, %v5822_v42, %v5823_v4  ;;  %v13064_v56 = vrot.slane %v5591_v37, 5  ;;  %v5597_v15 = vrot.slane %v5595_v50, 4  ;;  %v13073_v61 = vpop.permute.xlu1 %7778  ;;  %v13078_v50 = vld [vmem:[#allocation3 + $0x94] sm:$0xf] }
 0x33e   : > { %v7807_v60 = vsel %vm14423_vm3, %v14422_v2, %v12595_v46  ;;  %9090 = vmatprep.mubr.msk.bf16.mxu1 %vm7150_vm0, %v7092_v28  ;;  %v6424_v3 = vrot.slane %v6422_v19, 4  ;;  %v6425_v27 = vrot.slane %v12912_v24, 5  ;;  %v8728_v36 = vrot.slane %v6297_v47, 9 }
 0x33f   : > { %6770 = vrot.lane.b32.xlu1 %v12824_v43, %s9328_s9  ;;  %v7855_v9 = vsel %vm14424_vm1, %v7810_v20, %v12863_v32  ;;  %v6431_v4 = vrot.slane %v6429_v45, 4  ;;  %v6432_v42 = vrot.slane %v13052_v55, 5  ;;  %v5601_v37 = vshll.u32 %v13054_v48, 16  ;;  %v13090_v20 = vld [vmem:[#allocation3 + $0x98] sm:$0x1] }
 0x340   : > { %6594 = vrot.lane.b32.xlu0 %v8759_v58, %s9326_s30  ;;  %v6169_v46 = vrot.slane %v6167_v1, 4  ;;  %v6172_v28 = vrot.slane %v6170_v31, 5  ;;  %v5588_v2 = vor.u32 %v5587_v38, %v5584_v22  ;;  %v5219_v24 = vrot.slane %v13078_v50, 5  ;;  %v13087_v58 = vpop.permute.xlu0 %6582 }
 0x341   : > { %v7853_v32 = vsel %vm14425_vm8, %v7807_v60, %v12475_v8  ;;  %v5598_v47 = vor.u32 %v5597_v15, %v13064_v56  ;;  %v6176_v1 = vshll.u32 %v13040_v33, 16  ;;  %v6180_v31 = vshrl.u32 %v13040_v33, 16  ;;  %vm14465_vm8 = vmmov %vm14450_vm5 }
 0x342   : > { %v7885_v22 = vsel %vm3630_vm4, %v7853_v32, %v12616_v18  ;;  %v7887_v8 = vsel %vm3630_vm4, %v7855_v9, %v12565_v59  ;;  %v13100_v35 = vsel %vm9446_vm10, %v8727_v13, %v6422_v19  ;;  %v13104_v12 = vsel %vm9446_vm10, %v6424_v3, %v6425_v27 }
 0x343   : > { %7630 = vrot.lane.b32.xlu1 %v8859_v14, %s9328_s9  ;;  %v13106_v14 = vpop.permute.xlu1 %6666  ;;  %v13112_v38 = vsel %vm9446_vm10, %v8728_v36, %v6429_v45  ;;  %v13116_v59 = vsel %vm9446_vm10, %v6431_v4, %v6432_v42  ;;  %v5603_v18 = vrot.slane %v5601_v37, 5  ;;  %v8697_v13 = vrot.slane %v5081_v0, 9 }
 0x344   : > { %14426 = vst [vmem:[#allocation26_spill] sm:$0xff] %v13106_v14  ;;  %6596 = vrot.lane.b32.xlu0 %v12989_v11, %s9326_s30  ;;  %v5589_v19 = vrot.slane %v5588_v2, 4  ;;  %v5221_v15 = vrot.slane %v5219_v24, 4  ;;  %v5222_v60 = vrot.slane %v13090_v20, 5  ;;  %v6173_v3 = vor.u32 %v6172_v28, %v6169_v46  ;;  %v7693_v27 = vpop.permute.xlu0 %7692  ;;  %v14429_v46 = vld [vmem:[#allocation8_spill] sm:$0xff] }
 0x345   : > { %v7919_v11 = vsel %vm3696_vm14, %v7887_v8, %v12934_v57  ;;  %v5599_v36 = vrot.slane %v5598_v47, 4  ;;  %v13123_v45 = vrot.slane %v6176_v1, 5  ;;  %v6182_v9 = vrot.slane %v6180_v31, 4  ;;  %v14432_v28 = vld [vmem:[#allocation20_spill] sm:$0xff]  ;;  %v14433_v47 = vld [vmem:[#allocation38_spill] sm:$0xff] }
 0x346   : > { %v7917_v4 = vsel %vm3696_vm14, %v7885_v22, %v7693_v27  ;;  %v13127_v0 = vcombine.low %v13036_v5, %v5824_v25  ;;  %v8891_v42 = vcombine.low %v13100_v35, %v13104_v12  ;;  %v13133_v37 = vcombine.low %v12847_v21, %v12857_v44  ;;  %v5689_v44 = vld [vmem:[#allocation3 + $0x9c] sm:$0xe]  ;;  %v4661_v25 = vld [vmem:[#allocation3 + $0x90] sm:$0xf] }
 0x347   : > { %6850 = vrot.lane.b32.xlu1 %v12834_v54, %s9331_s12  ;;  %v14428_v54 = vld [vmem:[#allocation36_spill] sm:$0xff]  ;;  %v7949_v2 = vsel %vm7086_vm13, %v7917_v4, %v14432_v28  ;;  %v13142_v32 = vpop.permute.xlu1 %7776  ;;  %v7951_v1 = vsel %vm7086_vm13, %v7919_v11, %v14433_v47  ;;  %v13155_v31 = vsel %vm9446_vm10, %v8697_v13, %v5219_v24  ;;  %v13159_v22 = vsel %vm9446_vm10, %v5221_v15, %v5222_v60 }
 0x348   : > { %14427 = vst [vmem:[#allocation34_spill] sm:$0xff] %v13133_v37  ;;  %v13138_v57 = vsel %vm14430_vm12, %v14429_v46, %v14428_v54  ;;  %7504 = vrot.lane.b32.xlu0 %v12999_v53, %s9326_s30  ;;  %9125 = vmatmul.mubr.msk.bf16.vlgmr.msra.gmra.mrb[16].mxu0 %vm7150_vm0, %v7949_v2  ;;  %v13161_v8 = vrot.slane %v6173_v3, 4  ;;  %v6581_v35 = vpop.permute.xlu0 %6580  ;;  %v5594_v12 = vsel %vm9533_vm15, %v5589_v19, %v13064_v56  ;;  %v6186_v15 = vshll.u32 %v13052_v55, 16  ;;  %v14440_v47 = vld [vmem:[#allocation28_spill] sm:$0xff]  ;;  %vm14467_vm12 = vmmov %vm14424_vm1 }
 0x349   : > { %14431 = vst [vmem:[#allocation18_spill] sm:$0xff] %v13138_v57  ;;  %9128 = vmatprep.mubr.msk.bf16.mxu0 %vm7150_vm0, %v7951_v1  ;;  %v5604_v24 = vsel %vm9533_vm15, %v5599_v36, %v5603_v18  ;;  %v6183_v13 = vor.u32 %v6182_v9, %v13123_v45  ;;  %v14434_v60 = vcombine.low %v13003_v40, %v13001_v52  ;;  %v4974_v27 = vshrl.u32 %v4661_v25, 16  ;;  %v14438_v18 = vld [vmem:[#allocation33_spill] sm:$0xff]  ;;  %v4663_v9 = vld [vmem:[#allocation3 + $0x9c] sm:$0xf] }
 0x34a   : > { %v4977_v11 = vshll.u32 %v4661_v25, 16  ;;  %v14437_v56 = vcombine.low %v13009_v10, %v13013_v16  ;;  %v4983_v52 = vshll.u32 %v13078_v50, 16  ;;  %v4987_v40 = vshrl.u32 %v13078_v50, 16  ;;  %v13198_v16 = vld [vmem:[#allocation3 + $0xa8] sm:$0xf] }
 0x34b   : > { %7710 = vrot.lane.b32.xlu1 %v13028_v17, %s9331_s12  ;;  %v6953_v3 = vsel %vm14435_vm9, %v14434_v60, %v6581_v35  ;;  %v8713_v17 = vrot.slane %v5689_v44, 9  ;;  %v13179_v54 = vpop.permute.xlu1 %7522  ;;  %v13191_v36 = vcombine.low %v5594_v12, %v5604_v24  ;;  %v5827_v10 = vrot.slane %v12996_v23, 5  ;;  %v13211_v25 = vld [vmem:[#allocation3 + $0xa0] sm:$0xf]  ;;  %v13219_v24 = vld [vmem:[#allocation3 + $0xa8] sm:$0xf]  ;;  %vm14470_vm9 = vmmov %vm14450_vm5 }
 0x34c   : > { %v6997_v4 = vsel %vm14436_vm2, %v6953_v3, %v12920_v34  ;;  %6676 = vrot.lane.b32.xlu0 %v14437_v56, %s9332_s13  ;;  %v13202_v46 = vpop.permute.xlu0 %7524  ;;  %v13206_v28 = vrot.slane %v6183_v13, 4  ;;  %v13208_v2 = vrot.slane %v6186_v15, 5  ;;  %v5830_v44 = vrot.slane %v13054_v48, 5  ;;  %v13230_v60 = vld [vmem:[#allocation3 + $0xac] sm:$0xf]  ;;  %vm14472_vm2 = vmmov %vm14424_vm1 }
 0x34d   : > { %v7029_v19 = vsel %vm3630_vm4, %v6997_v4, %v14438_v18  ;;  %14439 = vst [vmem:[#allocation6_spill] sm:$0xff] %v13202_v46  ;;  %v13217_v35 = vsel %vm9446_vm10, %v8713_v17, %v5827_v10  ;;  %v4979_v12 = vrot.slane %v4977_v11, 5  ;;  %v13228_v48 = vrot.slane %v4983_v52, 5 }
 0x34e   : > { %v7061_v50 = vsel %vm3696_vm14, %v7029_v19, %v13060_v39  ;;  %v13221_v39 = vld [vmem:[#allocation3 + $0xac] sm:$0xf]  ;;  %v4989_v15 = vrot.slane %v4987_v40, 4  ;;  %v4998_v3 = vshrl.u32 %v4663_v9, 16  ;;  %v5001_v17 = vshll.u32 %v4663_v9, 16 }
 0x34f   : > { %6930 = vrot.lane.b32.xlu1 %v12951_v49, %s9334_s23  ;;  %v7094_v1 = vsel %vm7086_vm13, %v7061_v50, %v14440_v47  ;;  %v4976_v49 = vrot.slane %v4974_v27, 4  ;;  %v13223_v13 = vpop.permute.xlu1 %6918  ;;  %v6191_v27 = vshrl.u32 %v13198_v16, 16  ;;  %v6194_v11 = vshll.u32 %v13198_v16, 16 }
 0x350   : > { %7536 = vrot.lane.b32.xlu0 %v13127_v0, %s9332_s13  ;;  %9091 = vmatmul.mubr.msk.bf16.gmra.mrb[20].mxu1 %vm7150_vm0, %v7094_v1  ;;  %v5007_v4 = vshll.u32 %v13211_v25, 16  ;;  %v5011_v56 = vshrl.u32 %v13211_v25, 16  ;;  %v13237_v18 = vpop.permute.xlu0 %6920  ;;  %v5606_v52 = vshrl.u32 %v13219_v24, 16  ;;  %v5609_v40 = vshll.u32 %v13219_v24, 16 }
 0x351   : > { %14441 = vst [vmem:[#allocation9_spill] sm:$0xff] %v13237_v18  ;;  %v5615_v19 = vshll.u32 %v13221_v39, 16  ;;  %v5619_v9 = vshrl.u32 %v13221_v39, 16  ;;  %v5829_v50 = vrot.slane %v5827_v10, 4  ;;  %v4993_v47 = vshll.u32 %v13090_v20, 16 }
 0x352   : > { %v6204_v1 = vshrl.u32 %v13230_v60, 16  ;;  %v6200_v55 = vshll.u32 %v13230_v60, 16  ;;  %v4990_v21 = vor.u32 %v4989_v15, %v13228_v48  ;;  %v5000_v5 = vrot.slane %v4998_v3, 4 }
 0x353   : > { %7790 = vrot.lane.b32.xlu1 %v8891_v42, %s9334_s23  ;;  %v13246_v34 = vpop.permute.xlu1 %7622  ;;  %v4980_v42 = vor.u32 %v4979_v12, %v4976_v49  ;;  %v5003_v43 = vrot.slane %v5001_v17, 5  ;;  %v6193_v46 = vrot.slane %v6191_v27, 4  ;;  %v6196_v57 = vrot.slane %v6194_v11, 5  ;;  %v13269_v27 = vld [vmem:[#allocation3 + $0xb0] sm:$0x1] }
 0x354   : > { %14442 = vst [vmem:[#allocation24_spill] sm:$0xff] %v13246_v34  ;;  %6772 = vrot.lane.b32.xlu0 %v13133_v37, %s9328_s9  ;;  %v13251_v14 = vrot.slane %v5007_v4, 5  ;;  %v5013_v10 = vrot.slane %v5011_v56, 4  ;;  %v14443_v20 = vcombine.low %v13112_v38, %v13116_v59  ;;  %v13257_v18 = vpop.permute.xlu0 %6664  ;;  %v13259_v34 = vld [vmem:[#allocation3 + $0xa4] sm:$0x1]  ;;  %v5608_v37 = vrot.slane %v5606_v52, 4 }
 0x355   : > { %v5611_v49 = vrot.slane %v5609_v40, 5  ;;  %v13261_v12 = vrot.slane %v5615_v19, 5  ;;  %v5621_v15 = vrot.slane %v5619_v9, 4  ;;  %v6189_v3 = vsel %vm9533_vm15, %v13206_v28, %v13208_v2  ;;  %v13279_v28 = vld [vmem:[#allocation3 + $0xb0] sm:$0x1] }
 0x356   : > { %v5831_v17 = vsel %vm9446_vm10, %v5829_v50, %v5830_v44  ;;  %v13271_v38 = vrot.slane %v6200_v55, 5  ;;  %v6206_v59 = vrot.slane %v6204_v1, 4  ;;  %v14444_v4 = vcombine.low %v13020_v62, %v13040_v33  ;;  %v13315_v1 = vld [vmem:[#allocation3 + $0x4c] sm:$0xf] }
 0x357   : > { %7792 = vrot.lane.b32.xlu1 %v14443_v20, %s9334_s23  ;;  %v13273_v11 = vpop.permute.xlu1 %7698  ;;  %v4981_v56 = vrot.slane %v4980_v42, 4  ;;  %v4991_v52 = vrot.slane %v4990_v21, 4  ;;  %v4995_v40 = vrot.slane %v4993_v47, 5  ;;  %v5004_v19 = vor.u32 %v5003_v43, %v5000_v5  ;;  %v13317_v42 = vld [vmem:[#allocation3 + $0x48] sm:$0xf] }
 0x358   : > { %7632 = vrot.lane.b32.xlu0 %v14444_v4, %s9328_s9  ;;  %v13283_v2 = vcombine.low %v12987_v41, %v12996_v23  ;;  %v5014_v55 = vor.u32 %v5013_v10, %v13251_v14  ;;  %v5017_v44 = vshll.u32 %v13259_v34, 16  ;;  %v6197_v9 = vor.u32 %v6196_v57, %v6193_v46  ;;  %v13289_v62 = vpop.permute.xlu0 %6764  ;;  %v4048_v10 = vld [vmem:[#allocation3 + $0xcc] sm:$0x1] }
 0x359   : > { %v14446_v43 = vsel %vm9533_vm15, %v13161_v8, %v13123_v45  ;;  %v5612_v5 = vor.u32 %v5611_v49, %v5608_v37  ;;  %v5622_v41 = vor.u32 %v5621_v15, %v13261_v12  ;;  %v5625_v23 = vshll.u32 %v13269_v27, 16  ;;  %v5082_v15 = vld [vmem:[#allocation3 + $0x9c] sm:$0xe] }
 0x35a   : > { %14445 = vst [vmem:[#allocation21_spill] sm:$0xff] %v13283_v2  ;;  %v8876_v33 = vcombine.low %v14446_v43, %v6189_v3  ;;  %v13299_v21 = vcombine.low %v13217_v35, %v5831_v17  ;;  %v8861_v57 = vcombine.low %v13198_v16, %v13230_v60  ;;  %v6207_v46 = vor.u32 %v6206_v59, %v13271_v38  ;;  %v14447_v3 = vld [vmem:[#allocation35_spill] sm:$0xff] }
 0x35b   : > { %7506 = vrot.lane.b32.xlu1 %v13191_v36, %s9326_s30  ;;  %v6210_v50 = vshll.u32 %v13279_v28, 16  ;;  %v13305_v47 = vpop.permute.xlu1 %6762  ;;  %v4986_v45 = vsel %vm9533_vm15, %v4981_v56, %v13228_v48  ;;  %v4996_v37 = vsel %vm9533_vm15, %v4991_v52, %v4995_v40  ;;  %v5005_v8 = vrot.slane %v5004_v19, 4  ;;  %v14448_v48 = vld [vmem:[#allocation23_spill] sm:$0xff]  ;;  %v5690_v19 = vld [vmem:[#allocation3 + $0xa8] sm:$0xe] }
 0x35c   : > { %6852 = vrot.lane.b32.xlu0 %v12999_v53, %s9331_s12  ;;  %v5226_v35 = vrot.slane %v13211_v25, 5  ;;  %v5015_v20 = vrot.slane %v5014_v55, 4  ;;  %v5019_v49 = vrot.slane %v5017_v44, 5  ;;  %v6198_v53 = vrot.slane %v6197_v9, 4  ;;  %v13330_v4 = vpop.permute.xlu0 %7492 }
 0x35d   : > { %v14449_v17 = vcombine.low %v14447_v3, %v14448_v48  ;;  %v14451_v25 = vcombine.low %v13155_v31, %v13159_v22  ;;  %v5613_v56 = vrot.slane %v5612_v5, 4  ;;  %v5623_v52 = vrot.slane %v5622_v41, 4  ;;  %v4103_v41 = vld [vmem:[#allocation3 + $0xd4] sm:$0x1] }
 0x35e   : > { %v5627_v40 = vrot.slane %v5625_v23, 5  ;;  %v8761_v55 = vcombine.low %v4986_v45, %v4996_v37  ;;  %v6208_v44 = vrot.slane %v6207_v46, 4  ;;  %v6212_v9 = vrot.slane %v6210_v50, 5  ;;  %v14452_v23 = vld [vmem:[#allocation39_spill] sm:$0xff]  ;;  %v13347_v37 = vld [vmem:[#allocation3 + $0x3c] sm:$0xf] }
 0x35f   : > { %v6956_v59 = vsel %vm14450_vm5, %v14449_v17, %v13087_v58  ;;  %6678 = vrot.lane.b32.xlu1 %v14451_v25, %s9332_s13  ;;  %v5834_v43 = vrot.slane %v13221_v39, 5  ;;  %v7491_v3 = vpop.permute.xlu1 %7490  ;;  %v5010_v58 = vsel %vm9533_vm15, %v5005_v8, %v13251_v14  ;;  %v8698_v31 = vrot.slane %v5082_v15, 9 }
 0x360   : > { %7712 = vrot.lane.b32.xlu0 %v8876_v33, %s9331_s12  ;;  %v5228_v22 = vrot.slane %v5226_v35, 4  ;;  %v5229_v5 = vrot.slane %v13259_v34, 5  ;;  %v6999_v45 = vsel %vm14453_vm6, %v6956_v59, %v14452_v23  ;;  %v5020_v46 = vsel %vm9533_vm15, %v5015_v20, %v5019_v49  ;;  %v13345_v33 = vld [vmem:[#allocation3 + $0x40] sm:$0xf]  ;;  %v13353_v34 = vpop.permute.xlu0 %7620  ;;  %v6298_v49 = vld [vmem:[#allocation3 + $0xa8] sm:$0xe]  ;;  %vm14474_vm6 = vmmov %vm14424_vm1 }
 0x361   : > { %v6203_v50 = vsel %vm9533_vm15, %v6198_v53, %v13271_v38  ;;  %v5618_v8 = vsel %vm9533_vm15, %v5613_v56, %v13261_v12  ;;  %v5628_v20 = vsel %vm9533_vm15, %v5623_v52, %v5627_v40  ;;  %v8714_v38 = vrot.slane %v5690_v19, 9 }
 0x362   : > { %v4049_v15 = vsel %vm10923_vm7, 0, %v4048_v10  ;;  %v6213_v48 = vsel %vm9533_vm15, %v6208_v44, %v6212_v9  ;;  %v5836_v17 = vrot.slane %v5834_v43, 4  ;;  %v5837_v59 = vrot.slane %v13269_v27, 5  ;;  %v14456_v27 = vld [vmem:[#allocation30_spill] sm:$0xff]  ;;  %vm14457_vm7 = vmmov %vm14423_vm3  ;;  %v13384_v9 = vld [vmem:[#allocation3 + $0xb4] sm:$0xf] }
 0x363   : > { %7538 = vrot.lane.b32.xlu1 %v13299_v21, %s9332_s13  ;;  %4050 = vst [vmem:[#allocation3 + $0xcc] sm:$0x1] %v4049_v15  ;;  %v4104_v23 = vsel %vm10943_vm11, 0, %v4103_v41  ;;  %v6839_v14 = vpop.permute.xlu1 %6838  ;;  %v7031_v12 = vsel %vm3630_vm4, %v6999_v45, %v12958_v26  ;;  %v8762_v56 = vcombine.low %v5010_v58, %v5020_v46  ;;  %v13373_v10 = vsel %vm9446_vm10, %v8698_v31, %v5226_v35  ;;  %vm14460_vm11 = vmmov %vm14423_vm3 }
 0x364   : > { %6932 = vrot.lane.b32.xlu0 %v13127_v0, %s9334_s23  ;;  %v13377_v52 = vsel %vm9446_vm10, %v5228_v22, %v5229_v5  ;;  %4105 = vst [vmem:[#allocation3 + $0xd4] sm:$0x1] %v4104_v23  ;;  %v7816_v40 = vsel %vm14457_vm7, %v14456_v27, %v7491_v3  ;;  %v7063_v19 = vsel %vm3696_vm14, %v7031_v12, %v6839_v14  ;;  %v8729_v26 = vrot.slane %v6298_v49, 9  ;;  %v13390_v35 = vpop.permute.xlu0 %6840  ;;  %v13397_v22 = vld [vmem:[#allocation3 + $0xb4] sm:$0xf]  ;;  %v14459_v14 = vld [vmem:[#allocation10_spill] sm:$0xff]  ;;  %vm14461_vm3 = vmmov %vm14424_vm1 }
 0x365   : > { %v13382_v44 = vcombine.low %v5618_v8, %v5628_v20  ;;  %v7096_v0 = vsel %vm7086_vm13, %v7063_v19, %v13223_v13  ;;  %v13392_v58 = vcombine.low %v6203_v50, %v6213_v48  ;;  %v5835_v3 = vsel %vm9446_vm10, %v8714_v38, %v5834_v43  ;;  %v13399_v5 = vld [vmem:[#allocation3 + $0xb8] sm:$0xf]  ;;  %v13411_v43 = vld [vmem:[#allocation3 + $0xbc] sm:$0x1]  ;;  %v6299_v50 = vld [vmem:[#allocation3 + $0xb4] sm:$0xe] }
 0x366   : > { %v6436_v31 = vrot.slane %v13230_v60, 5  ;;  %9094 = vmatprep.mubr.msk.bf16.mxu1 %vm7150_vm0, %v7096_v0  ;;  %v8778_v41 = vcombine.low %v13373_v10, %v13377_v52  ;;  %v5838_v13 = vsel %vm9446_vm10, %v5836_v17, %v5837_v59  ;;  %v6439_v45 = vrot.slane %v13279_v28, 5  ;;  %v13421_v49 = vld [vmem:[#allocation3 + $0xb8] sm:$0xf]  ;;  %v13452_v19 = vld [vmem:[#allocation3 + $0xbc] sm:$0x1]  ;;  %vm14477_vm7 = vmmov %vm14424_vm1 }
 0x367   : > { %6774 = vrot.lane.b32.xlu1 %v13283_v2, %s9328_s9  ;;  %v13409_v46 = vcombine.low %v13219_v24, %v13221_v39  ;;  %v7813_v8 = vsel %vm14460_vm11, %v14459_v14, %v12984_v6  ;;  %v7859_v20 = vsel %vm14461_vm3, %v7816_v40, %v13179_v54  ;;  %v13418_v38 = vpop.permute.xlu1 %7782  ;;  %v5630_v28 = vshrl.u32 %v13384_v9, 16  ;;  %v14462_v40 = vld [vmem:[#allocation27_spill] sm:$0xff]  ;;  %vm14479_vm11 = vmmov %vm14450_vm5 }
 0x368   : > { %6598 = vrot.lane.b32.xlu0 %v8761_v55, %s9326_s30  ;;  %v5633_v24 = vshll.u32 %v13384_v9, 16  ;;  %v6215_v39 = vshrl.u32 %v13397_v22, 16  ;;  %v6218_v53 = vshll.u32 %v13397_v22, 16  ;;  %v5639_v15 = vshll.u32 %v13399_v5, 16  ;;  %v13433_v54 = vpop.permute.xlu0 %6586  ;;  %v5691_v10 = vld [vmem:[#allocation3 + $0xb4] sm:$0xe]  ;;  %vm14482_vm3 = vmmov %vm14450_vm5 }
 0x369   : > { %14458 = vst [vmem:[#allocation15_spill] sm:$0xff] %v13409_v46  ;;  %v5643_v6 = vshrl.u32 %v13399_v5, 16  ;;  %v6438_v55 = vrot.slane %v6436_v31, 4  ;;  %v8730_v48 = vrot.slane %v6299_v50, 9  ;;  %v6443_v17 = vrot.slane %v13421_v49, 5 }
 0x36a   : > { %v6446_v59 = vrot.slane %v13411_v43, 5  ;;  %v7891_v25 = vsel %vm3630_vm4, %v7859_v20, %v12905_v7  ;;  %v13439_v23 = vcombine.low %v5835_v3, %v5838_v13  ;;  %v6224_v12 = vshll.u32 %v13421_v49, 16 }
 0x36b   : > { %7634 = vrot.lane.b32.xlu1 %v8861_v57, %s9328_s9  ;;  %v6228_v27 = vshrl.u32 %v13421_v49, 16  ;;  %v7857_v16 = vsel %vm14424_vm1, %v7813_v8, %v14462_v40  ;;  %v13445_v60 = vpop.permute.xlu1 %6670  ;;  %v13450_v57 = vsel %vm9446_vm10, %v8729_v26, %v6436_v31  ;;  %v5632_v7 = vrot.slane %v5630_v28, 4 }
 0x36c   : > { %6600 = vrot.lane.b32.xlu0 %v8762_v56, %s9326_s30  ;;  %v5635_v0 = vrot.slane %v5633_v24, 5  ;;  %v6217_v3 = vrot.slane %v6215_v39, 4  ;;  %v6220_v13 = vrot.slane %v6218_v53, 5  ;;  %v13454_v50 = vrot.slane %v5639_v15, 5  ;;  %v7697_v56 = vpop.permute.xlu0 %7696  ;;  %v13468_v39 = vld [vmem:[#allocation3 + $0xac] sm:$0xf] }
 0x36d   : > { %v5645_v14 = vrot.slane %v5643_v6, 4  ;;  %v7889_v8 = vsel %vm3630_vm4, %v7857_v16, %v13026_v30  ;;  %v7923_v26 = vsel %vm3696_vm14, %v7891_v25, %v13273_v11  ;;  %v13464_v31 = vsel %vm9446_vm10, %v6438_v55, %v6439_v45  ;;  %14463 = vst [vmem:[#allocation12_spill] sm:$0xff] %v13468_v39  ;;  %v5083_v6 = vld [vmem:[#allocation3 + $0xa8] sm:$0xe] }
 0x36e   : > { %v6445_v20 = vrot.slane %v6443_v17, 4  ;;  %v7921_v28 = vsel %vm3696_vm14, %v7889_v8, %v7697_v56  ;;  %v5649_v24 = vshll.u32 %v13452_v19, 16  ;;  %v13470_v53 = vrot.slane %v6224_v12, 5 }
 0x36f   : > { %6854 = vrot.lane.b32.xlu1 %v13191_v36, %s9331_s12  ;;  %v6230_v30 = vrot.slane %v6228_v27, 4  ;;  %v13472_v15 = vpop.permute.xlu1 %7780  ;;  %v7953_v36 = vsel %vm7086_vm13, %v7921_v28, %v13142_v32  ;;  %v13480_v11 = vsel %vm9446_vm10, %v8730_v48, %v6443_v17  ;;  %v5636_v45 = vor.u32 %v5635_v0, %v5632_v7  ;;  %v13487_v27 = vld [vmem:[#allocation3 + $0xb0] sm:$0x1] }
 0x370   : > { %7508 = vrot.lane.b32.xlu0 %v13382_v44, %s9326_s30  ;;  %v5233_v55 = vrot.slane %v13468_v39, 5  ;;  %9129 = vmatmul.mubr.msk.bf16.gmra.mrb[20].mxu0 %vm7150_vm0, %v7953_v36  ;;  %v7955_v25 = vsel %vm7086_vm13, %v7923_v26, %v13073_v61  ;;  %v5646_v12 = vor.u32 %v5645_v14, %v13454_v50  ;;  %v6221_v40 = vor.u32 %v6220_v13, %v6217_v3  ;;  %v6585_v48 = vpop.permute.xlu0 %6584  ;;  %v13506_v13 = vld [vmem:[#allocation3 + $0xa8] sm:$0xf] }
 0x371   : > { %v6234_v32 = vshll.u32 %v13411_v43, 16  ;;  %9132 = vmatprep.mubr.msk.bf16.mxu0 %vm7150_vm0, %v7955_v25  ;;  %v8893_v17 = vcombine.low %v13450_v57, %v13464_v31  ;;  %v13497_v16 = vsel %vm9446_vm10, %v6445_v20, %v6446_v59  ;;  %v8862_v61 = vcombine.low %v13397_v22, %v13421_v49  ;;  %14466 = vst [vmem:[#allocation37_spill] sm:$0xff] %v13506_v13 }
 0x372   : > { %v14464_v7 = vcombine.low %v13347_v37, %v13345_v33  ;;  %v5651_v0 = vrot.slane %v5649_v24, 5  ;;  %v6231_v3 = vor.u32 %v6230_v30, %v13470_v53  ;;  %v5637_v59 = vrot.slane %v5636_v45, 4  ;;  %v14468_v24 = vld [vmem:[#allocation9_spill] sm:$0xff] }
 0x373   : > { %7714 = vrot.lane.b32.xlu1 %v13392_v58, %s9331_s12  ;;  %v8699_v58 = vrot.slane %v5083_v6, 9  ;;  %v13510_v14 = vpop.permute.xlu1 %7526  ;;  %v5235_v33 = vrot.slane %v5233_v55, 4  ;;  %v5236_v37 = vrot.slane %v13487_v27, 5  ;;  %v5647_v56 = vrot.slane %v5646_v12, 4  ;;  %v13547_v12 = vld [vmem:[#allocation3 + $0xb4] sm:$0xf] }
 0x374   : > { %v6959_v43 = vsel %vm14465_vm8, %v14464_v7, %v6585_v48  ;;  %6680 = vrot.lane.b32.xlu0 %v8778_v41, %s9332_s13  ;;  %v6222_v26 = vrot.slane %v6221_v40, 4  ;;  %v6236_v31 = vrot.slane %v6234_v32, 5  ;;  %v5841_v52 = vrot.slane %v13399_v5, 5  ;;  %vm14484_vm8 = vmmov %vm14424_vm1 }
 0x375   : > { %v7001_v57 = vsel %vm14467_vm12, %v6959_v43, %v13257_v18  ;;  %v13521_v18 = vpop.permute.xlu0 %7528  ;;  %v5022_v41 = vshrl.u32 %v13506_v13, 16  ;;  %v5025_v28 = vshll.u32 %v13506_v13, 16  ;;  %v6232_v30 = vrot.slane %v6231_v3, 4  ;;  %v14473_v13 = vld [vmem:[#allocation16_spill] sm:$0xff]  ;;  %vm14486_vm12 = vmmov %vm14482_vm3 }
 0x376   : > { %v7033_v8 = vsel %vm3630_vm4, %v7001_v57, %v12943_v51  ;;  %v5031_v36 = vshll.u32 %v13468_v39, 16  ;;  %v13541_v6 = vsel %vm9446_vm10, %v8699_v58, %v5233_v55  ;;  %v13545_v25 = vsel %vm9446_vm10, %v5235_v33, %v5236_v37  ;;  %v13557_v55 = vld [vmem:[#allocation3 + $0xb8] sm:$0xf] }
 0x377   : > { %6934 = vrot.lane.b32.xlu1 %v13299_v21, %s9334_s23  ;;  %v7065_v20 = vsel %vm3696_vm14, %v7033_v8, %v13390_v35  ;;  %v5035_v21 = vshrl.u32 %v13468_v39, 16  ;;  %v13532_v45 = vpop.permute.xlu1 %6922  ;;  %v8894_v35 = vcombine.low %v13480_v11, %v13497_v16  ;;  %v5642_v40 = vsel %vm9533_vm15, %v5637_v59, %v13454_v50  ;;  %v13567_v59 = vld [vmem:[#allocation3 + $0xc0] sm:$0xf] }
 0x378   : > { %v7098_v51 = vsel %vm7086_vm13, %v7065_v20, %v14468_v24  ;;  %7540 = vrot.lane.b32.xlu0 %v13439_v23, %s9332_s13  ;;  %v5652_v32 = vsel %vm9533_vm15, %v5647_v56, %v5651_v0  ;;  %v6227_v11 = vsel %vm9533_vm15, %v6222_v26, %v13470_v53  ;;  %v8715_v48 = vrot.slane %v5691_v10, 9  ;;  %v13585_v20 = vld [vmem:[#allocation3 + $0x60] sm:$0xf] }
 0x379   : > { %9095 = vmatmul.mubr.msk.bf16.gmra.mrb[24].mxu1 %vm7150_vm0, %v7098_v51  ;;  %v13560_v16 = vpop.permute.xlu0 %6924  ;;  %v5843_v7 = vrot.slane %v5841_v52, 4  ;;  %v5844_v43 = vrot.slane %v13452_v19, 5  ;;  %v5024_v58 = vrot.slane %v5022_v41, 4  ;;  %v5027_v3 = vrot.slane %v5025_v28, 5  ;;  %v13590_v28 = vld [vmem:[#allocation3 + $0xc0] sm:$0xf] }
 0x37a   : > { %v6237_v50 = vsel %vm9533_vm15, %v6232_v30, %v6236_v31  ;;  %v13565_v0 = vrot.slane %v5031_v36, 5  ;;  %v5037_v57 = vrot.slane %v5035_v21, 4  ;;  %v5046_v53 = vshrl.u32 %v13547_v12, 16  ;;  %v13583_v31 = vld [vmem:[#allocation3 + $0x64] sm:$0xf] }
 0x37b   : > { %7794 = vrot.lane.b32.xlu1 %v8893_v17, %s9334_s23  ;;  %v13570_v33 = vpop.permute.xlu1 %7702  ;;  %v8779_v19 = vcombine.low %v13541_v6, %v13545_v25  ;;  %v5049_v17 = vshll.u32 %v13547_v12, 16  ;;  %v5055_v37 = vshll.u32 %v13557_v55, 16  ;;  %v5059_v8 = vshrl.u32 %v13557_v55, 16  ;;  %v13600_v21 = vld [vmem:[#allocation3 + $0xc4] sm:$0xf] }
 0x37c   : > { %6776 = vrot.lane.b32.xlu0 %v13409_v46, %s9328_s9  ;;  %v13579_v56 = vcombine.low %v5642_v40, %v5652_v32  ;;  %v5842_v26 = vsel %vm9446_vm10, %v8715_v48, %v5841_v52  ;;  %v5041_v41 = vshll.u32 %v13487_v27, 16  ;;  %v14469_v24 = vcombine.low %v13317_v42, %v13315_v1  ;;  %v13607_v42 = vld [vmem:[#allocation3 + $0xc4] sm:$0xf] }
 0x37d   : > { %v13598_v52 = vpop.permute.xlu0 %6668  ;;  %v8878_v30 = vcombine.low %v6227_v11, %v6237_v50  ;;  %v5028_v36 = vor.u32 %v5027_v3, %v5024_v58  ;;  %v6239_v6 = vshrl.u32 %v13567_v59, 16  ;;  %v5845_v27 = vsel %vm9446_vm10, %v5843_v7, %v5844_v43  ;;  %v14471_v43 = vld [vmem:[#allocation26_spill] sm:$0xff] }
 0x37e   : > { %v6962_v51 = vsel %vm14470_vm9, %v14469_v24, %v13433_v54  ;;  %v5038_v25 = vor.u32 %v5037_v57, %v13565_v0  ;;  %v6242_v40 = vshll.u32 %v13567_v59, 16  ;;  %v5048_v1 = vrot.slane %v5046_v53, 4  ;;  %vm14488_vm9 = vmmov %vm14482_vm3 }
 0x37f   : > { %7796 = vrot.lane.b32.xlu1 %v8894_v35, %s9334_s23  ;;  %v7495_v54 = vpop.permute.xlu1 %7494  ;;  %v13613_v35 = vld [vmem:[#allocation3 + $0xbc] sm:$0x1]  ;;  %v5051_v32 = vrot.slane %v5049_v17, 5  ;;  %v13615_v11 = vrot.slane %v5055_v37, 5  ;;  %v5061_v48 = vrot.slane %v5059_v8, 4  ;;  %v5654_v7 = vshrl.u32 %v13590_v28, 16 }
 0x380   : > { %7636 = vrot.lane.b32.xlu0 %v8862_v61, %s9328_s9  ;;  %v7003_v58 = vsel %vm14472_vm2, %v6962_v51, %v14471_v43  ;;  %v5043_v3 = vrot.slane %v5041_v41, 5  ;;  %v6252_v50 = vshrl.u32 %v13600_v21, 16  ;;  %v5657_v57 = vshll.u32 %v13590_v28, 16  ;;  %vm14489_vm2 = vmmov %vm14424_vm1 }
 0x381   : > { %v7497_v22 = vpop.permute.xlu0 %7496  ;;  %v5029_v49 = vrot.slane %v5028_v36, 4  ;;  %v6241_v61 = vrot.slane %v6239_v6, 4  ;;  %v5663_v53 = vshll.u32 %v13607_v42, 16  ;;  %v5667_v17 = vshrl.u32 %v13607_v42, 16 }
 0x382   : > { %v5039_v37 = vrot.slane %v5038_v25, 4  ;;  %v6244_v8 = vrot.slane %v6242_v40, 5  ;;  %v5065_v24 = vshll.u32 %v13613_v35, 16  ;;  %v6248_v41 = vshll.u32 %v13600_v21, 16  ;;  %v13636_v40 = vld [vmem:[#allocation3 + $0xc8] sm:$0x1] }
 0x383   : > { %7510 = vrot.lane.b32.xlu1 %v13579_v56, %s9326_s30  ;;  %v6843_v51 = vpop.permute.xlu1 %6842  ;;  %v7035_v43 = vsel %vm3630_vm4, %v7003_v58, %v13305_v47  ;;  %v5052_v10 = vor.u32 %v5051_v32, %v5048_v1  ;;  %v5062_v36 = vor.u32 %v5061_v48, %v13615_v11  ;;  %v5656_v6 = vrot.slane %v5654_v7, 4 }
 0x384   : > { %6856 = vrot.lane.b32.xlu0 %v13382_v44, %s9331_s12  ;;  %v7822_v39 = vsel %vm14450_vm5, %v14473_v13, %v7495_v54  ;;  %v7067_v25 = vsel %vm3696_vm14, %v7035_v43, %v6843_v51  ;;  %v5659_v46 = vrot.slane %v5657_v57, 5  ;;  %v8748_v2 = vcombine.low %v13547_v12, %v13557_v55  ;;  %v13663_v57 = vld [vmem:[#allocation3 + $0xc8] sm:$0x1]  ;;  %vm14490_vm5 = vmmov %vm14424_vm1 }
 0x385   : > { %v7100_v47 = vsel %vm7086_vm13, %v7067_v25, %v13532_v45  ;;  %v13643_v44 = vpop.permute.xlu0 %6844  ;;  %v13645_v1 = vcombine.low %v5842_v26, %v5845_v27  ;;  %v13647_v32 = vrot.slane %v5663_v53, 5  ;;  %v5669_v13 = vrot.slane %v5667_v17, 4 }
 0x386   : > { %9098 = vmatprep.mubr.msk.bf16.mxu1 %vm7150_vm0, %v7100_v47  ;;  %v5034_v54 = vsel %vm9533_vm15, %v5029_v49, %v13565_v0  ;;  %v5044_v48 = vsel %vm9533_vm15, %v5039_v37, %v5043_v3  ;;  %v6254_v7 = vrot.slane %v6252_v50, 4  ;;  %v7863_v45 = vsel %vm14474_vm6, %v7822_v39, %v13510_v14  ;;  %v14475_v0 = vld [vmem:[#allocation40_spill] sm:$0xff]  ;;  %v14476_v49 = vld [vmem:[#allocation18_spill] sm:$0xff]  ;;  %v14478_v39 = vld [vmem:[#allocation29_spill] sm:$0xff] }
 0x387   : > { %6682 = vrot.lane.b32.xlu1 %v8779_v19, %s9332_s13  ;;  %v13655_v19 = vrot.slane %v6248_v41, 5  ;;  %v13659_v26 = vpop.permute.xlu1 %6766  ;;  %v5053_v27 = vrot.slane %v5052_v10, 4  ;;  %v5673_v58 = vshll.u32 %v13636_v40, 16  ;;  %v6245_v53 = vor.u32 %v6244_v8, %v6241_v61  ;;  %v5084_v41 = vld [vmem:[#allocation3 + $0xb4] sm:$0xe]  ;;  %v14483_v47 = vld [vmem:[#allocation6_spill] sm:$0xff]  ;;  %vm14496_vm6 = vmmov %vm14424_vm1 }
 0x388   : > { %7716 = vrot.lane.b32.xlu0 %v8878_v30, %s9331_s12  ;;  %v13668_v3 = vsel %vm14477_vm7, %v14476_v49, %v14475_v0  ;;  %v5063_v17 = vrot.slane %v5062_v36, 4  ;;  %v5067_v50 = vrot.slane %v5065_v24, 5  ;;  %v5660_v37 = vor.u32 %v5659_v46, %v5656_v6  ;;  %v14480_v24 = vld [vmem:[#allocation24_spill] sm:$0xff]  ;;  %v14481_v36 = vld [vmem:[#allocation22_spill] sm:$0xff]  ;;  %vm14498_vm7 = vmmov %vm14482_vm3 }
 0x389   : > { %v7819_v14 = vsel %vm14479_vm11, %v14478_v39, %v13330_v4  ;;  %v6591_v10 = vpop.permute.xlu0 %6590  ;;  %v13677_v30 = vcombine.low %v13384_v9, %v13399_v5  ;;  %v8863_v61 = vcombine.low %v13567_v59, %v13600_v21  ;;  %v5670_v8 = vor.u32 %v5669_v13, %v13647_v32  ;;  %vm14499_vm11 = vmmov %vm14424_vm1 }
 0x38a   : > { %v7895_v46 = vsel %vm3630_vm4, %v7863_v45, %v14480_v24  ;;  %v8763_v51 = vcombine.low %v5034_v54, %v5044_v48  ;;  %v6255_v4 = vor.u32 %v6254_v7, %v13655_v19  ;;  %v6258_v43 = vshll.u32 %v13663_v57, 16 }
 0x38b   : > { %7542 = vrot.lane.b32.xlu1 %v13645_v1, %s9332_s13  ;;  %v7825_v6 = vsel %vm14482_vm3, %v14481_v36, %v7497_v22  ;;  %v5058_v9 = vsel %vm9533_vm15, %v5053_v27, %v13615_v11  ;;  %v5675_v5 = vrot.slane %v5673_v58, 5  ;;  %v6246_v59 = vrot.slane %v6245_v53, 4  ;;  %v6300_v36 = vld [vmem:[#allocation3 + $0xc0] sm:$0xe] }
 0x38c   : > { %v13688_v25 = vpop.permute.xlu1 %7626  ;;  %6936 = vrot.lane.b32.xlu0 %v13439_v23, %s9334_s23  ;;  %v7861_v13 = vsel %vm14424_vm1, %v7819_v14, %v14483_v47  ;;  %v5068_v54 = vsel %vm9533_vm15, %v5063_v17, %v5067_v50  ;;  %v5661_v48 = vrot.slane %v5660_v37, 4  ;;  %v8700_v7 = vrot.slane %v5084_v41, 9  ;;  %v9305_v50 = vld [vmem:[#allocation3 + $0x58] sm:$0xf]  ;;  %v9306_v37 = vld [vmem:[#allocation3 + $0x54] sm:$0xf] }
 0x38d   : > { %v7893_v22 = vsel %vm3630_vm4, %v7861_v13, %v13353_v34  ;;  %v7701_v23 = vpop.permute.xlu0 %7700  ;;  %v7927_v11 = vsel %vm3696_vm14, %v7895_v46, %v13570_v33  ;;  %v5671_v45 = vrot.slane %v5670_v8, 4  ;;  %v5240_v27 = vrot.slane %v13557_v55, 5  ;;  %v5692_v8 = vld [vmem:[#allocation3 + $0xc0] sm:$0xe] }
 0x38e   : > { %v7865_v58 = vsel %vm14484_vm8, %v7825_v6, %v13521_v18  ;;  %v7925_v53 = vsel %vm3696_vm14, %v7893_v22, %v7701_v23  ;;  %v6256_v0 = vrot.slane %v6255_v4, 4  ;;  %v6260_v49 = vrot.slane %v6258_v43, 5  ;;  %v13761_v23 = vld [vmem:[#allocation3 + $0xcc] sm:$0xf]  ;;  %vm14504_vm8 = vmmov %vm14489_vm2 }
 0x38f   : > { %6778 = vrot.lane.b32.xlu1 %v13677_v30, %s9328_s9  ;;  %v7957_v34 = vsel %vm7086_vm13, %v7925_v53, %v13472_v15  ;;  %v8740_v39 = vcombine.low %v9306_v37, %v9305_v50  ;;  %v8764_v33 = vcombine.low %v5058_v9, %v5068_v54  ;;  %v6251_v14 = vsel %vm9533_vm15, %v6246_v59, %v13655_v19  ;;  %v14491_v54 = vld [vmem:[#allocation43_spill] sm:$0xff]  ;;  %v14492_v53 = vld [vmem:[#allocation32_spill] sm:$0xff] }
 0x390   : > { %v6847_v17 = vpop.permute.xlu1 %6846  ;;  %6602 = vrot.lane.b32.xlu0 %v8763_v51, %s9326_s30  ;;  %v14485_v18 = vcombine.low %v13585_v20, %v13583_v31  ;;  %9133 = vmatmul.mubr.msk.bf16.gmra.mrb[24].mxu0 %vm7150_vm0, %v7957_v34  ;;  %v7959_v24 = vsel %vm7086_vm13, %v7927_v11, %v13418_v38  ;;  %v5243_v15 = vrot.slane %v13613_v35, 5  ;;  %v5848_v46 = vrot.slane %v13607_v42, 5  ;;  %v14487_v51 = vld [vmem:[#allocation31_spill] sm:$0xff]  ;;  %v6301_v34 = vld [vmem:[#allocation3 + $0xcc] sm:$0xe] }
 0x391   : > { %v7897_v4 = vsel %vm3630_vm4, %v7865_v58, %v14487_v51  ;;  %9136 = vmatprep.mubr.msk.bf16.mxu0 %vm7150_vm0, %v7959_v24  ;;  %v6589_v19 = vpop.permute.xlu0 %6588  ;;  %v5666_v31 = vsel %vm9533_vm15, %v5661_v48, %v13647_v32  ;;  %v5676_v20 = vsel %vm9533_vm15, %v5671_v45, %v5675_v5  ;;  %v5242_v38 = vrot.slane %v5240_v27, 4 }
 0x392   : > { %v6968_v41 = vsel %vm14486_vm12, %v14485_v18, %v6591_v10  ;;  %v6965_v35 = vsel %vm14488_vm9, %v8740_v39, %v6589_v19  ;;  %v6261_v10 = vsel %vm9533_vm15, %v6256_v0, %v6260_v49  ;;  %v5241_v43 = vsel %vm9446_vm10, %v8700_v7, %v5240_v27  ;;  %vm14507_vm9 = vmmov %vm14489_vm2 }
 0x393   : > { %7638 = vrot.lane.b32.xlu1 %v8863_v61, %s9328_s9  ;;  %v8716_v61 = vrot.slane %v5692_v8, 9  ;;  %v7007_v6 = vsel %vm14489_vm2, %v6968_v41, %v13445_v60  ;;  %v7005_v32 = vsel %vm14490_vm5, %v6965_v35, %v13598_v52  ;;  %v5851_v5 = vrot.slane %v13636_v40, 5  ;;  %v13751_v60 = vld [vmem:[#allocation3 + $0xd0] sm:$0xf]  ;;  %v5901_v8 = vld [vmem:[#allocation3 + $0xd4] sm:$0x1] }
 0x394   : > { %v7707_v9 = vpop.permute.xlu1 %7706  ;;  %6604 = vrot.lane.b32.xlu0 %v8764_v33, %s9326_s30  ;;  %v6450_v59 = vrot.slane %v13600_v21, 5  ;;  %v7037_v47 = vsel %vm3630_vm4, %v7005_v32, %v13289_v62  ;;  %v13747_v13 = vcombine.low %v5666_v31, %v5676_v20  ;;  %v7929_v48 = vsel %vm3696_vm14, %v7897_v4, %v14491_v54 }
 0x395   : > { %v5850_v7 = vrot.slane %v5848_v46, 4  ;;  %v13755_v52 = vpop.permute.xlu0 %6672  ;;  %v7069_v40 = vsel %vm3696_vm14, %v7037_v47, %v13643_v44  ;;  %v8879_v21 = vcombine.low %v6251_v14, %v6261_v10  ;;  %v5244_v62 = vsel %vm9446_vm10, %v5242_v38, %v5243_v15 }
 0x396   : > { %v8731_v22 = vrot.slane %v6300_v36, 9  ;;  %v7039_v11 = vsel %vm3630_vm4, %v7007_v6, %v13659_v26  ;;  %v7102_v45 = vsel %vm7086_vm13, %v7069_v40, %v13560_v16  ;;  %v6457_v27 = vrot.slane %v13751_v60, 5 }
 0x397   : > { %6858 = vrot.lane.b32.xlu1 %v13579_v56, %s9331_s12  ;;  %v6453_v56 = vrot.slane %v13663_v57, 5  ;;  %v7071_v58 = vsel %vm3696_vm14, %v7039_v11, %v6847_v17  ;;  %9099 = vmatmul.mubr.msk.bf16.gmra.mrb[28].mxu1 %vm7150_vm0, %v7102_v45  ;;  %v7961_v0 = vsel %vm7086_vm13, %v7929_v48, %v14492_v53  ;;  %v6452_v49 = vrot.slane %v6450_v59, 4  ;;  %v9308_v45 = vld [vmem:[#allocation3 + $0x6c] sm:$0xf]  ;;  %v14497_v53 = vld [vmem:[#allocation25_spill] sm:$0xff] }
 0x398   : > { %v6927_v44 = vpop.permute.xlu1 %6926  ;;  %7512 = vrot.lane.b32.xlu0 %v13747_v13, %s9326_s30  ;;  %v6276_v26 = vshrl.u32 %v13751_v60, 16  ;;  %9137 = vmatmul.mubr.msk.bf16.gmra.mrb[28].mxu0 %vm7150_vm0, %v7961_v0  ;;  %v6263_v57 = vshrl.u32 %v13761_v23, 16  ;;  %v6266_v17 = vshll.u32 %v13761_v23, 16  ;;  %v6272_v50 = vshll.u32 %v13751_v60, 16  ;;  %s8952_s30 = sshll.u32 %s14529_s25, 9 }
 0x399   : > { %v7104_v16 = vsel %vm7086_vm13, %v7071_v58, %v6927_v44  ;;  %v7533_v37 = vpop.permute.xlu0 %7532  ;;  %v8780_v39 = vcombine.low %v5241_v43, %v5244_v62  ;;  %v5849_v33 = vsel %vm9446_vm10, %v8716_v61, %v5848_v46  ;;  %v5852_v14 = vsel %vm9446_vm10, %v5850_v7, %v5851_v5  ;;  %v14493_v62 = vld [vmem:[#allocation42_spill] sm:$0xff]  ;;  %s13888_s26 = scalar_lea.vmem %s14081_s6, %s8952_s30 }
 0x39a   : > { %9102 = vmatprep.mubr.msk.bf16.mxu1 %vm7150_vm0, %v7104_v16  ;;  %v7899_v18 = vsel %vm3630_vm4, %v13668_v3, %v13688_v25  ;;  %v8732_v41 = vrot.slane %v6301_v34, 9  ;;  %v6459_v24 = vrot.slane %v6457_v27, 4  ;;  %v6460_v15 = vrot.slane %v5901_v8, 5 }
 0x39b   : > { %7718 = vrot.lane.b32.xlu1 %v8879_v21, %s9331_s12  ;;  %v7931_v51 = vsel %vm3696_vm14, %v7899_v18, %v7707_v9  ;;  %v6451_v19 = vsel %vm9446_vm10, %v8731_v22, %v6450_v59  ;;  %v6454_v46 = vsel %vm9446_vm10, %v6452_v49, %v6453_v56  ;;  %v6278_v31 = vrot.slane %v6276_v26, 4  ;;  %v14494_v22 = vld [vmem:[#allocation41_spill] sm:$0xff] }
 0x39c   : > { %v7787_v4 = vpop.permute.xlu1 %7786  ;;  %6684 = vrot.lane.b32.xlu0 %v8780_v39, %s9332_s13  ;;  %v6265_v38 = vrot.slane %v6263_v57, 4  ;;  %v6268_v35 = vrot.slane %v6266_v17, 5  ;;  %v6274_v3 = vrot.slane %v6272_v50, 5  ;;  %v8828_v10 = vcombine.low %v5849_v33, %v5852_v14  ;;  %v9309_v14 = vld [vmem:[#allocation3 + $0x7c] sm:$0xf] }
 0x39d   : > { %v7963_v20 = vsel %vm7086_vm13, %v7931_v51, %v7787_v4  ;;  %v6769_v25 = vpop.permute.xlu0 %6768  ;;  %v6458_v43 = vsel %vm9446_vm10, %v8732_v41, %v6457_v27  ;;  %v6461_v61 = vsel %vm9446_vm10, %v6459_v24, %v6460_v15  ;;  %v8895_v6 = vcombine.low %v6451_v19, %v6454_v46  ;;  %vm14495_vm10 = vmmov %vm14482_vm3 }
 0x39e   : > { %9140 = vmatprep.mubr.msk.bf16.mxu0 %vm7150_vm0, %v7963_v20  ;;  %v6269_v32 = vor.u32 %v6268_v35, %v6265_v38  ;;  %v6279_v9 = vor.u32 %v6278_v31, %v6274_v3  ;;  %v6282_v5 = vshll.u32 %v5901_v8, 16  ;;  %v13808_v59 = vcombine.low %v13590_v28, %v13607_v42  ;;  %v9307_v42 = vld [vmem:[#allocation3 + $0x70] sm:$0xf]  ;;  %v9310_v8 = vld [vmem:[#allocation3 + $0x78] sm:$0xf] }
 0x39f   : > { %6938 = vrot.lane.b32.xlu1 %v13645_v1, %s9334_s23  ;;  %v8896_v47 = vcombine.low %v6458_v43, %v6461_v61  ;;  %v8864_v29 = vcombine.low %v13761_v23, %v13751_v60  ;;  %v7831_v11 = vsel %vm14495_vm10, %v14494_v22, %v14493_v62  ;;  %v8742_v56 = vcombine.low %v9308_v45, %v9307_v42  ;;  %v14502_v38 = vld [vmem:[#allocation19_spill] sm:$0xff] }
 0x3a0   : > { %v7789_v36 = vpop.permute.xlu1 %7788  ;;  %7544 = vrot.lane.b32.xlu0 %v8828_v10, %s9332_s13  ;;  %v6270_v48 = vrot.slane %v6269_v32, 4  ;;  %v6280_v7 = vrot.slane %v6279_v9, 4  ;;  %v6284_v40 = vrot.slane %v6282_v5, 5  ;;  %v7869_v27 = vsel %vm14496_vm6, %v7831_v11, %v7533_v37 }
 0x3a1   : > { %v6971_v0 = vsel %vm14498_vm7, %v8742_v56, %v14497_v53  ;;  %v8743_v18 = vcombine.low %v9310_v8, %v9309_v14  ;;  %v14512_v8 = vld [vmem:[#allocation21_spill] sm:$0xff] }
 0x3a2   : > { %v7629_v1 = vpop.permute.xlu0 %7628  ;;  %v6275_v60 = vsel %vm9533_vm15, %v6270_v48, %v6274_v3  ;;  %v6285_v23 = vsel %vm9533_vm15, %v6280_v7, %v6284_v40  ;;  %v7009_v26 = vsel %vm14499_vm11, %v6971_v0, %v13755_v52  ;;  %vm14500_vm15 = vmmov %vm14482_vm3  ;;  %v9311_v7 = vld [vmem:[#allocation3 + $0x84] sm:$0xf]  ;;  %v9312_v40 = vld [vmem:[#allocation3 + $0x88] sm:$0xf] }
 0x3a3   : > { %7798 = vrot.lane.b32.xlu1 %v8895_v6, %s9334_s23  ;;  %v7901_v58 = vsel %vm3630_vm4, %v7869_v27, %v7629_v1  ;;  %v8880_v57 = vcombine.low %v6275_v60, %v6285_v23  ;;  %v7041_v63 = vsel %vm3630_vm4, %v7009_v26, %v6769_v25  ;;  %vm14501_vm3 = vmmov %vm14424_vm1 }
 0x3a4   : > { %v7503_v54 = vpop.permute.xlu1 %7502  ;;  %6780 = vrot.lane.b32.xlu0 %v13808_v59, %s9328_s9  ;;  %vm14503_vm1 = vmmov %vm14498_vm7 }
 0x3a5   : > { %v7834_v35 = vsel %vm14503_vm1, %v14502_v38, %v7503_v54  ;;  %v14505_v54 = vld [vmem:[#allocation34_spill] sm:$0xff]  ;;  %vm14506_vm12 = vmmov %vm14503_vm1 }
 0x3a6   : > { %v6849_v21 = vpop.permute.xlu0 %6848  ;;  %vm14508_vm2 = vmmov %vm14503_vm1 }
 0x3a7   : > { %7800 = vrot.lane.b32.xlu1 %v8896_v47, %s9334_s23  ;;  %v7073_v17 = vsel %vm3696_vm14, %v7041_v63, %v6849_v21  ;;  %v8744_v21 = vcombine.low %v9311_v7, %v9312_v40  ;;  %vm14509_vm5 = vmmov %vm14501_vm3  ;;  %v9315_v40 = vld [vmem:[#allocation3 + $0x9c] sm:$0xf] }
 0x3a8   : > { %7640 = vrot.lane.b32.xlu0 %v8864_v29, %s9328_s9  ;;  %vm14510_vm10 = vmmov %vm14503_vm1 }
 0x3a9   : > { %v6675_v28 = vpop.permute.xlu1 %6674  ;;  %vm14511_vm6 = vmmov %vm14501_vm3 }
 0x3aa   : > { %v7709_v44 = vpop.permute.xlu0 %7708  ;;  %vm14513_vm7 = vmmov %vm14503_vm1 }
 0x3ab   : > { %v7933_v49 = vsel %vm3696_vm14, %v7901_v58, %v7709_v44  ;;  %vm14514_vm11 = vmmov %vm14501_vm3 }
 0x3ac   : > { %6860 = vrot.lane.b32.xlu0 %v13747_v13, %s9331_s12  ;;  %v7965_v16 = vsel %vm7086_vm13, %v7933_v49, %v7789_v36 }
 0x3ad   : > { %v7535_v34 = vpop.permute.xlu1 %7534  ;;  %9141 = vmatmul.mubr.msk.bf16.gmra.mrb[32].mxu0 %vm7150_vm0, %v7965_v16  ;;  %v9314_v16 = vld [vmem:[#allocation3 + $0x90] sm:$0xf] }
 0x3ae   : > { %v6929_v50 = vpop.permute.xlu0 %6928  ;;  %v7871_v25 = vsel %vm14504_vm8, %v7834_v35, %v7535_v34  ;;  %v9313_v34 = vld [vmem:[#allocation3 + $0x94] sm:$0xf]  ;;  %vm14517_vm8 = vmmov %vm14501_vm3 }
 0x3af   : > { %v7106_v37 = vsel %vm7086_vm13, %v7073_v17, %v6929_v50 }
 0x3b0   : > { %7720 = vrot.lane.b32.xlu0 %v8880_v57, %s9331_s12  ;;  %9103 = vmatmul.mubr.msk.bf16.gmra.mrb[32].mxu1 %vm7150_vm0, %v7106_v37  ;;  %v8745_v57 = vcombine.low %v9314_v16, %v9313_v34 }
 0x3b1   : > { %v6771_v39 = vpop.permute.xlu1 %6770 }
 0x3b2   : > { %v6595_v52 = vpop.permute.xlu0 %6594 }
 0x3b3   : > { %v6974_v24 = vsel %vm14500_vm15, %v8743_v18, %v6595_v52  ;;  %vm14516_vm15 = vmmov %vm14503_vm1 }
 0x3b4   : > { %6940 = vrot.lane.b32.xlu0 %v8828_v10, %s9334_s23  ;;  %v7011_v51 = vsel %vm14501_vm3, %v6974_v24, %v6675_v28 }
 0x3b5   : > { %v7631_v33 = vpop.permute.xlu1 %7630  ;;  %v7043_v46 = vsel %vm3630_vm4, %v7011_v51, %v6771_v39 }
 0x3b6   : > { %v6597_v13 = vpop.permute.xlu0 %6596  ;;  %v7903_v43 = vsel %vm3630_vm4, %v7871_v25, %v7631_v33 }
 0x3b7   : > { %v6977_v28 = vsel %vm14508_vm2, %v8744_v21, %v6597_v13  ;;  %v9316_v21 = vld [vmem:[#allocation3 + $0xa0] sm:$0xf]  ;;  %vm14522_vm2 = vmmov %vm14503_vm1 }
 0x3b9   : > { %v6851_v41 = vpop.permute.xlu1 %6850 }
 0x3ba   : > { %v7505_v15 = vpop.permute.xlu0 %7504  ;;  %v7075_v31 = vsel %vm3696_vm14, %v7043_v46, %v6851_v41 }
 0x3bb   : > { %v7837_v29 = vsel %vm14506_vm12, %v14505_v54, %v7505_v15  ;;  %vm14520_vm12 = vmmov %vm14503_vm1 }
 0x3bd   : > { %v7711_v4 = vpop.permute.xlu1 %7710 }
 0x3be   : > { %v6677_v19 = vpop.permute.xlu0 %6676  ;;  %v7935_v61 = vsel %vm3696_vm14, %v7903_v43, %v7711_v4 }
 0x3bf   : > { %v7013_v45 = vsel %vm14509_vm5, %v6977_v28, %v6677_v19  ;;  %vm14523_vm5 = vmmov %vm14501_vm3 }
 0x3c1   : > { %v6931_v20 = vpop.permute.xlu1 %6930 }
 0x3c2   : > { %v7108_v3 = vsel %vm7086_vm13, %v7075_v31, %v6931_v20  ;;  %v7537_v10 = vpop.permute.xlu0 %7536  ;;  %v13882_v31 = vld [vmem:[%s14080_s5] ss:$0 sm:$0xff] }
 0x3c3   : > { %9106 = vmatprep.mubr.msk.bf16.mxu1 %vm7150_vm0, %v7108_v3  ;;  %v7873_v62 = vsel %vm14507_vm9, %v7837_v29, %v7537_v10  ;;  %vm14521_vm9 = vmmov %vm14501_vm3 }
 0x3c5   : > { %v7791_v36 = vpop.permute.xlu1 %7790 }
 0x3c6   : > { %v7967_v6 = vsel %vm7086_vm13, %v7935_v61, %v7791_v36  ;;  %v6773_v32 = vpop.permute.xlu0 %6772 }
 0x3c7   : > { %9144 = vmatprep.mubr.msk.bf16.mxu0 %vm7150_vm0, %v7967_v6  ;;  %v7045_v60 = vsel %vm3630_vm4, %v7013_v45, %v6773_v32 }
 0x3c9   : > { %v7793_v9 = vpop.permute.xlu1 %7792 }
 0x3ca   : > { %v7633_v5 = vpop.permute.xlu0 %7632 }
 0x3cb   : > { %v7905_v22 = vsel %vm3630_vm4, %v7873_v62, %v7633_v5  ;;  %v8746_v62 = vcombine.low %v9315_v40, %v9316_v21 }
 0x3cd   : > { %v7507_v1 = vpop.permute.xlu1 %7506 }
 0x3ce   : > { %v6853_v47 = vpop.permute.xlu0 %6852  ;;  %v7840_v18 = vsel %vm14513_vm7, %v14512_v8, %v7507_v1  ;;  %vm14526_vm7 = vmmov %vm14501_vm3 }
 0x3cf   : > { %v7077_v23 = vsel %vm3696_vm14, %v7045_v60, %v6853_v47 }
 0x3d1   : > { %v6679_v48 = vpop.permute.xlu1 %6678 }
 0x3d2   : > { %v7713_v11 = vpop.permute.xlu0 %7712 }
 0x3d3   : > { %v7937_v42 = vsel %vm3696_vm14, %v7905_v22, %v7713_v11  ;;  %v14515_v22 = vld [vmem:[#allocation15_spill] sm:$0xff] }
 0x3d4   : > { %v7969_v27 = vsel %vm7086_vm13, %v7937_v42, %v7793_v9 }
 0x3d5   : > { %v7539_v56 = vpop.permute.xlu1 %7538  ;;  %9145 = vmatmul.mubr.msk.bf16.gmra.mrb[36].mxu0 %vm7150_vm0, %v7969_v27 }
 0x3d6   : > { %v6933_v58 = vpop.permute.xlu0 %6932  ;;  %v7875_v24 = vsel %vm14514_vm11, %v7840_v18, %v7539_v56  ;;  %vm14527_vm11 = vmmov %vm14501_vm3 }
 0x3d7   : > { %v7110_v44 = vsel %vm7086_vm13, %v7077_v23, %v6933_v58 }
 0x3d8   : > { %9107 = vmatmul.mubr.msk.bf16.gmra.mrb[36].mxu1 %vm7150_vm0, %v7110_v44 }
 0x3d9   : > { %v6775_v53 = vpop.permute.xlu1 %6774 }
 0x3da   : > { %v6599_v0 = vpop.permute.xlu0 %6598 }
 0x3db   : > { %v6980_v17 = vsel %vm14510_vm10, %v8745_v57, %v6599_v0  ;;  %vm14524_vm10 = vmmov %vm14503_vm1 }
 0x3dc   : > { %v7015_v37 = vsel %vm14511_vm6, %v6980_v17, %v6679_v48  ;;  %vm14525_vm6 = vmmov %vm14503_vm1 }
 0x3dd   : > { %v7635_v49 = vpop.permute.xlu1 %7634  ;;  %v7047_v33 = vsel %vm3630_vm4, %v7015_v37, %v6775_v53 }
 0x3de   : > { %v6601_v26 = vpop.permute.xlu0 %6600  ;;  %v7907_v51 = vsel %vm3630_vm4, %v7875_v24, %v7635_v49 }
 0x3df   : > { %v6983_v58 = vsel %vm14503_vm1, %v8746_v62, %v6601_v26 }
 0x3e1   : > { %v6855_v63 = vpop.permute.xlu1 %6854 }
 0x3e2   : > { %v7509_v50 = vpop.permute.xlu0 %7508  ;;  %v7079_v13 = vsel %vm3696_vm14, %v7047_v33, %v6855_v63  ;;  %v14518_v33 = vld [vmem:[#allocation12_spill] sm:$0xff] }
 0x3e3   : > { %v7843_v11 = vsel %vm14516_vm15, %v14515_v22, %v7509_v50 }
 0x3e5   : > { %v7715_v39 = vpop.permute.xlu1 %7714 }
 0x3e6   : > { %v6681_v52 = vpop.permute.xlu0 %6680  ;;  %v7939_v4 = vsel %vm3696_vm14, %v7907_v51, %v7715_v39 }
 0x3e7   : > { %v7017_v0 = vsel %vm14517_vm8, %v6983_v58, %v6681_v52  ;;  %v14519_v52 = vld [vmem:[#allocation37_spill] sm:$0xff] }
 0x3e9   : > { %v6935_v14 = vpop.permute.xlu1 %6934 }
 0x3ea   : > { %v7112_v41 = vsel %vm7086_vm13, %v7079_v13, %v6935_v14  ;;  %v7541_v15 = vpop.permute.xlu0 %7540  ;;  %v8747_v13 = vcombine.low %v14519_v52, %v14518_v33 }
 0x3eb   : > { %9110 = vmatprep.mubr.msk.bf16.mxu1 %vm7150_vm0, %v7112_v41  ;;  %v7877_v42 = vsel %vm14501_vm3, %v7843_v11, %v7541_v15 }
 0x3ed   : > { %v7795_v19 = vpop.permute.xlu1 %7794 }
 0x3ee   : > { %v7971_v46 = vsel %vm7086_vm13, %v7939_v4, %v7795_v19  ;;  %v6777_v20 = vpop.permute.xlu0 %6776 }
 0x3ef   : > { %9148 = vmatprep.mubr.msk.bf16.mxu0 %vm7150_vm0, %v7971_v46  ;;  %v9088_v38 = vpop.f32.mrb[16].mxu1  ;;  %v7049_v16 = vsel %vm3630_vm4, %v7017_v0, %v6777_v20 }
 0x3f0   : > { %v7226_v3 = vadd.f32 %v9088_v38, %v13882_v31  ;;  %v7217_v25 = vpop.f32.mrb[17].mxu1 }
 0x3f1   : > { %v7797_v35 = vpop.permute.xlu1 %7796  ;;  %v7218_v10 = vadd.f32 %v13882_v31, %v7217_v25  ;;  %v9089_v43 = vpop.f32.mrb[18].mxu1 }
 0x3f2   : > { %7346 = vst [vmem:[%s13888_s26 + $0x20] sm:$0xff] %v7226_v3  ;;  %v7229_v61 = vadd.f32 %v9089_v43, %v13882_v31  ;;  %v7220_v36 = vpop.f32.mrb[19].mxu1  ;;  %v7637_v6 = vpop.permute.xlu0 %7636  ;;  %v7415_v29 = vmul.f32 %v7226_v3, %v7226_v3 }
 0x3f3   : > { %7344 = vst [vmem:[%s13888_s26] sm:$0xff] %v7218_v10  ;;  %v7221_v32 = vadd.f32 %v13882_v31, %v7220_v36  ;;  %v7413_v5 = vmul.f32 %v7218_v10, %v7218_v10  ;;  %v7909_v60 = vsel %vm3630_vm4, %v7877_v42, %v7637_v6 }
 0x3f4   : > { %7347 = vst [vmem:[%s13888_s26 + $0x28] sm:$0xff] %v7229_v61  ;;  %v7416_v45 = vmul.f32 %v7229_v61, %v7229_v61 }
 0x3f5   : > { %v7511_v9 = vpop.permute.xlu1 %7510  ;;  %7345 = vst [vmem:[%s13888_s26 + $0x8] sm:$0xff] %v7221_v32  ;;  %v7376_v1 = vadd.f32 %v7221_v32, %v7218_v10  ;;  %v7414_v47 = vmul.f32 %v7221_v32, %v7221_v32 }
 0x3f6   : > { %v6857_v54 = vpop.permute.xlu0 %6856  ;;  %v7846_v46 = vsel %vm14522_vm2, %v13677_v30, %v7511_v9 }
 0x3f7   : > { %v7377_v48 = vadd.f32 %v7376_v1, %v7226_v3  ;;  %v7445_v7 = vadd.f32 %v7414_v47, %v7413_v5  ;;  %v7081_v57 = vsel %vm3696_vm14, %v7049_v16, %v6857_v54 }
 0x3f9   : > { %v6683_v28 = vpop.permute.xlu1 %6682  ;;  %v7446_v56 = vadd.f32 %v7445_v7, %v7415_v29  ;;  %v13901_v27 = vadd.f32 %v7377_v48, %v7229_v61 }
 0x3fa   : > { %v7717_v23 = vpop.permute.xlu0 %7716 }
 0x3fb   : > { %v7941_v44 = vsel %vm3696_vm14, %v7909_v60, %v7717_v23  ;;  %v13906_v53 = vadd.f32 %v7446_v56, %v7416_v45 }
 0x3fc   : > { %v7973_v34 = vsel %vm7086_vm13, %v7941_v44, %v7797_v35 }
 0x3fd   : > { %v7543_v49 = vpop.permute.xlu1 %7542  ;;  %9149 = vmatmul.mubr.msk.bf16.gmra.mrb[40].mxu0 %vm7150_vm0, %v7973_v34 }
 0x3fe   : > { %v6937_v63 = vpop.permute.xlu0 %6936  ;;  %v7879_v38 = vsel %vm14523_vm5, %v7846_v46, %v7543_v49 }
 0x3ff   : > { %v7114_v17 = vsel %vm7086_vm13, %v7081_v57, %v6937_v63 }
 0x400   : > { %9111 = vmatmul.mubr.msk.bf16.gmra.mrb[40].mxu1 %vm7150_vm0, %v7114_v17 }
 0x401   : > { %v6779_v50 = vpop.permute.xlu1 %6778 }
 0x402   : > { %v6603_v26 = vpop.permute.xlu0 %6602 }
 0x403   : > { %v6986_v8 = vsel %vm14520_vm12, %v8747_v13, %v6603_v26 }
 0x404   : > { %v7019_v41 = vsel %vm14521_vm9, %v6986_v8, %v6683_v28 }
 0x405   : > { %v7639_v37 = vpop.permute.xlu1 %7638  ;;  %v7051_v51 = vsel %vm3630_vm4, %v7019_v41, %v6779_v50 }
 0x406   : > { %v6605_v39 = vpop.permute.xlu0 %6604  ;;  %v7911_v3 = vsel %vm3630_vm4, %v7879_v38, %v7639_v37 }
 0x407   : > { %v6989_v29 = vsel %vm14524_vm10, %v8748_v2, %v6605_v39 }
 0x409   : > { %v6859_v14 = vpop.permute.xlu1 %6858 }
 0x40a   : > { %v7513_v18 = vpop.permute.xlu0 %7512  ;;  %v7083_v4 = vsel %vm3696_vm14, %v7051_v51, %v6859_v14 }
 0x40b   : > { %v7849_v48 = vsel %vm14525_vm6, %v13808_v59, %v7513_v18 }
 0x40d   : > { %v7719_v24 = vpop.permute.xlu1 %7718 }
 0x40e   : > { %v6685_v15 = vpop.permute.xlu0 %6684  ;;  %v7943_v25 = vsel %vm3696_vm14, %v7911_v3, %v7719_v24 }
 0x40f   : > { %v7021_v40 = vsel %vm14526_vm7, %v6989_v29, %v6685_v15 }
 0x411   : > { %v6939_v19 = vpop.permute.xlu1 %6938 }
 0x412   : > { %v7116_v20 = vsel %vm7086_vm13, %v7083_v4, %v6939_v19  ;;  %v7545_v35 = vpop.permute.xlu0 %7544 }
 0x413   : > { %9114 = vmatprep.mubr.msk.bf16.mxu1 %vm7150_vm0, %v7116_v20  ;;  %v7881_v21 = vsel %vm14527_vm11, %v7849_v48, %v7545_v35 }
 0x415   : > { %v7799_v10 = vpop.permute.xlu1 %7798 }
 0x416   : > { %v7975_v43 = vsel %vm7086_vm13, %v7943_v25, %v7799_v10  ;;  %v6781_v61 = vpop.permute.xlu0 %6780 }
 0x417   : > { %9152 = vmatprep.mubr.msk.bf16.mxu0 %vm7150_vm0, %v7975_v43  ;;  %v7053_v2 = vsel %vm3630_vm4, %v7021_v40, %v6781_v61 }
 0x419   : > { %v7801_v62 = vpop.permute.xlu1 %7800 }
 0x41a   : > { %v7641_v30 = vpop.permute.xlu0 %7640 }
 0x41b   : > { %v9126_v36 = vpop.f32.mrb[16].mxu0  ;;  %v7913_v22 = vsel %vm3630_vm4, %v7881_v21, %v7641_v30 }
 0x41c   : > { %v8084_v6 = vadd.f32 %v9126_v36, %v13882_v31  ;;  %v8075_v32 = vpop.f32.mrb[17].mxu0 }
 0x41d   : > { %v8076_v9 = vadd.f32 %v13882_v31, %v8075_v32  ;;  %v9127_v5 = vpop.f32.mrb[18].mxu0 }
 0x41e   : > { %v6861_v1 = vpop.permute.xlu0 %6860  ;;  %8919 = vst [vmem:[%s13888_s26 + $0x30] sm:$0xff] %v8084_v6  ;;  %v8087_v47 = vadd.f32 %v9127_v5, %v13882_v31  ;;  %v8078_v54 = vpop.f32.mrb[19].mxu0  ;;  %v8275_v59 = vmul.f32 %v8084_v6, %v8084_v6 }
 0x41f   : > { %8917 = vst [vmem:[%s13888_s26 + $0x10] sm:$0xff] %v8076_v9  ;;  %v8079_v7 = vadd.f32 %v13882_v31, %v8078_v54  ;;  %v8273_v11 = vmul.f32 %v8076_v9, %v8076_v9  ;;  %v7085_v0 = vsel %vm3696_vm14, %v7053_v2, %v6861_v1 }
 0x420   : > { %8920 = vst [vmem:[%s13888_s26 + $0x38] sm:$0xff] %v8087_v47  ;;  %v8276_v16 = vmul.f32 %v8087_v47, %v8087_v47 }
 0x421   : > { %8918 = vst [vmem:[%s13888_s26 + $0x18] sm:$0xff] %v8079_v7  ;;  %v8235_v28 = vadd.f32 %v8079_v7, %v8076_v9  ;;  %v8274_v12 = vmul.f32 %v8079_v7, %v8079_v7 }
 0x422   : > { %v7721_v55 = vpop.permute.xlu0 %7720 }
 0x423   : > { %v7945_v42 = vsel %vm3696_vm14, %v7913_v22, %v7721_v55  ;;  %v9092_v45 = vpop.f32.mrb[20].mxu1  ;;  %v8236_v56 = vadd.f32 %v8235_v28, %v8084_v6  ;;  %v8305_v60 = vadd.f32 %v8274_v12, %v8273_v11 }
 0x424   : > { %v7977_v23 = vsel %vm7086_vm13, %v7945_v42, %v7801_v62  ;;  %v7242_v58 = vadd.f32 %v9092_v45, %v13882_v31  ;;  %v7233_v44 = vpop.f32.mrb[21].mxu1 }
 0x425   : > { %v7234_v49 = vadd.f32 %v13882_v31, %v7233_v44  ;;  %v9093_v34 = vpop.f32.mrb[22].mxu1  ;;  %9153 = vmatmul.mubr.msk.bf16.gmra.mrb[44].mxu0 %vm7150_vm0, %v7977_v23  ;;  %v8306_v57 = vadd.f32 %v8305_v60, %v8275_v59  ;;  %v8237_v26 = vadd.f32 %v8236_v56, %v8087_v47 }
 0x426   : > { %7350 = vst [vmem:[%s13888_s26 + $0x60] sm:$0xff] %v7242_v58  ;;  %v7245_v63 = vadd.f32 %v9093_v34, %v13882_v31  ;;  %v7236_v17 = vpop.f32.mrb[23].mxu1  ;;  %v6941_v50 = vpop.permute.xlu0 %6940  ;;  %v7419_v41 = vmul.f32 %v7242_v58, %v7242_v58 }
 0x427   : > { %7348 = vst [vmem:[%s13888_s26 + $0x40] sm:$0xff] %v7234_v49  ;;  %v7379_v37 = vadd.f32 %v13901_v27, %v7234_v49  ;;  %v7417_v39 = vmul.f32 %v7234_v49, %v7234_v49  ;;  %v7237_v33 = vadd.f32 %v13882_v31, %v7236_v17  ;;  %v7118_v52 = vsel %vm7086_vm13, %v7085_v0, %v6941_v50 }
 0x428   : > { %7351 = vst [vmem:[%s13888_s26 + $0x68] sm:$0xff] %v7245_v63  ;;  %9115 = vmatmul.mubr.msk.bf16.gmra.mrb[44].mxu1 %vm7150_vm0, %v7118_v52  ;;  %v8307_v13 = vadd.f32 %v8306_v57, %v8276_v16  ;;  %v7420_v27 = vmul.f32 %v7245_v63, %v7245_v63 }
 0x429   : > { %v7448_v14 = vadd.f32 %v13906_v53, %v7417_v39  ;;  %7349 = vst [vmem:[%s13888_s26 + $0x48] sm:$0xff] %v7237_v33  ;;  %v7380_v8 = vadd.f32 %v7379_v37, %v7237_v33  ;;  %v7418_v18 = vmul.f32 %v7237_v33, %v7237_v33 }
 0x42b   : > { %v7381_v24 = vadd.f32 %v7380_v8, %v7242_v58  ;;  %v7449_v15 = vadd.f32 %v7448_v14, %v7418_v18 }
 0x42d   : > { %v7450_v51 = vadd.f32 %v7449_v15, %v7419_v41  ;;  %v7382_v4 = vadd.f32 %v7381_v24, %v7245_v63 }
 0x42f   : > { %v7451_v19 = vadd.f32 %v7450_v51, %v7420_v27 }
 0x443   : > { %v9130_v46 = vpop.f32.mrb[20].mxu0 }
 0x444   : > { %v8100_v20 = vadd.f32 %v9130_v46, %v13882_v31  ;;  %v8091_v38 = vpop.f32.mrb[21].mxu0 }
 0x445   : > { %v8092_v53 = vadd.f32 %v13882_v31, %v8091_v38  ;;  %v9131_v35 = vpop.f32.mrb[22].mxu0 }
 0x446   : > { %8923 = vst [vmem:[%s13888_s26 + $0x70] sm:$0xff] %v8100_v20  ;;  %v8103_v3 = vadd.f32 %v9131_v35, %v13882_v31  ;;  %v8094_v25 = vpop.f32.mrb[23].mxu0  ;;  %v8279_v9 = vmul.f32 %v8100_v20, %v8100_v20 }
 0x447   : > { %8921 = vst [vmem:[%s13888_s26 + $0x50] sm:$0xff] %v8092_v53  ;;  %v8238_v10 = vadd.f32 %v8237_v26, %v8092_v53  ;;  %v8277_v43 = vmul.f32 %v8092_v53, %v8092_v53  ;;  %v8095_v61 = vadd.f32 %v13882_v31, %v8094_v25 }
 0x448   : > { %8924 = vst [vmem:[%s13888_s26 + $0x78] sm:$0xff] %v8103_v3  ;;  %v8280_v7 = vmul.f32 %v8103_v3, %v8103_v3 }
 0x449   : > { %v8308_v30 = vadd.f32 %v8307_v13, %v8277_v43  ;;  %8922 = vst [vmem:[%s13888_s26 + $0x58] sm:$0xff] %v8095_v61  ;;  %v8239_v36 = vadd.f32 %v8238_v10, %v8095_v61  ;;  %v8278_v6 = vmul.f32 %v8095_v61, %v8095_v61 }
 0x44b   : > { %v8240_v5 = vadd.f32 %v8239_v36, %v8100_v20  ;;  %v8309_v1 = vadd.f32 %v8308_v30, %v8278_v6 }
 0x44c   : > { %v9096_v32 = vpop.f32.mrb[24].mxu1 }
 0x44d   : > { %v7258_v47 = vadd.f32 %v9096_v32, %v13882_v31  ;;  %v7249_v54 = vpop.f32.mrb[25].mxu1  ;;  %v8310_v40 = vadd.f32 %v8309_v1, %v8279_v9  ;;  %v8241_v22 = vadd.f32 %v8240_v5, %v8103_v3 }
 0x44e   : > { %v7250_v29 = vadd.f32 %v13882_v31, %v7249_v54  ;;  %v9097_v48 = vpop.f32.mrb[26].mxu1 }
 0x44f   : > { %7354 = vst [vmem:[%s13888_s26 + $0xa0] sm:$0xff] %v7258_v47  ;;  %v7261_v21 = vadd.f32 %v9097_v48, %v13882_v31  ;;  %v7252_v62 = vpop.f32.mrb[27].mxu1  ;;  %v8311_v55 = vadd.f32 %v8310_v40, %v8280_v7  ;;  %v7423_v45 = vmul.f32 %v7258_v47, %v7258_v47 }
 0x450   : > { %7352 = vst [vmem:[%s13888_s26 + $0x80] sm:$0xff] %v7250_v29  ;;  %v7383_v11 = vadd.f32 %v7382_v4, %v7250_v29  ;;  %v7421_v28 = vmul.f32 %v7250_v29, %v7250_v29  ;;  %v7253_v12 = vadd.f32 %v13882_v31, %v7252_v62 }
 0x451   : > { %7355 = vst [vmem:[%s13888_s26 + $0xa8] sm:$0xff] %v7261_v21  ;;  %v7424_v23 = vmul.f32 %v7261_v21, %v7261_v21 }
 0x452   : > { %v7452_v2 = vadd.f32 %v7451_v19, %v7421_v28  ;;  %7353 = vst [vmem:[%s13888_s26 + $0x88] sm:$0xff] %v7253_v12  ;;  %v7384_v59 = vadd.f32 %v7383_v11, %v7253_v12  ;;  %v7422_v42 = vmul.f32 %v7253_v12, %v7253_v12 }
 0x454   : > { %v7385_v56 = vadd.f32 %v7384_v59, %v7258_v47  ;;  %v7453_v60 = vadd.f32 %v7452_v2, %v7422_v42 }
 0x456   : > { %v7454_v58 = vadd.f32 %v7453_v60, %v7423_v45  ;;  %v7386_v44 = vadd.f32 %v7385_v56, %v7261_v21 }
 0x458   : > { %v7455_v0 = vadd.f32 %v7454_v58, %v7424_v23 }
 0x463   : > { %v9134_v49 = vpop.f32.mrb[24].mxu0 }
 0x464   : > { %v8116_v34 = vadd.f32 %v9134_v49, %v13882_v31  ;;  %v8107_v16 = vpop.f32.mrb[25].mxu0 }
 0x465   : > { %v8108_v57 = vadd.f32 %v13882_v31, %v8107_v16  ;;  %v9135_v63 = vpop.f32.mrb[26].mxu0 }
 0x466   : > { %8927 = vst [vmem:[%s13888_s26 + $0xb0] sm:$0xff] %v8116_v34  ;;  %v8119_v17 = vadd.f32 %v9135_v63, %v13882_v31  ;;  %v8110_v50 = vpop.f32.mrb[27].mxu0  ;;  %v8283_v8 = vmul.f32 %v8116_v34, %v8116_v34 }
 0x467   : > { %8925 = vst [vmem:[%s13888_s26 + $0x90] sm:$0xff] %v8108_v57  ;;  %v8242_v26 = vadd.f32 %v8241_v22, %v8108_v57  ;;  %v8281_v37 = vmul.f32 %v8108_v57, %v8108_v57  ;;  %v8111_v39 = vadd.f32 %v13882_v31, %v8110_v50 }
 0x468   : > { %8928 = vst [vmem:[%s13888_s26 + $0xb8] sm:$0xff] %v8119_v17  ;;  %v8284_v20 = vmul.f32 %v8119_v17, %v8119_v17 }
 0x469   : > { %v8312_v33 = vadd.f32 %v8311_v55, %v8281_v37  ;;  %8926 = vst [vmem:[%s13888_s26 + $0x98] sm:$0xff] %v8111_v39  ;;  %v8243_v52 = vadd.f32 %v8242_v26, %v8111_v39  ;;  %v8282_v13 = vmul.f32 %v8111_v39, %v8111_v39 }
 0x46a   : > { %v9100_v14 = vpop.f32.mrb[28].mxu1 }
 0x46b   : > { %v8244_v18 = vadd.f32 %v8243_v52, %v8116_v34  ;;  %v8313_v41 = vadd.f32 %v8312_v33, %v8282_v13  ;;  %v7274_v24 = vadd.f32 %v9100_v14, %v13882_v31  ;;  %v7265_v15 = vpop.f32.mrb[29].mxu1  ;;  %v9138_v27 = vpop.f32.mrb[28].mxu0 }
 0x46c   : > { %v7266_v51 = vadd.f32 %v13882_v31, %v7265_v15  ;;  %v8132_v4 = vadd.f32 %v9138_v27, %v13882_v31  ;;  %v9101_v19 = vpop.f32.mrb[30].mxu1  ;;  %v8123_v46 = vpop.f32.mrb[29].mxu0 }
 0x46d   : > { %v8314_v38 = vadd.f32 %v8313_v41, %v8283_v8  ;;  %7358 = vst [vmem:[%s13888_s26 + $0xe0] sm:$0xff] %v7274_v24  ;;  %v7277_v53 = vadd.f32 %v9101_v19, %v13882_v31  ;;  %v8124_v35 = vadd.f32 %v13882_v31, %v8123_v46  ;;  %v7268_v3 = vpop.f32.mrb[31].mxu1  ;;  %v9139_v25 = vpop.f32.mrb[30].mxu0  ;;  %v8245_v61 = vadd.f32 %v8244_v18, %v8119_v17 }
 0x46e   : > { %7356 = vst [vmem:[%s13888_s26 + $0xc0] sm:$0xff] %v7266_v51  ;;  %v7387_v10 = vadd.f32 %v7386_v44, %v7266_v51  ;;  %v7425_v43 = vmul.f32 %v7266_v51, %v7266_v51  ;;  %8931 = vst [vmem:[%s13888_s26 + $0xf0] sm:$0xff] %v8132_v4  ;;  %v8126_v30 = vpop.f32.mrb[31].mxu0  ;;  %v7269_v32 = vadd.f32 %v13882_v31, %v7268_v3 }
 0x46f   : > { %7359 = vst [vmem:[%s13888_s26 + $0xe8] sm:$0xff] %v7277_v53  ;;  %8929 = vst [vmem:[%s13888_s26 + $0xd0] sm:$0xff] %v8124_v35  ;;  %v8285_v36 = vmul.f32 %v8124_v35, %v8124_v35  ;;  %v8315_v6 = vadd.f32 %v8314_v38, %v8284_v20  ;;  %v8246_v5 = vadd.f32 %v8245_v61, %v8124_v35 }
 0x470   : > { %v7456_v9 = vadd.f32 %v7455_v0, %v7425_v43  ;;  %v8135_v1 = vadd.f32 %v9139_v25, %v13882_v31  ;;  %v8127_v47 = vadd.f32 %v13882_v31, %v8126_v30  ;;  %7357 = vst [vmem:[%s13888_s26 + $0xc8] sm:$0xff] %v7269_v32  ;;  %v7388_v29 = vadd.f32 %v7387_v10, %v7269_v32 }
 0x471   : > { %v8316_v54 = vadd.f32 %v8315_v6, %v8285_v36  ;;  %v7426_v48 = vmul.f32 %v7269_v32, %v7269_v32  ;;  %v7427_v21 = vmul.f32 %v7274_v24, %v7274_v24  ;;  %v8287_v11 = vmul.f32 %v8132_v4, %v8132_v4 }
 0x472   : > { %8932 = vst [vmem:[%s13888_s26 + $0xf8] sm:$0xff] %v8135_v1  ;;  %8930 = vst [vmem:[%s13888_s26 + $0xd8] sm:$0xff] %v8127_v47  ;;  %v8247_v7 = vadd.f32 %v8246_v5, %v8127_v47  ;;  %v8286_v40 = vmul.f32 %v8127_v47, %v8127_v47  ;;  %v7389_v62 = vadd.f32 %v7388_v29, %v7274_v24 }
 0x473   : > { %v7457_v22 = vadd.f32 %v7456_v9, %v7426_v48  ;;  %v7428_v55 = vmul.f32 %v7277_v53, %v7277_v53  ;;  %v8288_v42 = vmul.f32 %v8135_v1, %v8135_v1 }
 0x474   : > { %v8248_v28 = vadd.f32 %v8247_v7, %v8132_v4  ;;  %v8317_v12 = vadd.f32 %v8316_v54, %v8286_v40  ;;  %v7390_v59 = vadd.f32 %v7389_v62, %v7277_v53 }
 0x475   : > { %v7458_v2 = vadd.f32 %v7457_v22, %v7427_v21 }
 0x476   : > { %v8318_v45 = vadd.f32 %v8317_v12, %v8287_v11  ;;  %v8249_v56 = vadd.f32 %v8248_v28, %v8135_v1 }
 0x477   : > { %v7459_v60 = vadd.f32 %v7458_v2, %v7428_v55 }
 0x478   : > { %v8319_v23 = vadd.f32 %v8318_v45, %v8288_v42 }
 0x480   : > { %v9142_v58 = vpop.f32.mrb[32].mxu0 }
 0x481   : > { %v8148_v44 = vadd.f32 %v9142_v58, %v13882_v31  ;;  %v8139_v0 = vpop.f32.mrb[33].mxu0 }
 0x482   : > { %v8140_v49 = vadd.f32 %v13882_v31, %v8139_v0  ;;  %v9143_v34 = vpop.f32.mrb[34].mxu0 }
 0x483   : > { %8935 = vst [vmem:[%s13888_s26 + $0x130] sm:$0xff] %v8148_v44  ;;  %v8151_v16 = vadd.f32 %v9143_v34, %v13882_v31  ;;  %v9104_v57 = vpop.f32.mrb[32].mxu1  ;;  %v8142_v63 = vpop.f32.mrb[35].mxu0  ;;  %v8291_v51 = vmul.f32 %v8148_v44, %v8148_v44 }
 0x484   : > { %8933 = vst [vmem:[%s13888_s26 + $0x110] sm:$0xff] %v8140_v49  ;;  %v8250_v17 = vadd.f32 %v8249_v56, %v8140_v49  ;;  %v8289_v50 = vmul.f32 %v8140_v49, %v8140_v49  ;;  %v7290_v26 = vadd.f32 %v9104_v57, %v13882_v31  ;;  %v8143_v37 = vadd.f32 %v13882_v31, %v8142_v63  ;;  %v7281_v39 = vpop.f32.mrb[33].mxu1 }
 0x485   : > { %8936 = vst [vmem:[%s13888_s26 + $0x138] sm:$0xff] %v8151_v16  ;;  %v7282_v33 = vadd.f32 %v13882_v31, %v7281_v39  ;;  %v9105_v52 = vpop.f32.mrb[34].mxu1  ;;  %v8292_v53 = vmul.f32 %v8151_v16, %v8151_v16 }
 0x486   : > { %v8320_v13 = vadd.f32 %v8319_v23, %v8289_v50  ;;  %7362 = vst [vmem:[%s13888_s26 + $0x120] sm:$0xff] %v7290_v26  ;;  %8934 = vst [vmem:[%s13888_s26 + $0x118] sm:$0xff] %v8143_v37  ;;  %v8251_v14 = vadd.f32 %v8250_v17, %v8143_v37  ;;  %v8290_v8 = vmul.f32 %v8143_v37, %v8143_v37  ;;  %v7284_v18 = vpop.f32.mrb[35].mxu1 }
 0x487   : > { %7360 = vst [vmem:[%s13888_s26 + $0x100] sm:$0xff] %v7282_v33  ;;  %v7391_v41 = vadd.f32 %v7390_v59, %v7282_v33  ;;  %v7429_v24 = vmul.f32 %v7282_v33, %v7282_v33  ;;  %v7293_v15 = vadd.f32 %v9105_v52, %v13882_v31  ;;  %v7285_v27 = vadd.f32 %v13882_v31, %v7284_v18 }
 0x488   : > { %v8252_v4 = vadd.f32 %v8251_v14, %v8148_v44  ;;  %v8321_v19 = vadd.f32 %v8320_v13, %v8290_v8  ;;  %v7431_v25 = vmul.f32 %v7290_v26, %v7290_v26 }
 0x489   : > { %v7460_v46 = vadd.f32 %v7459_v60, %v7429_v24  ;;  %7363 = vst [vmem:[%s13888_s26 + $0x128] sm:$0xff] %v7293_v15  ;;  %7361 = vst [vmem:[%s13888_s26 + $0x108] sm:$0xff] %v7285_v27  ;;  %v7392_v20 = vadd.f32 %v7391_v41, %v7285_v27  ;;  %v7430_v38 = vmul.f32 %v7285_v27, %v7285_v27 }
 0x48a   : > { %v8322_v35 = vadd.f32 %v8321_v19, %v8291_v51  ;;  %v8253_v3 = vadd.f32 %v8252_v4, %v8151_v16  ;;  %v7432_v30 = vmul.f32 %v7293_v15, %v7293_v15 }
 0x48b   : > { %v7393_v10 = vadd.f32 %v7392_v20, %v7290_v26  ;;  %v7461_v43 = vadd.f32 %v7460_v46, %v7430_v38 }
 0x48c   : > { %v8323_v61 = vadd.f32 %v8322_v35, %v8292_v53 }
 0x48d   : > { %v7462_v36 = vadd.f32 %v7461_v43, %v7431_v25  ;;  %v7394_v6 = vadd.f32 %v7393_v10, %v7293_v15 }
 0x48f   : > { %v7463_v32 = vadd.f32 %v7462_v36, %v7432_v30 }
 0x4a8   : > { %v9146_v9 = vpop.f32.mrb[36].mxu0 }
 0x4a9   : > { %v8164_v5 = vadd.f32 %v9146_v9, %v13882_v31  ;;  %v8155_v1 = vpop.f32.mrb[37].mxu0 }
 0x4aa   : > { %v8156_v47 = vadd.f32 %v13882_v31, %v8155_v1  ;;  %v9147_v54 = vpop.f32.mrb[38].mxu0 }
 0x4ab   : > { %8939 = vst [vmem:[%s13888_s26 + $0x170] sm:$0xff] %v8164_v5  ;;  %v8167_v29 = vadd.f32 %v9147_v54, %v13882_v31  ;;  %v9108_v48 = vpop.f32.mrb[36].mxu1  ;;  %v8158_v7 = vpop.f32.mrb[39].mxu0  ;;  %v8295_v58 = vmul.f32 %v8164_v5, %v8164_v5 }
 0x4ac   : > { %8937 = vst [vmem:[%s13888_s26 + $0x150] sm:$0xff] %v8156_v47  ;;  %v8254_v40 = vadd.f32 %v8253_v3, %v8156_v47  ;;  %v8293_v21 = vmul.f32 %v8156_v47, %v8156_v47  ;;  %v7306_v62 = vadd.f32 %v9108_v48, %v13882_v31  ;;  %v8159_v22 = vadd.f32 %v13882_v31, %v8158_v7  ;;  %v7297_v11 = vpop.f32.mrb[37].mxu1 }
 0x4ad   : > { %8940 = vst [vmem:[%s13888_s26 + $0x178] sm:$0xff] %v8167_v29  ;;  %v7298_v28 = vadd.f32 %v13882_v31, %v7297_v11  ;;  %v9109_v12 = vpop.f32.mrb[38].mxu1  ;;  %v8296_v57 = vmul.f32 %v8167_v29, %v8167_v29 }
 0x4ae   : > { %v8324_v55 = vadd.f32 %v8323_v61, %v8293_v21  ;;  %7366 = vst [vmem:[%s13888_s26 + $0x160] sm:$0xff] %v7306_v62  ;;  %8938 = vst [vmem:[%s13888_s26 + $0x158] sm:$0xff] %v8159_v22  ;;  %v8255_v2 = vadd.f32 %v8254_v40, %v8159_v22  ;;  %v8294_v59 = vmul.f32 %v8159_v22, %v8159_v22  ;;  %v7300_v42 = vpop.f32.mrb[39].mxu1 }
 0x4af   : > { %7364 = vst [vmem:[%s13888_s26 + $0x140] sm:$0xff] %v7298_v28  ;;  %v7395_v45 = vadd.f32 %v7394_v6, %v7298_v28  ;;  %v7433_v56 = vmul.f32 %v7298_v28, %v7298_v28  ;;  %v7309_v60 = vadd.f32 %v9109_v12, %v13882_v31  ;;  %v7301_v23 = vadd.f32 %v13882_v31, %v7300_v42 }
 0x4b0   : > { %v8256_v44 = vadd.f32 %v8255_v2, %v8164_v5  ;;  %v8325_v0 = vadd.f32 %v8324_v55, %v8294_v59  ;;  %v7435_v50 = vmul.f32 %v7306_v62, %v7306_v62 }
 0x4b1   : > { %v7464_v49 = vadd.f32 %v7463_v32, %v7433_v56  ;;  %7367 = vst [vmem:[%s13888_s26 + $0x168] sm:$0xff] %v7309_v60  ;;  %7365 = vst [vmem:[%s13888_s26 + $0x148] sm:$0xff] %v7301_v23  ;;  %v7396_v34 = vadd.f32 %v7395_v45, %v7301_v23  ;;  %v7434_v16 = vmul.f32 %v7301_v23, %v7301_v23 }
 0x4b2   : > { %v8326_v63 = vadd.f32 %v8325_v0, %v8295_v58  ;;  %v8257_v17 = vadd.f32 %v8256_v44, %v8167_v29  ;;  %v7436_v33 = vmul.f32 %v7309_v60, %v7309_v60 }
 0x4b3   : > { %v7397_v26 = vadd.f32 %v7396_v34, %v7306_v62  ;;  %v7465_v37 = vadd.f32 %v7464_v49, %v7434_v16 }
 0x4b4   : > { %v8327_v39 = vadd.f32 %v8326_v63, %v8296_v57 }
 0x4b5   : > { %v7466_v52 = vadd.f32 %v7465_v37, %v7435_v50  ;;  %v7398_v13 = vadd.f32 %v7397_v26, %v7309_v60 }
 0x4b7   : > { %v7467_v14 = vadd.f32 %v7466_v52, %v7436_v33 }
 0x4d0   : > { %v9150_v8 = vpop.f32.mrb[40].mxu0 }
 0x4d1   : > { %v8180_v18 = vadd.f32 %v9150_v8, %v13882_v31  ;;  %v8171_v41 = vpop.f32.mrb[41].mxu0 }
 0x4d2   : > { %v8172_v24 = vadd.f32 %v13882_v31, %v8171_v41  ;;  %v9151_v15 = vpop.f32.mrb[42].mxu0 }
 0x4d3   : > { %8943 = vst [vmem:[%s13888_s26 + $0x1b0] sm:$0xff] %v8180_v18  ;;  %v8183_v27 = vadd.f32 %v9151_v15, %v13882_v31  ;;  %v9112_v51 = vpop.f32.mrb[40].mxu1  ;;  %v8174_v4 = vpop.f32.mrb[43].mxu0  ;;  %v8299_v9 = vmul.f32 %v8180_v18, %v8180_v18 }
 0x4d4   : > { %8941 = vst [vmem:[%s13888_s26 + $0x190] sm:$0xff] %v8172_v24  ;;  %v8258_v19 = vadd.f32 %v8257_v17, %v8172_v24  ;;  %v8297_v46 = vmul.f32 %v8172_v24, %v8172_v24  ;;  %v7322_v20 = vadd.f32 %v9112_v51, %v13882_v31  ;;  %v8175_v38 = vadd.f32 %v13882_v31, %v8174_v4  ;;  %v7313_v53 = vpop.f32.mrb[41].mxu1 }
 0x4d5   : > { %8944 = vst [vmem:[%s13888_s26 + $0x1b8] sm:$0xff] %v8183_v27  ;;  %v7314_v35 = vadd.f32 %v13882_v31, %v7313_v53  ;;  %v9113_v3 = vpop.f32.mrb[42].mxu1  ;;  %v8300_v48 = vmul.f32 %v8183_v27, %v8183_v27 }
 0x4d6   : > { %v8328_v25 = vadd.f32 %v8327_v39, %v8297_v46  ;;  %7370 = vst [vmem:[%s13888_s26 + $0x1a0] sm:$0xff] %v7322_v20  ;;  %8942 = vst [vmem:[%s13888_s26 + $0x198] sm:$0xff] %v8175_v38  ;;  %v8259_v10 = vadd.f32 %v8258_v19, %v8175_v38  ;;  %v8298_v43 = vmul.f32 %v8175_v38, %v8175_v38  ;;  %v7316_v61 = vpop.f32.mrb[43].mxu1 }
 0x4d7   : > { %7368 = vst [vmem:[%s13888_s26 + $0x180] sm:$0xff] %v7314_v35  ;;  %v7399_v30 = vadd.f32 %v7398_v13, %v7314_v35  ;;  %v7437_v36 = vmul.f32 %v7314_v35, %v7314_v35  ;;  %v7325_v6 = vadd.f32 %v9113_v3, %v13882_v31  ;;  %v7317_v32 = vadd.f32 %v13882_v31, %v7316_v61 }
 0x4d8   : > { %v8260_v5 = vadd.f32 %v8259_v10, %v8180_v18  ;;  %v8329_v1 = vadd.f32 %v8328_v25, %v8298_v43  ;;  %v7439_v21 = vmul.f32 %v7322_v20, %v7322_v20 }
 0x4d9   : > { %v7468_v47 = vadd.f32 %v7467_v14, %v7437_v36  ;;  %7371 = vst [vmem:[%s13888_s26 + $0x1a8] sm:$0xff] %v7325_v6  ;;  %7369 = vst [vmem:[%s13888_s26 + $0x188] sm:$0xff] %v7317_v32  ;;  %v7400_v54 = vadd.f32 %v7399_v30, %v7317_v32  ;;  %v7438_v29 = vmul.f32 %v7317_v32, %v7317_v32 }
 0x4da   : > { %v8330_v7 = vadd.f32 %v8329_v1, %v8299_v9  ;;  %v8261_v40 = vadd.f32 %v8260_v5, %v8183_v27  ;;  %v7440_v28 = vmul.f32 %v7325_v6, %v7325_v6 }
 0x4db   : > { %v7401_v62 = vadd.f32 %v7400_v54, %v7322_v20  ;;  %v7469_v22 = vadd.f32 %v7468_v47, %v7438_v29 }
 0x4dc   : > { %v8331_v11 = vadd.f32 %v8330_v7, %v8300_v48 }
 0x4dd   : > { %v7470_v12 = vadd.f32 %v7469_v22, %v7439_v21  ;;  %v7402_v55 = vadd.f32 %v7401_v62, %v7325_v6 }
 0x4df   : > { %v7471_v2 = vadd.f32 %v7470_v12, %v7440_v28 }
 0x4f8   : > { %v9154_v59 = vpop.f32.mrb[44].mxu0 }
 0x4f9   : > { %v8196_v42 = vadd.f32 %v9154_v59, %v13882_v31  ;;  %v8187_v45 = vpop.f32.mrb[45].mxu0 }
 0x4fa   : > { %v8188_v56 = vadd.f32 %v13882_v31, %v8187_v45  ;;  %v9155_v60 = vpop.f32.mrb[46].mxu0 }
 0x4fb   : > { %8947 = vst [vmem:[%s13888_s26 + $0x1f0] sm:$0xff] %v8196_v42  ;;  %v8199_v23 = vadd.f32 %v9155_v60, %v13882_v31  ;;  %v9116_v58 = vpop.f32.mrb[44].mxu1  ;;  %v8190_v44 = vpop.f32.mrb[47].mxu0  ;;  %v8303_v8 = vmul.f32 %v8196_v42, %v8196_v42 }
 0x4fc   : > { %8945 = vst [vmem:[%s13888_s26 + $0x1d0] sm:$0xff] %v8188_v56  ;;  %v8262_v0 = vadd.f32 %v8261_v40, %v8188_v56  ;;  %v8301_v49 = vmul.f32 %v8188_v56, %v8188_v56  ;;  %v7338_v34 = vadd.f32 %v9116_v58, %v13882_v31  ;;  %v8191_v16 = vadd.f32 %v13882_v31, %v8190_v44  ;;  %v7329_v57 = vpop.f32.mrb[45].mxu1 }
 0x4fd   : > { %8948 = vst [vmem:[%s13888_s26 + $0x1f8] sm:$0xff] %v8199_v23  ;;  %v7330_v63 = vadd.f32 %v13882_v31, %v7329_v57  ;;  %v9117_v17 = vpop.f32.mrb[46].mxu1  ;;  %v8304_v51 = vmul.f32 %v8199_v23, %v8199_v23 }
 0x4fe   : > { %v8332_v50 = vadd.f32 %v8331_v11, %v8301_v49  ;;  %7374 = vst [vmem:[%s13888_s26 + $0x1e0] sm:$0xff] %v7338_v34  ;;  %8946 = vst [vmem:[%s13888_s26 + $0x1d8] sm:$0xff] %v8191_v16  ;;  %v8263_v26 = vadd.f32 %v8262_v0, %v8191_v16  ;;  %v8302_v37 = vmul.f32 %v8191_v16, %v8191_v16  ;;  %v7332_v39 = vpop.f32.mrb[47].mxu1 }
 0x4ff   : > { %7372 = vst [vmem:[%s13888_s26 + $0x1c0] sm:$0xff] %v7330_v63  ;;  %v7403_v33 = vadd.f32 %v7402_v55, %v7330_v63  ;;  %v7441_v52 = vmul.f32 %v7330_v63, %v7330_v63  ;;  %v7341_v13 = vadd.f32 %v9117_v17, %v13882_v31  ;;  %v7333_v14 = vadd.f32 %v13882_v31, %v7332_v39 }
 0x500   : > { %v8264_v18 = vadd.f32 %v8263_v26, %v8196_v42  ;;  %v8333_v41 = vadd.f32 %v8332_v50, %v8302_v37  ;;  %v7443_v46 = vmul.f32 %v7338_v34, %v7338_v34 }
 0x501   : > { %v7472_v24 = vadd.f32 %v7471_v2, %v7441_v52  ;;  %7375 = vst [vmem:[%s13888_s26 + $0x1e8] sm:$0xff] %v7341_v13  ;;  %7373 = vst [vmem:[%s13888_s26 + $0x1c8] sm:$0xff] %v7333_v14  ;;  %v7404_v15 = vadd.f32 %v7403_v33, %v7333_v14  ;;  %v7442_v27 = vmul.f32 %v7333_v14, %v7333_v14 }
 0x502   : > { %v8265_v4 = vadd.f32 %v8264_v18, %v8199_v23  ;;  %v8334_v19 = vadd.f32 %v8333_v41, %v8303_v8  ;;  %v7444_v3 = vmul.f32 %v7341_v13, %v7341_v13 }
 0x503   : > { %v7405_v20 = vadd.f32 %v7404_v15, %v7338_v34  ;;  %v7473_v38 = vadd.f32 %v7472_v24, %v7442_v27 }
 0x504   : > { %v8266_v53 = vrot.slane %v8265_v4, 4  ;;  %v8335_v35 = vadd.f32 %v8334_v19, %v8304_v51 }
 0x505   : > { %v7406_v25 = vadd.f32 %v7405_v20, %v7341_v13  ;;  %v7474_v10 = vadd.f32 %v7473_v38, %v7443_v46 }
 0x506   : > { %v8267_v31 = vadd.f32 %v8266_v53, %v8265_v4  ;;  %v8336_v43 = vrot.slane %v8335_v35, 4 }
 0x507   : > { %v7407_v61 = vrot.slane %v7406_v25, 4  ;;  %v7475_v30 = vadd.f32 %v7474_v10, %v7444_v3 }
 0x508   : > { %v8268_v36 = vrot.slane %v8267_v31, 2  ;;  %v8337_v6 = vadd.f32 %v8336_v43, %v8335_v35 }
 0x509   : > { %v7408_v32 = vadd.f32 %v7407_v61, %v7406_v25  ;;  %v7476_v9 = vrot.slane %v7475_v30, 4 }
 0x50a   : > { %v8269_v5 = vadd.f32 %v8268_v36, %v8267_v31  ;;  %v8338_v1 = vrot.slane %v8337_v6, 2 }
 0x50b   : > { %v7409_v47 = vrot.slane %v7408_v32, 2  ;;  %v7477_v54 = vadd.f32 %v7476_v9, %v7475_v30 }
 0x50c   : > { %v8339_v29 = vadd.f32 %v8338_v1, %v8337_v6  ;;  %v8270_v48 = vrot.slane %v8269_v5, 1 }
 0x50d   : > { %v7410_v7 = vadd.f32 %v7409_v47, %v7408_v32  ;;  %v7478_v40 = vrot.slane %v7477_v54, 2 }
 0x50e   : > { %v8340_v21 = vrot.slane %v8339_v29, 1  ;;  %v8271_v11 = vadd.f32 %v8270_v48, %v8269_v5 }
 0x50f   : > { %v7411_v62 = vrot.slane %v7410_v7, 1  ;;  %v7479_v22 = vadd.f32 %v7478_v40, %v7477_v54 }
 0x510   : > { %v8341_v55 = vadd.f32 %v8340_v21, %v8339_v29 }
 0x511   : > { %v7412_v28 = vadd.f32 %v7411_v62, %v7410_v7  ;;  %v7480_v12 = vrot.slane %v7479_v22, 1 }
 0x513   : > { %v7481_v2 = vadd.f32 %v7480_v12, %v7479_v22  ;;  %v8272_v59 = vadd.f32 %v8271_v11, %v7412_v28 }
 0x515   : > { %v8342_v42 = vadd.f32 %v8341_v55, %v7481_v2  ;;  %8343 = vst [vmem:[%s289_s8] sm:$0x1] %v8272_v59 }
 0x517   : > { %8344 = vst [vmem:[%s289_s8 + $0x1] sm:$0x1] %v8342_v42 }
 0x518 PF: > { %s18_s24 = sadd.s32 1, %s9323_s24  }
 0x519   : > { %p15_p4 = scmp.ge.s32.totalorder %s18_s24, 4  }
 0x51b   :  { %17 = sbr.rel (!%p15_p4) target bundleno = 1 (0x1), region = 93 }

</bundles_post_ra>
